<compile_context>
chip_gen: v5e
topology: v5e:2x2
jax: 0.10.0
libtpu: 0.0.40
codegen_flags: <defaults>
</compile_context>

<pallas_src>
import functools
import math

import jax
import jax.numpy as jnp
from jax.experimental import pallas as pl
from jax.experimental.pallas import tpu as pltpu

EPS = 1e-6
NUM_GROUPS = 32


def _round_up(x, m):
    return (x + m - 1) // m * m


def resnet_block_kernel(x_ref, tp_ref,
                        g1_ref, be1_ref, gm1_ref, w1_ref, b1_ref,
                        g2_ref, be2_ref, gm2_ref, w2_ref, b2_ref,
                        *rest, H, W, Wp, Cin, Cout, G, use_shortcut):
    if use_shortcut:
        ws_ref, bs_ref, o_ref, pad1_ref, pad2_ref = rest
    else:
        o_ref, pad1_ref, pad2_ref = rest

    HW = H * W
    f32 = jnp.float32

    x2d = x_ref[0].reshape(HW, Cin)          # (HW, Cin) f32, view (W % 8 == 0)

    # ---------------- GroupNorm (two-pass stats, folded scale/bias) ----------
    def group_norm(h2d, gm_ref, gamma_ref, beta_ref, C):
        cs = C // G
        n = f32(HW * cs)
        gm = gm_ref[...]                                    # (G, C) one-hot membership
        nt = (((1,), (1,)), ((), ()))                       # contract last dims (NT)
        s1 = jnp.sum(h2d, axis=0, keepdims=True)            # (1, C)
        mean_g = jax.lax.dot_general(s1, gm, nt, preferred_element_type=f32) / n
        mean_c = jnp.dot(mean_g, gm, preferred_element_type=f32)   # (1, C)
        centered = h2d - mean_c
        s2 = jnp.sum(centered * centered, axis=0, keepdims=True)   # two-pass var
        var_g = jax.lax.dot_general(s2, gm, nt, preferred_element_type=f32) / n
        var_c = jnp.dot(var_g, gm, preferred_element_type=f32)
        scale_c = gamma_ref[...] * jax.lax.rsqrt(var_c + EPS)
        return centered * scale_c + beta_ref[...]

    def swish(v):
        return v * jax.nn.sigmoid(v)

    # ------- 3x3 conv (pad=1) as aligned row-band bf16 MXU matmuls -----------
    def conv3x3(h2d, pad_ref, w_ref, Ci, Co):
        # Re-zero only the thin border strips (cheap, megacore-safe); the
        # interior is fully overwritten below.  Columns [W+2, Wp) stay zero
        # and double as extra right padding so all reshapes are free views.
        pad_ref[0:1, :, :] = jnp.zeros((1, Wp, Ci), f32)
        pad_ref[H + 1:H + 2, :, :] = jnp.zeros((1, Wp, Ci), f32)
        pad_ref[1:H + 1, 0:1, :] = jnp.zeros((H, 1, Ci), f32)
        pad_ref[1:H + 1, W + 1:Wp, :] = jnp.zeros((H, Wp - W - 1, Ci), f32)
        pad_ref[1:H + 1, 1:W + 1, :] = h2d.reshape(H, W, Ci)

        # Three aligned row bands (leading-axis slices), cast to bf16 once each.
        bands = [pad_ref[di:di + H, :, :].reshape(H * Wp, Ci).astype(jnp.bfloat16)
                 for di in range(3)]
        out = None
        for dj in range(3):
            t = None
            for di in range(3):
                r = jnp.dot(bands[di], w_ref[di * 3 + dj],
                            preferred_element_type=f32)        # (H*Wp, Co) f32
                t = r if t is None else t + r
            # realign this dj tap: output[h, w] needs band column (w + dj)
            t = t.reshape(H, Wp, Co)[:, dj:dj + W, :].reshape(HW, Co)
            out = t if out is None else out + t
        return out

    # ---------------- block ----------------
    h = swish(group_norm(x2d, gm1_ref, g1_ref, be1_ref, Cin))
    h = conv3x3(h, pad1_ref, w1_ref, Cin, Cout) + b1_ref[...]
    h = h + tp_ref[0]                            # temb projection (precomputed)
    h = swish(group_norm(h, gm2_ref, g2_ref, be2_ref, Cout))
    # dropout: identity in eval mode
    h = conv3x3(h, pad2_ref, w2_ref, Cout, Cout) + b2_ref[...]

    if use_shortcut:
        xs = jnp.dot(x2d.astype(jnp.bfloat16), ws_ref[...],
                     preferred_element_type=f32) + bs_ref[...]
    else:
        xs = x2d
    o_ref[0] = (xs + h).reshape(H, W, Cout)


def _vmem_limit_bytes():
    cap = 128 * 1024 * 1024
    try:
        cap = int(getattr(pltpu.get_tpu_info(), "vmem_capacity_bytes", cap))
    except Exception:
        pass
    # ~110 MiB on 128 MiB parts (v5e/v6e), ~56 MiB on 64 MiB parts (v7x)
    return max(32 * 1024 * 1024, min(cap - 8 * 1024 * 1024, 110 * 1024 * 1024))


def resnet_block_nhwc(x_nhwc, temb, params, *, num_groups=NUM_GROUPS,
                      buffered_weights=True):
    """NHWC-native fused ResnetBlock (preferred entry point: no relayouts)."""
    B, H, W, Cin = x_nhwc.shape
    Cout = params["b1"].shape[0]
    G = num_groups
    assert Cin % G == 0 and Cout % G == 0, "channels must divide num_groups"
    assert W % 8 == 0, "W must be a multiple of 8 (sublane-friendly reshapes)"
    # (best MXU / lane-dense-store efficiency when Cin, Cout are multiples of 128)
    use_shortcut = (Cin != Cout)
    Wp = _round_up(W + 2, 8)

    x = x_nhwc.astype(jnp.float32)

    def swish(v):
        return v * jax.nn.sigmoid(v)

    # temb projection hoisted out of the kernel (M=1 matmul is a bad MXU shape)
    tproj = (swish(temb.astype(jnp.float32)) @ params["wt"].T.astype(jnp.float32)
             + params["bt"].astype(jnp.float32)).reshape(B, 1, Cout)

    def gmat(C):  # (G, C) one-hot group membership (contiguous channel groups)
        g = jnp.arange(G)[:, None]
        c = jnp.arange(C)[None, :]
        return (c // (C // G) == g).astype(jnp.float32)

    def conv_w(w):  # PyTorch (Cout, Cin, 3, 3) -> (9, Cin, Cout) bf16
        co, ci = w.shape[0], w.shape[1]
        return jnp.transpose(w, (2, 3, 1, 0)).reshape(9, ci, co).astype(jnp.bfloat16)

    gm1, gm2 = gmat(Cin), gmat(Cout)
    w1 = conv_w(params["w1"]); b1 = params["b1"].reshape(1, Cout).astype(jnp.float32)
    w2 = conv_w(params["w2"]); b2 = params["b2"].reshape(1, Cout).astype(jnp.float32)
    g1 = params["gamma1"].reshape(1, Cin).astype(jnp.float32)
    be1 = params["beta1"].reshape(1, Cin).astype(jnp.float32)
    g2 = params["gamma2"].reshape(1, Cout).astype(jnp.float32)
    be2 = params["beta2"].reshape(1, Cout).astype(jnp.float32)

    def const_spec(shape):
        nd = len(shape)
        idx = lambda b, _nd=nd: (0,) * _nd
        if buffered_weights:
            # constants never change across the grid: single-buffer them
            return pl.BlockSpec(shape, idx, pipeline_mode=pl.Buffered(1))
        return pl.BlockSpec(shape, idx)

    in_specs = [
        pl.BlockSpec((1, H, W, Cin), lambda b: (b, 0, 0, 0)),   # x (NHWC)
        pl.BlockSpec((1, 1, Cout), lambda b: (b, 0, 0)),        # temb projection
        const_spec((1, Cin)), const_spec((1, Cin)), const_spec((G, Cin)),
        const_spec((9, Cin, Cout)), const_spec((1, Cout)),      # conv1
        const_spec((1, Cout)), const_spec((1, Cout)), const_spec((G, Cout)),
        const_spec((9, Cout, Cout)), const_spec((1, Cout)),     # conv2
    ]
    args = [x, tproj, g1, be1, gm1, w1, b1, g2, be2, gm2, w2, b2]
    if use_shortcut:
        ws = params["ws"].T.astype(jnp.bfloat16)                # (Cin, Cout)
        bs = params["bs"].reshape(1, Cout).astype(jnp.float32)
        in_specs += [const_spec((Cin, Cout)), const_spec((1, Cout))]
        args += [ws, bs]

    grid_spec = pltpu.PrefetchScalarGridSpec(
        num_scalar_prefetch=0,
        grid=(B,),
        in_specs=in_specs,
        out_specs=pl.BlockSpec((1, H, W, Cout), lambda b: (b, 0, 0, 0)),
        scratch_shapes=[
            pltpu.VMEM((H + 2, Wp, Cin), jnp.float32),   # padded act for conv1
            pltpu.VMEM((H + 2, Wp, Cout), jnp.float32),  # padded act for conv2
        ],
    )

    kernel = functools.partial(resnet_block_kernel, H=H, W=W, Wp=Wp, Cin=Cin,
                               Cout=Cout, G=G, use_shortcut=use_shortcut)

    return pl.pallas_call(
        kernel,
        out_shape=jax.ShapeDtypeStruct((B, H, W, Cout), jnp.float32),
        grid_spec=grid_spec,
        compiler_params=pltpu.CompilerParams(
            dimension_semantics=("parallel",),           # megacore over batch
            vmem_limit_bytes=_vmem_limit_bytes()),
    )(*args)


def resnet_block(x_nchw, temb, params, *, num_groups=NUM_GROUPS,
                 buffered_weights=True):
    """PyTorch-layout wrapper (NCHW in/out).  Production callers should use
    resnet_block_nhwc directly and stay NHWC end-to-end to avoid the two
    HBM relayout transposes below."""
    out = resnet_block_nhwc(jnp.transpose(x_nchw, (0, 2, 3, 1)), temb, params,
                            num_groups=num_groups,
                            buffered_weights=buffered_weights)
    return jnp.transpose(out, (0, 3, 1, 2))


def init_params(key, Cin, Cout, temb_ch):
    """Deterministic synthetic parameters in PyTorch-native layouts."""
    ks = jax.random.split(key, 12)

    def u(k, shape, fan_in):
        lim = 1.0 / math.sqrt(float(fan_in))
        return jax.random.uniform(k, shape, jnp.float32, -lim, lim)

    return {
        "gamma1": 1.0 + 0.1 * jax.random.normal(ks[0], (Cin,), jnp.float32),
        "beta1": 0.1 * jax.random.normal(ks[1], (Cin,), jnp.float32),
        "w1": u(ks[2], (Cout, Cin, 3, 3), Cin * 9),
        "b1": u(ks[3], (Cout,), Cin * 9),
        "wt": u(ks[4], (Cout, temb_ch), temb_ch),    # Linear(temb_ch -> Cout)
        "bt": u(ks[5], (Cout,), temb_ch),
        "gamma2": 1.0 + 0.1 * jax.random.normal(ks[6], (Cout,), jnp.float32),
        "beta2": 0.1 * jax.random.normal(ks[7], (Cout,), jnp.float32),
        "w2": u(ks[8], (Cout, Cout, 3, 3), Cout * 9),
        "b2": u(ks[9], (Cout,), Cout * 9),
        "ws": u(ks[10], (Cout, Cin), Cin),           # nin_shortcut 1x1 conv
        "bs": u(ks[11], (Cout,), Cin),
    }


def resnet_block_ref(x, temb, params, *, num_groups=NUM_GROUPS):
    """Pure-JAX f32 reference mirroring the PyTorch forward (eval mode)."""
    B, Cin, H, W = x.shape
    Cout = params["b1"].shape[0]

    def swish(v):
        return v * jax.nn.sigmoid(v)

    def gnorm(h, gamma, beta):
        Bc, C, Hh, Ww = h.shape
        G = num_groups
        hg = h.reshape(Bc, G, C // G, Hh, Ww)
        mean = jnp.mean(hg, axis=(2, 3, 4), keepdims=True)
        var = jnp.mean((hg - mean) ** 2, axis=(2, 3, 4), keepdims=True)
        hn = ((hg - mean) / jnp.sqrt(var + EPS)).reshape(Bc, C, Hh, Ww)
        return hn * gamma.reshape(1, C, 1, 1) + beta.reshape(1, C, 1, 1)

    def conv3(h, w, b):
        out = jax.lax.conv_general_dilated(
            h, w, window_strides=(1, 1), padding=((1, 1), (1, 1)),
            dimension_numbers=("NCHW", "OIHW", "NCHW"))
        return out + b.reshape(1, -1, 1, 1)

    h = swish(gnorm(x, params["gamma1"], params["beta1"]))
    h = conv3(h, params["w1"], params["b1"])
    h = h + (swish(temb) @ params["wt"].T + params["bt"])[:, :, None, None]
    h = swish(gnorm(h, params["gamma2"], params["beta2"]))
    # dropout: identity in eval mode
    h = conv3(h, params["w2"], params["b2"])
    if Cin != Cout:
        x = jnp.einsum("bihw,oi->bohw", x, params["ws"]) + params["bs"].reshape(1, -1, 1, 1)
    return x + h


if __name__ == "__main__":
    # Small shapes; channels must be divisible by 32 (GroupNorm groups), W % 8 == 0.
    # Cin != Cout exercises the nin_shortcut path.
    B, Cin, Cout, H, W, T = 2, 64, 128, 8, 8, 64
    key = jax.random.PRNGKey(0)
    kx, kt, kp = jax.random.split(key, 3)
    x = jax.random.normal(kx, (B, Cin, H, W), jnp.float32)
    temb = jax.random.normal(kt, (B, T), jnp.float32)
    params = init_params(kp, Cin, Cout, T)

    try:
        out = jax.block_until_ready(resnet_block(x, temb, params))
    except Exception:
        # Fallback: default (double-buffered) constant specs if pl.Buffered(1)
        # is not supported by this JAX/Mosaic version.
        out = jax.block_until_ready(
            resnet_block(x, temb, params, buffered_weights=False))

    ref = jax.block_until_ready(resnet_block_ref(x, temb, params))

    assert out.shape == (B, Cout, H, W)
    err = float(jnp.max(jnp.abs(out - ref)))
    assert err < 5e-2, f"max abs diff {err}"   # bf16 MXU operands vs f32 reference
    print("KERNEL_OK")
</pallas_src>

<mosaic_0001>
module attributes {stable_mosaic.version = 11 : i64} {
  func.func @resnet_block_kernel(%arg0: i32, %arg1: memref<1x8x8x64xf32, #tpu.memory_space<vmem>>, %arg2: memref<1x1x128xf32, #tpu.memory_space<vmem>>, %arg3: memref<1x64xf32, #tpu.memory_space<vmem>>, %arg4: memref<1x64xf32, #tpu.memory_space<vmem>>, %arg5: memref<32x64xf32, #tpu.memory_space<vmem>>, %arg6: memref<9x64x128xbf16, #tpu.memory_space<vmem>>, %arg7: memref<1x128xf32, #tpu.memory_space<vmem>>, %arg8: memref<1x128xf32, #tpu.memory_space<vmem>>, %arg9: memref<1x128xf32, #tpu.memory_space<vmem>>, %arg10: memref<32x128xf32, #tpu.memory_space<vmem>>, %arg11: memref<9x128x128xbf16, #tpu.memory_space<vmem>>, %arg12: memref<1x128xf32, #tpu.memory_space<vmem>>, %arg13: memref<64x128xbf16, #tpu.memory_space<vmem>>, %arg14: memref<1x128xf32, #tpu.memory_space<vmem>>, %arg15: memref<1x8x8x128xf32, #tpu.memory_space<vmem>>, %arg16: memref<10x16x64xf32, #tpu.memory_space<vmem>>, %arg17: memref<10x16x128xf32, #tpu.memory_space<vmem>>) attributes {dimension_semantics = [#tpu.dimension_semantics<parallel>], iteration_bounds = array<i64: 2>, scalar_prefetch = 0 : i64, scratch_operands = 2 : i64, tpu.core_type = #tpu.core_type<tc>, window_params = [{transform_indices = @transform_0, window_bounds = array<i64: 1, 8, 8, 64>}, {transform_indices = @transform_1, window_bounds = array<i64: 1, 1, 128>}, {pipeline_mode = #tpu.pipeline_mode<synchronous>, transform_indices = @transform_2, window_bounds = array<i64: 1, 64>}, {pipeline_mode = #tpu.pipeline_mode<synchronous>, transform_indices = @transform_3, window_bounds = array<i64: 1, 64>}, {pipeline_mode = #tpu.pipeline_mode<synchronous>, transform_indices = @transform_4, window_bounds = array<i64: 32, 64>}, {pipeline_mode = #tpu.pipeline_mode<synchronous>, transform_indices = @transform_5, window_bounds = array<i64: 9, 64, 128>}, {pipeline_mode = #tpu.pipeline_mode<synchronous>, transform_indices = @transform_6, window_bounds = array<i64: 1, 128>}, {pipeline_mode = #tpu.pipeline_mode<synchronous>, transform_indices = @transform_7, window_bounds = array<i64: 1, 128>}, {pipeline_mode = #tpu.pipeline_mode<synchronous>, transform_indices = @transform_8, window_bounds = array<i64: 1, 128>}, {pipeline_mode = #tpu.pipeline_mode<synchronous>, transform_indices = @transform_9, window_bounds = array<i64: 32, 128>}, {pipeline_mode = #tpu.pipeline_mode<synchronous>, transform_indices = @transform_10, window_bounds = array<i64: 9, 128, 128>}, {pipeline_mode = #tpu.pipeline_mode<synchronous>, transform_indices = @transform_11, window_bounds = array<i64: 1, 128>}, {pipeline_mode = #tpu.pipeline_mode<synchronous>, transform_indices = @transform_12, window_bounds = array<i64: 64, 128>}, {pipeline_mode = #tpu.pipeline_mode<synchronous>, transform_indices = @transform_13, window_bounds = array<i64: 1, 128>}, {transform_indices = @transform_14, window_bounds = array<i64: 1, 8, 8, 128>}]} {
    %c0 = arith.constant 0 : index
    %c0_0 = arith.constant 0 : index
    %c0_1 = arith.constant 0 : index
    %c0_2 = arith.constant 0 : index
    %0 = vector.load %arg1[%c0, %c0_0, %c0_1, %c0_2] : memref<1x8x8x64xf32, #tpu.memory_space<vmem>>, vector<1x8x8x64xf32>
    %1 = vector.shape_cast %0 : vector<1x8x8x64xf32> to vector<8x8x64xf32>
    %2 = vector.shape_cast %1 : vector<8x8x64xf32> to vector<64x64xf32>
    %c0_3 = arith.constant 0 : index
    %c0_4 = arith.constant 0 : index
    %3 = vector.load %arg5[%c0_3, %c0_4] : memref<32x64xf32, #tpu.memory_space<vmem>>, vector<32x64xf32>
    %cst = arith.constant dense<0.000000e+00> : vector<64xf32>
    %4 = vector.multi_reduction <add>, %2, %cst [0] : vector<64x64xf32> to vector<64xf32>
    %5 = vector.shape_cast %4 : vector<64xf32> to vector<1x64xf32>
    %cst_5 = arith.constant dense<0.000000e+00> : vector<1x32xf32>
    %6 = tpu.matmul %5, %3, %cst_5 {dimension_numbers = #tpu.dot_dimension_numbers<[1], [1], [0], [0], [0, 0, 1, 0], [], []>} : vector<1x64xf32>, vector<32x64xf32>, vector<1x32xf32> -> vector<1x32xf32>
    %cst_6 = arith.constant 1.280000e+02 : f32
    %7 = vector.broadcast %cst_6 : f32 to vector<1x32xf32>
    %8 = arith.divf %6, %7 : vector<1x32xf32>
    %cst_7 = arith.constant dense<0.000000e+00> : vector<1x64xf32>
    %9 = tpu.matmul %8, %3, %cst_7 {dimension_numbers = #tpu.dot_dimension_numbers<[1], [0], [0], [1], [0, 0, 1, 1], [], []>} : vector<1x32xf32>, vector<32x64xf32>, vector<1x64xf32> -> vector<1x64xf32>
    %10 = vector.broadcast %9 : vector<1x64xf32> to vector<64x64xf32>
    %11 = arith.subf %2, %10 : vector<64x64xf32>
    %12 = arith.mulf %11, %11 : vector<64x64xf32>
    %cst_8 = arith.constant dense<0.000000e+00> : vector<64xf32>
    %13 = vector.multi_reduction <add>, %12, %cst_8 [0] : vector<64x64xf32> to vector<64xf32>
    %14 = vector.shape_cast %13 : vector<64xf32> to vector<1x64xf32>
    %cst_9 = arith.constant dense<0.000000e+00> : vector<1x32xf32>
    %15 = tpu.matmul %14, %3, %cst_9 {dimension_numbers = #tpu.dot_dimension_numbers<[1], [1], [0], [0], [0, 0, 1, 0], [], []>} : vector<1x64xf32>, vector<32x64xf32>, vector<1x32xf32> -> vector<1x32xf32>
    %cst_10 = arith.constant 1.280000e+02 : f32
    %16 = vector.broadcast %cst_10 : f32 to vector<1x32xf32>
    %17 = arith.divf %15, %16 : vector<1x32xf32>
    %cst_11 = arith.constant dense<0.000000e+00> : vector<1x64xf32>
    %18 = tpu.matmul %17, %3, %cst_11 {dimension_numbers = #tpu.dot_dimension_numbers<[1], [0], [0], [1], [0, 0, 1, 1], [], []>} : vector<1x32xf32>, vector<32x64xf32>, vector<1x64xf32> -> vector<1x64xf32>
    %c0_12 = arith.constant 0 : index
    %c0_13 = arith.constant 0 : index
    %19 = vector.load %arg3[%c0_12, %c0_13] : memref<1x64xf32, #tpu.memory_space<vmem>>, vector<1x64xf32>
    %cst_14 = arith.constant 9.99999997E-7 : f32
    %20 = vector.broadcast %cst_14 : f32 to vector<1x64xf32>
    %21 = arith.addf %18, %20 : vector<1x64xf32>
    %22 = math.rsqrt %21 : vector<1x64xf32>
    %23 = arith.mulf %19, %22 : vector<1x64xf32>
    %24 = vector.broadcast %23 : vector<1x64xf32> to vector<64x64xf32>
    %25 = arith.mulf %11, %24 : vector<64x64xf32>
    %c0_15 = arith.constant 0 : index
    %c0_16 = arith.constant 0 : index
    %26 = vector.load %arg4[%c0_15, %c0_16] : memref<1x64xf32, #tpu.memory_space<vmem>>, vector<1x64xf32>
    %27 = vector.broadcast %26 : vector<1x64xf32> to vector<64x64xf32>
    %28 = arith.addf %25, %27 : vector<64x64xf32>
    %29 = arith.negf %28 : vector<64x64xf32>
    %30 = math.exp %29 : vector<64x64xf32>
    %cst_17 = arith.constant 1.000000e+00 : f32
    %31 = vector.broadcast %cst_17 : f32 to vector<64x64xf32>
    %32 = arith.addf %31, %30 : vector<64x64xf32>
    %33 = arith.divf %31, %32 : vector<64x64xf32>
    %34 = arith.mulf %28, %33 : vector<64x64xf32>
    %cst_18 = arith.constant 0.000000e+00 : f32
    %35 = vector.broadcast %cst_18 : f32 to vector<1x16x64xf32>
    %c0_19 = arith.constant 0 : index
    %c0_20 = arith.constant 0 : index
    %c0_21 = arith.constant 0 : index
    %36 = vector.load %arg16[%c0_19, %c0_20, %c0_21] : memref<10x16x64xf32, #tpu.memory_space<vmem>>, vector<1x16x64xf32>
    tpu.vector_store %arg16[%c0_19, %c0_20, %c0_21], %35 {strides = array<i32>} : memref<10x16x64xf32, #tpu.memory_space<vmem>>, vector<1x16x64xf32>,
    %cst_22 = arith.constant 0.000000e+00 : f32
    %37 = vector.broadcast %cst_22 : f32 to vector<1x16x64xf32>
    %c9 = arith.constant 9 : index
    %c0_23 = arith.constant 0 : index
    %c0_24 = arith.constant 0 : index
    %38 = vector.load %arg16[%c9, %c0_23, %c0_24] : memref<10x16x64xf32, #tpu.memory_space<vmem>>, vector<1x16x64xf32>
    tpu.vector_store %arg16[%c9, %c0_23, %c0_24], %37 {strides = array<i32>} : memref<10x16x64xf32, #tpu.memory_space<vmem>>, vector<1x16x64xf32>,
    %cst_25 = arith.constant 0.000000e+00 : f32
    %39 = vector.broadcast %cst_25 : f32 to vector<8x1x64xf32>
    %c1 = arith.constant 1 : index
    %c0_26 = arith.constant 0 : index
    %c0_27 = arith.constant 0 : index
    %40 = vector.load %arg16[%c1, %c0_26, %c0_27] : memref<10x16x64xf32, #tpu.memory_space<vmem>>, vector<8x1x64xf32>
    tpu.vector_store %arg16[%c1, %c0_26, %c0_27], %39 {strides = array<i32>} : memref<10x16x64xf32, #tpu.memory_space<vmem>>, vector<8x1x64xf32>,
    %cst_28 = arith.constant 0.000000e+00 : f32
    %41 = vector.broadcast %cst_28 : f32 to vector<8x7x64xf32>
    %c1_29 = arith.constant 1 : index
    %c9_30 = arith.constant 9 : index
    %c0_31 = arith.constant 0 : index
    %42 = vector.load %arg16[%c1_29, %c9_30, %c0_31] : memref<10x16x64xf32, #tpu.memory_space<vmem>>, vector<8x7x64xf32>
    tpu.vector_store %arg16[%c1_29, %c9_30, %c0_31], %41 {strides = array<i32>} : memref<10x16x64xf32, #tpu.memory_space<vmem>>, vector<8x7x64xf32>,
    %43 = vector.shape_cast %34 : vector<64x64xf32> to vector<8x8x64xf32>
    %c1_32 = arith.constant 1 : index
    %c1_33 = arith.constant 1 : index
    %c0_34 = arith.constant 0 : index
    %44 = vector.load %arg16[%c1_32, %c1_33, %c0_34] : memref<10x16x64xf32, #tpu.memory_space<vmem>>, vector<8x8x64xf32>
    tpu.vector_store %arg16[%c1_32, %c1_33, %c0_34], %43 {strides = array<i32>} : memref<10x16x64xf32, #tpu.memory_space<vmem>>, vector<8x8x64xf32>,
    %c0_35 = arith.constant 0 : index
    %c0_36 = arith.constant 0 : index
    %c0_37 = arith.constant 0 : index
    %45 = vector.load %arg16[%c0_35, %c0_36, %c0_37] : memref<10x16x64xf32, #tpu.memory_space<vmem>>, vector<8x16x64xf32>
    %46 = vector.shape_cast %45 : vector<8x16x64xf32> to vector<128x64xf32>
    %47 = arith.truncf %46 : vector<128x64xf32> to vector<128x64xbf16>
    %c1_38 = arith.constant 1 : index
    %c0_39 = arith.constant 0 : index
    %c0_40 = arith.constant 0 : index
    %48 = vector.load %arg16[%c1_38, %c0_39, %c0_40] : memref<10x16x64xf32, #tpu.memory_space<vmem>>, vector<8x16x64xf32>
    %49 = vector.shape_cast %48 : vector<8x16x64xf32> to vector<128x64xf32>
    %50 = arith.truncf %49 : vector<128x64xf32> to vector<128x64xbf16>
    %c2 = arith.constant 2 : index
    %c0_41 = arith.constant 0 : index
    %c0_42 = arith.constant 0 : index
    %51 = vector.load %arg16[%c2, %c0_41, %c0_42] : memref<10x16x64xf32, #tpu.memory_space<vmem>>, vector<8x16x64xf32>
    %52 = vector.shape_cast %51 : vector<8x16x64xf32> to vector<128x64xf32>
    %53 = arith.truncf %52 : vector<128x64xf32> to vector<128x64xbf16>
    %c0_43 = arith.constant 0 : index
    %c0_44 = arith.constant 0 : index
    %c0_45 = arith.constant 0 : index
    %54 = vector.load %arg6[%c0_43, %c0_44, %c0_45] : memref<9x64x128xbf16, #tpu.memory_space<vmem>>, vector<1x64x128xbf16>
    %55 = vector.shape_cast %54 : vector<1x64x128xbf16> to vector<64x128xbf16>
    %cst_46 = arith.constant dense<0.000000e+00> : vector<128x128xf32>
    %56 = tpu.matmul %47, %55, %cst_46 {dimension_numbers = #tpu.dot_dimension_numbers<[1], [0], [0], [1], [0, 0, 1, 1], [], []>} : vector<128x64xbf16>, vector<64x128xbf16>, vector<128x128xf32> -> vector<128x128xf32>
    %c3 = arith.constant 3 : index
    %c0_47 = arith.constant 0 : index
    %c0_48 = arith.constant 0 : index
    %57 = vector.load %arg6[%c3, %c0_47, %c0_48] : memref<9x64x128xbf16, #tpu.memory_space<vmem>>, vector<1x64x128xbf16>
    %58 = vector.shape_cast %57 : vector<1x64x128xbf16> to vector<64x128xbf16>
    %cst_49 = arith.constant dense<0.000000e+00> : vector<128x128xf32>
    %59 = tpu.matmul %50, %58, %cst_49 {dimension_numbers = #tpu.dot_dimension_numbers<[1], [0], [0], [1], [0, 0, 1, 1], [], []>} : vector<128x64xbf16>, vector<64x128xbf16>, vector<128x128xf32> -> vector<128x128xf32>
    %60 = arith.addf %56, %59 : vector<128x128xf32>
    %c6 = arith.constant 6 : index
    %c0_50 = arith.constant 0 : index
    %c0_51 = arith.constant 0 : index
    %61 = vector.load %arg6[%c6, %c0_50, %c0_51] : memref<9x64x128xbf16, #tpu.memory_space<vmem>>, vector<1x64x128xbf16>
    %62 = vector.shape_cast %61 : vector<1x64x128xbf16> to vector<64x128xbf16>
    %cst_52 = arith.constant dense<0.000000e+00> : vector<128x128xf32>
    %63 = tpu.matmul %53, %62, %cst_52 {dimension_numbers = #tpu.dot_dimension_numbers<[1], [0], [0], [1], [0, 0, 1, 1], [], []>} : vector<128x64xbf16>, vector<64x128xbf16>, vector<128x128xf32> -> vector<128x128xf32>
    %64 = arith.addf %60, %63 : vector<128x128xf32>
    %65 = vector.shape_cast %64 : vector<128x128xf32> to vector<8x16x128xf32>
    %66 = vector.extract_strided_slice %65 {offsets = [0, 0, 0], sizes = [8, 8, 128], strides = [1, 1, 1]} : vector<8x16x128xf32> to vector<8x8x128xf32>
    %67 = vector.shape_cast %66 : vector<8x8x128xf32> to vector<64x128xf32>
    %c1_53 = arith.constant 1 : index
    %c0_54 = arith.constant 0 : index
    %c0_55 = arith.constant 0 : index
    %68 = vector.load %arg6[%c1_53, %c0_54, %c0_55] : memref<9x64x128xbf16, #tpu.memory_space<vmem>>, vector<1x64x128xbf16>
    %69 = vector.shape_cast %68 : vector<1x64x128xbf16> to vector<64x128xbf16>
    %cst_56 = arith.constant dense<0.000000e+00> : vector<128x128xf32>
    %70 = tpu.matmul %47, %69, %cst_56 {dimension_numbers = #tpu.dot_dimension_numbers<[1], [0], [0], [1], [0, 0, 1, 1], [], []>} : vector<128x64xbf16>, vector<64x128xbf16>, vector<128x128xf32> -> vector<128x128xf32>
    %c4 = arith.constant 4 : index
    %c0_57 = arith.constant 0 : index
    %c0_58 = arith.constant 0 : index
    %71 = vector.load %arg6[%c4, %c0_57, %c0_58] : memref<9x64x128xbf16, #tpu.memory_space<vmem>>, vector<1x64x128xbf16>
    %72 = vector.shape_cast %71 : vector<1x64x128xbf16> to vector<64x128xbf16>
    %cst_59 = arith.constant dense<0.000000e+00> : vector<128x128xf32>
    %73 = tpu.matmul %50, %72, %cst_59 {dimension_numbers = #tpu.dot_dimension_numbers<[1], [0], [0], [1], [0, 0, 1, 1], [], []>} : vector<128x64xbf16>, vector<64x128xbf16>, vector<128x128xf32> -> vector<128x128xf32>
    %74 = arith.addf %70, %73 : vector<128x128xf32>
    %c7 = arith.constant 7 : index
    %c0_60 = arith.constant 0 : index
    %c0_61 = arith.constant 0 : index
    %75 = vector.load %arg6[%c7, %c0_60, %c0_61] : memref<9x64x128xbf16, #tpu.memory_space<vmem>>, vector<1x64x128xbf16>
    %76 = vector.shape_cast %75 : vector<1x64x128xbf16> to vector<64x128xbf16>
    %cst_62 = arith.constant dense<0.000000e+00> : vector<128x128xf32>
    %77 = tpu.matmul %53, %76, %cst_62 {dimension_numbers = #tpu.dot_dimension_numbers<[1], [0], [0], [1], [0, 0, 1, 1], [], []>} : vector<128x64xbf16>, vector<64x128xbf16>, vector<128x128xf32> -> vector<128x128xf32>
    %78 = arith.addf %74, %77 : vector<128x128xf32>
    %79 = vector.shape_cast %78 : vector<128x128xf32> to vector<8x16x128xf32>
    %80 = vector.extract_strided_slice %79 {offsets = [0, 1, 0], sizes = [8, 8, 128], strides = [1, 1, 1]} : vector<8x16x128xf32> to vector<8x8x128xf32>
    %81 = vector.shape_cast %80 : vector<8x8x128xf32> to vector<64x128xf32>
    %82 = arith.addf %67, %81 : vector<64x128xf32>
    %c2_63 = arith.constant 2 : index
    %c0_64 = arith.constant 0 : index
    %c0_65 = arith.constant 0 : index
    %83 = vector.load %arg6[%c2_63, %c0_64, %c0_65] : memref<9x64x128xbf16, #tpu.memory_space<vmem>>, vector<1x64x128xbf16>
    %84 = vector.shape_cast %83 : vector<1x64x128xbf16> to vector<64x128xbf16>
    %cst_66 = arith.constant dense<0.000000e+00> : vector<128x128xf32>
    %85 = tpu.matmul %47, %84, %cst_66 {dimension_numbers = #tpu.dot_dimension_numbers<[1], [0], [0], [1], [0, 0, 1, 1], [], []>} : vector<128x64xbf16>, vector<64x128xbf16>, vector<128x128xf32> -> vector<128x128xf32>
    %c5 = arith.constant 5 : index
    %c0_67 = arith.constant 0 : index
    %c0_68 = arith.constant 0 : index
    %86 = vector.load %arg6[%c5, %c0_67, %c0_68] : memref<9x64x128xbf16, #tpu.memory_space<vmem>>, vector<1x64x128xbf16>
    %87 = vector.shape_cast %86 : vector<1x64x128xbf16> to vector<64x128xbf16>
    %cst_69 = arith.constant dense<0.000000e+00> : vector<128x128xf32>
    %88 = tpu.matmul %50, %87, %cst_69 {dimension_numbers = #tpu.dot_dimension_numbers<[1], [0], [0], [1], [0, 0, 1, 1], [], []>} : vector<128x64xbf16>, vector<64x128xbf16>, vector<128x128xf32> -> vector<128x128xf32>
    %89 = arith.addf %85, %88 : vector<128x128xf32>
    %c8 = arith.constant 8 : index
    %c0_70 = arith.constant 0 : index
    %c0_71 = arith.constant 0 : index
    %90 = vector.load %arg6[%c8, %c0_70, %c0_71] : memref<9x64x128xbf16, #tpu.memory_space<vmem>>, vector<1x64x128xbf16>
    %91 = vector.shape_cast %90 : vector<1x64x128xbf16> to vector<64x128xbf16>
    %cst_72 = arith.constant dense<0.000000e+00> : vector<128x128xf32>
    %92 = tpu.matmul %53, %91, %cst_72 {dimension_numbers = #tpu.dot_dimension_numbers<[1], [0], [0], [1], [0, 0, 1, 1], [], []>} : vector<128x64xbf16>, vector<64x128xbf16>, vector<128x128xf32> -> vector<128x128xf32>
    %93 = arith.addf %89, %92 : vector<128x128xf32>
    %94 = vector.shape_cast %93 : vector<128x128xf32> to vector<8x16x128xf32>
    %95 = vector.extract_strided_slice %94 {offsets = [0, 2, 0], sizes = [8, 8, 128], strides = [1, 1, 1]} : vector<8x16x128xf32> to vector<8x8x128xf32>
    %96 = vector.shape_cast %95 : vector<8x8x128xf32> to vector<64x128xf32>
    %97 = arith.addf %82, %96 : vector<64x128xf32>
    %c0_73 = arith.constant 0 : index
    %c0_74 = arith.constant 0 : index
    %98 = vector.load %arg7[%c0_73, %c0_74] : memref<1x128xf32, #tpu.memory_space<vmem>>, vector<1x128xf32>
    %99 = vector.broadcast %98 : vector<1x128xf32> to vector<64x128xf32>
    %100 = arith.addf %97, %99 : vector<64x128xf32>
    %c0_75 = arith.constant 0 : index
    %c0_76 = arith.constant 0 : index
    %c0_77 = arith.constant 0 : index
    %101 = vector.load %arg2[%c0_75, %c0_76, %c0_77] : memref<1x1x128xf32, #tpu.memory_space<vmem>>, vector<1x1x128xf32>
    %102 = vector.shape_cast %101 : vector<1x1x128xf32> to vector<1x128xf32>
    %103 = vector.broadcast %102 : vector<1x128xf32> to vector<64x128xf32>
    %104 = arith.addf %100, %103 : vector<64x128xf32>
    %c0_78 = arith.constant 0 : index
    %c0_79 = arith.constant 0 : index
    %105 = vector.load %arg10[%c0_78, %c0_79] : memref<32x128xf32, #tpu.memory_space<vmem>>, vector<32x128xf32>
    %cst_80 = arith.constant dense<0.000000e+00> : vector<128xf32>
    %106 = vector.multi_reduction <add>, %104, %cst_80 [0] : vector<64x128xf32> to vector<128xf32>
    %107 = vector.shape_cast %106 : vector<128xf32> to vector<1x128xf32>
    %cst_81 = arith.constant dense<0.000000e+00> : vector<1x32xf32>
    %108 = tpu.matmul %107, %105, %cst_81 {dimension_numbers = #tpu.dot_dimension_numbers<[1], [1], [0], [0], [0, 0, 1, 0], [], []>} : vector<1x128xf32>, vector<32x128xf32>, vector<1x32xf32> -> vector<1x32xf32>
    %cst_82 = arith.constant 2.560000e+02 : f32
    %109 = vector.broadcast %cst_82 : f32 to vector<1x32xf32>
    %110 = arith.divf %108, %109 : vector<1x32xf32>
    %cst_83 = arith.constant dense<0.000000e+00> : vector<1x128xf32>
    %111 = tpu.matmul %110, %105, %cst_83 {dimension_numbers = #tpu.dot_dimension_numbers<[1], [0], [0], [1], [0, 0, 1, 1], [], []>} : vector<1x32xf32>, vector<32x128xf32>, vector<1x128xf32> -> vector<1x128xf32>
    %112 = vector.broadcast %111 : vector<1x128xf32> to vector<64x128xf32>
    %113 = arith.subf %104, %112 : vector<64x128xf32>
    %114 = arith.mulf %113, %113 : vector<64x128xf32>
    %cst_84 = arith.constant dense<0.000000e+00> : vector<128xf32>
    %115 = vector.multi_reduction <add>, %114, %cst_84 [0] : vector<64x128xf32> to vector<128xf32>
    %116 = vector.shape_cast %115 : vector<128xf32> to vector<1x128xf32>
    %cst_85 = arith.constant dense<0.000000e+00> : vector<1x32xf32>
    %117 = tpu.matmul %116, %105, %cst_85 {dimension_numbers = #tpu.dot_dimension_numbers<[1], [1], [0], [0], [0, 0, 1, 0], [], []>} : vector<1x128xf32>, vector<32x128xf32>, vector<1x32xf32> -> vector<1x32xf32>
    %cst_86 = arith.constant 2.560000e+02 : f32
    %118 = vector.broadcast %cst_86 : f32 to vector<1x32xf32>
    %119 = arith.divf %117, %118 : vector<1x32xf32>
    %cst_87 = arith.constant dense<0.000000e+00> : vector<1x128xf32>
    %120 = tpu.matmul %119, %105, %cst_87 {dimension_numbers = #tpu.dot_dimension_numbers<[1], [0], [0], [1], [0, 0, 1, 1], [], []>} : vector<1x32xf32>, vector<32x128xf32>, vector<1x128xf32> -> vector<1x128xf32>
    %c0_88 = arith.constant 0 : index
    %c0_89 = arith.constant 0 : index
    %121 = vector.load %arg8[%c0_88, %c0_89] : memref<1x128xf32, #tpu.memory_space<vmem>>, vector<1x128xf32>
    %cst_90 = arith.constant 9.99999997E-7 : f32
    %122 = vector.broadcast %cst_90 : f32 to vector<1x128xf32>
    %123 = arith.addf %120, %122 : vector<1x128xf32>
    %124 = math.rsqrt %123 : vector<1x128xf32>
    %125 = arith.mulf %121, %124 : vector<1x128xf32>
    %126 = vector.broadcast %125 : vector<1x128xf32> to vector<64x128xf32>
    %127 = arith.mulf %113, %126 : vector<64x128xf32>
    %c0_91 = arith.constant 0 : index
    %c0_92 = arith.constant 0 : index
    %128 = vector.load %arg9[%c0_91, %c0_92] : memref<1x128xf32, #tpu.memory_space<vmem>>, vector<1x128xf32>
    %129 = vector.broadcast %128 : vector<1x128xf32> to vector<64x128xf32>
    %130 = arith.addf %127, %129 : vector<64x128xf32>
    %131 = arith.negf %130 : vector<64x128xf32>
    %132 = math.exp %131 : vector<64x128xf32>
    %cst_93 = arith.constant 1.000000e+00 : f32
    %133 = vector.broadcast %cst_93 : f32 to vector<64x128xf32>
    %134 = arith.addf %133, %132 : vector<64x128xf32>
    %135 = arith.divf %133, %134 : vector<64x128xf32>
    %136 = arith.mulf %130, %135 : vector<64x128xf32>
    %cst_94 = arith.constant 0.000000e+00 : f32
    %137 = vector.broadcast %cst_94 : f32 to vector<1x16x128xf32>
    %c0_95 = arith.constant 0 : index
    %c0_96 = arith.constant 0 : index
    %c0_97 = arith.constant 0 : index
    %138 = vector.load %arg17[%c0_95, %c0_96, %c0_97] : memref<10x16x128xf32, #tpu.memory_space<vmem>>, vector<1x16x128xf32>
    tpu.vector_store %arg17[%c0_95, %c0_96, %c0_97], %137 {strides = array<i32>} : memref<10x16x128xf32, #tpu.memory_space<vmem>>, vector<1x16x128xf32>,
    %cst_98 = arith.constant 0.000000e+00 : f32
    %139 = vector.broadcast %cst_98 : f32 to vector<1x16x128xf32>
    %c9_99 = arith.constant 9 : index
    %c0_100 = arith.constant 0 : index
    %c0_101 = arith.constant 0 : index
    %140 = vector.load %arg17[%c9_99, %c0_100, %c0_101] : memref<10x16x128xf32, #tpu.memory_space<vmem>>, vector<1x16x128xf32>
    tpu.vector_store %arg17[%c9_99, %c0_100, %c0_101], %139 {strides = array<i32>} : memref<10x16x128xf32, #tpu.memory_space<vmem>>, vector<1x16x128xf32>,
    %cst_102 = arith.constant 0.000000e+00 : f32
    %141 = vector.broadcast %cst_102 : f32 to vector<8x1x128xf32>
    %c1_103 = arith.constant 1 : index
    %c0_104 = arith.constant 0 : index
    %c0_105 = arith.constant 0 : index
    %142 = vector.load %arg17[%c1_103, %c0_104, %c0_105] : memref<10x16x128xf32, #tpu.memory_space<vmem>>, vector<8x1x128xf32>
    tpu.vector_store %arg17[%c1_103, %c0_104, %c0_105], %141 {strides = array<i32>} : memref<10x16x128xf32, #tpu.memory_space<vmem>>, vector<8x1x128xf32>,
    %cst_106 = arith.constant 0.000000e+00 : f32
    %143 = vector.broadcast %cst_106 : f32 to vector<8x7x128xf32>
    %c1_107 = arith.constant 1 : index
    %c9_108 = arith.constant 9 : index
    %c0_109 = arith.constant 0 : index
    %144 = vector.load %arg17[%c1_107, %c9_108, %c0_109] : memref<10x16x128xf32, #tpu.memory_space<vmem>>, vector<8x7x128xf32>
    tpu.vector_store %arg17[%c1_107, %c9_108, %c0_109], %143 {strides = array<i32>} : memref<10x16x128xf32, #tpu.memory_space<vmem>>, vector<8x7x128xf32>,
    %145 = vector.shape_cast %136 : vector<64x128xf32> to vector<8x8x128xf32>
    %c1_110 = arith.constant 1 : index
    %c1_111 = arith.constant 1 : index
    %c0_112 = arith.constant 0 : index
    %146 = vector.load %arg17[%c1_110, %c1_111, %c0_112] : memref<10x16x128xf32, #tpu.memory_space<vmem>>, vector<8x8x128xf32>
    tpu.vector_store %arg17[%c1_110, %c1_111, %c0_112], %145 {strides = array<i32>} : memref<10x16x128xf32, #tpu.memory_space<vmem>>, vector<8x8x128xf32>,
    %c0_113 = arith.constant 0 : index
    %c0_114 = arith.constant 0 : index
    %c0_115 = arith.constant 0 : index
    %147 = vector.load %arg17[%c0_113, %c0_114, %c0_115] : memref<10x16x128xf32, #tpu.memory_space<vmem>>, vector<8x16x128xf32>
    %148 = vector.shape_cast %147 : vector<8x16x128xf32> to vector<128x128xf32>
    %149 = arith.truncf %148 : vector<128x128xf32> to vector<128x128xbf16>
    %c1_116 = arith.constant 1 : index
    %c0_117 = arith.constant 0 : index
    %c0_118 = arith.constant 0 : index
    %150 = vector.load %arg17[%c1_116, %c0_117, %c0_118] : memref<10x16x128xf32, #tpu.memory_space<vmem>>, vector<8x16x128xf32>
    %151 = vector.shape_cast %150 : vector<8x16x128xf32> to vector<128x128xf32>
    %152 = arith.truncf %151 : vector<128x128xf32> to vector<128x128xbf16>
    %c2_119 = arith.constant 2 : index
    %c0_120 = arith.constant 0 : index
    %c0_121 = arith.constant 0 : index
    %153 = vector.load %arg17[%c2_119, %c0_120, %c0_121] : memref<10x16x128xf32, #tpu.memory_space<vmem>>, vector<8x16x128xf32>
    %154 = vector.shape_cast %153 : vector<8x16x128xf32> to vector<128x128xf32>
    %155 = arith.truncf %154 : vector<128x128xf32> to vector<128x128xbf16>
    %c0_122 = arith.constant 0 : index
    %c0_123 = arith.constant 0 : index
    %c0_124 = arith.constant 0 : index
    %156 = vector.load %arg11[%c0_122, %c0_123, %c0_124] : memref<9x128x128xbf16, #tpu.memory_space<vmem>>, vector<1x128x128xbf16>
    %157 = vector.shape_cast %156 : vector<1x128x128xbf16> to vector<128x128xbf16>
    %cst_125 = arith.constant dense<0.000000e+00> : vector<128x128xf32>
    %158 = tpu.matmul %149, %157, %cst_125 {dimension_numbers = #tpu.dot_dimension_numbers<[1], [0], [0], [1], [0, 0, 1, 1], [], []>} : vector<128x128xbf16>, vector<128x128xbf16>, vector<128x128xf32> -> vector<128x128xf32>
    %c3_126 = arith.constant 3 : index
    %c0_127 = arith.constant 0 : index
    %c0_128 = arith.constant 0 : index
    %159 = vector.load %arg11[%c3_126, %c0_127, %c0_128] : memref<9x128x128xbf16, #tpu.memory_space<vmem>>, vector<1x128x128xbf16>
    %160 = vector.shape_cast %159 : vector<1x128x128xbf16> to vector<128x128xbf16>
    %cst_129 = arith.constant dense<0.000000e+00> : vector<128x128xf32>
    %161 = tpu.matmul %152, %160, %cst_129 {dimension_numbers = #tpu.dot_dimension_numbers<[1], [0], [0], [1], [0, 0, 1, 1], [], []>} : vector<128x128xbf16>, vector<128x128xbf16>, vector<128x128xf32> -> vector<128x128xf32>
    %162 = arith.addf %158, %161 : vector<128x128xf32>
    %c6_130 = arith.constant 6 : index
    %c0_131 = arith.constant 0 : index
    %c0_132 = arith.constant 0 : index
    %163 = vector.load %arg11[%c6_130, %c0_131, %c0_132] : memref<9x128x128xbf16, #tpu.memory_space<vmem>>, vector<1x128x128xbf16>
    %164 = vector.shape_cast %163 : vector<1x128x128xbf16> to vector<128x128xbf16>
    %cst_133 = arith.constant dense<0.000000e+00> : vector<128x128xf32>
    %165 = tpu.matmul %155, %164, %cst_133 {dimension_numbers = #tpu.dot_dimension_numbers<[1], [0], [0], [1], [0, 0, 1, 1], [], []>} : vector<128x128xbf16>, vector<128x128xbf16>, vector<128x128xf32> -> vector<128x128xf32>
    %166 = arith.addf %162, %165 : vector<128x128xf32>
    %167 = vector.shape_cast %166 : vector<128x128xf32> to vector<8x16x128xf32>
    %168 = vector.extract_strided_slice %167 {offsets = [0, 0, 0], sizes = [8, 8, 128], strides = [1, 1, 1]} : vector<8x16x128xf32> to vector<8x8x128xf32>
    %169 = vector.shape_cast %168 : vector<8x8x128xf32> to vector<64x128xf32>
    %c1_134 = arith.constant 1 : index
    %c0_135 = arith.constant 0 : index
    %c0_136 = arith.constant 0 : index
    %170 = vector.load %arg11[%c1_134, %c0_135, %c0_136] : memref<9x128x128xbf16, #tpu.memory_space<vmem>>, vector<1x128x128xbf16>
    %171 = vector.shape_cast %170 : vector<1x128x128xbf16> to vector<128x128xbf16>
    %cst_137 = arith.constant dense<0.000000e+00> : vector<128x128xf32>
    %172 = tpu.matmul %149, %171, %cst_137 {dimension_numbers = #tpu.dot_dimension_numbers<[1], [0], [0], [1], [0, 0, 1, 1], [], []>} : vector<128x128xbf16>, vector<128x128xbf16>, vector<128x128xf32> -> vector<128x128xf32>
    %c4_138 = arith.constant 4 : index
    %c0_139 = arith.constant 0 : index
    %c0_140 = arith.constant 0 : index
    %173 = vector.load %arg11[%c4_138, %c0_139, %c0_140] : memref<9x128x128xbf16, #tpu.memory_space<vmem>>, vector<1x128x128xbf16>
    %174 = vector.shape_cast %173 : vector<1x128x128xbf16> to vector<128x128xbf16>
    %cst_141 = arith.constant dense<0.000000e+00> : vector<128x128xf32>
    %175 = tpu.matmul %152, %174, %cst_141 {dimension_numbers = #tpu.dot_dimension_numbers<[1], [0], [0], [1], [0, 0, 1, 1], [], []>} : vector<128x128xbf16>, vector<128x128xbf16>, vector<128x128xf32> -> vector<128x128xf32>
    %176 = arith.addf %172, %175 : vector<128x128xf32>
    %c7_142 = arith.constant 7 : index
    %c0_143 = arith.constant 0 : index
    %c0_144 = arith.constant 0 : index
    %177 = vector.load %arg11[%c7_142, %c0_143, %c0_144] : memref<9x128x128xbf16, #tpu.memory_space<vmem>>, vector<1x128x128xbf16>
    %178 = vector.shape_cast %177 : vector<1x128x128xbf16> to vector<128x128xbf16>
    %cst_145 = arith.constant dense<0.000000e+00> : vector<128x128xf32>
    %179 = tpu.matmul %155, %178, %cst_145 {dimension_numbers = #tpu.dot_dimension_numbers<[1], [0], [0], [1], [0, 0, 1, 1], [], []>} : vector<128x128xbf16>, vector<128x128xbf16>, vector<128x128xf32> -> vector<128x128xf32>
    %180 = arith.addf %176, %179 : vector<128x128xf32>
    %181 = vector.shape_cast %180 : vector<128x128xf32> to vector<8x16x128xf32>
    %182 = vector.extract_strided_slice %181 {offsets = [0, 1, 0], sizes = [8, 8, 128], strides = [1, 1, 1]} : vector<8x16x128xf32> to vector<8x8x128xf32>
    %183 = vector.shape_cast %182 : vector<8x8x128xf32> to vector<64x128xf32>
    %184 = arith.addf %169, %183 : vector<64x128xf32>
    %c2_146 = arith.constant 2 : index
    %c0_147 = arith.constant 0 : index
    %c0_148 = arith.constant 0 : index
    %185 = vector.load %arg11[%c2_146, %c0_147, %c0_148] : memref<9x128x128xbf16, #tpu.memory_space<vmem>>, vector<1x128x128xbf16>
    %186 = vector.shape_cast %185 : vector<1x128x128xbf16> to vector<128x128xbf16>
    %cst_149 = arith.constant dense<0.000000e+00> : vector<128x128xf32>
    %187 = tpu.matmul %149, %186, %cst_149 {dimension_numbers = #tpu.dot_dimension_numbers<[1], [0], [0], [1], [0, 0, 1, 1], [], []>} : vector<128x128xbf16>, vector<128x128xbf16>, vector<128x128xf32> -> vector<128x128xf32>
    %c5_150 = arith.constant 5 : index
    %c0_151 = arith.constant 0 : index
    %c0_152 = arith.constant 0 : index
    %188 = vector.load %arg11[%c5_150, %c0_151, %c0_152] : memref<9x128x128xbf16, #tpu.memory_space<vmem>>, vector<1x128x128xbf16>
    %189 = vector.shape_cast %188 : vector<1x128x128xbf16> to vector<128x128xbf16>
    %cst_153 = arith.constant dense<0.000000e+00> : vector<128x128xf32>
    %190 = tpu.matmul %152, %189, %cst_153 {dimension_numbers = #tpu.dot_dimension_numbers<[1], [0], [0], [1], [0, 0, 1, 1], [], []>} : vector<128x128xbf16>, vector<128x128xbf16>, vector<128x128xf32> -> vector<128x128xf32>
    %191 = arith.addf %187, %190 : vector<128x128xf32>
    %c8_154 = arith.constant 8 : index
    %c0_155 = arith.constant 0 : index
    %c0_156 = arith.constant 0 : index
    %192 = vector.load %arg11[%c8_154, %c0_155, %c0_156] : memref<9x128x128xbf16, #tpu.memory_space<vmem>>, vector<1x128x128xbf16>
    %193 = vector.shape_cast %192 : vector<1x128x128xbf16> to vector<128x128xbf16>
    %cst_157 = arith.constant dense<0.000000e+00> : vector<128x128xf32>
    %194 = tpu.matmul %155, %193, %cst_157 {dimension_numbers = #tpu.dot_dimension_numbers<[1], [0], [0], [1], [0, 0, 1, 1], [], []>} : vector<128x128xbf16>, vector<128x128xbf16>, vector<128x128xf32> -> vector<128x128xf32>
    %195 = arith.addf %191, %194 : vector<128x128xf32>
    %196 = vector.shape_cast %195 : vector<128x128xf32> to vector<8x16x128xf32>
    %197 = vector.extract_strided_slice %196 {offsets = [0, 2, 0], sizes = [8, 8, 128], strides = [1, 1, 1]} : vector<8x16x128xf32> to vector<8x8x128xf32>
    %198 = vector.shape_cast %197 : vector<8x8x128xf32> to vector<64x128xf32>
    %199 = arith.addf %184, %198 : vector<64x128xf32>
    %c0_158 = arith.constant 0 : index
    %c0_159 = arith.constant 0 : index
    %200 = vector.load %arg12[%c0_158, %c0_159] : memref<1x128xf32, #tpu.memory_space<vmem>>, vector<1x128xf32>
    %201 = vector.broadcast %200 : vector<1x128xf32> to vector<64x128xf32>
    %202 = arith.addf %199, %201 : vector<64x128xf32>
    %203 = arith.truncf %2 : vector<64x64xf32> to vector<64x64xbf16>
    %c0_160 = arith.constant 0 : index
    %c0_161 = arith.constant 0 : index
    %204 = vector.load %arg13[%c0_160, %c0_161] : memref<64x128xbf16, #tpu.memory_space<vmem>>, vector<64x128xbf16>
    %cst_162 = arith.constant dense<0.000000e+00> : vector<64x128xf32>
    %205 = tpu.matmul %203, %204, %cst_162 {dimension_numbers = #tpu.dot_dimension_numbers<[1], [0], [0], [1], [0, 0, 1, 1], [], []>} : vector<64x64xbf16>, vector<64x128xbf16>, vector<64x128xf32> -> vector<64x128xf32>
    %c0_163 = arith.constant 0 : index
    %c0_164 = arith.constant 0 : index
    %206 = vector.load %arg14[%c0_163, %c0_164] : memref<1x128xf32, #tpu.memory_space<vmem>>, vector<1x128xf32>
    %207 = vector.broadcast %206 : vector<1x128xf32> to vector<64x128xf32>
    %208 = arith.addf %205, %207 : vector<64x128xf32>
    %209 = arith.addf %208, %202 : vector<64x128xf32>
    %210 = vector.shape_cast %209 : vector<64x128xf32> to vector<8x8x128xf32>
    %c0_165 = arith.constant 0 : index
    %c0_166 = arith.constant 0 : index
    %c0_167 = arith.constant 0 : index
    %c0_168 = arith.constant 0 : index
    %211 = vector.load %arg15[%c0_165, %c0_166, %c0_167, %c0_168] : memref<1x8x8x128xf32, #tpu.memory_space<vmem>>, vector<1x8x8x128xf32>
    %212 = vector.shape_cast %211 : vector<1x8x8x128xf32> to vector<8x8x128xf32>
    %213 = vector.shape_cast %210 : vector<8x8x128xf32> to vector<1x8x8x128xf32>
    tpu.vector_store %arg15[%c0_165, %c0_166, %c0_167, %c0_168], %213 {strides = array<i32>} : memref<1x8x8x128xf32, #tpu.memory_space<vmem>>, vector<1x8x8x128xf32>,
    return
  }
  func.func @transform_0(%arg0: i32) -> (i32, i32, i32, i32) {
    %c0_i32 = arith.constant 0 : i32
    %c0_i32_0 = arith.constant 0 : i32
    %c0_i32_1 = arith.constant 0 : i32
    %c0_i32_2 = arith.constant 0 : i32
    return %arg0, %c0_i32, %c0_i32_0, %c0_i32_1 : i32, i32, i32, i32
  }
  func.func @transform_1(%arg0: i32) -> (i32, i32, i32) {
    %c0_i32 = arith.constant 0 : i32
    %c0_i32_0 = arith.constant 0 : i32
    %c0_i32_1 = arith.constant 0 : i32
    return %arg0, %c0_i32, %c0_i32_0 : i32, i32, i32
  }
  func.func @transform_2(%arg0: i32) -> (i32, i32) {
    %c0_i32 = arith.constant 0 : i32
    %c0_i32_0 = arith.constant 0 : i32
    %c0_i32_1 = arith.constant 0 : i32
    return %c0_i32, %c0_i32_0 : i32, i32
  }
  func.func @transform_3(%arg0: i32) -> (i32, i32) {
    %c0_i32 = arith.constant 0 : i32
    %c0_i32_0 = arith.constant 0 : i32
    %c0_i32_1 = arith.constant 0 : i32
    return %c0_i32, %c0_i32_0 : i32, i32
  }
  func.func @transform_4(%arg0: i32) -> (i32, i32) {
    %c0_i32 = arith.constant 0 : i32
    %c0_i32_0 = arith.constant 0 : i32
    %c0_i32_1 = arith.constant 0 : i32
    return %c0_i32, %c0_i32_0 : i32, i32
  }
  func.func @transform_5(%arg0: i32) -> (i32, i32, i32) {
    %c0_i32 = arith.constant 0 : i32
    %c0_i32_0 = arith.constant 0 : i32
    %c0_i32_1 = arith.constant 0 : i32
    %c0_i32_2 = arith.constant 0 : i32
    return %c0_i32, %c0_i32_0, %c0_i32_1 : i32, i32, i32
  }
  func.func @transform_6(%arg0: i32) -> (i32, i32) {
    %c0_i32 = arith.constant 0 : i32
    %c0_i32_0 = arith.constant 0 : i32
    %c0_i32_1 = arith.constant 0 : i32
    return %c0_i32, %c0_i32_0 : i32, i32
  }
  func.func @transform_7(%arg0: i32) -> (i32, i32) {
    %c0_i32 = arith.constant 0 : i32
    %c0_i32_0 = arith.constant 0 : i32
    %c0_i32_1 = arith.constant 0 : i32
    return %c0_i32, %c0_i32_0 : i32, i32
  }
  func.func @transform_8(%arg0: i32) -> (i32, i32) {
    %c0_i32 = arith.constant 0 : i32
    %c0_i32_0 = arith.constant 0 : i32
    %c0_i32_1 = arith.constant 0 : i32
    return %c0_i32, %c0_i32_0 : i32, i32
  }
  func.func @transform_9(%arg0: i32) -> (i32, i32) {
    %c0_i32 = arith.constant 0 : i32
    %c0_i32_0 = arith.constant 0 : i32
    %c0_i32_1 = arith.constant 0 : i32
    return %c0_i32, %c0_i32_0 : i32, i32
  }
  func.func @transform_10(%arg0: i32) -> (i32, i32, i32) {
    %c0_i32 = arith.constant 0 : i32
    %c0_i32_0 = arith.constant 0 : i32
    %c0_i32_1 = arith.constant 0 : i32
    %c0_i32_2 = arith.constant 0 : i32
    return %c0_i32, %c0_i32_0, %c0_i32_1 : i32, i32, i32
  }
  func.func @transform_11(%arg0: i32) -> (i32, i32) {
    %c0_i32 = arith.constant 0 : i32
    %c0_i32_0 = arith.constant 0 : i32
    %c0_i32_1 = arith.constant 0 : i32
    return %c0_i32, %c0_i32_0 : i32, i32
  }
  func.func @transform_12(%arg0: i32) -> (i32, i32) {
    %c0_i32 = arith.constant 0 : i32
    %c0_i32_0 = arith.constant 0 : i32
    %c0_i32_1 = arith.constant 0 : i32
    return %c0_i32, %c0_i32_0 : i32, i32
  }
  func.func @transform_13(%arg0: i32) -> (i32, i32) {
    %c0_i32 = arith.constant 0 : i32
    %c0_i32_0 = arith.constant 0 : i32
    %c0_i32_1 = arith.constant 0 : i32
    return %c0_i32, %c0_i32_0 : i32, i32
  }
  func.func @transform_14(%arg0: i32) -> (i32, i32, i32, i32) {
    %c0_i32 = arith.constant 0 : i32
    %c0_i32_0 = arith.constant 0 : i32
    %c0_i32_1 = arith.constant 0 : i32
    %c0_i32_2 = arith.constant 0 : i32
    return %arg0, %c0_i32, %c0_i32_0, %c0_i32_1 : i32, i32, i32, i32
  }
}

module attributes {stable_mosaic.version = 11 : i64} {
  func.func @resnet_block_kernel(%arg0: i32, %arg1: memref<1x8x8x64xf32, #tpu.memory_space<vmem>>, %arg2: memref<1x1x128xf32, #tpu.memory_space<vmem>>, %arg3: memref<1x64xf32, #tpu.memory_space<vmem>>, %arg4: memref<1x64xf32, #tpu.memory_space<vmem>>, %arg5: memref<32x64xf32, #tpu.memory_space<vmem>>, %arg6: memref<9x64x128xbf16, #tpu.memory_space<vmem>>, %arg7: memref<1x128xf32, #tpu.memory_space<vmem>>, %arg8: memref<1x128xf32, #tpu.memory_space<vmem>>, %arg9: memref<1x128xf32, #tpu.memory_space<vmem>>, %arg10: memref<32x128xf32, #tpu.memory_space<vmem>>, %arg11: memref<9x128x128xbf16, #tpu.memory_space<vmem>>, %arg12: memref<1x128xf32, #tpu.memory_space<vmem>>, %arg13: memref<64x128xbf16, #tpu.memory_space<vmem>>, %arg14: memref<1x128xf32, #tpu.memory_space<vmem>>, %arg15: memref<1x8x8x128xf32, #tpu.memory_space<vmem>>, %arg16: memref<10x16x64xf32, #tpu.memory_space<vmem>>, %arg17: memref<10x16x128xf32, #tpu.memory_space<vmem>>) attributes {dimension_semantics = [#tpu.dimension_semantics<parallel>], iteration_bounds = array<i64: 2>, scalar_prefetch = 0 : i64, scratch_operands = 2 : i64, tpu.core_type = #tpu.core_type<tc>, window_params = [{transform_indices = @transform_0, window_bounds = array<i64: 1, 8, 8, 64>}, {transform_indices = @transform_1, window_bounds = array<i64: 1, 1, 128>}, {pipeline_mode = #tpu.pipeline_mode<synchronous>, transform_indices = @transform_2, window_bounds = array<i64: 1, 64>}, {pipeline_mode = #tpu.pipeline_mode<synchronous>, transform_indices = @transform_3, window_bounds = array<i64: 1, 64>}, {pipeline_mode = #tpu.pipeline_mode<synchronous>, transform_indices = @transform_4, window_bounds = array<i64: 32, 64>}, {pipeline_mode = #tpu.pipeline_mode<synchronous>, transform_indices = @transform_5, window_bounds = array<i64: 9, 64, 128>}, {pipeline_mode = #tpu.pipeline_mode<synchronous>, transform_indices = @transform_6, window_bounds = array<i64: 1, 128>}, {pipeline_mode = #tpu.pipeline_mode<synchronous>, transform_indices = @transform_7, window_bounds = array<i64: 1, 128>}, {pipeline_mode = #tpu.pipeline_mode<synchronous>, transform_indices = @transform_8, window_bounds = array<i64: 1, 128>}, {pipeline_mode = #tpu.pipeline_mode<synchronous>, transform_indices = @transform_9, window_bounds = array<i64: 32, 128>}, {pipeline_mode = #tpu.pipeline_mode<synchronous>, transform_indices = @transform_10, window_bounds = array<i64: 9, 128, 128>}, {pipeline_mode = #tpu.pipeline_mode<synchronous>, transform_indices = @transform_11, window_bounds = array<i64: 1, 128>}, {pipeline_mode = #tpu.pipeline_mode<synchronous>, transform_indices = @transform_12, window_bounds = array<i64: 64, 128>}, {pipeline_mode = #tpu.pipeline_mode<synchronous>, transform_indices = @transform_13, window_bounds = array<i64: 1, 128>}, {transform_indices = @transform_14, window_bounds = array<i64: 1, 8, 8, 128>}]} {
    %c0 = arith.constant 0 : index
    %c0_0 = arith.constant 0 : index
    %c0_1 = arith.constant 0 : index
    %c0_2 = arith.constant 0 : index
    %0 = vector.load %arg1[%c0, %c0_0, %c0_1, %c0_2] : memref<1x8x8x64xf32, #tpu.memory_space<vmem>>, vector<1x8x8x64xf32>
    %1 = vector.shape_cast %0 : vector<1x8x8x64xf32> to vector<8x8x64xf32>
    %2 = vector.shape_cast %1 : vector<8x8x64xf32> to vector<64x64xf32>
    %c0_3 = arith.constant 0 : index
    %c0_4 = arith.constant 0 : index
    %3 = vector.load %arg5[%c0_3, %c0_4] : memref<32x64xf32, #tpu.memory_space<vmem>>, vector<32x64xf32>
    %cst = arith.constant dense<0.000000e+00> : vector<64xf32>
    %4 = vector.multi_reduction <add>, %2, %cst [0] : vector<64x64xf32> to vector<64xf32>
    %5 = vector.shape_cast %4 : vector<64xf32> to vector<1x64xf32>
    %cst_5 = arith.constant dense<0.000000e+00> : vector<1x32xf32>
    %6 = tpu.matmul %5, %3, %cst_5 {dimension_numbers = #tpu.dot_dimension_numbers<[1], [1], [0], [0], [0, 0, 1, 0], [], []>} : vector<1x64xf32>, vector<32x64xf32>, vector<1x32xf32> -> vector<1x32xf32>
    %cst_6 = arith.constant 1.280000e+02 : f32
    %7 = vector.broadcast %cst_6 : f32 to vector<1x32xf32>
    %8 = arith.divf %6, %7 : vector<1x32xf32>
    %cst_7 = arith.constant dense<0.000000e+00> : vector<1x64xf32>
    %9 = tpu.matmul %8, %3, %cst_7 {dimension_numbers = #tpu.dot_dimension_numbers<[1], [0], [0], [1], [0, 0, 1, 1], [], []>} : vector<1x32xf32>, vector<32x64xf32>, vector<1x64xf32> -> vector<1x64xf32>
    %10 = vector.broadcast %9 : vector<1x64xf32> to vector<64x64xf32>
    %11 = arith.subf %2, %10 : vector<64x64xf32>
    %12 = arith.mulf %11, %11 : vector<64x64xf32>
    %cst_8 = arith.constant dense<0.000000e+00> : vector<64xf32>
    %13 = vector.multi_reduction <add>, %12, %cst_8 [0] : vector<64x64xf32> to vector<64xf32>
    %14 = vector.shape_cast %13 : vector<64xf32> to vector<1x64xf32>
    %cst_9 = arith.constant dense<0.000000e+00> : vector<1x32xf32>
    %15 = tpu.matmul %14, %3, %cst_9 {dimension_numbers = #tpu.dot_dimension_numbers<[1], [1], [0], [0], [0, 0, 1, 0], [], []>} : vector<1x64xf32>, vector<32x64xf32>, vector<1x32xf32> -> vector<1x32xf32>
    %cst_10 = arith.constant 1.280000e+02 : f32
    %16 = vector.broadcast %cst_10 : f32 to vector<1x32xf32>
    %17 = arith.divf %15, %16 : vector<1x32xf32>
    %cst_11 = arith.constant dense<0.000000e+00> : vector<1x64xf32>
    %18 = tpu.matmul %17, %3, %cst_11 {dimension_numbers = #tpu.dot_dimension_numbers<[1], [0], [0], [1], [0, 0, 1, 1], [], []>} : vector<1x32xf32>, vector<32x64xf32>, vector<1x64xf32> -> vector<1x64xf32>
    %c0_12 = arith.constant 0 : index
    %c0_13 = arith.constant 0 : index
    %19 = vector.load %arg3[%c0_12, %c0_13] : memref<1x64xf32, #tpu.memory_space<vmem>>, vector<1x64xf32>
    %cst_14 = arith.constant 9.99999997E-7 : f32
    %20 = vector.broadcast %cst_14 : f32 to vector<1x64xf32>
    %21 = arith.addf %18, %20 : vector<1x64xf32>
    %22 = math.rsqrt %21 : vector<1x64xf32>
    %23 = arith.mulf %19, %22 : vector<1x64xf32>
    %24 = vector.broadcast %23 : vector<1x64xf32> to vector<64x64xf32>
    %25 = arith.mulf %11, %24 : vector<64x64xf32>
    %c0_15 = arith.constant 0 : index
    %c0_16 = arith.constant 0 : index
    %26 = vector.load %arg4[%c0_15, %c0_16] : memref<1x64xf32, #tpu.memory_space<vmem>>, vector<1x64xf32>
    %27 = vector.broadcast %26 : vector<1x64xf32> to vector<64x64xf32>
    %28 = arith.addf %25, %27 : vector<64x64xf32>
    %29 = arith.negf %28 : vector<64x64xf32>
    %30 = math.exp %29 : vector<64x64xf32>
    %cst_17 = arith.constant 1.000000e+00 : f32
    %31 = vector.broadcast %cst_17 : f32 to vector<64x64xf32>
    %32 = arith.addf %31, %30 : vector<64x64xf32>
    %33 = arith.divf %31, %32 : vector<64x64xf32>
    %34 = arith.mulf %28, %33 : vector<64x64xf32>
    %cst_18 = arith.constant 0.000000e+00 : f32
    %35 = vector.broadcast %cst_18 : f32 to vector<1x16x64xf32>
    %c0_19 = arith.constant 0 : index
    %c0_20 = arith.constant 0 : index
    %c0_21 = arith.constant 0 : index
    %36 = vector.load %arg16[%c0_19, %c0_20, %c0_21] : memref<10x16x64xf32, #tpu.memory_space<vmem>>, vector<1x16x64xf32>
    tpu.vector_store %arg16[%c0_19, %c0_20, %c0_21], %35 {strides = array<i32>} : memref<10x16x64xf32, #tpu.memory_space<vmem>>, vector<1x16x64xf32>,
    %cst_22 = arith.constant 0.000000e+00 : f32
    %37 = vector.broadcast %cst_22 : f32 to vector<1x16x64xf32>
    %c9 = arith.constant 9 : index
    %c0_23 = arith.constant 0 : index
    %c0_24 = arith.constant 0 : index
    %38 = vector.load %arg16[%c9, %c0_23, %c0_24] : memref<10x16x64xf32, #tpu.memory_space<vmem>>, vector<1x16x64xf32>
    tpu.vector_store %arg16[%c9, %c0_23, %c0_24], %37 {strides = array<i32>} : memref<10x16x64xf32, #tpu.memory_space<vmem>>, vector<1x16x64xf32>,
    %cst_25 = arith.constant 0.000000e+00 : f32
    %39 = vector.broadcast %cst_25 : f32 to vector<8x1x64xf32>
    %c1 = arith.constant 1 : index
    %c0_26 = arith.constant 0 : index
    %c0_27 = arith.constant 0 : index
    %40 = vector.load %arg16[%c1, %c0_26, %c0_27] : memref<10x16x64xf32, #tpu.memory_space<vmem>>, vector<8x1x64xf32>
    tpu.vector_store %arg16[%c1, %c0_26, %c0_27], %39 {strides = array<i32>} : memref<10x16x64xf32, #tpu.memory_space<vmem>>, vector<8x1x64xf32>,
    %cst_28 = arith.constant 0.000000e+00 : f32
    %41 = vector.broadcast %cst_28 : f32 to vector<8x7x64xf32>
    %c1_29 = arith.constant 1 : index
    %c9_30 = arith.constant 9 : index
    %c0_31 = arith.constant 0 : index
    %42 = vector.load %arg16[%c1_29, %c9_30, %c0_31] : memref<10x16x64xf32, #tpu.memory_space<vmem>>, vector<8x7x64xf32>
    tpu.vector_store %arg16[%c1_29, %c9_30, %c0_31], %41 {strides = array<i32>} : memref<10x16x64xf32, #tpu.memory_space<vmem>>, vector<8x7x64xf32>,
    %43 = vector.shape_cast %34 : vector<64x64xf32> to vector<8x8x64xf32>
    %c1_32 = arith.constant 1 : index
    %c1_33 = arith.constant 1 : index
    %c0_34 = arith.constant 0 : index
    %44 = vector.load %arg16[%c1_32, %c1_33, %c0_34] : memref<10x16x64xf32, #tpu.memory_space<vmem>>, vector<8x8x64xf32>
    tpu.vector_store %arg16[%c1_32, %c1_33, %c0_34], %43 {strides = array<i32>} : memref<10x16x64xf32, #tpu.memory_space<vmem>>, vector<8x8x64xf32>,
    %c0_35 = arith.constant 0 : index
    %c0_36 = arith.constant 0 : index
    %c0_37 = arith.constant 0 : index
    %45 = vector.load %arg16[%c0_35, %c0_36, %c0_37] : memref<10x16x64xf32, #tpu.memory_space<vmem>>, vector<8x16x64xf32>
    %46 = vector.shape_cast %45 : vector<8x16x64xf32> to vector<128x64xf32>
    %47 = arith.truncf %46 : vector<128x64xf32> to vector<128x64xbf16>
    %c1_38 = arith.constant 1 : index
    %c0_39 = arith.constant 0 : index
    %c0_40 = arith.constant 0 : index
    %48 = vector.load %arg16[%c1_38, %c0_39, %c0_40] : memref<10x16x64xf32, #tpu.memory_space<vmem>>, vector<8x16x64xf32>
    %49 = vector.shape_cast %48 : vector<8x16x64xf32> to vector<128x64xf32>
    %50 = arith.truncf %49 : vector<128x64xf32> to vector<128x64xbf16>
    %c2 = arith.constant 2 : index
    %c0_41 = arith.constant 0 : index
    %c0_42 = arith.constant 0 : index
    %51 = vector.load %arg16[%c2, %c0_41, %c0_42] : memref<10x16x64xf32, #tpu.memory_space<vmem>>, vector<8x16x64xf32>
    %52 = vector.shape_cast %51 : vector<8x16x64xf32> to vector<128x64xf32>
    %53 = arith.truncf %52 : vector<128x64xf32> to vector<128x64xbf16>
    %c0_43 = arith.constant 0 : index
    %c0_44 = arith.constant 0 : index
    %c0_45 = arith.constant 0 : index
    %54 = vector.load %arg6[%c0_43, %c0_44, %c0_45] : memref<9x64x128xbf16, #tpu.memory_space<vmem>>, vector<1x64x128xbf16>
    %55 = vector.shape_cast %54 : vector<1x64x128xbf16> to vector<64x128xbf16>
    %cst_46 = arith.constant dense<0.000000e+00> : vector<128x128xf32>
    %56 = tpu.matmul %47, %55, %cst_46 {dimension_numbers = #tpu.dot_dimension_numbers<[1], [0], [0], [1], [0, 0, 1, 1], [], []>} : vector<128x64xbf16>, vector<64x128xbf16>, vector<128x128xf32> -> vector<128x128xf32>
    %c3 = arith.constant 3 : index
    %c0_47 = arith.constant 0 : index
    %c0_48 = arith.constant 0 : index
    %57 = vector.load %arg6[%c3, %c0_47, %c0_48] : memref<9x64x128xbf16, #tpu.memory_space<vmem>>, vector<1x64x128xbf16>
    %58 = vector.shape_cast %57 : vector<1x64x128xbf16> to vector<64x128xbf16>
    %cst_49 = arith.constant dense<0.000000e+00> : vector<128x128xf32>
    %59 = tpu.matmul %50, %58, %cst_49 {dimension_numbers = #tpu.dot_dimension_numbers<[1], [0], [0], [1], [0, 0, 1, 1], [], []>} : vector<128x64xbf16>, vector<64x128xbf16>, vector<128x128xf32> -> vector<128x128xf32>
    %60 = arith.addf %56, %59 : vector<128x128xf32>
    %c6 = arith.constant 6 : index
    %c0_50 = arith.constant 0 : index
    %c0_51 = arith.constant 0 : index
    %61 = vector.load %arg6[%c6, %c0_50, %c0_51] : memref<9x64x128xbf16, #tpu.memory_space<vmem>>, vector<1x64x128xbf16>
    %62 = vector.shape_cast %61 : vector<1x64x128xbf16> to vector<64x128xbf16>
    %cst_52 = arith.constant dense<0.000000e+00> : vector<128x128xf32>
    %63 = tpu.matmul %53, %62, %cst_52 {dimension_numbers = #tpu.dot_dimension_numbers<[1], [0], [0], [1], [0, 0, 1, 1], [], []>} : vector<128x64xbf16>, vector<64x128xbf16>, vector<128x128xf32> -> vector<128x128xf32>
    %64 = arith.addf %60, %63 : vector<128x128xf32>
    %65 = vector.shape_cast %64 : vector<128x128xf32> to vector<8x16x128xf32>
    %66 = vector.extract_strided_slice %65 {offsets = [0, 0, 0], sizes = [8, 8, 128], strides = [1, 1, 1]} : vector<8x16x128xf32> to vector<8x8x128xf32>
    %67 = vector.shape_cast %66 : vector<8x8x128xf32> to vector<64x128xf32>
    %c1_53 = arith.constant 1 : index
    %c0_54 = arith.constant 0 : index
    %c0_55 = arith.constant 0 : index
    %68 = vector.load %arg6[%c1_53, %c0_54, %c0_55] : memref<9x64x128xbf16, #tpu.memory_space<vmem>>, vector<1x64x128xbf16>
    %69 = vector.shape_cast %68 : vector<1x64x128xbf16> to vector<64x128xbf16>
    %cst_56 = arith.constant dense<0.000000e+00> : vector<128x128xf32>
    %70 = tpu.matmul %47, %69, %cst_56 {dimension_numbers = #tpu.dot_dimension_numbers<[1], [0], [0], [1], [0, 0, 1, 1], [], []>} : vector<128x64xbf16>, vector<64x128xbf16>, vector<128x128xf32> -> vector<128x128xf32>
    %c4 = arith.constant 4 : index
    %c0_57 = arith.constant 0 : index
    %c0_58 = arith.constant 0 : index
    %71 = vector.load %arg6[%c4, %c0_57, %c0_58] : memref<9x64x128xbf16, #tpu.memory_space<vmem>>, vector<1x64x128xbf16>
    %72 = vector.shape_cast %71 : vector<1x64x128xbf16> to vector<64x128xbf16>
    %cst_59 = arith.constant dense<0.000000e+00> : vector<128x128xf32>
    %73 = tpu.matmul %50, %72, %cst_59 {dimension_numbers = #tpu.dot_dimension_numbers<[1], [0], [0], [1], [0, 0, 1, 1], [], []>} : vector<128x64xbf16>, vector<64x128xbf16>, vector<128x128xf32> -> vector<128x128xf32>
    %74 = arith.addf %70, %73 : vector<128x128xf32>
    %c7 = arith.constant 7 : index
    %c0_60 = arith.constant 0 : index
    %c0_61 = arith.constant 0 : index
    %75 = vector.load %arg6[%c7, %c0_60, %c0_61] : memref<9x64x128xbf16, #tpu.memory_space<vmem>>, vector<1x64x128xbf16>
    %76 = vector.shape_cast %75 : vector<1x64x128xbf16> to vector<64x128xbf16>
    %cst_62 = arith.constant dense<0.000000e+00> : vector<128x128xf32>
    %77 = tpu.matmul %53, %76, %cst_62 {dimension_numbers = #tpu.dot_dimension_numbers<[1], [0], [0], [1], [0, 0, 1, 1], [], []>} : vector<128x64xbf16>, vector<64x128xbf16>, vector<128x128xf32> -> vector<128x128xf32>
    %78 = arith.addf %74, %77 : vector<128x128xf32>
    %79 = vector.shape_cast %78 : vector<128x128xf32> to vector<8x16x128xf32>
    %80 = vector.extract_strided_slice %79 {offsets = [0, 1, 0], sizes = [8, 8, 128], strides = [1, 1, 1]} : vector<8x16x128xf32> to vector<8x8x128xf32>
    %81 = vector.shape_cast %80 : vector<8x8x128xf32> to vector<64x128xf32>
    %82 = arith.addf %67, %81 : vector<64x128xf32>
    %c2_63 = arith.constant 2 : index
    %c0_64 = arith.constant 0 : index
    %c0_65 = arith.constant 0 : index
    %83 = vector.load %arg6[%c2_63, %c0_64, %c0_65] : memref<9x64x128xbf16, #tpu.memory_space<vmem>>, vector<1x64x128xbf16>
    %84 = vector.shape_cast %83 : vector<1x64x128xbf16> to vector<64x128xbf16>
    %cst_66 = arith.constant dense<0.000000e+00> : vector<128x128xf32>
    %85 = tpu.matmul %47, %84, %cst_66 {dimension_numbers = #tpu.dot_dimension_numbers<[1], [0], [0], [1], [0, 0, 1, 1], [], []>} : vector<128x64xbf16>, vector<64x128xbf16>, vector<128x128xf32> -> vector<128x128xf32>
    %c5 = arith.constant 5 : index
    %c0_67 = arith.constant 0 : index
    %c0_68 = arith.constant 0 : index
    %86 = vector.load %arg6[%c5, %c0_67, %c0_68] : memref<9x64x128xbf16, #tpu.memory_space<vmem>>, vector<1x64x128xbf16>
    %87 = vector.shape_cast %86 : vector<1x64x128xbf16> to vector<64x128xbf16>
    %cst_69 = arith.constant dense<0.000000e+00> : vector<128x128xf32>
    %88 = tpu.matmul %50, %87, %cst_69 {dimension_numbers = #tpu.dot_dimension_numbers<[1], [0], [0], [1], [0, 0, 1, 1], [], []>} : vector<128x64xbf16>, vector<64x128xbf16>, vector<128x128xf32> -> vector<128x128xf32>
    %89 = arith.addf %85, %88 : vector<128x128xf32>
    %c8 = arith.constant 8 : index
    %c0_70 = arith.constant 0 : index
    %c0_71 = arith.constant 0 : index
    %90 = vector.load %arg6[%c8, %c0_70, %c0_71] : memref<9x64x128xbf16, #tpu.memory_space<vmem>>, vector<1x64x128xbf16>
    %91 = vector.shape_cast %90 : vector<1x64x128xbf16> to vector<64x128xbf16>
    %cst_72 = arith.constant dense<0.000000e+00> : vector<128x128xf32>
    %92 = tpu.matmul %53, %91, %cst_72 {dimension_numbers = #tpu.dot_dimension_numbers<[1], [0], [0], [1], [0, 0, 1, 1], [], []>} : vector<128x64xbf16>, vector<64x128xbf16>, vector<128x128xf32> -> vector<128x128xf32>
    %93 = arith.addf %89, %92 : vector<128x128xf32>
    %94 = vector.shape_cast %93 : vector<128x128xf32> to vector<8x16x128xf32>
    %95 = vector.extract_strided_slice %94 {offsets = [0, 2, 0], sizes = [8, 8, 128], strides = [1, 1, 1]} : vector<8x16x128xf32> to vector<8x8x128xf32>
    %96 = vector.shape_cast %95 : vector<8x8x128xf32> to vector<64x128xf32>
    %97 = arith.addf %82, %96 : vector<64x128xf32>
    %c0_73 = arith.constant 0 : index
    %c0_74 = arith.constant 0 : index
    %98 = vector.load %arg7[%c0_73, %c0_74] : memref<1x128xf32, #tpu.memory_space<vmem>>, vector<1x128xf32>
    %99 = vector.broadcast %98 : vector<1x128xf32> to vector<64x128xf32>
    %100 = arith.addf %97, %99 : vector<64x128xf32>
    %c0_75 = arith.constant 0 : index
    %c0_76 = arith.constant 0 : index
    %c0_77 = arith.constant 0 : index
    %101 = vector.load %arg2[%c0_75, %c0_76, %c0_77] : memref<1x1x128xf32, #tpu.memory_space<vmem>>, vector<1x1x128xf32>
    %102 = vector.shape_cast %101 : vector<1x1x128xf32> to vector<1x128xf32>
    %103 = vector.broadcast %102 : vector<1x128xf32> to vector<64x128xf32>
    %104 = arith.addf %100, %103 : vector<64x128xf32>
    %c0_78 = arith.constant 0 : index
    %c0_79 = arith.constant 0 : index
    %105 = vector.load %arg10[%c0_78, %c0_79] : memref<32x128xf32, #tpu.memory_space<vmem>>, vector<32x128xf32>
    %cst_80 = arith.constant dense<0.000000e+00> : vector<128xf32>
    %106 = vector.multi_reduction <add>, %104, %cst_80 [0] : vector<64x128xf32> to vector<128xf32>
    %107 = vector.shape_cast %106 : vector<128xf32> to vector<1x128xf32>
    %cst_81 = arith.constant dense<0.000000e+00> : vector<1x32xf32>
    %108 = tpu.matmul %107, %105, %cst_81 {dimension_numbers = #tpu.dot_dimension_numbers<[1], [1], [0], [0], [0, 0, 1, 0], [], []>} : vector<1x128xf32>, vector<32x128xf32>, vector<1x32xf32> -> vector<1x32xf32>
    %cst_82 = arith.constant 2.560000e+02 : f32
    %109 = vector.broadcast %cst_82 : f32 to vector<1x32xf32>
    %110 = arith.divf %108, %109 : vector<1x32xf32>
    %cst_83 = arith.constant dense<0.000000e+00> : vector<1x128xf32>
    %111 = tpu.matmul %110, %105, %cst_83 {dimension_numbers = #tpu.dot_dimension_numbers<[1], [0], [0], [1], [0, 0, 1, 1], [], []>} : vector<1x32xf32>, vector<32x128xf32>, vector<1x128xf32> -> vector<1x128xf32>
    %112 = vector.broadcast %111 : vector<1x128xf32> to vector<64x128xf32>
    %113 = arith.subf %104, %112 : vector<64x128xf32>
    %114 = arith.mulf %113, %113 : vector<64x128xf32>
    %cst_84 = arith.constant dense<0.000000e+00> : vector<128xf32>
    %115 = vector.multi_reduction <add>, %114, %cst_84 [0] : vector<64x128xf32> to vector<128xf32>
    %116 = vector.shape_cast %115 : vector<128xf32> to vector<1x128xf32>
    %cst_85 = arith.constant dense<0.000000e+00> : vector<1x32xf32>
    %117 = tpu.matmul %116, %105, %cst_85 {dimension_numbers = #tpu.dot_dimension_numbers<[1], [1], [0], [0], [0, 0, 1, 0], [], []>} : vector<1x128xf32>, vector<32x128xf32>, vector<1x32xf32> -> vector<1x32xf32>
    %cst_86 = arith.constant 2.560000e+02 : f32
    %118 = vector.broadcast %cst_86 : f32 to vector<1x32xf32>
    %119 = arith.divf %117, %118 : vector<1x32xf32>
    %cst_87 = arith.constant dense<0.000000e+00> : vector<1x128xf32>
    %120 = tpu.matmul %119, %105, %cst_87 {dimension_numbers = #tpu.dot_dimension_numbers<[1], [0], [0], [1], [0, 0, 1, 1], [], []>} : vector<1x32xf32>, vector<32x128xf32>, vector<1x128xf32> -> vector<1x128xf32>
    %c0_88 = arith.constant 0 : index
    %c0_89 = arith.constant 0 : index
    %121 = vector.load %arg8[%c0_88, %c0_89] : memref<1x128xf32, #tpu.memory_space<vmem>>, vector<1x128xf32>
    %cst_90 = arith.constant 9.99999997E-7 : f32
    %122 = vector.broadcast %cst_90 : f32 to vector<1x128xf32>
    %123 = arith.addf %120, %122 : vector<1x128xf32>
    %124 = math.rsqrt %123 : vector<1x128xf32>
    %125 = arith.mulf %121, %124 : vector<1x128xf32>
    %126 = vector.broadcast %125 : vector<1x128xf32> to vector<64x128xf32>
    %127 = arith.mulf %113, %126 : vector<64x128xf32>
    %c0_91 = arith.constant 0 : index
    %c0_92 = arith.constant 0 : index
    %128 = vector.load %arg9[%c0_91, %c0_92] : memref<1x128xf32, #tpu.memory_space<vmem>>, vector<1x128xf32>
    %129 = vector.broadcast %128 : vector<1x128xf32> to vector<64x128xf32>
    %130 = arith.addf %127, %129 : vector<64x128xf32>
    %131 = arith.negf %130 : vector<64x128xf32>
    %132 = math.exp %131 : vector<64x128xf32>
    %cst_93 = arith.constant 1.000000e+00 : f32
    %133 = vector.broadcast %cst_93 : f32 to vector<64x128xf32>
    %134 = arith.addf %133, %132 : vector<64x128xf32>
    %135 = arith.divf %133, %134 : vector<64x128xf32>
    %136 = arith.mulf %130, %135 : vector<64x128xf32>
    %cst_94 = arith.constant 0.000000e+00 : f32
    %137 = vector.broadcast %cst_94 : f32 to vector<1x16x128xf32>
    %c0_95 = arith.constant 0 : index
    %c0_96 = arith.constant 0 : index
    %c0_97 = arith.constant 0 : index
    %138 = vector.load %arg17[%c0_95, %c0_96, %c0_97] : memref<10x16x128xf32, #tpu.memory_space<vmem>>, vector<1x16x128xf32>
    tpu.vector_store %arg17[%c0_95, %c0_96, %c0_97], %137 {strides = array<i32>} : memref<10x16x128xf32, #tpu.memory_space<vmem>>, vector<1x16x128xf32>,
    %cst_98 = arith.constant 0.000000e+00 : f32
    %139 = vector.broadcast %cst_98 : f32 to vector<1x16x128xf32>
    %c9_99 = arith.constant 9 : index
    %c0_100 = arith.constant 0 : index
    %c0_101 = arith.constant 0 : index
    %140 = vector.load %arg17[%c9_99, %c0_100, %c0_101] : memref<10x16x128xf32, #tpu.memory_space<vmem>>, vector<1x16x128xf32>
    tpu.vector_store %arg17[%c9_99, %c0_100, %c0_101], %139 {strides = array<i32>} : memref<10x16x128xf32, #tpu.memory_space<vmem>>, vector<1x16x128xf32>,
    %cst_102 = arith.constant 0.000000e+00 : f32
    %141 = vector.broadcast %cst_102 : f32 to vector<8x1x128xf32>
    %c1_103 = arith.constant 1 : index
    %c0_104 = arith.constant 0 : index
    %c0_105 = arith.constant 0 : index
    %142 = vector.load %arg17[%c1_103, %c0_104, %c0_105] : memref<10x16x128xf32, #tpu.memory_space<vmem>>, vector<8x1x128xf32>
    tpu.vector_store %arg17[%c1_103, %c0_104, %c0_105], %141 {strides = array<i32>} : memref<10x16x128xf32, #tpu.memory_space<vmem>>, vector<8x1x128xf32>,
    %cst_106 = arith.constant 0.000000e+00 : f32
    %143 = vector.broadcast %cst_106 : f32 to vector<8x7x128xf32>
    %c1_107 = arith.constant 1 : index
    %c9_108 = arith.constant 9 : index
    %c0_109 = arith.constant 0 : index
    %144 = vector.load %arg17[%c1_107, %c9_108, %c0_109] : memref<10x16x128xf32, #tpu.memory_space<vmem>>, vector<8x7x128xf32>
    tpu.vector_store %arg17[%c1_107, %c9_108, %c0_109], %143 {strides = array<i32>} : memref<10x16x128xf32, #tpu.memory_space<vmem>>, vector<8x7x128xf32>,
    %145 = vector.shape_cast %136 : vector<64x128xf32> to vector<8x8x128xf32>
    %c1_110 = arith.constant 1 : index
    %c1_111 = arith.constant 1 : index
    %c0_112 = arith.constant 0 : index
    %146 = vector.load %arg17[%c1_110, %c1_111, %c0_112] : memref<10x16x128xf32, #tpu.memory_space<vmem>>, vector<8x8x128xf32>
    tpu.vector_store %arg17[%c1_110, %c1_111, %c0_112], %145 {strides = array<i32>} : memref<10x16x128xf32, #tpu.memory_space<vmem>>, vector<8x8x128xf32>,
    %c0_113 = arith.constant 0 : index
    %c0_114 = arith.constant 0 : index
    %c0_115 = arith.constant 0 : index
    %147 = vector.load %arg17[%c0_113, %c0_114, %c0_115] : memref<10x16x128xf32, #tpu.memory_space<vmem>>, vector<8x16x128xf32>
    %148 = vector.shape_cast %147 : vector<8x16x128xf32> to vector<128x128xf32>
    %149 = arith.truncf %148 : vector<128x128xf32> to vector<128x128xbf16>
    %c1_116 = arith.constant 1 : index
    %c0_117 = arith.constant 0 : index
    %c0_118 = arith.constant 0 : index
    %150 = vector.load %arg17[%c1_116, %c0_117, %c0_118] : memref<10x16x128xf32, #tpu.memory_space<vmem>>, vector<8x16x128xf32>
    %151 = vector.shape_cast %150 : vector<8x16x128xf32> to vector<128x128xf32>
    %152 = arith.truncf %151 : vector<128x128xf32> to vector<128x128xbf16>
    %c2_119 = arith.constant 2 : index
    %c0_120 = arith.constant 0 : index
    %c0_121 = arith.constant 0 : index
    %153 = vector.load %arg17[%c2_119, %c0_120, %c0_121] : memref<10x16x128xf32, #tpu.memory_space<vmem>>, vector<8x16x128xf32>
    %154 = vector.shape_cast %153 : vector<8x16x128xf32> to vector<128x128xf32>
    %155 = arith.truncf %154 : vector<128x128xf32> to vector<128x128xbf16>
    %c0_122 = arith.constant 0 : index
    %c0_123 = arith.constant 0 : index
    %c0_124 = arith.constant 0 : index
    %156 = vector.load %arg11[%c0_122, %c0_123, %c0_124] : memref<9x128x128xbf16, #tpu.memory_space<vmem>>, vector<1x128x128xbf16>
    %157 = vector.shape_cast %156 : vector<1x128x128xbf16> to vector<128x128xbf16>
    %cst_125 = arith.constant dense<0.000000e+00> : vector<128x128xf32>
    %158 = tpu.matmul %149, %157, %cst_125 {dimension_numbers = #tpu.dot_dimension_numbers<[1], [0], [0], [1], [0, 0, 1, 1], [], []>} : vector<128x128xbf16>, vector<128x128xbf16>, vector<128x128xf32> -> vector<128x128xf32>
    %c3_126 = arith.constant 3 : index
    %c0_127 = arith.constant 0 : index
    %c0_128 = arith.constant 0 : index
    %159 = vector.load %arg11[%c3_126, %c0_127, %c0_128] : memref<9x128x128xbf16, #tpu.memory_space<vmem>>, vector<1x128x128xbf16>
    %160 = vector.shape_cast %159 : vector<1x128x128xbf16> to vector<128x128xbf16>
    %cst_129 = arith.constant dense<0.000000e+00> : vector<128x128xf32>
    %161 = tpu.matmul %152, %160, %cst_129 {dimension_numbers = #tpu.dot_dimension_numbers<[1], [0], [0], [1], [0, 0, 1, 1], [], []>} : vector<128x128xbf16>, vector<128x128xbf16>, vector<128x128xf32> -> vector<128x128xf32>
    %162 = arith.addf %158, %161 : vector<128x128xf32>
    %c6_130 = arith.constant 6 : index
    %c0_131 = arith.constant 0 : index
    %c0_132 = arith.constant 0 : index
    %163 = vector.load %arg11[%c6_130, %c0_131, %c0_132] : memref<9x128x128xbf16, #tpu.memory_space<vmem>>, vector<1x128x128xbf16>
    %164 = vector.shape_cast %163 : vector<1x128x128xbf16> to vector<128x128xbf16>
    %cst_133 = arith.constant dense<0.000000e+00> : vector<128x128xf32>
    %165 = tpu.matmul %155, %164, %cst_133 {dimension_numbers = #tpu.dot_dimension_numbers<[1], [0], [0], [1], [0, 0, 1, 1], [], []>} : vector<128x128xbf16>, vector<128x128xbf16>, vector<128x128xf32> -> vector<128x128xf32>
    %166 = arith.addf %162, %165 : vector<128x128xf32>
    %167 = vector.shape_cast %166 : vector<128x128xf32> to vector<8x16x128xf32>
    %168 = vector.extract_strided_slice %167 {offsets = [0, 0, 0], sizes = [8, 8, 128], strides = [1, 1, 1]} : vector<8x16x128xf32> to vector<8x8x128xf32>
    %169 = vector.shape_cast %168 : vector<8x8x128xf32> to vector<64x128xf32>
    %c1_134 = arith.constant 1 : index
    %c0_135 = arith.constant 0 : index
    %c0_136 = arith.constant 0 : index
    %170 = vector.load %arg11[%c1_134, %c0_135, %c0_136] : memref<9x128x128xbf16, #tpu.memory_space<vmem>>, vector<1x128x128xbf16>
    %171 = vector.shape_cast %170 : vector<1x128x128xbf16> to vector<128x128xbf16>
    %cst_137 = arith.constant dense<0.000000e+00> : vector<128x128xf32>
    %172 = tpu.matmul %149, %171, %cst_137 {dimension_numbers = #tpu.dot_dimension_numbers<[1], [0], [0], [1], [0, 0, 1, 1], [], []>} : vector<128x128xbf16>, vector<128x128xbf16>, vector<128x128xf32> -> vector<128x128xf32>
    %c4_138 = arith.constant 4 : index
    %c0_139 = arith.constant 0 : index
    %c0_140 = arith.constant 0 : index
    %173 = vector.load %arg11[%c4_138, %c0_139, %c0_140] : memref<9x128x128xbf16, #tpu.memory_space<vmem>>, vector<1x128x128xbf16>
    %174 = vector.shape_cast %173 : vector<1x128x128xbf16> to vector<128x128xbf16>
    %cst_141 = arith.constant dense<0.000000e+00> : vector<128x128xf32>
    %175 = tpu.matmul %152, %174, %cst_141 {dimension_numbers = #tpu.dot_dimension_numbers<[1], [0], [0], [1], [0, 0, 1, 1], [], []>} : vector<128x128xbf16>, vector<128x128xbf16>, vector<128x128xf32> -> vector<128x128xf32>
    %176 = arith.addf %172, %175 : vector<128x128xf32>
    %c7_142 = arith.constant 7 : index
    %c0_143 = arith.constant 0 : index
    %c0_144 = arith.constant 0 : index
    %177 = vector.load %arg11[%c7_142, %c0_143, %c0_144] : memref<9x128x128xbf16, #tpu.memory_space<vmem>>, vector<1x128x128xbf16>
    %178 = vector.shape_cast %177 : vector<1x128x128xbf16> to vector<128x128xbf16>
    %cst_145 = arith.constant dense<0.000000e+00> : vector<128x128xf32>
    %179 = tpu.matmul %155, %178, %cst_145 {dimension_numbers = #tpu.dot_dimension_numbers<[1], [0], [0], [1], [0, 0, 1, 1], [], []>} : vector<128x128xbf16>, vector<128x128xbf16>, vector<128x128xf32> -> vector<128x128xf32>
    %180 = arith.addf %176, %179 : vector<128x128xf32>
    %181 = vector.shape_cast %180 : vector<128x128xf32> to vector<8x16x128xf32>
    %182 = vector.extract_strided_slice %181 {offsets = [0, 1, 0], sizes = [8, 8, 128], strides = [1, 1, 1]} : vector<8x16x128xf32> to vector<8x8x128xf32>
    %183 = vector.shape_cast %182 : vector<8x8x128xf32> to vector<64x128xf32>
    %184 = arith.addf %169, %183 : vector<64x128xf32>
    %c2_146 = arith.constant 2 : index
    %c0_147 = arith.constant 0 : index
    %c0_148 = arith.constant 0 : index
    %185 = vector.load %arg11[%c2_146, %c0_147, %c0_148] : memref<9x128x128xbf16, #tpu.memory_space<vmem>>, vector<1x128x128xbf16>
    %186 = vector.shape_cast %185 : vector<1x128x128xbf16> to vector<128x128xbf16>
    %cst_149 = arith.constant dense<0.000000e+00> : vector<128x128xf32>
    %187 = tpu.matmul %149, %186, %cst_149 {dimension_numbers = #tpu.dot_dimension_numbers<[1], [0], [0], [1], [0, 0, 1, 1], [], []>} : vector<128x128xbf16>, vector<128x128xbf16>, vector<128x128xf32> -> vector<128x128xf32>
    %c5_150 = arith.constant 5 : index
    %c0_151 = arith.constant 0 : index
    %c0_152 = arith.constant 0 : index
    %188 = vector.load %arg11[%c5_150, %c0_151, %c0_152] : memref<9x128x128xbf16, #tpu.memory_space<vmem>>, vector<1x128x128xbf16>
    %189 = vector.shape_cast %188 : vector<1x128x128xbf16> to vector<128x128xbf16>
    %cst_153 = arith.constant dense<0.000000e+00> : vector<128x128xf32>
    %190 = tpu.matmul %152, %189, %cst_153 {dimension_numbers = #tpu.dot_dimension_numbers<[1], [0], [0], [1], [0, 0, 1, 1], [], []>} : vector<128x128xbf16>, vector<128x128xbf16>, vector<128x128xf32> -> vector<128x128xf32>
    %191 = arith.addf %187, %190 : vector<128x128xf32>
    %c8_154 = arith.constant 8 : index
    %c0_155 = arith.constant 0 : index
    %c0_156 = arith.constant 0 : index
    %192 = vector.load %arg11[%c8_154, %c0_155, %c0_156] : memref<9x128x128xbf16, #tpu.memory_space<vmem>>, vector<1x128x128xbf16>
    %193 = vector.shape_cast %192 : vector<1x128x128xbf16> to vector<128x128xbf16>
    %cst_157 = arith.constant dense<0.000000e+00> : vector<128x128xf32>
    %194 = tpu.matmul %155, %193, %cst_157 {dimension_numbers = #tpu.dot_dimension_numbers<[1], [0], [0], [1], [0, 0, 1, 1], [], []>} : vector<128x128xbf16>, vector<128x128xbf16>, vector<128x128xf32> -> vector<128x128xf32>
    %195 = arith.addf %191, %194 : vector<128x128xf32>
    %196 = vector.shape_cast %195 : vector<128x128xf32> to vector<8x16x128xf32>
    %197 = vector.extract_strided_slice %196 {offsets = [0, 2, 0], sizes = [8, 8, 128], strides = [1, 1, 1]} : vector<8x16x128xf32> to vector<8x8x128xf32>
    %198 = vector.shape_cast %197 : vector<8x8x128xf32> to vector<64x128xf32>
    %199 = arith.addf %184, %198 : vector<64x128xf32>
    %c0_158 = arith.constant 0 : index
    %c0_159 = arith.constant 0 : index
    %200 = vector.load %arg12[%c0_158, %c0_159] : memref<1x128xf32, #tpu.memory_space<vmem>>, vector<1x128xf32>
    %201 = vector.broadcast %200 : vector<1x128xf32> to vector<64x128xf32>
    %202 = arith.addf %199, %201 : vector<64x128xf32>
    %203 = arith.truncf %2 : vector<64x64xf32> to vector<64x64xbf16>
    %c0_160 = arith.constant 0 : index
    %c0_161 = arith.constant 0 : index
    %204 = vector.load %arg13[%c0_160, %c0_161] : memref<64x128xbf16, #tpu.memory_space<vmem>>, vector<64x128xbf16>
    %cst_162 = arith.constant dense<0.000000e+00> : vector<64x128xf32>
    %205 = tpu.matmul %203, %204, %cst_162 {dimension_numbers = #tpu.dot_dimension_numbers<[1], [0], [0], [1], [0, 0, 1, 1], [], []>} : vector<64x64xbf16>, vector<64x128xbf16>, vector<64x128xf32> -> vector<64x128xf32>
    %c0_163 = arith.constant 0 : index
    %c0_164 = arith.constant 0 : index
    %206 = vector.load %arg14[%c0_163, %c0_164] : memref<1x128xf32, #tpu.memory_space<vmem>>, vector<1x128xf32>
    %207 = vector.broadcast %206 : vector<1x128xf32> to vector<64x128xf32>
    %208 = arith.addf %205, %207 : vector<64x128xf32>
    %209 = arith.addf %208, %202 : vector<64x128xf32>
    %210 = vector.shape_cast %209 : vector<64x128xf32> to vector<8x8x128xf32>
    %c0_165 = arith.constant 0 : index
    %c0_166 = arith.constant 0 : index
    %c0_167 = arith.constant 0 : index
    %c0_168 = arith.constant 0 : index
    %211 = vector.load %arg15[%c0_165, %c0_166, %c0_167, %c0_168] : memref<1x8x8x128xf32, #tpu.memory_space<vmem>>, vector<1x8x8x128xf32>
    %212 = vector.shape_cast %211 : vector<1x8x8x128xf32> to vector<8x8x128xf32>
    %213 = vector.shape_cast %210 : vector<8x8x128xf32> to vector<1x8x8x128xf32>
    tpu.vector_store %arg15[%c0_165, %c0_166, %c0_167, %c0_168], %213 {strides = array<i32>} : memref<1x8x8x128xf32, #tpu.memory_space<vmem>>, vector<1x8x8x128xf32>,
    return
  }
  func.func @transform_0(%arg0: i32) -> (i32, i32, i32, i32) {
    %c0_i32 = arith.constant 0 : i32
    %c0_i32_0 = arith.constant 0 : i32
    %c0_i32_1 = arith.constant 0 : i32
    %c0_i32_2 = arith.constant 0 : i32
    return %arg0, %c0_i32, %c0_i32_0, %c0_i32_1 : i32, i32, i32, i32
  }
  func.func @transform_1(%arg0: i32) -> (i32, i32, i32) {
    %c0_i32 = arith.constant 0 : i32
    %c0_i32_0 = arith.constant 0 : i32
    %c0_i32_1 = arith.constant 0 : i32
    return %arg0, %c0_i32, %c0_i32_0 : i32, i32, i32
  }
  func.func @transform_2(%arg0: i32) -> (i32, i32) {
    %c0_i32 = arith.constant 0 : i32
    %c0_i32_0 = arith.constant 0 : i32
    %c0_i32_1 = arith.constant 0 : i32
    return %c0_i32, %c0_i32_0 : i32, i32
  }
  func.func @transform_3(%arg0: i32) -> (i32, i32) {
    %c0_i32 = arith.constant 0 : i32
    %c0_i32_0 = arith.constant 0 : i32
    %c0_i32_1 = arith.constant 0 : i32
    return %c0_i32, %c0_i32_0 : i32, i32
  }
  func.func @transform_4(%arg0: i32) -> (i32, i32) {
    %c0_i32 = arith.constant 0 : i32
    %c0_i32_0 = arith.constant 0 : i32
    %c0_i32_1 = arith.constant 0 : i32
    return %c0_i32, %c0_i32_0 : i32, i32
  }
  func.func @transform_5(%arg0: i32) -> (i32, i32, i32) {
    %c0_i32 = arith.constant 0 : i32
    %c0_i32_0 = arith.constant 0 : i32
    %c0_i32_1 = arith.constant 0 : i32
    %c0_i32_2 = arith.constant 0 : i32
    return %c0_i32, %c0_i32_0, %c0_i32_1 : i32, i32, i32
  }
  func.func @transform_6(%arg0: i32) -> (i32, i32) {
    %c0_i32 = arith.constant 0 : i32
    %c0_i32_0 = arith.constant 0 : i32
    %c0_i32_1 = arith.constant 0 : i32
    return %c0_i32, %c0_i32_0 : i32, i32
  }
  func.func @transform_7(%arg0: i32) -> (i32, i32) {
    %c0_i32 = arith.constant 0 : i32
    %c0_i32_0 = arith.constant 0 : i32
    %c0_i32_1 = arith.constant 0 : i32
    return %c0_i32, %c0_i32_0 : i32, i32
  }
  func.func @transform_8(%arg0: i32) -> (i32, i32) {
    %c0_i32 = arith.constant 0 : i32
    %c0_i32_0 = arith.constant 0 : i32
    %c0_i32_1 = arith.constant 0 : i32
    return %c0_i32, %c0_i32_0 : i32, i32
  }
  func.func @transform_9(%arg0: i32) -> (i32, i32) {
    %c0_i32 = arith.constant 0 : i32
    %c0_i32_0 = arith.constant 0 : i32
    %c0_i32_1 = arith.constant 0 : i32
    return %c0_i32, %c0_i32_0 : i32, i32
  }
  func.func @transform_10(%arg0: i32) -> (i32, i32, i32) {
    %c0_i32 = arith.constant 0 : i32
    %c0_i32_0 = arith.constant 0 : i32
    %c0_i32_1 = arith.constant 0 : i32
    %c0_i32_2 = arith.constant 0 : i32
    return %c0_i32, %c0_i32_0, %c0_i32_1 : i32, i32, i32
  }
  func.func @transform_11(%arg0: i32) -> (i32, i32) {
    %c0_i32 = arith.constant 0 : i32
    %c0_i32_0 = arith.constant 0 : i32
    %c0_i32_1 = arith.constant 0 : i32
    return %c0_i32, %c0_i32_0 : i32, i32
  }
  func.func @transform_12(%arg0: i32) -> (i32, i32) {
    %c0_i32 = arith.constant 0 : i32
    %c0_i32_0 = arith.constant 0 : i32
    %c0_i32_1 = arith.constant 0 : i32
    return %c0_i32, %c0_i32_0 : i32, i32
  }
  func.func @transform_13(%arg0: i32) -> (i32, i32) {
    %c0_i32 = arith.constant 0 : i32
    %c0_i32_0 = arith.constant 0 : i32
    %c0_i32_1 = arith.constant 0 : i32
    return %c0_i32, %c0_i32_0 : i32, i32
  }
  func.func @transform_14(%arg0: i32) -> (i32, i32, i32, i32) {
    %c0_i32 = arith.constant 0 : i32
    %c0_i32_0 = arith.constant 0 : i32
    %c0_i32_1 = arith.constant 0 : i32
    %c0_i32_2 = arith.constant 0 : i32
    return %arg0, %c0_i32, %c0_i32_0, %c0_i32_1 : i32, i32, i32, i32
  }
}

</mosaic_0001>

<bundles_post_ra>
// kernel: tpu_custom_call.1
= control target key start
LH: loop header
LB: loop body
LE: loop exit
PB: predicated region body
PF: predicated region fallthrough
CT: control target
= control target key end

     0   :  { %s6599_s0 = inlined_call_operand.hbm [shape: f32[2,8,8,64], index: 0, kind: input, shape index: {}]   ;;  %s6600_s1 = inlined_call_operand.hbm [shape: f32[2,1,128], index: 1, kind: input, shape index: {}]   ;;  %s6601_s2 = inlined_call_operand.vmem [shape: f32[1,64], index: 2, kind: input, shape index: {}]   ;;  %s6602_s3 = inlined_call_operand.vmem [shape: f32[1,64], index: 3, kind: input, shape index: {}]   ;;  %s6603_s4 = inlined_call_operand.hbm [shape: f32[32,64], index: 4, kind: input, shape index: {}]   ;;  %s6604_s5 = inlined_call_operand.hbm [shape: bf16[9,64,128], index: 5, kind: input, shape index: {}]   ;;  %s6605_s6 = inlined_call_operand.vmem [shape: f32[1,128], index: 6, kind: input, shape index: {}]   ;;  %s6606_s7 = inlined_call_operand.vmem [shape: f32[1,128], index: 7, kind: input, shape index: {}]   ;;  %s6607_s8 = inlined_call_operand.vmem [shape: f32[1,128], index: 8, kind: input, shape index: {}]   ;;  %s6608_s9 = inlined_call_operand.hbm [shape: f32[32,128], index: 9, kind: input, shape index: {}]   ;;  %s6609_s10 = inlined_call_operand.hbm [shape: bf16[9,128,128], index: 10, kind: input, shape index: {}]   ;;  %s6610_s11 = inlined_call_operand.vmem [shape: f32[1,128], index: 11, kind: input, shape index: {}]   ;;  %s6611_s12 = inlined_call_operand.hbm [shape: bf16[64,128], index: 12, kind: input, shape index: {}]   ;;  %s6612_s13 = inlined_call_operand.vmem [shape: f32[1,128], index: 13, kind: input, shape index: {}]   ;;  %s6613_s14 = inlined_call_operand.hbm [shape: f32[2,8,8,128], index: 14, kind: output, shape index: {}]  }
   0x1   :  { %6624 = sst [smem:[#allocation28_spill]] %s6599_s0 }
   0x2   :  { %6625 = sst [smem:[#allocation29_spill]] %s6603_s4 }
   0x3   :  { %6626 = sst [smem:[#allocation30_spill]] %s6604_s5 }
   0x4   :  { %6627 = sst [smem:[#allocation31_spill]] %s6607_s8 }
   0x5   :  { %6628 = sst [smem:[#allocation32_spill]] %s6608_s9 }
   0x6   :  { %6629 = sst [smem:[#allocation33_spill]] %s6609_s10 }
   0x7   :  { %6630 = sst [smem:[#allocation34_spill]] %s6610_s11 }
   0x8   :  { %6631 = sst [smem:[#allocation35_spill]] %s6611_s12 }
   0x9   :  { %6632 = sst [smem:[#allocation36_spill]] %s6612_s13 }
   0xa   :  { %6633 = sst [smem:[#allocation37_spill]] %s6613_s14 }
   0xb   :  { %19 = vsyncpa [#allocation5], 0 }
   0xc   :  { %21 = vsyncpa [#allocation5 + $0x1], 0 }
   0xd   :  { %22 = vsyncpa [#allocation8], 0 }
   0xe   :  { %24 = vsyncpa [#allocation8 + $0x1], 0 }
   0xf   :  { %25 = vsyncpa [#allocation11], 0 }
  0x10   :  { %26 = vsyncpa [#allocation14], 0 }
  0x11   :  { %27 = vsyncpa [#allocation6], 0 }
  0x12   :  { %29 = vsyncpa [#allocation6 + $0x1], 0  ;;  %s5193_s29 = smov 0   ;;  %s5195_s30 = smov 0  }
  0x13   :  { %s5197_s15 = smov 0   ;;  %s5199_s16 = smov 0  }
  0x14 LB: > { %6634 = sst [smem:[#allocation23_spill]] %s5098_s15  ;;  %s5217_s20 = sadd.s32 4294967295, %s5102_s16   ;;  %s5102_s16 = sphi %s5199_s16, %s6711_s16   ;;  %s5098_s15 = sphi %s5197_s15, %s6713_s15   ;;  %s5094_s30 = sphi %s5195_s30, %s6715_s30   ;;  %s5090_s29 = sphi %s5193_s29, %s6714_s29  }
  0x15   : > { %6635 = sst [smem:[#allocation24_spill]] %s5102_s16  ;;  %p3913_p0 = scmp.ge.s32.totalorder %s5102_s16, 1 }
  0x16   : > { %s6636_s4 = sld [smem:[#allocation29_spill]]  ;;  %p56_p1 = scmp.eq.s32.totalorder %s5217_s20, 0 }
  0x17   : > { %p370_p2 = scmp.lt.s32.totalorder %s5102_s16, 3  ;;  %s5104_s22 = smov [#allocation9]  }
  0x18   : > { %s389_s23 = sshll.u32 %s5104_s22, 4  ;;  %s6638_s5 = sld [smem:[#allocation30_spill]]  ;;  %s390_s23 = int_to_ptr.vmem [resolvable:$true] %s389_s23 }
  0x19   : > { %p5222_p3 = pnand %p3913_p0, %p370_p2  ;;  %s5105_s28 = smov [#allocation10]  }
  0x1a   : > { %s403_s17 = sshll.u32 %s5105_s28, 4  ;;  %s6615_s18 = smov 128   ;;  %s404_s17 = int_to_ptr.vmem [resolvable:$true] %s403_s17 }
  0x1b   : > { %p4638_p4 = pneg %p5222_p3  ;;  %s6616_s22 = smov 8  }
  0x1c   : > { %s387_s19 = sshll.u32 %s6636_s4, 4  ;;  %s5108_s24 = smov 64   ;;  %s388_s19 = int_to_ptr.hbm [resolvable:$true] %s387_s19 }
  0x1d   : > { %p5234_p6 = pnand %p4638_p4, %p56_p1  ;;  %s5109_s25 = smov 4  }
  0x1e   : > { %s401_s26 = sshll.u32 %s6638_s5, 4  ;;  %s6640_s10 = sld [smem:[#allocation33_spill]]  ;;  %s402_s26 = int_to_ptr.hbm [resolvable:$true] %s401_s26 }
  0x1f   : > { %4641 = dma.hbm_to_vmem [thread:$0]  (!%p5234_p6), %s388_s19, 512, %s390_s23, [#allocation8], %s6615_s18, %s6615_s18, %s6616_s22  }
  0x20   : > { %4644 = dma.hbm_to_vmem [thread:$0]  (!%p5234_p6), %s402_s26, 4608, %s404_s17, [#allocation11], %s5108_s24, %s5108_s24, %s5109_s25  }
  0x21   : > { %s5110_s28 = smov [#allocation13]   ;;  %s6641_s9 = sld [smem:[#allocation32_spill]] }
  0x22   : > { %s440_s11 = sshll.u32 %s5110_s28, 4  ;;  %s5111_s4 = smov [#allocation12]   ;;  %s441_s11 = int_to_ptr.vmem [resolvable:$true] %s440_s11 }
  0x23   : > { %s426_s5 = sshll.u32 %s5111_s4, 4  ;;  %s6642_s12 = sld [smem:[#allocation35_spill]]  ;;  %s427_s5 = int_to_ptr.vmem [resolvable:$true] %s426_s5 }
  0x24   : > { %s438_s14 = sshll.u32 %s6640_s10, 4  ;;  %s5112_s8 = smov [#allocation15]   ;;  %s439_s14 = int_to_ptr.hbm [resolvable:$true] %s438_s14 }
  0x25   : > { %4650 = dma.hbm_to_vmem [thread:$0]  (!%p5234_p6), %s439_s14, 9216, %s441_s11, [#allocation14], %s5108_s24, %s5108_s24, %s5109_s25  }
  0x26   : > { %s457_s11 = sshll.u32 %s5112_s8, 4  ;;  %s3912_s13 = sadd.s32 4294967294, %s5102_s16   ;;  %s458_s11 = int_to_ptr.vmem [resolvable:$true] %s457_s11 }
  0x27   : > { %s424_s19 = sshll.u32 %s6641_s9, 4  ;;  %s5265_s14 = sadd.s32 1, %s5102_s16   ;;  %s425_s19 = int_to_ptr.hbm [resolvable:$true] %s424_s19 }
  0x28   : > { %4647 = dma.hbm_to_vmem [thread:$0]  (!%p5234_p6), %s425_s19, 512, %s427_s5, [#allocation11], %s6615_s18, %s6615_s18, %s6616_s22  }
  0x29   : > { %s455_s17 = sshll.u32 %s6642_s12, 4  ;;  %6643 = sst [smem:[#allocation25_spill]] %s5265_s14  ;;  %s456_s17 = int_to_ptr.hbm [resolvable:$true] %s455_s17 }
  0x2a   : > { %4653 = dma.hbm_to_vmem [thread:$0]  (!%p5234_p6), %s456_s17, 512, %s458_s11, [#allocation14], %s5108_s24, %s5108_s24, %s5109_s25  }
  0x2b   : > { %s42_s28 = sadd.s32 1, %s5098_s15  ;;  %s39_s4 = ssub.s32 %s5102_s16, %s5265_s14 }
  0x2c   : > { %p49_p7 = scmp.ne.s32.totalorder %s5098_s15, %s5094_s30  ;;  %p40_p8 = scmp.eq.s32.totalorder %s39_s4, 0 }
  0x2d   : > { %p50_p9 = scmp.eq.s32.totalorder %s5102_s16, 0  ;;  %p55_p10 = scmp.ne.s32.totalorder %s5094_s30, %s5090_s29 }
  0x2e   : > { %p357_p11 = scmp.eq.s32.totalorder %s5217_s20, 1  ;;  %p363_p2 = scmp.eq.s32.totalorder %s3912_s13, 1 }
  0x2f   : > { %s5277_s19 = scalar_select %p40_p8, %s5098_s15, %s42_s28  }
  0x30   : > { %p5279_p12 = por %p50_p9, %p49_p7  ;;  %p5285_p13 = por %p56_p1, %p55_p10 }
  0x31   : > { %6644 = sst [smem:[#allocation26_spill]] %s5277_s19  ;;  %p5289_p0 = por %p357_p11, %p49_p7 }
  0x32   : > { %p4670_p4 = scmp.lt.s32.totalorder %s5102_s16, 2  ;;  %s5295_s25 = sand.u32 1, %s5098_s15  }
  0x33   : > { %p5297_p6 = por %p363_p2, %p55_p10  ;;  %s3920_s26 = sshll.u32 %s5295_s25, 6 }
  0x34   : > { %s4490_s17 = sshll.u32 %s5102_s16, 6  ;;  %s6649_s0 = sld [smem:[#allocation28_spill]] }
  0x35   : > { %s478_s18 = scalar_lea.vmem [#allocation4], %s3920_s26  ;;  %p5308_p7 = pnand %p4670_p4, %p5279_p12 }
  0x36   : > { %s486_s22 = sshll.u32 %s478_s18, 4  ;;  %s496_s9 = sand.u32 1, %s5102_s16   ;;  %s487_s22 = int_to_ptr.vmem [resolvable:$true] %s486_s22 }
  0x37   : > { %s502_s19 = scalar_lea.hbm %s6600_s1, %s5102_s16  ;;  %s475_s15 = scalar_lea.sflag [#allocation5], %s5295_s25 }
  0x38   : > { %p4964_p9 = pneg %p5308_p7 }
  0x3a   : > { %s483_s28 = scalar_lea.hbm %s6649_s0, %s4490_s17  ;;  %s4967_s26 = scalar_lea.hbm %s6649_s0, 128 }
  0x3b   : > { %s484_s4 = sshll.u32 %s483_s28, 4  ;;  %s485_s4 = int_to_ptr.hbm [resolvable:$true] %s484_s4 }
  0x3c   : > { %s4960_s8 = sshra.s32 %s485_s4, 4  ;;  %s4961_s8 = int_to_ptr.hbm [resolvable:$true] %s4960_s8 }
  0x3d   : > { %s4962_s17 = scalar_lea.hbm %s4961_s8, 64  ;;  %p4968_p12 = scmp.lt.s32.totalorder %s4961_s8, %s6649_s0 }
  0x3e   : > { %p4963_p8 = scmp.ne.s32.totalorder %s4961_s8, %s4962_s17  ;;  %p4969_p2 = scmp.lt.s32.totalorder %s4967_s26, %s4962_s17 }
  0x40   : > { %p4965_p10 = pnand %p4964_p9, %p4963_p8  ;;  %p4970_p4 = por %p4969_p2, %p4968_p12 }
  0x42   : > { %p4966_p11 = pneg %p4965_p10 }
  0x44   : > { %p4971_p5 = pnand %p4970_p4, %p4966_p11 }
  0x46   : > { %4974 = shalt.err (!%p4971_p5)
}
  0x47   : > { %s6651_s10 = smov 8   ;;  %s6652_s12 = smov 128  }
  0x48   : > { %4657 = dma.hbm_to_vmem [thread:$0]  (!%p5308_p7), %s485_s4, 1024, %s487_s22, %s475_s15, %s6652_s12, %s6652_s12, %s6651_s10  }
  0x49   : > { %s504_s14 = sshll.u32 %s502_s19, 4  ;;  %s499_s16 = scalar_lea.vmem [#allocation7], %s5295_s25  ;;  %s505_s14 = int_to_ptr.hbm [resolvable:$true] %s504_s14 }
  0x4a   : > { %s506_s18 = sshll.u32 %s499_s16, 4  ;;  %s497_s5 = scalar_lea.sflag [#allocation8], %s496_s9  ;;  %s507_s18 = int_to_ptr.vmem [resolvable:$true] %s506_s18 }
  0x4b   : > { %s4990_s11 = sshra.s32 %s505_s14, 4  ;;  %s4997_s28 = scalar_lea.hbm %s6600_s1, 2  ;;  %s4991_s11 = int_to_ptr.hbm [resolvable:$true] %s4990_s11 }
  0x4c   : > { %s4992_s8 = scalar_lea.hbm %s4991_s11, 1  ;;  %p4998_p11 = scmp.lt.s32.totalorder %s4991_s11, %s6600_s1 }
  0x4d   : > { %p4993_p8 = scmp.ne.s32.totalorder %s4991_s11, %s4992_s8  ;;  %p4999_p12 = scmp.lt.s32.totalorder %s4997_s28, %s4992_s8 }
  0x4f   : > { %p4995_p5 = pnand %p4993_p8, %p4964_p9  ;;  %p5000_p2 = por %p4999_p12, %p4998_p11 }
  0x51   : > { %p4996_p10 = pneg %p4995_p5 }
  0x53   : > { %p5001_p4 = pnand %p5000_p2, %p4996_p10 }
  0x55   : > { %5004 = shalt.err (!%p5001_p4)
}
  0x56   : > { %4660 = dma.hbm_to_vmem [thread:$0]  (!%p5308_p7), %s505_s14, 16, %s507_s18, %s497_s5  }
  0x57   : > { %515 = sbr.rel (%p5222_p3) target bundleno = 2409 (0x969), region = 76 }
  0x5c   : > { %s5349_s9 = sand.u32 1, %s5094_s30  }
  0x5d   : > { %s3924_s16 = sshll.u32 %s5349_s9, 6  ;;  %s518_s0 = scalar_lea.sflag [#allocation5], %s5349_s9 }
  0x5e   : > { %s5355_s22 = scalar_lea.vmem [#allocation4], %s3924_s16 }
  0x5f   : > { %5065 = dma.done.wait (%p5285_p13), %s518_s0, 1024  }
  0x60   : > { %5067 = vsyncadd (%p5285_p13), %s518_s0, 4294966272  ;;  %s527_s21 = sand.u32 1, %s5217_s20   ;;  %s530_s19 = scalar_lea.vmem [#allocation7], %s5349_s9 }
  0x61   : > { %s528_s14 = scalar_lea.sflag [#allocation8], %s527_s21 }
  0x62   : > { %5069 = dma.done.wait (%p5285_p13), %s528_s14, 16  }
  0x63   : > { %5071 = vsyncadd (%p5285_p13), %s528_s14, 4294967280 }
  0x64   : > { %5073 = dma.done.wait (%p56_p1), [#allocation8], 512  }
  0x65   : > { %5075 = vsyncadd (%p56_p1), [#allocation8], 4294966784 }
  0x66   : > { %5077 = dma.done.wait (%p56_p1), [#allocation11], 5120  }
  0x67   : > { %5079 = vsyncadd (%p56_p1), [#allocation11], 4294962176 }
  0x68   : > { %5081 = dma.done.wait (%p56_p1), [#allocation14], 9728  }
  0x69   : > { %5083 = vsyncadd (%p56_p1), [#allocation14], 4294957568  ;;  %vm6623_vm0 = vcmask 523264   ;;  %v617_v0 = vld [vmem:[#allocation9 + $0x18] sm:$0xff]  ;;  %v5384_v2 = vld [vmem:[%s5355_s22 + $0x8] sm:$0xff]  ;;  %v5113_v33 = vmov 128.0  }
  0x6a   : > { %3931 = vmatpush.xpose.msk.msra.mxu0 %vm6623_vm0, %v617_v0  ;;  %v5381_v1 = vld [vmem:[%s5355_s22] sm:$0xff]  ;;  %699 = vmatpush.msra.mxu1 %v617_v0  ;;  %v616_v3 = vld [vmem:[#allocation9 + $0x10] sm:$0xff]  ;;  %v620_v7 = vsel %vm6623_vm0, %v5384_v2, 0.0  ;;  %v615_v11 = vld [vmem:[#allocation9 + $0x8] sm:$0xff]  ;;  %4729 = vrcp.f32 %v5113_v33  ;;  %vm683_vm2 = vcmask 261120   ;;  %vm993_vm6 = vcmask 516096  }
  0x6b   : > { %v608_v4 = vld [vmem:[%s5355_s22 + $0x10] sm:$0xff]  ;;  %v609_v5 = vld [vmem:[%s5355_s22 + $0x18] sm:$0xff]  ;;  %v619_v6 = vsel %vm6623_vm0, %v5381_v1, 0.0  ;;  %3937 = vmatpush.xpose.msk.msra.mxu2 %vm6623_vm0, %v617_v0  ;;  %785 = vmatpush.msra.mxu3 %v617_v0  ;;  %v610_v8 = vld [vmem:[%s5355_s22 + $0x20] sm:$0xff]  ;;  %vm1002_vm7 = vcmask 522240   ;;  %s6677_s17 = sld [smem:[#allocation31_spill]] }
  0x6c   : > { %v621_v9 = vadd.f32 %v620_v7, %v619_v6  ;;  %v622_v10 = vsel %vm6623_vm0, %v608_v4, 0.0  ;;  %700 = vmatpush.msra.mxu1 %v616_v3  ;;  %v611_v12 = vld [vmem:[%s5355_s22 + $0x28] sm:$0xff]  ;;  %v624_v13 = vsel %vm6623_vm0, %v609_v5, 0.0  ;;  %v626_v16 = vsel %vm6623_vm0, %v610_v8, 0.0  ;;  %v612_v17 = vld [vmem:[%s5355_s22 + $0x30] sm:$0xff]  ;;  %v613_v20 = vld [vmem:[%s5355_s22 + $0x38] sm:$0xff] }
  0x6d   : > { %786 = vmatpush.msra.mxu3 %v616_v3  ;;  %v614_v15 = vld [vmem:[#allocation9] sm:$0xff]  ;;  %v628_v19 = vsel %vm6623_vm0, %v611_v12, 0.0  ;;  %v630_v22 = vsel %vm6623_vm0, %v612_v17, 0.0  ;;  %v632_v24 = vsel %vm6623_vm0, %v613_v20, 0.0  ;;  %v5461_v33 = vld [vmem:[#allocation10 + $0xc8] sm:$0xff]  ;;  %s6698_s15 = sld [smem:[#allocation36_spill]] }
  0x6e   : > { %3932 = vmatpush.xpose.msk.msra.mxu0 %vm6623_vm0, %v616_v3  ;;  %v623_v14 = vadd.f32 %v622_v10, %v621_v9  ;;  %701 = vmatpush.msra.mxu1 %v615_v11  ;;  %s6699_s21 = sld [smem:[#allocation34_spill]]  ;;  %s6527_s14 = scalar_lea.vmem [#allocation16], %s3924_s16 }
  0x6f   : > { %3938 = vmatpush.xpose.msk.msra.mxu2 %vm6623_vm0, %v616_v3  ;;  %787 = vmatpush.msra.mxu3 %v615_v11  ;;  %s4603_s16 = sshll.u32 %s5217_s20, 6  ;;  %s6707_s25 = sld [smem:[#allocation37_spill]] }
  0x70   : > { %v625_v18 = vadd.f32 %v624_v13, %v623_v14  ;;  %702 = vmatpush.msra.mxu1 %v614_v15  ;;  %v4730_v34 = vpop.eup %4729  ;;  %s3770_s13 = sshll.u32 %s6527_s14, 4  ;;  %s3758_s20 = scalar_lea.sflag [#allocation6], %s5349_s9  ;;  %s3771_s13 = int_to_ptr.vmem [resolvable:$true] %s3770_s13 }
  0x71   : > { %788 = vmatpush.msra.mxu3 %v614_v15  ;;  %v676_v35 = vmul.f32 128.0, %v4730_v34  ;;  %vm680_vm1 = vweird.f32 %v4730_v34 }
  0x72   : > { %3933 = vmatpush.xpose.msk.msra.mxu0 %vm6623_vm0, %v615_v11  ;;  %v627_v21 = vadd.f32 %v626_v16, %v625_v18 }
  0x73   : > { %3939 = vmatpush.xpose.msk.msra.mxu2 %vm6623_vm0, %v615_v11  ;;  %v677_v36 = vsub.f32 1.0, %v676_v35  ;;  %v769_v35 = vld [vmem:[%s6601_s2] sm:$0x1] }
  0x74   : > { %v629_v23 = vadd.f32 %v628_v19, %v627_v21 }
  0x75   : > { %v678_v37 = vmul.f32 %v4730_v34, %v677_v36  ;;  %s3769_s4 = scalar_lea.hbm %s6707_s25, %s4603_s16  ;;  %s5040_s8 = scalar_lea.hbm %s6707_s25, 128 }
  0x76   : > { %3934 = vmatpush.xpose.msk.msra.mxu0 %vm6623_vm0, %v614_v15  ;;  %v631_v25 = vadd.f32 %v630_v22, %v629_v23  ;;  %v4498_v23 = vld [vmem:[#allocation10 + $0x78] sm:$0xff]  ;;  %s3772_s10 = sshll.u32 %s3769_s4, 4  ;;  %s3773_s10 = int_to_ptr.hbm [resolvable:$true] %s3772_s10 }
  0x77   : > { %3940 = vmatpush.xpose.msk.msra.mxu2 %vm6623_vm0, %v614_v15  ;;  %v679_v38 = vadd.f32 %v4730_v34, %v678_v37  ;;  %1161 = vmatpush.bf16.msrb.mxu1 %v4498_v23  ;;  %s5034_s12 = sshra.s32 %s3773_s10, 4  ;;  %s5035_s12 = int_to_ptr.hbm [resolvable:$true] %s5034_s12 }
  0x78   : > { %v633_v26 = vadd.f32 %v632_v24, %v631_v25  ;;  %v5455_v24 = vld [vmem:[#allocation10 + $0xd8] sm:$0xff]  ;;  %4604 = vmatpush.bf16.msrb.mxu3 %v4498_v23  ;;  %s5036_s18 = scalar_lea.hbm %s5035_s12, 64  ;;  %p5041_p7 = scmp.lt.s32.totalorder %s5035_s12, %s6707_s25 }
  0x79   : > { %v681_v39 = vsel %vm680_vm1, %v4730_v34, %v679_v38  ;;  %v4510_v25 = vld [vmem:[#allocation10 + $0x98] sm:$0xff]  ;;  %v4508_v34 = vld [vmem:[#allocation10 + $0x88] sm:$0xff]  ;;  %v4495_v38 = vld [vmem:[#allocation10 + $0x60] sm:$0xff]  ;;  %p5037_p1 = scmp.ne.s32.totalorder %s5035_s12, %s5036_s18  ;;  %p5042_p9 = scmp.lt.s32.totalorder %s5040_s8, %s5036_s18 }
  0x7a   : > { %v634_v27 = vrot.slane %v633_v26, 4  ;;  %1348 = vmatpush.bf16.msrb.mxu0 %v5455_v24 }
  0x7b   : > { %1439 = vmatpush.bf16.msrb.mxu2 %v4510_v25  ;;  %p5038_p3 = pnand %p5037_p1, %p5289_p0  ;;  %p5043_p8 = por %p5042_p9, %p5041_p7 }
  0x7c   : > { %v635_v28 = vadd.f32 %v634_v27, %v633_v26  ;;  %v4497_v27 = vld [vmem:[#allocation10 + $0x70] sm:$0xff] }
  0x7d   : > { %1162 = vmatpush.bf16.msrb.mxu1 %v4497_v27  ;;  %4605 = vmatpush.bf16.msrb.mxu3 %v4497_v27  ;;  %p5039_p13 = pneg %p5038_p3 }
  0x7e   : > { %v636_v29 = vrot.slane %v635_v28, 2 }
  0x7f   : > { %p5044_p5 = pnand %p5043_p8, %p5039_p13 }
  0x80   : > { %v637_v30 = vadd.f32 %v636_v29, %v635_v28  ;;  %v5458_v28 = vld [vmem:[#allocation10 + $0xd0] sm:$0xff] }
  0x81   : > { %v4509_v29 = vld [vmem:[#allocation10 + $0x90] sm:$0xff]  ;;  %1349 = vmatpush.bf16.msrb.mxu0 %v5458_v28 }
  0x82   : > { %v638_v31 = vrot.slane %v637_v30, 1  ;;  %1440 = vmatpush.bf16.msrb.mxu2 %v4509_v29 }
  0x84   : > { %v639_v32 = vadd.f32 %v638_v31, %v637_v30 }
  0x85   : > { %1350 = vmatpush.bf16.msrb.mxu0 %v5461_v33 }
  0x86   : > { %3935 = vmatmul.msk.f32.vlgmr.msra.gmra.mxu0 %vm6623_vm0, %v639_v32  ;;  %v4496_v32 = vld [vmem:[#allocation10 + $0x68] sm:$0xff]  ;;  %1441 = vmatpush.bf16.msrb.mxu2 %v4508_v34 }
  0x87   : > { %1163 = vmatpush.bf16.msrb.mxu1 %v4496_v32  ;;  %4606 = vmatpush.bf16.msrb.mxu3 %v4496_v32 }
  0x8b   : > { %1164 = vmatpush.bf16.msrb.mxu1 %v4495_v38  ;;  %4607 = vmatpush.bf16.msrb.mxu3 %v4495_v38 }
 0x103   : > { %v672_v40 = vpop.f32.mrf.mxu0 }
 0x104   : > { %v682_v41 = vmul.f32 %v681_v39, %v672_v40  ;;  %v5467_v40 = vld [vmem:[#allocation10 + $0xc0] sm:$0xff] }
 0x105   : > { %1351 = vmatpush.bf16.msrb.mxu0 %v5467_v40 }
 0x106   : > { %3936 = vmatmul.msk.f32.vlgmr.msra.gmra.mxu1 %vm683_vm2, %v682_v41  ;;  %v4507_v41 = vld [vmem:[#allocation10 + $0x80] sm:$0xff] }
 0x107   : > { %1442 = vmatpush.bf16.msrb.mxu2 %v4507_v41 }
 0x183   : > { %v704_v42 = vpop.f32.mrf.mxu1 }
 0x184   : > { %v707_v43 = vperm.slane %v704_v42, 0 }
 0x186   : > { %v5412_v44 = vsub.f32 %v5381_v1, %v707_v43  ;;  %v5415_v45 = vsub.f32 %v5384_v2, %v707_v43  ;;  %v5417_v46 = vsub.f32 %v608_v4, %v707_v43  ;;  %v5419_v47 = vsub.f32 %v609_v5, %v707_v43 }
 0x187   : > { %v5421_v48 = vsub.f32 %v610_v8, %v707_v43  ;;  %v5429_v52 = vsub.f32 %v611_v12, %v707_v43  ;;  %v5435_v57 = vsub.f32 %v612_v17, %v707_v43  ;;  %v5440_v61 = vsub.f32 %v613_v20, %v707_v43  ;;  %v4723_v43 = vld [vmem:[%s6602_s3] ss:$0 sm:$0xff] }
 0x188   : > { %v716_v49 = vmul.f32 %v5412_v44, %v5412_v44  ;;  %v717_v50 = vmul.f32 %v5415_v45, %v5415_v45  ;;  %v718_v51 = vmul.f32 %v5417_v46, %v5417_v46  ;;  %v719_v53 = vmul.f32 %v5419_v47, %v5419_v47 }
 0x189   : > { %v720_v58 = vmul.f32 %v5421_v48, %v5421_v48  ;;  %v721_v62 = vmul.f32 %v5429_v52, %v5429_v52  ;;  %v722_v1 = vmul.f32 %v5435_v57, %v5435_v57  ;;  %v723_v4 = vmul.f32 %v5440_v61, %v5440_v61 }
 0x18a   : > { %v724_v54 = vsel %vm6623_vm0, %v716_v49, 0.0  ;;  %v725_v55 = vsel %vm6623_vm0, %v717_v50, 0.0  ;;  %v727_v59 = vsel %vm6623_vm0, %v718_v51, 0.0  ;;  %v729_v63 = vsel %vm6623_vm0, %v719_v53, 0.0 }
 0x18b   : > { %v726_v56 = vadd.f32 %v725_v55, %v724_v54  ;;  %v731_v2 = vsel %vm6623_vm0, %v720_v58, 0.0  ;;  %v733_v5 = vsel %vm6623_vm0, %v721_v62, 0.0  ;;  %v735_v7 = vsel %vm6623_vm0, %v722_v1, 0.0 }
 0x18c   : > { %v737_v9 = vsel %vm6623_vm0, %v723_v4, 0.0 }
 0x18d   : > { %v728_v60 = vadd.f32 %v727_v59, %v726_v56 }
 0x18f   : > { %v730_v0 = vadd.f32 %v729_v63, %v728_v60 }
 0x191   : > { %v732_v3 = vadd.f32 %v731_v2, %v730_v0 }
 0x193   : > { %v734_v6 = vadd.f32 %v733_v5, %v732_v3 }
 0x195   : > { %v736_v8 = vadd.f32 %v735_v7, %v734_v6 }
 0x197   : > { %v738_v10 = vadd.f32 %v737_v9, %v736_v8 }
 0x199   : > { %v739_v11 = vrot.slane %v738_v10, 4 }
 0x19b   : > { %v740_v12 = vadd.f32 %v739_v11, %v738_v10 }
 0x19d   : > { %v741_v13 = vrot.slane %v740_v12, 2 }
 0x19f   : > { %v742_v14 = vadd.f32 %v741_v13, %v740_v12 }
 0x1a1   : > { %v743_v15 = vrot.slane %v742_v14, 1 }
 0x1a3   : > { %v744_v16 = vadd.f32 %v743_v15, %v742_v14 }
 0x1a5   : > { %3941 = vmatmul.msk.f32.vlgmr.msra.gmra.mxu2 %vm6623_vm0, %v744_v16 }
 0x228   : > { %v765_v17 = vpop.f32.mrf.mxu2 }
 0x229   : > { %v768_v18 = vmul.f32 %v765_v17, %v681_v39 }
 0x22b   : > { %3942 = vmatmul.msk.f32.vlgmr.msra.gmra.mxu3 %vm683_vm2, %v768_v18 }
 0x2ae   : > { %v790_v19 = vpop.f32.mrf.mxu3 }
 0x2af   : > { %v791_v20 = vadd.f32 1e-06, %v790_v19 }
 0x2b1   : > { %4731 = vrsqrt.f32 %v791_v20  ;;  %vm799_vm4 = vweird.f32 %v791_v20 }
 0x2b7   : > { %v4732_v21 = vpop.eup %4731 }
 0x2b8   : > { %v794_v22 = vmul.f32 %v4732_v21, %v791_v20  ;;  %vm800_vm3 = vweird.f32 %v4732_v21 }
 0x2b9   : > { %vm801_vm5 = vmor %vm799_vm4, %vm800_vm3 }
 0x2ba   : > { %v795_v26 = vmul.f32 %v4732_v21, %v794_v22 }
 0x2bc   : > { %v796_v30 = vmul.f32 0.5, %v795_v26 }
 0x2be   : > { %v797_v31 = vsub.f32 1.5, %v796_v30  ;;  %v4494_v30 = vld [vmem:[#allocation10 + $0x18] sm:$0xff] }
 0x2bf   : > { %1250 = vmatpush.bf16.msra.mxu3 %v4494_v30 }
 0x2c0   : > { %v798_v36 = vmul.f32 %v4732_v21, %v797_v31 }
 0x2c2   : > { %v802_v37 = vsel %vm801_vm5, %v4732_v21, %v798_v36  ;;  %v4506_v36 = vld [vmem:[#allocation10 + $0x38] sm:$0xff] }
 0x2c3   : > { %v803_v39 = vmul.f32 %v802_v37, %v769_v35  ;;  %1512 = vmatpush.bf16.msra.mxu1 %v4506_v36 }
 0x2c5   : > { %v805_v42 = vperm.slane %v803_v39, 0 }
 0x2c7   : > { %v807_v49 = vmul.f32 %v805_v42, %v5412_v44  ;;  %v808_v50 = vmul.f32 %v805_v42, %v5415_v45  ;;  %v809_v51 = vmul.f32 %v805_v42, %v5417_v46  ;;  %v810_v53 = vmul.f32 %v805_v42, %v5419_v47 }
 0x2c8   : > { %v811_v54 = vmul.f32 %v805_v42, %v5421_v48  ;;  %v812_v55 = vmul.f32 %v805_v42, %v5429_v52  ;;  %v813_v56 = vmul.f32 %v805_v42, %v5435_v57  ;;  %v814_v58 = vmul.f32 %v805_v42, %v5440_v61 }
 0x2c9   : > { %v5481_v59 = vadd.f32 %v4723_v43, %v807_v49  ;;  %v5483_v44 = vadd.f32 %v4723_v43, %v808_v50  ;;  %v5114_v46 = vmov 0.0   ;;  %v5489_v47 = vadd.f32 %v4723_v43, %v809_v51 }
 0x2ca   : > { %v5485_v45 = vadd.f32 %v4723_v43, %v814_v58  ;;  %994 = vst.msk [vmem:[#allocation2 + $0x10] sm:$0x1] %vm993_vm6, %v5114_v46  ;;  %v5491_v48 = vadd.f32 %v4723_v43, %v810_v53  ;;  %v5497_v60 = vadd.f32 %v4723_v43, %v811_v54  ;;  %v5503_v63 = vadd.f32 %v4723_v43, %v812_v55 }
 0x2cb   : > { %v3943_v52 = vmul.f32 -1.442695, %v5481_v59  ;;  %v3944_v57 = vmul.f32 -1.442695, %v5483_v44  ;;  %1003 = vst.msk [vmem:[#allocation2 + $0x19] sm:$0x7f] %vm1002_vm7, %v5114_v46  ;;  %v5508_v1 = vadd.f32 %v4723_v43, %v813_v56 }
 0x2cc   : > { %v3950_v61 = vmul.f32 -1.442695, %v5485_v45  ;;  %987 = vst.msk [vmem:[#allocation2] sm:$0xff] %vm6623_vm0, %v5114_v46  ;;  %v3945_v62 = vmul.f32 -1.442695, %v5489_v47  ;;  %v4493_v43 = vld [vmem:[#allocation10 + $0x10] sm:$0xff] }
 0x2cd   : > { %4733 = vpow2.f32 %v3943_v52  ;;  %988 = vst.msk [vmem:[#allocation2 + $0x8] sm:$0xff] %vm6623_vm0, %v5114_v46  ;;  %v3946_v0 = vmul.f32 -1.442695, %v5491_v48  ;;  %v3947_v2 = vmul.f32 -1.442695, %v5497_v60  ;;  %1251 = vmatpush.bf16.msra.mxu3 %v4493_v43 }
 0x2ce   : > { %4735 = vpow2.f32 %v3944_v57  ;;  %990 = vst.msk [vmem:[#allocation2 + $0x90] sm:$0xff] %vm6623_vm0, %v5114_v46  ;;  %v3948_v3 = vmul.f32 -1.442695, %v5503_v63  ;;  %v3949_v4 = vmul.f32 -1.442695, %v5508_v1 }
 0x2cf   : > { %4737 = vpow2.f32 %v3950_v61  ;;  %991 = vst.msk [vmem:[#allocation2 + $0x98] sm:$0xff] %vm6623_vm0, %v5114_v46 }
 0x2d0   : > { %995 = vst.msk [vmem:[#allocation2 + $0x20] sm:$0x1] %vm993_vm6, %v5114_v46  ;;  %4739 = vpow2.f32 %v3945_v62 }
 0x2d1   : > { %996 = vst.msk [vmem:[#allocation2 + $0x30] sm:$0x1] %vm993_vm6, %v5114_v46  ;;  %4741 = vpow2.f32 %v3946_v0  ;;  %v4492_v0 = vld [vmem:[#allocation10 + $0x8] sm:$0xff] }
 0x2d2   : > { %997 = vst.msk [vmem:[#allocation2 + $0x40] sm:$0x1] %vm993_vm6, %v5114_v46  ;;  %4743 = vpow2.f32 %v3947_v2  ;;  %1252 = vmatpush.bf16.msra.mxu3 %v4492_v0 }
 0x2d3   : > { %v4734_v5 = vpop.eup %4733  ;;  %998 = vst.msk [vmem:[#allocation2 + $0x50] sm:$0x1] %vm993_vm6, %v5114_v46  ;;  %4745 = vpow2.f32 %v3948_v3 }
 0x2d4   : > { %v4736_v6 = vpop.eup %4735  ;;  %v5525_v7 = vadd.f32 1.0, %v4734_v5  ;;  %999 = vst.msk [vmem:[#allocation2 + $0x60] sm:$0x1] %vm993_vm6, %v5114_v46  ;;  %4747 = vpow2.f32 %v3949_v4 }
 0x2d5   : > { %v4738_v8 = vpop.eup %4737  ;;  %v5529_v9 = vadd.f32 1.0, %v4736_v6  ;;  %1000 = vst.msk [vmem:[#allocation2 + $0x70] sm:$0x1] %vm993_vm6, %v5114_v46 }
 0x2d6   : > { %v4740_v10 = vpop.eup %4739  ;;  %v5533_v11 = vadd.f32 1.0, %v4738_v8  ;;  %4749 = vrcp.f32 %v5525_v7  ;;  %1001 = vst.msk [vmem:[#allocation2 + $0x80] sm:$0x1] %vm993_vm6, %v5114_v46  ;;  %v868_v14 = vand.u32 2147483647, %v5525_v7  ;;  %v870_v16 = vand.u32 2147483648, %v5525_v7 }
 0x2d7   : > { %v4742_v12 = vpop.eup %4741  ;;  %4751 = vrcp.f32 %v5529_v9  ;;  %1004 = vst.msk [vmem:[#allocation2 + $0x29] sm:$0x7f] %vm1002_vm7, %v5114_v46  ;;  %v5550_v17 = vadd.f32 1.0, %v4740_v10  ;;  %v885_v21 = vand.u32 2147483648, %v5529_v9  ;;  %vm864_vm8 = vweird.f32 %v5525_v7 }
 0x2d8   : > { %4753 = vrcp.f32 %v5533_v11  ;;  %1005 = vst.msk [vmem:[#allocation2 + $0x39] sm:$0x7f] %vm1002_vm7, %v5114_v46  ;;  %v4744_v13 = vpop.eup %4743  ;;  %v5552_v18 = vadd.f32 1.0, %v4742_v12  ;;  %v975_v20 = vand.u32 2147483648, %v5533_v11  ;;  %vm5570_vm9 = vcmp.eq.f32.partialorder %v868_v14, 8.507059e+37 }
 0x2d9   : > { %1006 = vst.msk [vmem:[#allocation2 + $0x49] sm:$0x7f] %vm1002_vm7, %v5114_v46  ;;  %v4746_v15 = vpop.eup %4745  ;;  %4755 = vrcp.f32 %v5550_v17  ;;  %v5564_v23 = vadd.f32 1.0, %v4744_v13  ;;  %v883_v29 = vand.u32 2147483647, %v5529_v9  ;;  %v871_v32 = vor.u32 1.1754944e-38, %v870_v16 }
 0x2da   : > { %1007 = vst.msk [vmem:[#allocation2 + $0x59] sm:$0x7f] %vm1002_vm7, %v5114_v46  ;;  %v4748_v19 = vpop.eup %4747  ;;  %4757 = vrcp.f32 %v5552_v18  ;;  %vm969_vm10 = vweird.f32 %v5533_v11  ;;  %v973_v34 = vand.u32 2147483647, %v5533_v11  ;;  %v5585_v37 = vadd.f32 1.0, %v4746_v15 }
 0x2db   : > { %1008 = vst.msk [vmem:[#allocation2 + $0x69] sm:$0x7f] %vm1002_vm7, %v5114_v46  ;;  %v5589_v41 = vor.u32 1.1754944e-38, %v975_v20  ;;  %v5591_v42 = vor.u32 1.1754944e-38, %v885_v21  ;;  %vm879_vm11 = vweird.f32 %v5529_v9  ;;  %v900_v50 = vand.u32 2147483648, %v5550_v17 }
 0x2dc   : > { %v5558_v22 = vpop.eup %4749  ;;  %1009 = vst.msk [vmem:[#allocation2 + $0x79] sm:$0x7f] %vm1002_vm7, %v5114_v46  ;;  %4759 = vrcp.f32 %v5564_v23  ;;  %v5596_v51 = vadd.f32 1.0, %v4748_v19  ;;  %v898_v55 = vand.u32 2147483647, %v5550_v17  ;;  %vm5604_vm13 = vcmp.eq.f32.partialorder %v973_v34, 8.507059e+37 }
 0x2dd   : > { %v5566_v25 = vpop.eup %4751  ;;  %v860_v26 = vmul.f32 %v5558_v22, %v5525_v7  ;;  %1010 = vst.msk [vmem:[#allocation2 + $0x89] sm:$0x7f] %vm1002_vm7, %v5114_v46  ;;  %vm865_vm12 = vweird.f32 %v5558_v22  ;;  %vm894_vm14 = vweird.f32 %v5550_v17  ;;  %vm909_vm15 = vweird.f32 %v5552_v18 }
 0x2de   : > { %v5578_v31 = vpop.eup %4753  ;;  %2392 = vst [vmem:[#allocation3] sm:$0xff] %v5114_v46  ;;  %v875_v35 = vmul.f32 %v5566_v25, %v5529_v9  ;;  %4761 = vrcp.f32 %v5585_v37  ;;  %v913_v3 = vand.u32 2147483647, %v5552_v18  ;;  %vm866_vm1 = vmor %vm864_vm8, %vm865_vm12  ;;  %vm880_vm4 = vweird.f32 %v5566_v25 }
 0x2df   : > { %v861_v38 = vsub.f32 1.0, %v860_v26  ;;  %v965_v39 = vmul.f32 %v5578_v31, %v5533_v11  ;;  %v5601_v56 = vpop.eup %4755  ;;  %2398 = vst [vmem:[#allocation3 + $0x10] sm:$0x1] %v5114_v46  ;;  %vm970_vm3 = vweird.f32 %v5578_v31  ;;  %vm5627_vm5 = vcmp.eq.f32.partialorder %v883_v29, 8.507059e+37 }
 0x2e0   : > { %v876_v49 = vsub.f32 1.0, %v875_v35  ;;  %v5612_v57 = vpop.eup %4757  ;;  %2399 = vst [vmem:[#allocation3 + $0x20] sm:$0x1] %v5114_v46  ;;  %v890_v2 = vmul.f32 %v5601_v56, %v5550_v17  ;;  %v901_v5 = vor.u32 1.1754944e-38, %v900_v50  ;;  %vm5636_vm6 = vcmp.eq.f32.partialorder %v898_v55, 8.507059e+37  ;;  %vm5654_vm8 = vmor %vm969_vm10, %vm970_vm3 }
 0x2e1   : > { %v862_v53 = vmul.f32 %v5558_v22, %v861_v38  ;;  %v966_v54 = vsub.f32 1.0, %v965_v39  ;;  %2400 = vst [vmem:[#allocation3 + $0x30] sm:$0x1] %v5114_v46  ;;  %v905_v6 = vmul.f32 %v5612_v57, %v5552_v18  ;;  %v915_v13 = vand.u32 2147483648, %v5552_v18  ;;  %v4520_v39 = vld [vmem:[#allocation10 + $0xa8] sm:$0xff] }
 0x2e2   : > { %v877_v52 = vmul.f32 %v5566_v25, %v876_v49  ;;  %2401 = vst [vmem:[#allocation3 + $0x40] sm:$0x1] %v5114_v46  ;;  %v891_v10 = vsub.f32 1.0, %v890_v2  ;;  %v5641_v14 = vpop.eup %4759  ;;  %vm924_vm7 = vweird.f32 %v5564_v23  ;;  %vm5659_vm12 = vcmp.eq.f32.partialorder %v913_v3, 8.507059e+37 }
 0x2e3   : > { %v863_v61 = vadd.f32 %v5558_v22, %v862_v53  ;;  %v967_v62 = vmul.f32 %v5578_v31, %v966_v54  ;;  %2402 = vst [vmem:[#allocation3 + $0x50] sm:$0x1] %v5114_v46  ;;  %v906_v19 = vsub.f32 1.0, %v905_v6  ;;  %vm910_vm10 = vweird.f32 %v5612_v57 }
 0x2e4   : > { %v878_v16 = vadd.f32 %v5566_v25, %v877_v52  ;;  %2403 = vst [vmem:[#allocation3 + $0x60] sm:$0x1] %v5114_v46  ;;  %v5664_v27 = vpop.eup %4761  ;;  %v892_v29 = vmul.f32 %v5601_v56, %v891_v10  ;;  %v916_v34 = vor.u32 1.1754944e-38, %v915_v13  ;;  %v930_v35 = vand.u32 2147483648, %v5564_v23 }
 0x2e5   : > { %v867_v8 = vsel %vm866_vm1, %v5558_v22, %v863_v61  ;;  %v968_v7 = vadd.f32 %v5578_v31, %v967_v62  ;;  %v4491_v22 = vld [vmem:[#allocation10] sm:$0xff]  ;;  %2404 = vst [vmem:[#allocation3 + $0x70] sm:$0x1] %v5114_v46  ;;  %v907_v30 = vmul.f32 %v5612_v57, %v906_v19  ;;  %vm5678_vm1 = vmor %vm879_vm11, %vm880_vm4  ;;  %v935_v36 = vmul.f32 %v5664_v27, %v5585_v37  ;;  %v4505_v61 = vld [vmem:[#allocation10 + $0x30] sm:$0xff] }
 0x2e6   : > { %v872_v15 = vsel %vm5570_vm9, %v871_v32, %v867_v8  ;;  %vm895_vm9 = vweird.f32 %v5601_v56  ;;  %2405 = vst [vmem:[#allocation3 + $0x80] sm:$0x1] %v5114_v46  ;;  %v882_v38 = vsel %vm5678_vm1, %v5566_v25, %v878_v16  ;;  %v893_v9 = vadd.f32 %v5601_v56, %v892_v29  ;;  %1253 = vmatpush.bf16.msra.mxu3 %v4491_v22  ;;  %vm5710_vm4 = vmor %vm909_vm15, %vm910_vm10  ;;  %v4515_v62 = vld [vmem:[#allocation10 + $0x40] sm:$0xff] }
 0x2e7   : > { %v979_v20 = vmul.f32 %v872_v15, %v5481_v59  ;;  %v928_v59 = vand.u32 2147483647, %v5564_v23  ;;  %v972_v11 = vsel %vm5654_vm8, %v5578_v31, %v968_v7  ;;  %v920_v31 = vmul.f32 %v5641_v14, %v5564_v23  ;;  %vm5696_vm11 = vmor %vm894_vm14, %vm895_vm9  ;;  %2406 = vst [vmem:[#allocation3 + $0x19] sm:$0x7f] %v5114_v46  ;;  %1513 = vmatpush.bf16.msra.mxu1 %v4505_v61 }
 0x2e8   : > { %v908_v43 = vadd.f32 %v5612_v57, %v907_v30  ;;  %vm925_vm3 = vweird.f32 %v5641_v14  ;;  %v977_v25 = vsel %vm5604_vm13, %v5589_v41, %v972_v11  ;;  %v936_v50 = vsub.f32 1.0, %v935_v36  ;;  %2407 = vst [vmem:[#allocation3 + $0x29] sm:$0x7f] %v5114_v46 }
 0x2e9   : > { %1011 = vst.msk [vmem:[#allocation2 + $0x11] sm:$0xff] %vm6623_vm0, %v979_v20  ;;  %v921_v49 = vsub.f32 1.0, %v920_v31  ;;  %4763 = vrcp.f32 %v5596_v51  ;;  %v897_v53 = vsel %vm5696_vm11, %v5601_v56, %v893_v9  ;;  %v943_v18 = vand.u32 2147483647, %v5585_v37  ;;  %vm5747_vm15 = vmor %vm924_vm7, %vm925_vm3  ;;  %v4521_v9 = vld [vmem:[#allocation10 + $0xb0] sm:$0xff] }
 0x2ea   : > { %v912_v41 = vsel %vm5710_vm4, %v5612_v57, %v908_v43  ;;  %v945_v54 = vand.u32 2147483648, %v5585_v37  ;;  %2408 = vst [vmem:[#allocation3 + $0x39] sm:$0x7f] %v5114_v46  ;;  %v887_v55 = vsel %vm5627_vm5, %v5591_v42, %v882_v38  ;;  %v937_v52 = vmul.f32 %v5664_v27, %v936_v50  ;;  %v4519_v43 = vld [vmem:[#allocation10 + $0xa0] sm:$0xff] }
 0x2eb   : > { %v922_v58 = vmul.f32 %v5641_v14, %v921_v49  ;;  %vm940_vm13 = vweird.f32 %v5664_v27  ;;  %2409 = vst [vmem:[#allocation3 + $0x49] sm:$0x7f] %v5114_v46  ;;  %v986_v56 = vmul.f32 %v977_v25, %v5485_v45  ;;  %v902_v57 = vsel %vm5636_vm6, %v901_v5, %v897_v53  ;;  %v4503_v50 = vld [vmem:[#allocation10 + $0x20] sm:$0xff] }
 0x2ec   : > { %vm5735_vm14 = vcmp.eq.f32.partialorder %v928_v59, 8.507059e+37  ;;  %v931_v0 = vor.u32 1.1754944e-38, %v930_v35  ;;  %2410 = vst [vmem:[#allocation3 + $0x59] sm:$0x7f] %v5114_v46  ;;  %v917_v42 = vsel %vm5659_vm12, %v916_v34, %v912_v41  ;;  %v938_v3 = vadd.f32 %v5664_v27, %v937_v52  ;;  %v4526_v52 = vld [vmem:[#allocation10 + $0x118] sm:$0xff] }
 0x2ed   : > { %v923_v2 = vadd.f32 %v5641_v14, %v922_v58  ;;  %vm939_vm5 = vweird.f32 %v5585_v37  ;;  %2411 = vst [vmem:[#allocation3 + $0x69] sm:$0x7f] %v5114_v46  ;;  %v980_v6 = vmul.f32 %v887_v55, %v5483_v44  ;;  %vm944_vm8 = vcmp.eq.f32.partialorder %v943_v18, 8.507059e+37 }
 0x2ee   : > { %vm941_vm6 = vmor %vm939_vm5, %vm940_vm13  ;;  %v946_v23 = vor.u32 1.1754944e-38, %v945_v54  ;;  %2412 = vst [vmem:[#allocation3 + $0x79] sm:$0x7f] %v5114_v46  ;;  %v981_v10 = vmul.f32 %v902_v57, %v5489_v47  ;;  %v982_v44 = vmul.f32 %v917_v42, %v5491_v48  ;;  %v958_v20 = vand.u32 2147483647, %v5596_v51  ;;  %v4518_v54 = vld [vmem:[#allocation10 + $0x58] sm:$0xff] }
 0x2ef   : > { %v4764_v8 = vpop.eup %4763  ;;  %v927_v37 = vsel %vm5747_vm15, %v5641_v14, %v923_v2  ;;  %v942_v12 = vsel %vm941_vm6, %v5664_v27, %v938_v3  ;;  %2413 = vst [vmem:[#allocation3 + $0x89] sm:$0x7f] %v5114_v46  ;;  %v960_v14 = vand.u32 2147483648, %v5596_v51  ;;  %vm954_vm9 = vweird.f32 %v5596_v51  ;;  %1831 = vmatpush.bf16.msra.mxu2 %v4518_v54  ;;  %v4516_v57 = vld [vmem:[#allocation10 + $0x48] sm:$0xff] }
 0x2f0   : > { %v1043_v4 = vld [vmem:[#allocation2 + $0x10] sm:$0xff]  ;;  %v1044_v5 = vld [vmem:[#allocation2 + $0x18] sm:$0xff]  ;;  %v932_v13 = vsel %vm5735_vm14, %v931_v0, %v927_v37  ;;  %v947_v15 = vsel %vm944_vm8, %v946_v23, %v942_v12  ;;  %v950_v16 = vmul.f32 %v4764_v8, %v5596_v51  ;;  %1018 = vst.msk [vmem:[#allocation2 + $0x81] sm:$0xff] %vm6623_vm0, %v986_v56  ;;  %vm955_vm7 = vweird.f32 %v4764_v8  ;;  %v1019_v51 = vld [vmem:[#allocation2] sm:$0xff] }
 0x2f1   : > { %v5757_v7 = vpack.c.bf16 %v1044_v5, %v1043_v4  ;;  %v983_v47 = vmul.f32 %v932_v13, %v5497_v60  ;;  %1012 = vst.msk [vmem:[#allocation2 + $0x21] sm:$0xff] %vm6623_vm0, %v980_v6  ;;  %v984_v46 = vmul.f32 %v947_v15, %v5503_v63  ;;  %vm956_vm12 = vmor %vm954_vm9, %vm955_vm7  ;;  %v961_v63 = vor.u32 1.1754944e-38, %v960_v14  ;;  %v4517_v56 = vld [vmem:[#allocation10 + $0x50] sm:$0xff]  ;;  %v4524_v13 = vld [vmem:[#allocation10 + $0x108] sm:$0xff] }
 0x2f2   : > { %v951_v48 = vsub.f32 1.0, %v950_v16  ;;  %1013 = vst.msk [vmem:[#allocation2 + $0x31] sm:$0xff] %vm6623_vm0, %v981_v10  ;;  %vm959_vm10 = vcmp.eq.f32.partialorder %v958_v20, 8.507059e+37  ;;  %v4525_v0 = vld [vmem:[#allocation10 + $0x110] sm:$0xff]  ;;  %v4514_v15 = vld [vmem:[#allocation10 + $0xf8] sm:$0xff]  ;;  %vm6622_vm1 = vcmask 1046528  }
 0x2f3   : > { %3967 = vmatmul.msk.bf16.vlgmr.msrb.gmra.mxu1 %vm6623_vm0, %v5757_v7  ;;  %4039 = vmatmul.msk.bf16.vlgmr.msrb.gmra.mxu2 %vm6623_vm0, %v5757_v7  ;;  %1014 = vst.msk [vmem:[#allocation2 + $0x41] sm:$0xff] %vm6623_vm0, %v982_v44  ;;  %v4513_v14 = vld [vmem:[#allocation10 + $0xf0] sm:$0xff]  ;;  %vm6621_vm11 = vcmask 1045504  }
 0x2f4   : > { %v952_v19 = vmul.f32 %v4764_v8, %v951_v48  ;;  %1015 = vst.msk [vmem:[#allocation2 + $0x51] sm:$0xff] %vm6623_vm0, %v983_v47  ;;  %1832 = vmatpush.bf16.msra.mxu2 %v4517_v56 }
 0x2f5   : > { %1016 = vst.msk [vmem:[#allocation2 + $0x61] sm:$0xff] %vm6623_vm0, %v984_v46 }
 0x2f6   : > { %v953_v60 = vadd.f32 %v4764_v8, %v952_v19  ;;  %v4512_v19 = vld [vmem:[#allocation10 + $0xe8] sm:$0xff] }
 0x2f7   : > { %v1057_v21 = vld [vmem:[#allocation2 + $0x80] sm:$0xff]  ;;  %v1058_v22 = vld [vmem:[#allocation2 + $0x88] sm:$0xff] }
 0x2f8   : > { %v957_v26 = vsel %vm956_vm12, %v4764_v8, %v953_v60  ;;  %v5785_v59 = vpack.c.bf16 %v1058_v22, %v1057_v21  ;;  %v1068_v27 = vld [vmem:[#allocation2 + $0x20] sm:$0xff]  ;;  %v1069_v11 = vld [vmem:[#allocation2 + $0x28] sm:$0xff]  ;;  %1833 = vmatpush.bf16.msra.mxu2 %v4516_v57 }
 0x2f9   : > { %v962_v29 = vsel %vm959_vm10, %v961_v63, %v957_v26  ;;  %v5787_v30 = vpack.c.bf16 %v1069_v11, %v1068_v27  ;;  %v1070_v31 = vld [vmem:[#allocation2 + $0x30] sm:$0xff]  ;;  %v1071_v35 = vld [vmem:[#allocation2 + $0x38] sm:$0xff]  ;;  %v4511_v22 = vld [vmem:[#allocation10 + $0xe0] sm:$0xff] }
 0x2fa   : > { %v985_v32 = vmul.f32 %v962_v29, %v5508_v1  ;;  %3974 = vmatmul.msk.bf16.vlgmr.msrb.gmra.mxu3 %vm6623_vm0, %v5785_v59  ;;  %v1020_v1 = vld [vmem:[#allocation2 + $0x8] sm:$0xff] }
 0x2fb   : > { %4015 = vmatmul.msk.bf16.vlgmr.msrb.gmra.mxu0 %vm6623_vm0, %v5787_v30  ;;  %4608 = vmatpush.bf16.msrb.mxu3 %v5455_v24  ;;  %v5802_v34 = vpack.c.bf16 %v1020_v1, %v1019_v51  ;;  %v5805_v24 = vpack.c.bf16 %v1071_v35, %v1070_v31  ;;  %v1073_v36 = vld [vmem:[#allocation2 + $0x48] sm:$0xff]  ;;  %v1074_v25 = vld [vmem:[#allocation2 + $0x50] sm:$0xff]  ;;  %v1075_v17 = vld [vmem:[#allocation2 + $0x58] sm:$0xff] }
 0x2fc   : > { %1017 = vst.msk [vmem:[#allocation2 + $0x71] sm:$0xff] %vm6623_vm0, %v985_v32  ;;  %v5825_v49 = vpack.c.bf16 %v1075_v17, %v1074_v25  ;;  %v1076_v53 = vld [vmem:[#allocation2 + $0x60] sm:$0xff]  ;;  %v1077_v41 = vld [vmem:[#allocation2 + $0x68] sm:$0xff]  ;;  %1834 = vmatpush.bf16.msra.mxu2 %v4515_v62  ;;  %v1082_v51 = vld [vmem:[#allocation2 + $0x90] sm:$0xff] }
 0x2fd   : > { %v5835_v18 = vpack.c.bf16 %v1077_v41, %v1076_v53  ;;  %v1083_v1 = vld [vmem:[#allocation2 + $0x98] sm:$0xff] }
 0x2ff   : > { %4609 = vmatpush.bf16.msrb.mxu3 %v5458_v28  ;;  %v4504_v28 = vld [vmem:[#allocation10 + $0x28] sm:$0xff] }
 0x300   : > { %1514 = vmatpush.bf16.msra.mxu1 %v4504_v28  ;;  %v5919_v28 = vpack.c.bf16 %v1083_v1, %v1082_v51 }
 0x303   : > { %3968 = vmatmul.msk.bf16.gmra.mxu1 %vm6623_vm0, %v5787_v30  ;;  %4040 = vmatmul.msk.bf16.gmra.mxu2 %vm6623_vm0, %v5787_v30  ;;  %v1055_v55 = vld [vmem:[#allocation2 + $0x70] sm:$0xff]  ;;  %v1056_v58 = vld [vmem:[#allocation2 + $0x78] sm:$0xff] }
 0x304   : > { %4610 = vmatpush.bf16.msrb.mxu3 %v5461_v33  ;;  %v1072_v33 = vld [vmem:[#allocation2 + $0x40] sm:$0xff]  ;;  %1515 = vmatpush.bf16.msra.mxu1 %v4503_v50  ;;  %v5849_v61 = vpack.c.bf16 %v1056_v58, %v1055_v55 }
 0x305   : > { %v5815_v38 = vpack.c.bf16 %v1073_v36, %v1072_v33  ;;  %v4523_v36 = vld [vmem:[#allocation10 + $0x100] sm:$0xff] }
 0x308   : > { %4611 = vmatpush.bf16.msrb.mxu3 %v5467_v40  ;;  %v4522_v40 = vld [vmem:[#allocation10 + $0xb8] sm:$0xff]  ;;  %1913 = vmatpush.bf16.msrb.mxu1 %v4526_v52 }
 0x309   : > { %1758 = vmatpush.bf16.msra.mxu0 %v4522_v40 }
 0x30a   : > { %3991 = vmatmul.msk.bf16.vlgmr.msra.gmra.mxu3 %vm6623_vm0, %v5802_v34 }
 0x30b   : > { %4016 = vmatmul.msk.bf16.gmra.mxu0 %vm6623_vm0, %v5805_v24 }
 0x30c   : > { %1914 = vmatpush.bf16.msrb.mxu1 %v4525_v0  ;;  %1594 = vmatpush.bf16.msra.mxu3 %v4514_v15 }
 0x30d   : > { %1759 = vmatpush.bf16.msra.mxu0 %v4521_v9 }
 0x310   : > { %1915 = vmatpush.bf16.msrb.mxu1 %v4524_v13  ;;  %1595 = vmatpush.bf16.msra.mxu3 %v4513_v14 }
 0x311   : > { %1760 = vmatpush.bf16.msra.mxu0 %v4520_v39 }
 0x313   : > { %3969 = vmatmul.msk.bf16.gmra.mxu1 %vm6623_vm0, %v5805_v24  ;;  %4041 = vmatmul.msk.bf16.gmra.mxu2 %vm6623_vm0, %v5805_v24 }
 0x314   : > { %1596 = vmatpush.bf16.msra.mxu3 %v4512_v19  ;;  %1916 = vmatpush.bf16.msrb.mxu1 %v4523_v36 }
 0x315   : > { %1761 = vmatpush.bf16.msra.mxu0 %v4519_v43 }
 0x318   : > { %1597 = vmatpush.bf16.msra.mxu3 %v4511_v22 }
 0x31a   : > { %3992 = vmatmul.msk.bf16.gmra.mxu3 %vm6623_vm0, %v5757_v7 }
 0x31b   : > { %4017 = vmatmul.msk.bf16.gmra.mxu0 %vm6623_vm0, %v5815_v38 }
 0x323   : > { %3970 = vmatmul.msk.bf16.gmra.mxu1 %vm6623_vm0, %v5815_v38  ;;  %4042 = vmatmul.msk.bf16.gmra.mxu2 %vm6623_vm0, %v5815_v38 }
 0x32a   : > { %3993 = vmatmul.msk.bf16.gmra.mxu3 %vm6623_vm0, %v5787_v30 }
 0x32b   : > { %4018 = vmatmul.msk.bf16.gmra.mxu0 %vm6623_vm0, %v5825_v49 }
 0x333   : > { %3971 = vmatmul.msk.bf16.gmra.mxu1 %vm6623_vm0, %v5825_v49  ;;  %4043 = vmatmul.msk.bf16.gmra.mxu2 %vm6623_vm0, %v5825_v49 }
 0x33a   : > { %3994 = vmatmul.msk.bf16.gmra.mxu3 %vm6623_vm0, %v5805_v24 }
 0x33b   : > { %4019 = vmatmul.msk.bf16.gmra.mxu0 %vm6623_vm0, %v5835_v18 }
 0x343   : > { %3972 = vmatmul.msk.bf16.gmra.mxu1 %vm6623_vm0, %v5835_v18  ;;  %4044 = vmatmul.msk.bf16.gmra.mxu2 %vm6623_vm0, %v5835_v18 }
 0x34a   : > { %3995 = vmatmul.msk.bf16.gmra.mxu3 %vm6623_vm0, %v5815_v38 }
 0x34b   : > { %4111 = vmatmul.msk.bf16.vlgmr.msra.gmra.mxu0 %vm6623_vm0, %v5757_v7 }
 0x353   : > { %3973 = vmatmul.msk.bf16.gmra.mxu1 %vm6623_vm0, %v5849_v61  ;;  %4045 = vmatmul.msk.bf16.gmra.mxu2 %vm6623_vm0, %v5849_v61 }
 0x35a   : > { %3996 = vmatmul.msk.bf16.gmra.mxu3 %vm6623_vm0, %v5825_v49 }
 0x35b   : > { %4112 = vmatmul.msk.bf16.gmra.mxu0 %vm6623_vm0, %v5787_v30 }
 0x363   : > { %4046 = vmatmul.msk.bf16.gmra.mxu2 %vm6623_vm0, %v5785_v59  ;;  %4063 = vmatmul.msk.bf16.vlgmr.msra.gmra.mxu1 %vm6623_vm0, %v5802_v34 }
 0x36a   : > { %3997 = vmatmul.msk.bf16.gmra.mxu3 %vm6623_vm0, %v5835_v18 }
 0x36b   : > { %4113 = vmatmul.msk.bf16.gmra.mxu0 %vm6623_vm0, %v5805_v24 }
 0x370   : > { %v1166_v42 = vpop.f32.mrf.mxu1 }
 0x373   : > { %4064 = vmatmul.msk.bf16.gmra.mxu1 %vm6623_vm0, %v5757_v7  ;;  %4135 = vmatmul.msk.bf16.vlgmr.msra.gmra.mxu2 %vm6623_vm0, %v5802_v34 }
 0x376   : > { %v5871_v2 = vpop.f32.mrf.mxu2 }
 0x378   : > { %v1168_v45 = vpop.f32.mrf.mxu1  ;;  %v1353_v3 = vpop.f32.mrf.mxu0 }
 0x37a   : > { %3998 = vmatmul.msk.bf16.gmra.mxu3 %vm6623_vm0, %v5849_v61 }
 0x37b   : > { %4114 = vmatmul.msk.bf16.gmra.mxu0 %vm6623_vm0, %v5815_v38 }
 0x37d   : > { %v5879_v5 = vpop.f32.mrf.mxu3 }
 0x37e   : > { %v5877_v4 = vpop.f32.mrf.mxu2 }
 0x380   : > { %v1170_v6 = vpop.f32.mrf.mxu1  ;;  %v1355_v23 = vpop.f32.mrf.mxu0 }
 0x383   : > { %4065 = vmatmul.msk.bf16.gmra.mxu1 %vm6623_vm0, %v5787_v30  ;;  %4136 = vmatmul.msk.bf16.gmra.mxu2 %vm6623_vm0, %v5757_v7 }
 0x385   : > { %v1196_v10 = vpop.f32.mrf.mxu3 }
 0x386   : > { %v5885_v8 = vpop.f32.mrf.mxu2 }
 0x388   : > { %v1172_v37 = vpop.f32.mrf.mxu1  ;;  %v5887_v12 = vpop.f32.mrf.mxu0 }
 0x38a   : > { %4020 = vmatmul.msk.bf16.vlgmr.msrb.gmra.mxu3 %vm6623_vm0, %v5849_v61 }
 0x38b   : > { %4115 = vmatmul.msk.bf16.gmra.mxu0 %vm6623_vm0, %v5825_v49 }
 0x38d   : > { %v1255_v16 = vpop.f32.mrf.mxu3 }
 0x38e   : > { %v5893_v44 = vpop.f32.mrf.mxu2  ;;  %v1256_v7 = vadd.f32 %v1255_v16, %v1166_v42 }
 0x390   : > { %v1174_v47 = vpop.f32.mrf.mxu1  ;;  %v5895_v46 = vadd.f32 %v1353_v3, %v1256_v7  ;;  %v1359_v48 = vpop.f32.mrf.mxu0 }
 0x393   : > { %4066 = vmatmul.msk.bf16.gmra.mxu1 %vm6623_vm0, %v5805_v24  ;;  %4137 = vmatmul.msk.bf16.gmra.mxu2 %vm6623_vm0, %v5787_v30 }
 0x395   : > { %v1257_v60 = vpop.f32.mrf.mxu3 }
 0x396   : > { %v5901_v20 = vpop.f32.mrf.mxu2 }
 0x398   : > { %v1176_v63 = vpop.f32.mrf.mxu1  ;;  %v5903_v21 = vpop.f32.mrf.mxu0 }
 0x39a   : > { %4021 = vmatmul.msk.bf16.gmra.mxu3 %vm6623_vm0, %v5785_v59 }
 0x39b   : > { %4116 = vmatmul.msk.bf16.gmra.mxu0 %vm6623_vm0, %v5835_v18 }
 0x39d   : > { %v1259_v27 = vpop.f32.mrf.mxu3 }
 0x39e   : > { %v5909_v26 = vpop.f32.mrf.mxu2  ;;  %v5911_v29 = vadd.f32 %v1259_v27, %v1170_v6 }
 0x3a0   : > { %v1178_v11 = vpop.f32.mrf.mxu1  ;;  %v1363_v32 = vpop.f32.mrf.mxu0 }
 0x3a3   : > { %4067 = vmatmul.msk.bf16.gmra.mxu1 %vm6623_vm0, %v5815_v38  ;;  %4138 = vmatmul.msk.bf16.gmra.mxu2 %vm6623_vm0, %v5805_v24 }
 0x3a5   : > { %v1261_v31 = vpop.f32.mrf.mxu3 }
 0x3a6   : > { %v5917_v34 = vpop.f32.mrf.mxu2 }
 0x3a8   : > { %v1180_v35 = vpop.f32.mrf.mxu1  ;;  %v5921_v33 = vpop.f32.mrf.mxu0 }
 0x3aa   : > { %4022 = vmatmul.msk.bf16.gmra.mxu3 %vm6623_vm0, %v5919_v28 }
 0x3ab   : > { %4117 = vmatmul.msk.bf16.gmra.mxu0 %vm6623_vm0, %v5849_v61 }
 0x3ad   : > { %v1263_v9 = vpop.f32.mrf.mxu3 }
 0x3ae   : > { %v5927_v40 = vpop.f32.mrf.mxu2  ;;  %v5929_v43 = vadd.f32 %v1263_v9, %v1174_v47 }
 0x3b0   : > { %v1182_v39 = vpop.f32.mrf.mxu1  ;;  %v1367_v25 = vpop.f32.mrf.mxu0 }
 0x3b3   : > { %4068 = vmatmul.msk.bf16.gmra.mxu1 %vm6623_vm0, %v5825_v49  ;;  %4139 = vmatmul.msk.bf16.gmra.mxu2 %vm6623_vm0, %v5815_v38 }
 0x3b5   : > { %v1265_v50 = vpop.f32.mrf.mxu3 }
 0x3b6   : > { %v5935_v17 = vpop.f32.mrf.mxu2 }
 0x3b8   : > { %v1184_v53 = vpop.f32.mrf.mxu1  ;;  %v5937_v41 = vpop.f32.mrf.mxu0 }
 0x3ba   : > { %4087 = vmatmul.msk.bf16.vlgmr.msra.gmra.mxu3 %vm6623_vm0, %v5787_v30 }
 0x3bb   : > { %4118 = vmatmul.msk.bf16.gmra.mxu0 %vm6623_vm0, %v5785_v59 }
 0x3bd   : > { %v1267_v55 = vpop.f32.mrf.mxu3 }
 0x3be   : > { %v5943_v54 = vpop.f32.mrf.mxu2  ;;  %v5945_v52 = vadd.f32 %v1267_v55, %v1178_v11 }
 0x3c0   : > { %v1186_v58 = vpop.f32.mrf.mxu1  ;;  %v1371_v56 = vpop.f32.mrf.mxu0 }
 0x3c3   : > { %4069 = vmatmul.msk.bf16.gmra.mxu1 %vm6623_vm0, %v5835_v18  ;;  %4140 = vmatmul.msk.bf16.gmra.mxu2 %vm6623_vm0, %v5825_v49 }
 0x3c5   : > { %v1269_v62 = vpop.f32.mrf.mxu3 }
 0x3c6   : > { %v5951_v57 = vpop.f32.mrf.mxu2 }
 0x3c8   : > { %v1188_v0 = vpop.f32.mrf.mxu1  ;;  %v5975_v19 = vpop.f32.mrf.mxu0 }
 0x3ca   : > { %4088 = vmatmul.msk.bf16.gmra.mxu3 %vm6623_vm0, %v5805_v24 }
 0x3cd   : > { %v1271_v45 = vpop.f32.mrf.mxu3 }
 0x3ce   : > { %v5955_v42 = vpop.f32.mrf.mxu2  ;;  %v5957_v6 = vadd.f32 %v1271_v45, %v1182_v39 }
 0x3d0   : > { %v1190_v3 = vpop.f32.mrf.mxu1  ;;  %v1765_v11 = vpop.f32.mrf.mxu0 }
 0x3d3   : > { %4070 = vmatmul.msk.bf16.gmra.mxu1 %vm6623_vm0, %v5849_v61  ;;  %4141 = vmatmul.msk.bf16.gmra.mxu2 %vm6623_vm0, %v5835_v18 }
 0x3d5   : > { %v1273_v10 = vpop.f32.mrf.mxu3 }
 0x3d6   : > { %v5963_v23 = vpop.f32.mrf.mxu2 }
 0x3d8   : > { %v1192_v37 = vpop.f32.mrf.mxu1  ;;  %v5987_v31 = vpop.f32.mrf.mxu0 }
 0x3da   : > { %4089 = vmatmul.msk.bf16.gmra.mxu3 %vm6623_vm0, %v5815_v38 }
 0x3dd   : > { %v1275_v15 = vpop.f32.mrf.mxu3 }
 0x3de   : > { %v5967_v13 = vpop.f32.mrf.mxu2  ;;  %v1276_v47 = vadd.f32 %v1275_v15, %v1186_v58 }
 0x3e0   : > { %v1517_v16 = vpop.f32.mrf.mxu1  ;;  %v1770_v50 = vpop.f32.mrf.mxu0 }
 0x3e3   : > { %4142 = vmatmul.msk.bf16.gmra.mxu2 %vm6623_vm0, %v5849_v61  ;;  %4159 = vmatmul.msk.bf16.vlgmr.msrb.gmra.mxu1 %vm6623_vm0, %v5787_v30 }
 0x3e5   : > { %v1277_v48 = vpop.f32.mrf.mxu3 }
 0x3e6   : > { %v5973_v7 = vpop.f32.mrf.mxu2 }
 0x3e8   : > { %v1519_v14 = vpop.f32.mrf.mxu1 }
 0x3ea   : > { %4090 = vmatmul.msk.bf16.gmra.mxu3 %vm6623_vm0, %v5825_v49 }
 0x3ed   : > { %v1279_v63 = vpop.f32.mrf.mxu3 }
 0x3ee   : > { %v5979_v60 = vpop.f32.mrf.mxu2  ;;  %v1280_v27 = vadd.f32 %v1279_v63, %v1190_v3 }
 0x3f0   : > { %v1522_v22 = vpop.f32.mrf.mxu1 }
 0x3f3   : > { %4160 = vmatmul.msk.bf16.gmra.mxu1 %vm6623_vm0, %v5805_v24 }
 0x3f5   : > { %v1281_v30 = vpop.f32.mrf.mxu3 }
 0x3f6   : > { %v5983_v32 = vpop.f32.mrf.mxu2 }
 0x3f8   : > { %v1524_v51 = vpop.f32.mrf.mxu1 }
 0x3fa   : > { %4091 = vmatmul.msk.bf16.gmra.mxu3 %vm6623_vm0, %v5835_v18 }
 0x3fd   : > { %v5991_v36 = vpop.f32.mrf.mxu3 }
 0x3fe   : > { %v1838_v1 = vpop.f32.mrf.mxu2 }
 0x3ff   : > { %v5989_v35 = vadd.f32 %v1838_v1, %v1765_v11 }
 0x400   : > { %v1527_v9 = vpop.f32.mrf.mxu1 }
 0x403   : > { %4161 = vmatmul.msk.bf16.gmra.mxu1 %vm6623_vm0, %v5815_v38  ;;  %v6009_v38 = vpop.f32.mrf.mxu0 }
 0x405   : > { %v1285_v39 = vpop.f32.mrf.mxu3 }
 0x406   : > { %v5995_v24 = vpop.f32.mrf.mxu2 }
 0x408   : > { %v5997_v25 = vpop.f32.mrf.mxu1 }
 0x40a   : > { %4092 = vmatmul.msk.bf16.gmra.mxu3 %vm6623_vm0, %v5849_v61 }
 0x40b   : > { %v1775_v10 = vpop.f32.mrf.mxu0 }
 0x40d   : > { %v1373_v58 = vpop.f32.mrf.mxu3 }
 0x40e   : > { %v1843_v53 = vpop.f32.mrf.mxu2  ;;  %v6005_v62 = vadd.f32 %v1373_v58, %v1276_v47 }
 0x40f   : > { %v6001_v55 = vadd.f32 %v1843_v53, %v1770_v50 }
 0x410   : > { %v6003_v56 = vpop.f32.mrf.mxu1 }
 0x413   : > { %4162 = vmatmul.msk.bf16.gmra.mxu1 %vm6623_vm0, %v5825_v49 }
 0x415   : > { %v1375_v45 = vpop.f32.mrf.mxu3 }
 0x416   : > { %v6011_v0 = vpop.f32.mrf.mxu2  ;;  %v1520_v45 = vadd.f32 %v1519_v14, %v5877_v4 }
 0x418   : > { %v6013_v3 = vpop.f32.mrf.mxu1 }
 0x41a   : > { %4093 = vmatmul.msk.bf16.gmra.mxu3 %vm6623_vm0, %v5785_v59 }
 0x41d   : > { %v1377_v48 = vpop.f32.mrf.mxu3 }
 0x41e   : > { %v1848_v37 = vpop.f32.mrf.mxu2  ;;  %v6021_v63 = vadd.f32 %v1377_v48, %v1280_v27  ;;  %v1518_v27 = vadd.f32 %v1517_v16, %v5871_v2  ;;  %v1523_v16 = vadd.f32 %v1522_v22, %v5885_v8 }
 0x41f   : > { %v6017_v15 = vadd.f32 %v1848_v37, %v1775_v10 }
 0x420   : > { %v6019_v47 = vpop.f32.mrf.mxu1 }
 0x423   : > { %4163 = vmatmul.msk.bf16.gmra.mxu1 %vm6623_vm0, %v5835_v18 }
 0x425   : > { %v1379_v49 = vpop.f32.mrf.mxu3 }
 0x428   : > { %v6025_v11 = vpop.f32.mrf.mxu1 }
 0x42a   : > { %4094 = vmatmul.msk.bf16.gmra.mxu3 %vm6623_vm0, %v5919_v28 }
 0x42d   : > { %v6029_v30 = vpop.f32.mrf.mxu3 }
 0x42e   : > { %6675 = vst [vmem:[#allocation27_spill] sm:$0xff] %v6029_v30 }
 0x430   : > { %v6031_v1 = vpop.f32.mrf.mxu1 }
 0x433   : > { %4164 = vmatmul.msk.bf16.gmra.mxu1 %vm6623_vm0, %v5849_v61 }
 0x435   : > { %v1383_v39 = vpop.f32.mrf.mxu3 }
 0x438   : > { %v6035_v50 = vpop.f32.mrf.mxu1 }
 0x43d   : > { %v1599_v53 = vpop.f32.mrf.mxu3 }
 0x43e   : > { %v1639_v58 = vadd.f32 %v1599_v53, %v1518_v27 }
 0x440   : > { %v6038_v18 = vpop.f32.mrf.mxu1  ;;  %v1672_v61 = vrot.slane %v1639_v58, 1 }
 0x443   : > { %4165 = vmatmul.msk.bf16.gmra.mxu1 %vm6623_vm0, %v5785_v59  ;;  %v1525_v59 = vadd.f32 %v1524_v51, %v5893_v44 }
 0x445   : > { %v1601_v10 = vpop.f32.mrf.mxu3 }
 0x446   : > { %v1640_v48 = vadd.f32 %v1601_v10, %v1520_v45 }
 0x448   : > { %v6043_v37 = vpop.f32.mrf.mxu1  ;;  %v1673_v49 = vrot.slane %v1640_v48, 1  ;;  %v6058_v48 = vld [vmem:[#allocation12 + $0x18] sm:$0xff] }
 0x449   : > { %2084 = vmatpush.xpose.msrb.mxu3 %v6058_v48  ;;  %2115 = vmatpush.msrb.mxu0 %v6058_v48 }
 0x44a   : > { %v1674_v39 = vsel %vm6622_vm1, %v1672_v61, %v1673_v49  ;;  %2165 = vmatpush.xpose.msrb.mxu2 %v6058_v48  ;;  %v1837_v61 = vadd.f32 %v5983_v32, %v5975_v19 }
 0x44b   : > { %v1704_v2 = vadd.f32 %v1674_v39, %v5895_v46  ;;  %v1386_v46 = vadd.f32 %v5887_v12, %v5911_v29  ;;  %v1530_v12 = vadd.f32 %v5997_v25, %v5909_v26  ;;  %v1533_v25 = vadd.f32 %v6003_v56, %v5917_v34 }
 0x44d   : > { %v1604_v30 = vpop.f32.mrf.mxu3 }
 0x44e   : > { %v1641_v53 = vadd.f32 %v1604_v30, %v1523_v16  ;;  %v1528_v30 = vadd.f32 %v1527_v9, %v5901_v20 }
 0x450   : > { %v6048_v27 = vpop.f32.mrf.mxu1  ;;  %v1675_v45 = vrot.slane %v1641_v53, 1 }
 0x453   : > { %4166 = vmatmul.msk.bf16.gmra.mxu1 %vm6623_vm0, %v5919_v28 }
 0x455   : > { %v1606_v4 = vpop.f32.mrf.mxu3 }
 0x456   : > { %v1642_v58 = vadd.f32 %v1606_v4, %v1525_v59 }
 0x458   : > { %v6053_v14 = vpop.f32.mrf.mxu1  ;;  %v1676_v10 = vrot.slane %v1642_v58, 1  ;;  %v1387_v58 = vadd.f32 %v5903_v21, %v5929_v43 }
 0x45a   : > { %v1677_v8 = vsel %vm6622_vm1, %v1675_v45, %v1676_v10 }
 0x45b   : > { %v1705_v22 = vadd.f32 %v1677_v8, %v1386_v46  ;;  %v1842_v8 = vadd.f32 %v5995_v24, %v5987_v31 }
 0x45d   : > { %v1609_v44 = vpop.f32.mrf.mxu3 }
 0x45e   : > { %v1643_v51 = vadd.f32 %v1609_v44, %v1528_v30  ;;  %v1535_v30 = vadd.f32 %v6013_v3, %v5927_v40 }
 0x460   : > { %v1918_v28 = vpop.f32.mrf.mxu1  ;;  %v1678_v9 = vrot.slane %v1643_v51, 1 }
 0x461   : > { %v1958_v29 = vadd.f32 %v1918_v28, %v1837_v61  ;;  %v1851_v28 = vpop.f32.mrf.mxu2  ;;  %v1778_v61 = vpop.f32.mrf.mxu0 }
 0x463   : > { %v1991_v59 = vrot.slane %v1958_v29, 2 }
 0x465   : > { %v1611_v49 = vpop.f32.mrf.mxu3 }
 0x466   : > { %v1644_v16 = vadd.f32 %v1611_v49, %v1530_v12  ;;  %v1388_v49 = vadd.f32 %v5921_v33, %v5945_v52  ;;  %v1847_v33 = vadd.f32 %v6011_v0, %v6009_v38  ;;  %v1538_v52 = vadd.f32 %v6019_v47, %v5935_v17 }
 0x467   : > { %v1389_v38 = vadd.f32 %v5937_v41, %v5957_v6  ;;  %v1545_v41 = vadd.f32 %v6035_v50, %v5955_v42  ;;  %v2056_v50 = vld [vmem:[#allocation12 + $0x8] sm:$0xff] }
 0x468   : > { %v1920_v39 = vpop.f32.mrf.mxu1  ;;  %v1679_v53 = vrot.slane %v1644_v16, 1 }
 0x469   : > { %v1959_v20 = vadd.f32 %v1920_v39, %v5989_v35  ;;  %v6088_v39 = vld [vmem:[#allocation12 + $0x10] sm:$0xff] }
 0x46a   : > { %v1680_v45 = vsel %vm6622_vm1, %v1678_v9, %v1679_v53  ;;  %2085 = vmatpush.xpose.msrb.mxu3 %v6088_v39  ;;  %2116 = vmatpush.msrb.mxu0 %v6088_v39  ;;  %v1780_v9 = vpop.f32.mrf.mxu0 }
 0x46b   : > { %v1992_v4 = vrot.slane %v1959_v20, 2  ;;  %v1706_v32 = vadd.f32 %v1680_v45, %v1387_v58  ;;  %2166 = vmatpush.xpose.msrb.mxu2 %v6088_v39  ;;  %v1853_v20 = vpop.f32.mrf.mxu2 }
 0x46c   : > { %2117 = vmatpush.msrb.mxu0 %v2056_v50 }
 0x46d   : > { %v1993_v19 = vsel %vm6621_vm11, %v1991_v59, %v1992_v4  ;;  %v1614_v10 = vpop.f32.mrf.mxu3 }
 0x46e   : > { %v6073_v26 = vadd.f32 %v1993_v19, %v1704_v2  ;;  %v1645_v46 = vadd.f32 %v1614_v10, %v1533_v25  ;;  %2086 = vmatpush.xpose.msrb.mxu3 %v2056_v50 }
 0x46f   : > { %2167 = vmatpush.xpose.msrb.mxu2 %v2056_v50 }
 0x470   : > { %v1923_v35 = vpop.f32.mrf.mxu1  ;;  %v1681_v12 = vrot.slane %v1645_v46, 1 }
 0x471   : > { %v1960_v21 = vadd.f32 %v1923_v35, %v1842_v8 }
 0x472   : > { %v6110_v8 = vpop.f32.mrf.mxu0 }
 0x473   : > { %v1994_v34 = vrot.slane %v1960_v21, 2  ;;  %v6102_v0 = vpop.f32.mrf.mxu2  ;;  %v1852_v21 = vadd.f32 %v1851_v28, %v1778_v61 }
 0x475   : > { %v1616_v43 = vpop.f32.mrf.mxu3 }
 0x476   : > { %v1646_v51 = vadd.f32 %v1616_v43, %v1535_v30  ;;  %v1543_v43 = vadd.f32 %v6031_v1, %v5951_v57 }
 0x478   : > { %v1925_v44 = vpop.f32.mrf.mxu1  ;;  %v1682_v29 = vrot.slane %v1646_v51, 1 }
 0x479   : > { %v1961_v2 = vadd.f32 %v1925_v44, %v6001_v55  ;;  %v1854_v44 = vadd.f32 %v1853_v20, %v1780_v9 }
 0x47a   : > { %v1683_v31 = vsel %vm6622_vm1, %v1681_v12, %v1682_v29 }
 0x47b   : > { %v1995_v56 = vrot.slane %v1961_v2, 2  ;;  %v1707_v40 = vadd.f32 %v1683_v31, %v1388_v49  ;;  %v6116_v6 = vpop.f32.mrf.mxu2 }
 0x47d   : > { %v1996_v24 = vsel %vm6621_vm11, %v1994_v34, %v1995_v56  ;;  %v1619_v55 = vpop.f32.mrf.mxu3 }
 0x47e   : > { %v6086_v3 = vadd.f32 %v1996_v24, %v1705_v22  ;;  %v1540_v22 = vadd.f32 %v6025_v11, %v5943_v54  ;;  %v1647_v53 = vadd.f32 %v1619_v55, %v1538_v52  ;;  %v1550_v52 = vadd.f32 %v6043_v37, %v5967_v13 }
 0x47f   : > { %v1555_v37 = vadd.f32 %v6053_v14, %v5979_v60 }
 0x480   : > { %v1928_v16 = vpop.f32.mrf.mxu1  ;;  %v1684_v25 = vrot.slane %v1647_v53, 1 }
 0x481   : > { %v1962_v59 = vadd.f32 %v1928_v16, %v1847_v33  ;;  %v1548_v33 = vadd.f32 %v6038_v18, %v5963_v23  ;;  %v1553_v23 = vadd.f32 %v6048_v27, %v5973_v7 }
 0x483   : > { %v1997_v35 = vrot.slane %v1962_v59, 2  ;;  %v1861_v20 = vpop.f32.mrf.mxu2 }
 0x485   : > { %v1621_v4 = vpop.f32.mrf.mxu3 }
 0x486   : > { %v1648_v45 = vadd.f32 %v1621_v4, %v1540_v22 }
 0x488   : > { %v1930_v58 = vpop.f32.mrf.mxu1  ;;  %v1685_v10 = vrot.slane %v1648_v45, 1 }
 0x489   : > { %v1963_v19 = vadd.f32 %v1930_v58, %v6017_v15 }
 0x48a   : > { %v1686_v17 = vsel %vm6622_vm1, %v1684_v25, %v1685_v10 }
 0x48b   : > { %v1998_v46 = vrot.slane %v1963_v19, 2  ;;  %v6106_v47 = vadd.f32 %v1686_v17, %v1389_v38  ;;  %v1863_v58 = vpop.f32.mrf.mxu2 }
 0x48d   : > { %v1999_v54 = vsel %vm6621_vm11, %v1997_v35, %v1998_v46  ;;  %v1624_v15 = vpop.f32.mrf.mxu3  ;;  %v2055_v46 = vld [vmem:[#allocation12] sm:$0xff] }
 0x48e   : > { %v6108_v11 = vadd.f32 %v1999_v54, %v1706_v32  ;;  %v1649_v51 = vadd.f32 %v1624_v15, %v1543_v43  ;;  %v1785_v32 = vpop.f32.mrf.mxu0  ;;  %2087 = vmatpush.xpose.msrb.mxu3 %v2055_v46  ;;  %2118 = vmatpush.msrb.mxu0 %v2055_v46  ;;  %v1284_v15 = vadd.f32 %v5991_v36, %v5879_v5 }
 0x48f   : > { %2168 = vmatpush.xpose.msrb.mxu2 %v2055_v46 }
 0x490   : > { %v1933_v30 = vpop.f32.mrf.mxu1  ;;  %v1687_v49 = vrot.slane %v1649_v51, 1 }
 0x491   : > { %v1964_v2 = vadd.f32 %v1933_v30, %v1852_v21  ;;  %v6676_v30 = vld [vmem:[#allocation27_spill] sm:$0xff] }
 0x492   : > { %2190 = vmatpush.msra.mxu3 %v6058_v48  ;;  %v1392_v21 = vadd.f32 %v6676_v30, %v1284_v15 }
 0x493   : > { %v2000_v24 = vrot.slane %v1964_v2, 2  ;;  %v1866_v13 = vpop.f32.mrf.mxu2 }
 0x494   : > { %2191 = vmatpush.msra.mxu3 %v6088_v39  ;;  %v1857_v39 = vadd.f32 %v6102_v0, %v6110_v8  ;;  %v4724_v0 = vld [vmem:[%s6605_s6] ss:$0 sm:$0xff] }
 0x495   : > { %v1626_v12 = vpop.f32.mrf.mxu3 }
 0x496   : > { %v1650_v34 = vadd.f32 %v1626_v12, %v1545_v41  ;;  %v1788_v9 = vpop.f32.mrf.mxu0  ;;  %2192 = vmatpush.msra.mxu3 %v2056_v50  ;;  %v1859_v41 = vadd.f32 %v6116_v6, %v1785_v32 }
 0x497   : > { %v1862_v36 = vadd.f32 %v1861_v20, %v1788_v9 }
 0x498   : > { %v1935_v29 = vpop.f32.mrf.mxu1  ;;  %v1688_v31 = vrot.slane %v1650_v34, 1  ;;  %2193 = vmatpush.msra.mxu3 %v2055_v46 }
 0x499   : > { %v1965_v56 = vadd.f32 %v1935_v29, %v1854_v44 }
 0x49a   : > { %v1689_v61 = vsel %vm6622_vm1, %v1687_v49, %v1688_v31 }
 0x49b   : > { %v2001_v28 = vrot.slane %v1965_v56, 2  ;;  %v6121_v1 = vadd.f32 %v1689_v61, %v6005_v62  ;;  %v1868_v44 = vpop.f32.mrf.mxu2 }
 0x49d   : > { %v2002_v57 = vsel %vm6621_vm11, %v2000_v24, %v2001_v28  ;;  %v1629_v55 = vpop.f32.mrf.mxu3 }
 0x49e   : > { %v6123_v42 = vadd.f32 %v2002_v57, %v1707_v40  ;;  %v1651_v22 = vadd.f32 %v1629_v55, %v1548_v33  ;;  %v1790_v45 = vpop.f32.mrf.mxu0 }
 0x49f   : > { %v1864_v51 = vadd.f32 %v1863_v58, %v1790_v45 }
 0x4a0   : > { %v1938_v16 = vpop.f32.mrf.mxu1  ;;  %v1690_v40 = vrot.slane %v1651_v22, 1  ;;  %v4725_v22 = vld [vmem:[%s530_s19] ss:$0 sm:$0xff]  ;;  %v2038_v58 = vadd.f32 %v4724_v0, %v6123_v42 }
 0x4a1   : > { %v1966_v29 = vadd.f32 %v1938_v16, %v1857_v39  ;;  %v2036_v16 = vadd.f32 %v4724_v0, %v6086_v3 }
 0x4a3   : > { %v1871_v56 = vpop.f32.mrf.mxu2  ;;  %v2003_v57 = vrot.slane %v1966_v29, 2  ;;  %v5115_v29 = vmov 256.0  }
 0x4a4   : > { %4765 = vrcp.f32 %v5115_v29 }
 0x4a5   : > { %v1631_v53 = vpop.f32.mrf.mxu3 }
 0x4a6   : > { %v1652_v59 = vadd.f32 %v1631_v53, %v1550_v52  ;;  %v1793_v18 = vpop.f32.mrf.mxu0  ;;  %v2035_v52 = vadd.f32 %v4724_v0, %v6073_v26  ;;  %v2037_v53 = vadd.f32 %v4724_v0, %v6108_v11 }
 0x4a7   : > { %v1867_v49 = vadd.f32 %v1866_v13, %v1793_v18  ;;  %v2050_v18 = vadd.f32 %v4725_v22, %v2038_v58 }
 0x4a8   : > { %v1940_v62 = vpop.f32.mrf.mxu1  ;;  %v1691_v4 = vrot.slane %v1652_v59, 1 }
 0x4a9   : > { %v1967_v2 = vadd.f32 %v1940_v62, %v1859_v41 }
 0x4aa   : > { %v1692_v19 = vsel %vm6622_vm1, %v1690_v40, %v1691_v4  ;;  %v2048_v4 = vadd.f32 %v4725_v22, %v2036_v16 }
 0x4ab   : > { %v6131_v25 = vadd.f32 %v1692_v19, %v6021_v63  ;;  %v2004_v31 = vrot.slane %v1967_v2, 2  ;;  %v1873_v40 = vpop.f32.mrf.mxu2 }
 0x4ad   : > { %v1634_v10 = vpop.f32.mrf.mxu3  ;;  %v2005_v8 = vsel %vm6621_vm11, %v2003_v57, %v2004_v31 }
 0x4ae   : > { %v1653_v38 = vadd.f32 %v1634_v10, %v1553_v23  ;;  %v1795_v14 = vpop.f32.mrf.mxu0  ;;  %v2027_v62 = vadd.f32 %v2005_v8, %v6106_v47  ;;  %v2047_v10 = vadd.f32 %v4725_v22, %v2035_v52 }
 0x4af   : > { %v1869_v12 = vadd.f32 %v1868_v44, %v1795_v14 }
 0x4b0   : > { %v1943_v35 = vpop.f32.mrf.mxu1  ;;  %v1693_v7 = vrot.slane %v1653_v38, 1  ;;  %v2039_v46 = vadd.f32 %v4724_v0, %v2027_v62  ;;  %v2059_v11 = vadd.f32 %v2048_v4, %v2047_v10 }
 0x4b1   : > { %v1968_v24 = vadd.f32 %v1943_v35, %v1862_v36  ;;  %v2049_v35 = vadd.f32 %v4725_v22, %v2037_v53 }
 0x4b3   : > { %v2006_v32 = vrot.slane %v1968_v24, 2 }
 0x4b5   : > { %v1636_v17 = vpop.f32.mrf.mxu3 }
 0x4b6   : > { %v1654_v54 = vadd.f32 %v1636_v17, %v1555_v37  ;;  %v1798_v61 = vpop.f32.mrf.mxu0  ;;  %v2060_v17 = vadd.f32 %v2059_v11, %v2049_v35 }
 0x4b7   : > { %v1872_v45 = vadd.f32 %v1871_v56, %v1798_v61 }
 0x4b8   : > { %v1945_v63 = vpop.f32.mrf.mxu1  ;;  %v1694_v27 = vrot.slane %v1654_v54, 1 }
 0x4b9   : > { %v1969_v34 = vadd.f32 %v1945_v63, %v1864_v51  ;;  %v2051_v63 = vadd.f32 %v4725_v22, %v2039_v46 }
 0x4ba   : > { %v1695_v48 = vsel %vm6622_vm1, %v1693_v7, %v1694_v27 }
 0x4bb   : > { %v1711_v43 = vadd.f32 %v1695_v48, %v1392_v21  ;;  %v2007_v50 = vrot.slane %v1969_v34, 2  ;;  %v4766_v34 = vpop.eup %4765 }
 0x4bc   : > { %v2093_v56 = vmul.f32 256.0, %v4766_v34  ;;  %vm2097_vm3 = vweird.f32 %v4766_v34 }
 0x4bd   : > { %v2008_v9 = vsel %vm6621_vm11, %v2006_v32, %v2007_v50 }
 0x4be   : > { %v2028_v3 = vadd.f32 %v2008_v9, %v6121_v1  ;;  %v1800_v19 = vpop.f32.mrf.mxu0  ;;  %v2061_v1 = vadd.f32 %v2060_v17, %v2050_v18 }
 0x4bf   : > { %v1874_v23 = vadd.f32 %v1873_v40, %v1800_v19 }
 0x4c0   : > { %v1948_v60 = vpop.f32.mrf.mxu1  ;;  %v2040_v47 = vadd.f32 %v4724_v0, %v2028_v3  ;;  %v2062_v30 = vadd.f32 %v2061_v1, %v2051_v63  ;;  %v4542_v1 = vld [vmem:[#allocation13 + $0xf8] sm:$0xff] }
 0x4c1   : > { %v1970_v6 = vadd.f32 %v1948_v60, %v1867_v49  ;;  %v2094_v49 = vsub.f32 1.0, %v2093_v56  ;;  %2576 = vmatpush.bf16.msra.mxu0 %v4542_v1 }
 0x4c2   : > { %v2052_v7 = vadd.f32 %v4725_v22, %v2040_v47 }
 0x4c3   : > { %v2009_v33 = vrot.slane %v1970_v6, 2  ;;  %v2095_v31 = vmul.f32 %v4766_v34, %v2094_v49  ;;  %v4547_v49 = vld [vmem:[#allocation13 + $0x1a0] sm:$0xff] }
 0x4c5   : > { %v2096_v24 = vadd.f32 %v4766_v34, %v2095_v31  ;;  %v4563_v31 = vld [vmem:[#allocation13 + $0x120] sm:$0xff] }
 0x4c8   : > { %v1950_v5 = vpop.f32.mrf.mxu1 }
 0x4c9   : > { %v1971_v28 = vadd.f32 %v1950_v5, %v1869_v12 }
 0x4cb   : > { %v2010_v55 = vrot.slane %v1971_v28, 2 }
 0x4cd   : > { %v2011_v59 = vsel %vm6621_vm11, %v2009_v33, %v2010_v55 }
 0x4ce   : > { %v2029_v26 = vadd.f32 %v2011_v59, %v6131_v25  ;;  %v2063_v25 = vadd.f32 %v2062_v30, %v2052_v7  ;;  %v4566_v30 = vld [vmem:[#allocation13 + $0x138] sm:$0xff] }
 0x4cf   : > { %2902 = vmatpush.bf16.msra.mxu1 %v4566_v30  ;;  %v4558_v30 = vld [vmem:[#allocation13 + $0x78] sm:$0xff] }
 0x4d0   : > { %v1953_v20 = vpop.f32.mrf.mxu1  ;;  %v2041_v54 = vadd.f32 %v4724_v0, %v2029_v26 }
 0x4d1   : > { %v1972_v13 = vadd.f32 %v1953_v20, %v1872_v45 }
 0x4d2   : > { %v2053_v21 = vadd.f32 %v4725_v22, %v2041_v54 }
 0x4d3   : > { %v2012_v42 = vrot.slane %v1972_v13, 2 }
 0x4d4   : > { %v2064_v60 = vadd.f32 %v2063_v25, %v2053_v21  ;;  %v4549_v25 = vld [vmem:[#allocation13 + $0x1b0] sm:$0xff] }
 0x4d8   : > { %v1955_v37 = vpop.f32.mrf.mxu1 }
 0x4d9   : > { %v1973_v38 = vadd.f32 %v1955_v37, %v1874_v23 }
 0x4db   : > { %v2013_v15 = vrot.slane %v1973_v38, 2 }
 0x4dd   : > { %v2014_v27 = vsel %vm6621_vm11, %v2012_v42, %v2013_v15  ;;  %v4534_v42 = vld [vmem:[#allocation13 + $0x38] sm:$0xff] }
 0x4de   : > { %v2030_v48 = vadd.f32 %v2014_v27, %v1711_v43  ;;  %v2098_v43 = vsel %vm2097_vm3, %v4766_v34, %v2096_v24  ;;  %2665 = vmatpush.bf16.msra.mxu2 %v4534_v42  ;;  %v4550_v27 = vld [vmem:[#allocation13 + $0x1b8] sm:$0xff]  ;;  %v4539_v34 = vld [vmem:[#allocation13 + $0xe0] sm:$0xff] }
 0x4df   : > { %v4559_v42 = vld [vmem:[#allocation13 + $0x100] sm:$0xff] }
 0x4e0   : > { %v2042_v44 = vadd.f32 %v4724_v0, %v2030_v48  ;;  %v4541_v48 = vld [vmem:[#allocation13 + $0xf0] sm:$0xff] }
 0x4e1   : > { %2577 = vmatpush.bf16.msra.mxu0 %v4541_v48 }
 0x4e2   : > { %v2054_v14 = vadd.f32 %v4725_v22, %v2042_v44  ;;  %v4565_v44 = vld [vmem:[#allocation13 + $0x130] sm:$0xff] }
 0x4e3   : > { %2903 = vmatpush.bf16.msra.mxu1 %v4565_v44 }
 0x4e4   : > { %v2065_v41 = vadd.f32 %v2064_v60, %v2054_v14 }
 0x4e6   : > { %v2066_v39 = vrot.slane %v2065_v41, 4 }
 0x4e8   : > { %v2067_v51 = vadd.f32 %v2066_v39, %v2065_v41  ;;  %v4540_v39 = vld [vmem:[#allocation13 + $0xe8] sm:$0xff] }
 0x4e9   : > { %2578 = vmatpush.bf16.msra.mxu0 %v4540_v39 }
 0x4ea   : > { %v2068_v2 = vrot.slane %v2067_v51, 2 }
 0x4ec   : > { %v2069_v5 = vadd.f32 %v2068_v2, %v2067_v51  ;;  %v4548_v51 = vld [vmem:[#allocation13 + $0x1a8] sm:$0xff] }
 0x4ed   : > { %v4564_v2 = vld [vmem:[#allocation13 + $0x128] sm:$0xff]  ;;  %2579 = vmatpush.bf16.msra.mxu0 %v4539_v34 }
 0x4ee   : > { %v2070_v36 = vrot.slane %v2069_v5, 1  ;;  %2904 = vmatpush.bf16.msra.mxu1 %v4564_v2 }
 0x4f0   : > { %v2071_v12 = vadd.f32 %v2070_v36, %v2069_v5  ;;  %v2174_v5 = vld [vmem:[%s6606_s7] sm:$0x1] }
 0x4f2   : > { %2088 = vmatmul.f32.vlgmr.msrb.gmra.mxu3 %v2071_v12  ;;  %v4531_v12 = vld [vmem:[#allocation13 + $0x20] sm:$0xff]  ;;  %2905 = vmatpush.bf16.msra.mxu1 %v4563_v31 }
 0x4f3   : > { %2771 = vmatpush.bf16.msrb.mxu3 %v4550_v27 }
 0x4f7   : > { %2772 = vmatpush.bf16.msrb.mxu3 %v4549_v25 }
 0x4fb   : > { %2773 = vmatpush.bf16.msrb.mxu3 %v4548_v51 }
 0x4ff   : > { %2774 = vmatpush.bf16.msrb.mxu3 %v4547_v49 }
 0x575   : > { %v2089_v28 = vpop.f32.mrf.mxu3 }
 0x576   : > { %v2099_v61 = vmul.f32 %v2098_v43, %v2089_v28  ;;  %v4530_v28 = vld [vmem:[#allocation13 + $0x18] sm:$0xff] }
 0x578   : > { %4167 = vmatmul.msk.f32.vlgmr.msrb.gmra.mxu0 %vm683_vm2, %v2099_v61  ;;  %v4538_v61 = vld [vmem:[#allocation13 + $0xd8] sm:$0xff] }
 0x579   : > { %2580 = vmatpush.bf16.msra.mxu0 %v4538_v61 }
 0x5f5   : > { %v2120_v57 = vpop.f32.mrf.mxu0 }
 0x5f6   : > { %v2123_v50 = vperm.slane %v2120_v57, 0 }
 0x5f8   : > { %v6163_v6 = vsub.f32 %v2047_v10, %v2123_v50  ;;  %v6165_v0 = vsub.f32 %v2048_v4, %v2123_v50  ;;  %v6167_v8 = vsub.f32 %v2049_v35, %v2123_v50  ;;  %v6169_v32 = vsub.f32 %v2050_v18, %v2123_v50 }
 0x5f9   : > { %v6175_v20 = vsub.f32 %v2051_v63, %v2123_v50  ;;  %v6179_v52 = vsub.f32 %v2052_v7, %v2123_v50  ;;  %v6183_v62 = vsub.f32 %v2053_v21, %v2123_v50  ;;  %v6187_v4 = vsub.f32 %v2054_v14, %v2123_v50  ;;  %v4533_v7 = vld [vmem:[#allocation13 + $0x30] sm:$0xff]  ;;  %v4532_v14 = vld [vmem:[#allocation13 + $0x28] sm:$0xff] }
 0x5fa   : > { %v2132_v55 = vmul.f32 %v6163_v6, %v6163_v6  ;;  %v2133_v16 = vmul.f32 %v6165_v0, %v6165_v0  ;;  %v2134_v9 = vmul.f32 %v6167_v8, %v6167_v8  ;;  %v2135_v22 = vmul.f32 %v6169_v32, %v6169_v32  ;;  %2666 = vmatpush.bf16.msra.mxu2 %v4533_v7  ;;  %v4801_v7 = vld [vmem:[#allocation3] sm:$0xff] }
 0x5fb   : > { %v2136_v59 = vmul.f32 %v6175_v20, %v6175_v20  ;;  %v2137_v58 = vmul.f32 %v6179_v52, %v6179_v52  ;;  %v2138_v45 = vmul.f32 %v6183_v62, %v6183_v62  ;;  %v2139_v10 = vmul.f32 %v6187_v4, %v6187_v4 }
 0x5fc   : > { %v2140_v33 = vadd.f32 %v2133_v16, %v2132_v55  ;;  %v4546_v55 = vld [vmem:[#allocation13 + $0x198] sm:$0xff]  ;;  %v6234_v27 = vpack.c.bf16 %v4801_v7, %v4801_v7 }
 0x5fd   : > { %v4562_v16 = vld [vmem:[#allocation13 + $0x118] sm:$0xff]  ;;  %2775 = vmatpush.bf16.msrb.mxu3 %v4546_v55 }
 0x5fe   : > { %v2141_v53 = vadd.f32 %v2140_v33, %v2134_v9  ;;  %2667 = vmatpush.bf16.msra.mxu2 %v4532_v14  ;;  %2906 = vmatpush.bf16.msra.mxu1 %v4562_v16 }
 0x600   : > { %v2142_v40 = vadd.f32 %v2141_v53, %v2135_v22 }
 0x602   : > { %v2143_v3 = vadd.f32 %v2142_v40, %v2136_v59  ;;  %2668 = vmatpush.bf16.msra.mxu2 %v4531_v12 }
 0x604   : > { %v2144_v19 = vadd.f32 %v2143_v3, %v2137_v58  ;;  %v4545_v3 = vld [vmem:[#allocation13 + $0x190] sm:$0xff] }
 0x605   : > { %2776 = vmatpush.bf16.msrb.mxu3 %v4545_v3 }
 0x606   : > { %v2145_v35 = vadd.f32 %v2144_v19, %v2138_v45  ;;  %2669 = vmatpush.bf16.msra.mxu2 %v4530_v28  ;;  %v4561_v45 = vld [vmem:[#allocation13 + $0x110] sm:$0xff] }
 0x607   : > { %2907 = vmatpush.bf16.msra.mxu1 %v4561_v45 }
 0x608   : > { %v2146_v46 = vadd.f32 %v2145_v35, %v2139_v10 }
 0x60a   : > { %v2147_v26 = vrot.slane %v2146_v46, 4 }
 0x60c   : > { %v2148_v23 = vadd.f32 %v2147_v26, %v2146_v46  ;;  %v4528_v26 = vld [vmem:[#allocation13 + $0x8] sm:$0xff] }
 0x60e   : > { %v2149_v13 = vrot.slane %v2148_v23, 2 }
 0x610   : > { %v2150_v11 = vadd.f32 %v2149_v13, %v2148_v23 }
 0x612   : > { %v2151_v18 = vrot.slane %v2150_v11, 1 }
 0x614   : > { %v2152_v47 = vadd.f32 %v2151_v18, %v2150_v11  ;;  %v4536_v11 = vld [vmem:[#allocation13 + $0xc8] sm:$0xff] }
 0x616   : > { %2169 = vmatmul.f32.vlgmr.msrb.gmra.mxu2 %v2152_v47  ;;  %v4544_v47 = vld [vmem:[#allocation13 + $0x188] sm:$0xff] }
 0x617   : > { %2777 = vmatpush.bf16.msrb.mxu3 %v4544_v47 }
 0x699   : > { %v2170_v37 = vpop.f32.mrf.mxu2 }
 0x69a   : > { %v2173_v38 = vmul.f32 %v2170_v37, %v2098_v43  ;;  %v4726_v43 = vld [vmem:[%s6677_s17] ss:$0 sm:$0xff]  ;;  %v4560_v37 = vld [vmem:[#allocation13 + $0x108] sm:$0xff] }
 0x69b   : > { %2908 = vmatpush.bf16.msra.mxu1 %v4560_v37 }
 0x69c   : > { %4168 = vmatmul.msk.f32.vlgmr.msra.gmra.mxu3 %vm683_vm2, %v2173_v38 }
 0x69f   : > { %2909 = vmatpush.bf16.msra.mxu1 %v4559_v42  ;;  %v4557_v42 = vld [vmem:[#allocation13 + $0x70] sm:$0xff] }
 0x71f   : > { %v2195_v17 = vpop.f32.mrf.mxu3 }
 0x720   : > { %v2196_v63 = vadd.f32 1e-06, %v2195_v17 }
 0x722   : > { %4767 = vrsqrt.f32 %v2196_v63  ;;  %vm2204_vm4 = vweird.f32 %v2196_v63 }
 0x728   : > { %v4768_v54 = vpop.eup %4767 }
 0x729   : > { %v2199_v15 = vmul.f32 %v4768_v54, %v2196_v63  ;;  %vm2205_vm2 = vweird.f32 %v4768_v54 }
 0x72a   : > { %vm2206_vm13 = vmor %vm2204_vm4, %vm2205_vm2 }
 0x72b   : > { %v2200_v21 = vmul.f32 %v4768_v54, %v2199_v15 }
 0x72d   : > { %v2201_v60 = vmul.f32 0.5, %v2200_v21 }
 0x72f   : > { %v2202_v41 = vsub.f32 1.5, %v2201_v60 }
 0x731   : > { %v2203_v36 = vmul.f32 %v4768_v54, %v2202_v41 }
 0x733   : > { %v2207_v29 = vsel %vm2206_vm13, %v4768_v54, %v2203_v36  ;;  %v4543_v54 = vld [vmem:[#allocation13 + $0x180] sm:$0xff] }
 0x734   : > { %v2208_v56 = vmul.f32 %v2207_v29, %v2174_v5  ;;  %2778 = vmatpush.bf16.msrb.mxu3 %v4543_v54 }
 0x736   : > { %v2210_v24 = vperm.slane %v2208_v56, 0 }
 0x738   : > { %v2212_v57 = vmul.f32 %v2210_v24, %v6163_v6  ;;  %v2213_v50 = vmul.f32 %v2210_v24, %v6165_v0  ;;  %v2214_v9 = vmul.f32 %v2210_v24, %v6167_v8  ;;  %v2215_v33 = vmul.f32 %v2210_v24, %v6169_v32  ;;  %v4529_v6 = vld [vmem:[#allocation13 + $0x10] sm:$0xff] }
 0x739   : > { %v2216_v22 = vmul.f32 %v2210_v24, %v6175_v20  ;;  %v2217_v53 = vmul.f32 %v2210_v24, %v6179_v52  ;;  %v4537_v0 = vld [vmem:[#allocation13 + $0xd0] sm:$0xff]  ;;  %v2218_v46 = vmul.f32 %v2210_v24, %v6183_v62  ;;  %2670 = vmatpush.bf16.msra.mxu2 %v4529_v6  ;;  %v2219_v13 = vmul.f32 %v2210_v24, %v6187_v4  ;;  %v4527_v62 = vld [vmem:[#allocation13] sm:$0xff] }
 0x73a   : > { %v6208_v59 = vadd.f32 %v4726_v43, %v2212_v57  ;;  %v6210_v40 = vadd.f32 %v4726_v43, %v2213_v50  ;;  %v6212_v58 = vadd.f32 %v4726_v43, %v2214_v9  ;;  %v6214_v19 = vadd.f32 %v4726_v43, %v2215_v33  ;;  %2581 = vmatpush.bf16.msra.mxu0 %v4537_v0  ;;  %v4535_v4 = vld [vmem:[#allocation13 + $0xc0] sm:$0xff] }
 0x73b   : > { %v6216_v8 = vadd.f32 %v4726_v43, %v2216_v22  ;;  %v6218_v32 = vadd.f32 %v4726_v43, %v2217_v53  ;;  %v6228_v38 = vadd.f32 %v4726_v43, %v2218_v46  ;;  %v6230_v17 = vadd.f32 %v4726_v43, %v2219_v13 }
 0x73c   : > { %v4169_v20 = vmul.f32 -1.442695, %v6208_v59  ;;  %v4170_v52 = vmul.f32 -1.442695, %v6210_v40  ;;  %v4171_v10 = vmul.f32 -1.442695, %v6212_v58 }
 0x73d   : > { %v4172_v35 = vmul.f32 -1.442695, %v6214_v19  ;;  %v4173_v23 = vmul.f32 -1.442695, %v6216_v8  ;;  %v4174_v18 = vmul.f32 -1.442695, %v6218_v32  ;;  %2671 = vmatpush.bf16.msra.mxu2 %v4528_v26 }
 0x73e   : > { %4769 = vpow2.f32 %v4169_v20  ;;  %2582 = vmatpush.bf16.msra.mxu0 %v4536_v11  ;;  %v4175_v21 = vmul.f32 -1.442695, %v6228_v38  ;;  %v4176_v44 = vmul.f32 -1.442695, %v6230_v17 }
 0x73f   : > { %4771 = vpow2.f32 %v4170_v52 }
 0x740   : > { %4773 = vpow2.f32 %v4171_v10 }
 0x741   : > { %4775 = vpow2.f32 %v4172_v35  ;;  %2672 = vmatpush.bf16.msra.mxu2 %v4527_v62 }
 0x742   : > { %4777 = vpow2.f32 %v4173_v23  ;;  %2583 = vmatpush.bf16.msra.mxu0 %v4535_v4 }
 0x743   : > { %4779 = vpow2.f32 %v4174_v18 }
 0x744   : > { %v4770_v63 = vpop.eup %4769  ;;  %2673 = vmatmul.bf16.vlgmr.msra.gmra.mxu2 %v6234_v27 }
 0x745   : > { %v4772_v15 = vpop.eup %4771  ;;  %v6232_v1 = vadd.f32 1.0, %v4770_v63 }
 0x746   : > { %v4774_v48 = vpop.eup %4773  ;;  %v6237_v25 = vadd.f32 1.0, %v4772_v15  ;;  %2999 = vmatpush.bf16.msrb.mxu0 %v4558_v30 }
 0x747   : > { %v4776_v60 = vpop.eup %4775  ;;  %4781 = vrcp.f32 %v6232_v1  ;;  %v6243_v39 = vadd.f32 1.0, %v4774_v48  ;;  %v2273_v2 = vand.u32 2147483647, %v6232_v1  ;;  %v2275_v5 = vand.u32 2147483648, %v6232_v1 }
 0x748   : > { %v4778_v14 = vpop.eup %4777  ;;  %4783 = vrcp.f32 %v6237_v25  ;;  %v6245_v51 = vadd.f32 1.0, %v4776_v60  ;;  %v2288_v12 = vand.u32 2147483647, %v6237_v25  ;;  %vm2269_vm14 = vweird.f32 %v6232_v1 }
 0x749   : > { %v4780_v41 = vpop.eup %4779  ;;  %4785 = vpow2.f32 %v4175_v21  ;;  %v6249_v36 = vadd.f32 1.0, %v4778_v14  ;;  %v2290_v29 = vand.u32 2147483648, %v6237_v25  ;;  %vm2284_vm15 = vweird.f32 %v6237_v25 }
 0x74a   : > { %4787 = vpow2.f32 %v4176_v44  ;;  %v6256_v34 = vadd.f32 1.0, %v4780_v41  ;;  %v2305_v49 = vand.u32 2147483648, %v6243_v39  ;;  %v2320_v31 = vand.u32 2147483648, %v6245_v51  ;;  %3000 = vmatpush.bf16.msrb.mxu0 %v4557_v42 }
 0x74b   : > { %4789 = vrcp.f32 %v6243_v39  ;;  %vm6263_vm5 = vcmp.eq.f32.partialorder %v2273_v2, 8.507059e+37  ;;  %v2276_v61 = vor.u32 1.1754944e-38, %v2275_v5  ;;  %v2303_v57 = vand.u32 2147483647, %v6243_v39 }
 0x74c   : > { %4791 = vrcp.f32 %v6245_v51  ;;  %vm6269_vm6 = vcmp.eq.f32.partialorder %v2288_v12, 8.507059e+37  ;;  %v2318_v9 = vand.u32 2147483647, %v6245_v51  ;;  %v2335_v33 = vand.u32 2147483648, %v6249_v36 }
 0x74d   : > { %v4782_v56 = vpop.eup %4781  ;;  %4793 = vrcp.f32 %v6249_v36  ;;  %v2291_v6 = vor.u32 1.1754944e-38, %v2290_v29  ;;  %vm2299_vm8 = vweird.f32 %v6243_v39  ;;  %v2306_v45 = vor.u32 1.1754944e-38, %v2305_v49 }
 0x74e   : > { %v4784_v24 = vpop.eup %4783  ;;  %v2265_v43 = vmul.f32 %v4782_v56, %v6232_v1  ;;  %4795 = vrcp.f32 %v6256_v34  ;;  %vm2270_vm7 = vweird.f32 %v4782_v56  ;;  %vm2314_vm9 = vweird.f32 %v6245_v51 }
 0x74f   : > { %v4786_v50 = vpop.eup %4785  ;;  %v2280_v55 = vmul.f32 %v4784_v24, %v6237_v25  ;;  %v2321_v20 = vor.u32 1.1754944e-38, %v2320_v31  ;;  %vm2285_vm12 = vweird.f32 %v4784_v24  ;;  %vm6279_vm10 = vcmp.eq.f32.partialorder %v2303_v57, 8.507059e+37  ;;  %vm2271_vm13 = vmor %vm2269_vm14, %vm2270_vm7 }
 0x750   : > { %v4788_v22 = vpop.eup %4787  ;;  %v2266_v53 = vsub.f32 1.0, %v2265_v43  ;;  %vm2329_vm3 = vweird.f32 %v6249_v36  ;;  %v2333_v26 = vand.u32 2147483647, %v6249_v36  ;;  %vm6286_vm2 = vcmp.eq.f32.partialorder %v2318_v9, 8.507059e+37  ;;  %vm2286_vm0 = vmor %vm2284_vm15, %vm2285_vm12 }
 0x751   : > { %v4790_v0 = vpop.eup %4789  ;;  %v2281_v3 = vsub.f32 1.0, %v2280_v55  ;;  %v2336_v47 = vor.u32 1.1754944e-38, %v2335_v33  ;;  %v2348_v37 = vand.u32 2147483647, %v6256_v34  ;;  %v6298_v44 = vadd.f32 1.0, %v4786_v50 }
 0x752   : > { %v4792_v52 = vpop.eup %4791  ;;  %v2267_v10 = vmul.f32 %v4782_v56, %v2266_v53  ;;  %v2295_v35 = vmul.f32 %v4790_v0, %v6243_v39  ;;  %vm2300_vm4 = vweird.f32 %v4790_v0  ;;  %v2350_v31 = vand.u32 2147483648, %v6256_v34 }
 0x753   : > { %v4794_v23 = vpop.eup %4793  ;;  %v2282_v13 = vmul.f32 %v4784_v24, %v2281_v3  ;;  %v2310_v11 = vmul.f32 %v4792_v52, %v6245_v51  ;;  %vm2315_vm11 = vweird.f32 %v4792_v52  ;;  %vm2301_vm14 = vmor %vm2299_vm8, %vm2300_vm4  ;;  %4797 = vrcp.f32 %v6298_v44 }
 0x754   : > { %v2268_v62 = vadd.f32 %v4782_v56, %v2267_v10  ;;  %v2296_v4 = vsub.f32 1.0, %v2295_v35  ;;  %v2325_v63 = vmul.f32 %v4794_v23, %v6249_v36  ;;  %vm2330_vm1 = vweird.f32 %v4794_v23  ;;  %v4796_v7 = vpop.eup %4795 }
 0x755   : > { %v2283_v54 = vadd.f32 %v4784_v24, %v2282_v13  ;;  %v2311_v15 = vsub.f32 1.0, %v2310_v11  ;;  %v2340_v41 = vmul.f32 %v4796_v7, %v6256_v34  ;;  %v6315_v43 = vadd.f32 1.0, %v4788_v22  ;;  %vm2331_vm15 = vmor %vm2329_vm3, %vm2330_vm1 }
 0x756   : > { %v2272_v30 = vsel %vm2271_vm13, %v4782_v56, %v2268_v62  ;;  %v2297_v21 = vmul.f32 %v4790_v0, %v2296_v4  ;;  %v2326_v48 = vsub.f32 1.0, %v2325_v63  ;;  %v2351_v36 = vor.u32 1.1754944e-38, %v2350_v31 }
 0x757   : > { %v2277_v60 = vsel %vm6263_vm5, %v2276_v61, %v2272_v30  ;;  %v2287_v1 = vsel %vm2286_vm0, %v4784_v24, %v2283_v54  ;;  %v2312_v14 = vmul.f32 %v4792_v52, %v2311_v15  ;;  %v2341_v49 = vsub.f32 1.0, %v2340_v41  ;;  %vm2316_vm0 = vmor %vm2314_vm9, %vm2315_vm11  ;;  %v4574_v41 = vld [vmem:[#allocation13 + $0x1f8] sm:$0xff] }
 0x758   : > { %v2384_v2 = vmul.f32 %v2277_v60, %v6208_v59  ;;  %v2292_v5 = vsel %vm6269_vm6, %v2291_v6, %v2287_v1  ;;  %v2298_v12 = vadd.f32 %v4790_v0, %v2297_v21  ;;  %v2327_v25 = vmul.f32 %v4794_v23, %v2326_v48  ;;  %3113 = vmatpush.bf16.msrb.mxu2 %v4574_v41 }
 0x759   : > { %v2385_v29 = vmul.f32 %v2292_v5, %v6210_v40  ;;  %v2313_v56 = vadd.f32 %v4792_v52, %v2312_v14  ;;  %v2342_v28 = vmul.f32 %v4796_v7, %v2341_v49  ;;  %vm2345_vm5 = vweird.f32 %v4796_v7  ;;  %v4798_v33 = vpop.eup %4797  ;;  %v4571_v49 = vld [vmem:[#allocation13 + $0x1e0] sm:$0xff] }
 0x75a   : > { %2414 = vst [vmem:[#allocation3 + $0x11] sm:$0xff] %v2384_v2  ;;  %v2302_v24 = vsel %vm2301_vm14, %v4790_v0, %v2298_v12  ;;  %v2328_v59 = vadd.f32 %v4794_v23, %v2327_v25  ;;  %vm2334_vm11 = vcmp.eq.f32.partialorder %v2333_v26, 8.507059e+37  ;;  %vm2344_vm6 = vweird.f32 %v6256_v34  ;;  %v4553_v25 = vld [vmem:[#allocation13 + $0x50] sm:$0xff] }
 0x75b   : > { %2415 = vst [vmem:[#allocation3 + $0x21] sm:$0xff] %v2385_v29  ;;  %v2307_v40 = vsel %vm6279_vm10, %v2306_v45, %v2302_v24  ;;  %v2317_v39 = vsel %vm2316_vm0, %v4792_v52, %v2313_v56  ;;  %v2343_v16 = vadd.f32 %v4796_v7, %v2342_v28  ;;  %vm2346_vm8 = vmor %vm2344_vm6, %vm2345_vm5  ;;  %4799 = vrcp.f32 %v6315_v43  ;;  %v4573_v29 = vld [vmem:[#allocation13 + $0x1f0] sm:$0xff]  ;;  %v4572_v56 = vld [vmem:[#allocation13 + $0x1e8] sm:$0xff] }
 0x75c   : > { %v2386_v61 = vmul.f32 %v2307_v40, %v6212_v58  ;;  %v2322_v51 = vsel %vm6286_vm2, %v2321_v20, %v2317_v39  ;;  %v2332_v57 = vsel %vm2331_vm15, %v4794_v23, %v2328_v59  ;;  %vm2349_vm1 = vcmp.eq.f32.partialorder %v2348_v37, 8.507059e+37  ;;  %3114 = vmatpush.bf16.msrb.mxu2 %v4573_v29  ;;  %v4570_v40 = vld [vmem:[#allocation13 + $0x1d8] sm:$0xff] }
 0x75d   : > { %v2387_v50 = vmul.f32 %v2322_v51, %v6214_v19  ;;  %v2337_v55 = vsel %vm2334_vm11, %v2336_v47, %v2332_v57  ;;  %v2347_v58 = vsel %vm2346_vm8, %v4796_v7, %v2343_v16  ;;  %v2355_v0 = vmul.f32 %v4798_v33, %v6298_v44  ;;  %v4590_v39 = vld [vmem:[#allocation13 + $0x178] sm:$0xff]  ;;  %v4589_v51 = vld [vmem:[#allocation13 + $0x170] sm:$0xff]  ;;  %v4580_v16 = vld [vmem:[#allocation13 + $0xa8] sm:$0xff] }
 0x75e   : > { %2416 = vst [vmem:[#allocation3 + $0x31] sm:$0xff] %v2386_v61  ;;  %v2388_v9 = vmul.f32 %v2337_v55, %v6216_v8  ;;  %v2352_v22 = vsel %vm2349_vm1, %v2351_v36, %v2347_v58  ;;  %v2363_v10 = vand.u32 2147483647, %v6298_v44  ;;  %v2365_v35 = vand.u32 2147483648, %v6298_v44  ;;  %v4582_v28 = vld [vmem:[#allocation13 + $0xb8] sm:$0xff]  ;;  %v4569_v61 = vld [vmem:[#allocation13 + $0x1d0] sm:$0xff]  ;;  %3316 = vmatpush.bf16.msra.mxu3 %v4590_v39 }
 0x75f   : > { %2417 = vst [vmem:[#allocation3 + $0x41] sm:$0xff] %v2387_v50  ;;  %v2389_v19 = vmul.f32 %v2352_v22, %v6218_v32  ;;  %v2356_v20 = vsub.f32 1.0, %v2355_v0  ;;  %v4556_v32 = vld [vmem:[#allocation13 + $0x68] sm:$0xff]  ;;  %vm2360_vm7 = vweird.f32 %v4798_v33  ;;  %vm2359_vm9 = vweird.f32 %v6298_v44  ;;  %3413 = vmatpush.bf16.msrb.mxu1 %v4582_v28  ;;  %v4581_v57 = vld [vmem:[#allocation13 + $0xb0] sm:$0xff]  ;;  %v4579_v22 = vld [vmem:[#allocation13 + $0xa0] sm:$0xff] }
 0x760   : > { %2418 = vst [vmem:[#allocation3 + $0x51] sm:$0xff] %v2388_v9  ;;  %3001 = vmatpush.bf16.msrb.mxu0 %v4556_v32  ;;  %vm2361_vm12 = vmor %vm2359_vm9, %vm2360_vm7  ;;  %vm2364_vm10 = vcmp.eq.f32.partialorder %v2363_v10, 8.507059e+37  ;;  %v2366_v11 = vor.u32 1.1754944e-38, %v2365_v35  ;;  %v2380_v18 = vand.u32 2147483648, %v6315_v43  ;;  %v2378_v62 = vand.u32 2147483647, %v6315_v43  ;;  %3115 = vmatpush.bf16.msrb.mxu2 %v4572_v56 }
 0x761   : > { %v2446_v53 = vld [vmem:[#allocation3 + $0x10] sm:$0xff]  ;;  %v2447_v6 = vld [vmem:[#allocation3 + $0x18] sm:$0xff]  ;;  %2419 = vst [vmem:[#allocation3 + $0x61] sm:$0xff] %v2389_v19  ;;  %v4800_v52 = vpop.eup %4799  ;;  %v2357_v46 = vmul.f32 %v4798_v33, %v2356_v20  ;;  %vm2374_vm2 = vweird.f32 %v6315_v43  ;;  %v4567_v9 = vld [vmem:[#allocation13 + $0x1c0] sm:$0xff]  ;;  %vm6686_vm14 = vcmask 523264   ;;  %vm6687_vm0 = vcmask 1046528  }
 0x762   : > { %v6331_v34 = vpack.c.bf16 %v2447_v6, %v2446_v53  ;;  %v2471_v3 = vld [vmem:[#allocation3 + $0x20] sm:$0xff]  ;;  %v2472_v8 = vld [vmem:[#allocation3 + $0x28] sm:$0xff]  ;;  %v2370_v26 = vmul.f32 %v4800_v52, %v6315_v43  ;;  %vm2375_vm3 = vweird.f32 %v4800_v52  ;;  %v2381_v42 = vor.u32 1.1754944e-38, %v2380_v18  ;;  %3317 = vmatpush.bf16.msra.mxu3 %v4589_v51  ;;  %v4597_v18 = vld [vmem:[#allocation13 + $0x230] sm:$0xff] }
 0x763   : > { %v6333_v45 = vpack.c.bf16 %v2472_v8, %v2471_v3  ;;  %v2358_v23 = vadd.f32 %v4798_v33, %v2357_v46  ;;  %vm2376_vm4 = vmor %vm2374_vm2, %vm2375_vm3  ;;  %vm2379_vm13 = vcmp.eq.f32.partialorder %v2378_v62, 8.507059e+37  ;;  %v4552_v43 = vld [vmem:[#allocation13 + $0x48] sm:$0xff]  ;;  %3414 = vmatpush.bf16.msrb.mxu1 %v4581_v57  ;;  %v4551_v6 = vld [vmem:[#allocation13 + $0x40] sm:$0xff]  ;;  %vm6700_vm3 = vcmask 1045504  }
 0x764   : > { %2584 = vmatmul.bf16.vlgmr.msra.gmra.mxu0 %v6331_v34  ;;  %2677 = vmatmul.bf16.gmra.mxu2 %v6331_v34  ;;  %v2371_v13 = vsub.f32 1.0, %v2370_v26  ;;  %v4568_v50 = vld [vmem:[#allocation13 + $0x1c8] sm:$0xff]  ;;  %v4586_v19 = vld [vmem:[#allocation13 + $0x158] sm:$0xff]  ;;  %v4585_v3 = vld [vmem:[#allocation13 + $0x150] sm:$0xff] }
 0x765   : > { %2779 = vmatmul.bf16.vlgmr.msrb.gmra.mxu3 %v6333_v45  ;;  %2910 = vmatmul.bf16.vlgmr.msra.gmra.mxu1 %v6331_v34  ;;  %v2362_v47 = vsel %vm2361_vm12, %v4798_v33, %v2358_v23  ;;  %v2473_v21 = vld [vmem:[#allocation3 + $0x30] sm:$0xff]  ;;  %v2474_v48 = vld [vmem:[#allocation3 + $0x38] sm:$0xff]  ;;  %v4587_v33 = vld [vmem:[#allocation13 + $0x160] sm:$0xff] }
 0x766   : > { %v2372_v37 = vmul.f32 %v4800_v52, %v2371_v13  ;;  %v2367_v4 = vsel %vm2364_vm10, %v2366_v11, %v2362_v47  ;;  %v6348_v44 = vpack.c.bf16 %v2474_v48, %v2473_v21  ;;  %v2475_v60 = vld [vmem:[#allocation3 + $0x40] sm:$0xff]  ;;  %v2476_v1 = vld [vmem:[#allocation3 + $0x48] sm:$0xff]  ;;  %3116 = vmatpush.bf16.msrb.mxu2 %v4571_v49  ;;  %v4577_v8 = vld [vmem:[#allocation13 + $0x90] sm:$0xff] }
 0x767   : > { %v2390_v63 = vmul.f32 %v2367_v4, %v6228_v38  ;;  %v4555_v38 = vld [vmem:[#allocation13 + $0x60] sm:$0xff]  ;;  %v6354_v14 = vpack.c.bf16 %v2476_v1, %v2475_v60  ;;  %v2477_v2 = vld [vmem:[#allocation3 + $0x50] sm:$0xff]  ;;  %v2478_v5 = vld [vmem:[#allocation3 + $0x58] sm:$0xff]  ;;  %3415 = vmatpush.bf16.msrb.mxu1 %v4580_v16 }
 0x768   : > { %v2373_v54 = vadd.f32 %v4800_v52, %v2372_v37  ;;  %3002 = vmatpush.bf16.msrb.mxu0 %v4555_v38  ;;  %v6360_v12 = vpack.c.bf16 %v2478_v5, %v2477_v2  ;;  %v2479_v31 = vld [vmem:[#allocation3 + $0x60] sm:$0xff]  ;;  %v2480_v24 = vld [vmem:[#allocation3 + $0x68] sm:$0xff]  ;;  %v4593_v51 = vld [vmem:[#allocation13 + $0x210] sm:$0xff] }
 0x769   : > { %2420 = vst [vmem:[#allocation3 + $0x71] sm:$0xff] %v2390_v63  ;;  %v6366_v59 = vpack.c.bf16 %v2480_v24, %v2479_v31  ;;  %v4588_v55 = vld [vmem:[#allocation13 + $0x168] sm:$0xff]  ;;  %v4578_v0 = vld [vmem:[#allocation13 + $0x98] sm:$0xff]  ;;  %v4583_v32 = vld [vmem:[#allocation13 + $0x140] sm:$0xff] }
 0x76a   : > { %v2377_v15 = vsel %vm2376_vm4, %v4800_v52, %v2373_v54  ;;  %3117 = vmatpush.bf16.msrb.mxu2 %v4570_v40  ;;  %3318 = vmatpush.bf16.msra.mxu3 %v4588_v55  ;;  %v4584_v20 = vld [vmem:[#allocation13 + $0x148] sm:$0xff]  ;;  %v4575_v46 = vld [vmem:[#allocation13 + $0x80] sm:$0xff]  ;;  %v4598_v23 = vld [vmem:[#allocation13 + $0x238] sm:$0xff] }
 0x76b   : > { %v2382_v7 = vsel %vm2379_vm13, %v2381_v42, %v2377_v15  ;;  %3416 = vmatpush.bf16.msrb.mxu1 %v4579_v22  ;;  %v4576_v52 = vld [vmem:[#allocation13 + $0x88] sm:$0xff]  ;;  %v4595_v48 = vld [vmem:[#allocation13 + $0x220] sm:$0xff]  ;;  %v4602_v29 = vld [vmem:[#allocation15 + $0x18] sm:$0xff] }
 0x76c   : > { %v2391_v30 = vmul.f32 %v2382_v7, %v6230_v17  ;;  %v4554_v17 = vld [vmem:[#allocation13 + $0x58] sm:$0xff]  ;;  %v4596_v62 = vld [vmem:[#allocation13 + $0x228] sm:$0xff]  ;;  %vm6688_vm15 = vmmov %vm6686_vm14 }
 0x76d   : > { %3003 = vmatpush.bf16.msrb.mxu0 %v4554_v17  ;;  %vm6689_vm5 = vmmov %vm6687_vm0 }
 0x76e   : > { %2421 = vst [vmem:[#allocation3 + $0x81] sm:$0xff] %v2391_v30  ;;  %3118 = vmatpush.bf16.msrb.mxu2 %v4569_v61  ;;  %3319 = vmatpush.bf16.msra.mxu3 %v4587_v33  ;;  %vm6690_vm11 = vmmov %vm6687_vm0 }
 0x76f   : > { %3417 = vmatpush.bf16.msrb.mxu1 %v4578_v0  ;;  %v4601_v0 = vld [vmem:[#allocation15 + $0x10] sm:$0xff]  ;;  %vm6691_vm6 = vmmov %vm6686_vm14 }
 0x770   : > { %v2481_v36 = vld [vmem:[#allocation3 + $0x70] sm:$0xff]  ;;  %v2482_v58 = vld [vmem:[#allocation3 + $0x78] sm:$0xff]  ;;  %vm6692_vm8 = vmmov %vm6687_vm0 }
 0x771   : > { %3004 = vmatpush.bf16.msrb.mxu0 %v4553_v25  ;;  %v6372_v53 = vpack.c.bf16 %v2482_v58, %v2481_v36  ;;  %vm6693_vm1 = vmmov %vm6687_vm0 }
 0x772   : > { %3119 = vmatpush.bf16.msrb.mxu2 %v4568_v50  ;;  %3320 = vmatpush.bf16.msra.mxu3 %v4586_v19  ;;  %v4592_v19 = vld [vmem:[#allocation13 + $0x208] sm:$0xff]  ;;  %vm6694_vm7 = vmmov %vm6691_vm6 }
 0x773   : > { %3418 = vmatpush.bf16.msrb.mxu1 %v4577_v8  ;;  %vm6695_vm9 = vmmov %vm6687_vm0 }
 0x774   : > { %2588 = vmatmul.bf16.gmra.mxu0 %v6333_v45  ;;  %2681 = vmatmul.bf16.gmra.mxu2 %v6333_v45  ;;  %vm6696_vm12 = vmmov %vm6687_vm0 }
 0x775   : > { %2783 = vmatmul.bf16.gmra.mxu3 %v6348_v44  ;;  %2915 = vmatmul.bf16.gmra.mxu1 %v6333_v45  ;;  %v2483_v10 = vld [vmem:[#allocation3 + $0x80] sm:$0xff]  ;;  %v2484_v35 = vld [vmem:[#allocation3 + $0x88] sm:$0xff]  ;;  %vm6697_vm10 = vmmov %vm6687_vm0 }
 0x776   : > { %3005 = vmatpush.bf16.msrb.mxu0 %v4552_v43  ;;  %3120 = vmatpush.bf16.msrb.mxu2 %v4567_v9  ;;  %v6378_v26 = vpack.c.bf16 %v2484_v35, %v2483_v10  ;;  %vm6701_vm2 = vmmov %vm6700_vm3 }
 0x777   : > { %3321 = vmatpush.bf16.msra.mxu3 %v4585_v3  ;;  %3419 = vmatpush.bf16.msrb.mxu1 %v4576_v52  ;;  %vm6702_vm4 = vmmov %vm6701_vm2 }
 0x778   : > { %vm6703_vm13 = vmmov %vm6701_vm2 }
 0x77a   : > { %3006 = vmatpush.bf16.msrb.mxu0 %v4551_v6  ;;  %3716 = vmatpush.bf16.msra.mxu2 %v4602_v29  ;;  %v4802_v29 = vld [vmem:[%s5355_s22] sm:$0xff] }
 0x77b   : > { %3322 = vmatpush.bf16.msra.mxu3 %v4584_v20  ;;  %3420 = vmatpush.bf16.msrb.mxu1 %v4575_v46 }
 0x77e   : > { %3527 = vmatpush.bf16.msra.mxu0 %v4598_v23  ;;  %3717 = vmatpush.bf16.msra.mxu2 %v4601_v0 }
 0x77f   : > { %3323 = vmatpush.bf16.msra.mxu3 %v4583_v32 }
 0x782   : > { %3528 = vmatpush.bf16.msra.mxu0 %v4597_v18 }
 0x784   : > { %2592 = vmatmul.bf16.gmra.mxu0 %v6348_v44  ;;  %2685 = vmatmul.bf16.gmra.mxu2 %v6348_v44 }
 0x785   : > { %2787 = vmatmul.bf16.gmra.mxu3 %v6354_v14  ;;  %2920 = vmatmul.bf16.gmra.mxu1 %v6348_v44 }
 0x786   : > { %3529 = vmatpush.bf16.msra.mxu0 %v4596_v62 }
 0x78a   : > { %3530 = vmatpush.bf16.msra.mxu0 %v4595_v48 }
 0x794   : > { %2596 = vmatmul.bf16.gmra.mxu0 %v6354_v14  ;;  %2689 = vmatmul.bf16.gmra.mxu2 %v6354_v14 }
 0x795   : > { %2791 = vmatmul.bf16.gmra.mxu3 %v6360_v12  ;;  %2925 = vmatmul.bf16.gmra.mxu1 %v6354_v14 }
 0x7a4   : > { %2600 = vmatmul.bf16.gmra.mxu0 %v6360_v12  ;;  %2693 = vmatmul.bf16.gmra.mxu2 %v6360_v12 }
 0x7a5   : > { %2795 = vmatmul.bf16.gmra.mxu3 %v6366_v59  ;;  %2930 = vmatmul.bf16.gmra.mxu1 %v6360_v12 }
 0x7b4   : > { %2604 = vmatmul.bf16.gmra.mxu0 %v6366_v59  ;;  %2697 = vmatmul.bf16.gmra.mxu2 %v6366_v59 }
 0x7b5   : > { %2799 = vmatmul.bf16.gmra.mxu3 %v6372_v53  ;;  %2935 = vmatmul.bf16.gmra.mxu1 %v6366_v59 }
 0x7c4   : > { %2608 = vmatmul.bf16.gmra.mxu0 %v6372_v53  ;;  %2701 = vmatmul.bf16.gmra.mxu2 %v6372_v53 }
 0x7c5   : > { %2803 = vmatmul.bf16.gmra.mxu3 %v6378_v26  ;;  %2940 = vmatmul.bf16.gmra.mxu1 %v6372_v53 }
 0x7c7   : > { %v2674_v13 = vpop.f32.mrf.mxu2 }
 0x7cf   : > { %v2676_v11 = vpop.f32.mrf.mxu2 }
 0x7d4   : > { %2612 = vmatmul.bf16.gmra.mxu0 %v6378_v26  ;;  %3121 = vmatmul.bf16.vlgmr.msrb.gmra.mxu2 %v6333_v45 }
 0x7d5   : > { %2807 = vmatmul.bf16.gmra.mxu3 %v6234_v27  ;;  %2945 = vmatmul.bf16.gmra.mxu1 %v6378_v26 }
 0x7e1   : > { %v2585_v47 = vpop.f32.mrf.mxu0 }
 0x7e2   : > { %v2675_v37 = vadd.f32 %v2674_v13, %v2585_v47  ;;  %v6406_v43 = vpop.f32.mrf.mxu1  ;;  %v4591_v13 = vld [vmem:[#allocation13 + $0x200] sm:$0xff] }
 0x7e4   : > { %3007 = vmatmul.bf16.vlgmr.msrb.gmra.mxu0 %v6234_v27  ;;  %3126 = vmatmul.bf16.gmra.mxu2 %v6348_v44 }
 0x7e5   : > { %3324 = vmatmul.bf16.vlgmr.msra.gmra.mxu3 %v6331_v34  ;;  %3421 = vmatmul.bf16.vlgmr.msrb.gmra.mxu1 %v6234_v27 }
 0x7e7   : > { %v2678_v4 = vpop.f32.mrf.mxu2 }
 0x7e8   : > { %v2780_v63 = vpop.f32.mrf.mxu3 }
 0x7e9   : > { %v6392_v54 = vadd.f32 %v2780_v63, %v2675_v37  ;;  %v2587_v42 = vpop.f32.mrf.mxu0 }
 0x7ea   : > { %v6412_v55 = vpop.f32.mrf.mxu1 }
 0x7ef   : > { %v2680_v15 = vpop.f32.mrf.mxu2 }
 0x7f0   : > { %v2782_v7 = vpop.f32.mrf.mxu3 }
 0x7f1   : > { %v2589_v30 = vpop.f32.mrf.mxu0 }
 0x7f2   : > { %v2679_v21 = vadd.f32 %v2678_v4, %v2589_v30  ;;  %v6416_v6 = vpop.f32.mrf.mxu1  ;;  %v4600_v30 = vld [vmem:[#allocation15 + $0x8] sm:$0xff] }
 0x7f3   : > { %3718 = vmatpush.bf16.msra.mxu2 %v4600_v30 }
 0x7f4   : > { %3012 = vmatmul.bf16.gmra.mxu0 %v6331_v34  ;;  %3131 = vmatmul.bf16.gmra.mxu2 %v6354_v14 }
 0x7f5   : > { %3329 = vmatmul.bf16.gmra.mxu3 %v6333_v45  ;;  %3426 = vmatmul.bf16.gmra.mxu1 %v6331_v34  ;;  %v4594_v34 = vld [vmem:[#allocation13 + $0x218] sm:$0xff] }
 0x7f6   : > { %3531 = vmatpush.bf16.msra.mxu0 %v4594_v34 }
 0x7f7   : > { %v2682_v38 = vpop.f32.mrf.mxu2 }
 0x7f8   : > { %v2784_v60 = vpop.f32.mrf.mxu3 }
 0x7f9   : > { %v6398_v1 = vadd.f32 %v2784_v60, %v2679_v21  ;;  %v2591_v17 = vpop.f32.mrf.mxu0 }
 0x7fa   : > { %3532 = vmatpush.bf16.msra.mxu0 %v4593_v51  ;;  %v6424_v10 = vpop.f32.mrf.mxu1 }
 0x7fe   : > { %3533 = vmatpush.bf16.msra.mxu0 %v4592_v19 }
 0x7ff   : > { %v2684_v41 = vpop.f32.mrf.mxu2 }
 0x800   : > { %v2786_v2 = vpop.f32.mrf.mxu3 }
 0x801   : > { %v2593_v5 = vpop.f32.mrf.mxu0 }
 0x802   : > { %v2683_v25 = vadd.f32 %v2682_v38, %v2593_v5  ;;  %v6430_v11 = vpop.f32.mrf.mxu1  ;;  %3534 = vmatpush.bf16.msra.mxu0 %v4591_v13  ;;  %v4599_v5 = vld [vmem:[#allocation15] sm:$0xff] }
 0x803   : > { %3719 = vmatpush.bf16.msra.mxu2 %v4599_v5 }
 0x804   : > { %3017 = vmatmul.bf16.gmra.mxu0 %v6333_v45  ;;  %3136 = vmatmul.bf16.gmra.mxu2 %v6360_v12 }
 0x805   : > { %3334 = vmatmul.bf16.gmra.mxu3 %v6348_v44  ;;  %3431 = vmatmul.bf16.gmra.mxu1 %v6333_v45 }
 0x807   : > { %v2686_v56 = vpop.f32.mrf.mxu2 }
 0x808   : > { %v2788_v49 = vpop.f32.mrf.mxu3 }
 0x809   : > { %v6404_v31 = vadd.f32 %v2788_v49, %v2683_v25  ;;  %v2595_v24 = vpop.f32.mrf.mxu0 }
 0x80a   : > { %v6434_v42 = vpop.f32.mrf.mxu1 }
 0x80f   : > { %v2688_v40 = vpop.f32.mrf.mxu2 }
 0x810   : > { %v2790_v39 = vpop.f32.mrf.mxu3 }
 0x811   : > { %v2597_v28 = vpop.f32.mrf.mxu0 }
 0x812   : > { %v2687_v61 = vadd.f32 %v2686_v56, %v2597_v28  ;;  %v6442_v17 = vpop.f32.mrf.mxu1  ;;  %v4803_v56 = vld [vmem:[%s5355_s22 + $0x8] sm:$0xff] }
 0x813   : > { %v3660_v49 = vpack.c.bf16 %v4803_v56, %v4802_v29 }
 0x814   : > { %3022 = vmatmul.bf16.gmra.mxu0 %v6348_v44  ;;  %3141 = vmatmul.bf16.gmra.mxu2 %v6366_v59 }
 0x815   : > { %3339 = vmatmul.bf16.gmra.mxu3 %v6354_v14  ;;  %3436 = vmatmul.bf16.gmra.mxu1 %v6348_v44 }
 0x817   : > { %v2690_v57 = vpop.f32.mrf.mxu2 }
 0x818   : > { %v2792_v50 = vpop.f32.mrf.mxu3 }
 0x819   : > { %v6414_v16 = vadd.f32 %v2792_v50, %v2687_v61  ;;  %v2599_v9 = vpop.f32.mrf.mxu0 }
 0x81a   : > { %v6447_v24 = vpop.f32.mrf.mxu1 }
 0x81f   : > { %v2692_v36 = vpop.f32.mrf.mxu2 }
 0x820   : > { %v2794_v58 = vpop.f32.mrf.mxu3 }
 0x821   : > { %v2601_v33 = vpop.f32.mrf.mxu0 }
 0x822   : > { %v2691_v22 = vadd.f32 %v2690_v57, %v2601_v33 }
 0x824   : > { %3027 = vmatmul.bf16.gmra.mxu0 %v6354_v14  ;;  %3146 = vmatmul.bf16.gmra.mxu2 %v6372_v53 }
 0x825   : > { %3344 = vmatmul.bf16.gmra.mxu3 %v6360_v12  ;;  %3441 = vmatmul.bf16.gmra.mxu1 %v6354_v14 }
 0x827   : > { %v2694_v3 = vpop.f32.mrf.mxu2 }
 0x828   : > { %v2796_v8 = vpop.f32.mrf.mxu3 }
 0x829   : > { %v6422_v20 = vadd.f32 %v2796_v8, %v2691_v22  ;;  %v2603_v52 = vpop.f32.mrf.mxu0 }
 0x82f   : > { %v2696_v35 = vpop.f32.mrf.mxu2 }
 0x830   : > { %v2798_v32 = vpop.f32.mrf.mxu3  ;;  %v4804_v35 = vld [vmem:[%s5355_s22 + $0x10] sm:$0xff] }
 0x831   : > { %v2605_v46 = vpop.f32.mrf.mxu0  ;;  %v4805_v32 = vld [vmem:[%s5355_s22 + $0x18] sm:$0xff] }
 0x832   : > { %v2695_v23 = vadd.f32 %v2694_v3, %v2605_v46  ;;  %v3661_v46 = vpack.c.bf16 %v4805_v32, %v4804_v35 }
 0x834   : > { %3032 = vmatmul.bf16.gmra.mxu0 %v6360_v12  ;;  %3151 = vmatmul.bf16.gmra.mxu2 %v6378_v26 }
 0x835   : > { %3349 = vmatmul.bf16.gmra.mxu3 %v6366_v59  ;;  %3446 = vmatmul.bf16.gmra.mxu1 %v6360_v12 }
 0x837   : > { %v2698_v18 = vpop.f32.mrf.mxu2 }
 0x838   : > { %v2800_v47 = vpop.f32.mrf.mxu3 }
 0x839   : > { %v6432_v37 = vadd.f32 %v2800_v47, %v2695_v23  ;;  %v2607_v62 = vpop.f32.mrf.mxu0  ;;  %v2931_v23 = vpop.f32.mrf.mxu1 }
 0x83f   : > { %v2700_v4 = vpop.f32.mrf.mxu2 }
 0x840   : > { %v2802_v63 = vpop.f32.mrf.mxu3 }
 0x841   : > { %v2609_v15 = vpop.f32.mrf.mxu0  ;;  %v2933_v4 = vpop.f32.mrf.mxu1 }
 0x842   : > { %v2699_v7 = vadd.f32 %v2698_v18, %v2609_v15 }
 0x844   : > { %3037 = vmatmul.bf16.gmra.mxu0 %v6366_v59  ;;  %3156 = vmatmul.bf16.gmra.mxu2 %v6234_v27 }
 0x845   : > { %3354 = vmatmul.bf16.gmra.mxu3 %v6372_v53  ;;  %3451 = vmatmul.bf16.gmra.mxu1 %v6366_v59 }
 0x847   : > { %v2702_v21 = vpop.f32.mrf.mxu2 }
 0x848   : > { %v2804_v48 = vpop.f32.mrf.mxu3 }
 0x849   : > { %v6440_v38 = vadd.f32 %v2804_v48, %v2699_v7  ;;  %v2611_v60 = vpop.f32.mrf.mxu0 }
 0x84a   : > { %v2936_v60 = vpop.f32.mrf.mxu1 }
 0x84f   : > { %v2704_v41 = vpop.f32.mrf.mxu2 }
 0x850   : > { %v2806_v2 = vpop.f32.mrf.mxu3 }
 0x851   : > { %v2613_v25 = vpop.f32.mrf.mxu0 }
 0x852   : > { %v2703_v34 = vadd.f32 %v2702_v21, %v2613_v25  ;;  %v2938_v29 = vpop.f32.mrf.mxu1 }
 0x854   : > { %3042 = vmatmul.bf16.gmra.mxu0 %v6372_v53  ;;  %4481 = vmatmul.msk.bf16.vlgmr.msra.gmra.mxu2 %vm6686_vm14, %v3660_v49  ;;  %vm6704_vm14 = vmmov %vm6701_vm2 }
 0x855   : > { %3359 = vmatmul.bf16.gmra.mxu3 %v6378_v26  ;;  %3456 = vmatmul.bf16.gmra.mxu1 %v6372_v53 }
 0x857   : > { %v3122_v40 = vpop.f32.mrf.mxu2 }
 0x858   : > { %v2808_v39 = vpop.f32.mrf.mxu3 }
 0x859   : > { %v6452_v28 = vadd.f32 %v2808_v39, %v2703_v34  ;;  %v2615_v61 = vpop.f32.mrf.mxu0 }
 0x85f   : > { %v3124_v51 = vpop.f32.mrf.mxu2 }
 0x860   : > { %v2810_v57 = vpop.f32.mrf.mxu3 }
 0x861   : > { %v3008_v50 = vpop.f32.mrf.mxu0  ;;  %v2941_v57 = vpop.f32.mrf.mxu1 }
 0x862   : > { %v3009_v9 = vadd.f32 %v3008_v50, %v6406_v43 }
 0x864   : > { %v3162_v36 = vadd.f32 %v3122_v40, %v3009_v9  ;;  %3535 = vmatmul.bf16.vlgmr.msra.gmra.mxu0 %v6333_v45  ;;  %4482 = vmatmul.msk.bf16.gmra.mxu2 %vm6688_vm15, %v3661_v46  ;;  %v4806_v40 = vld [vmem:[%s5355_s22 + $0x20] sm:$0xff] }
 0x866   : > { %v3194_v0 = vrot.slane %v3162_v36, 1 }
 0x867   : > { %v3127_v58 = vpop.f32.mrf.mxu2 }
 0x869   : > { %v3010_v33 = vpop.f32.mrf.mxu0 }
 0x86a   : > { %v3011_v22 = vadd.f32 %v3010_v33, %v6412_v55 }
 0x86c   : > { %v3163_v19 = vadd.f32 %v3124_v51, %v3011_v22 }
 0x86e   : > { %v3195_v3 = vrot.slane %v3163_v19, 1 }
 0x86f   : > { %v3129_v8 = vpop.f32.mrf.mxu2 }
 0x870   : > { %v3196_v52 = vsel %vm6687_vm0, %v3194_v0, %v3195_v3  ;;  %v2943_v3 = vpop.f32.mrf.mxu1  ;;  %vm6705_vm0 = vmmov %vm6701_vm2 }
 0x871   : > { %v3013_v13 = vpop.f32.mrf.mxu0  ;;  %v6461_v43 = vadd.f32 %v3196_v52, %v6392_v54  ;;  %vm6706_vm15 = vmmov %vm6705_vm0 }
 0x872   : > { %v3014_v45 = vadd.f32 %v3013_v13, %v6416_v6 }
 0x874   : > { %v3164_v18 = vadd.f32 %v3127_v58, %v3014_v45  ;;  %3540 = vmatmul.bf16.gmra.mxu0 %v6348_v44 }
 0x876   : > { %v3197_v15 = vrot.slane %v3164_v18, 1  ;;  %v4808_v18 = vld [vmem:[%s5355_s22 + $0x30] sm:$0xff] }
 0x877   : > { %v3132_v55 = vpop.f32.mrf.mxu2 }
 0x878   : > { %v2946_v32 = vpop.f32.mrf.mxu1 }
 0x879   : > { %v3015_v47 = vpop.f32.mrf.mxu0 }
 0x87a   : > { %v3016_v62 = vadd.f32 %v3015_v47, %v6424_v10 }
 0x87c   : > { %v3165_v63 = vadd.f32 %v3129_v8, %v3016_v62 }
 0x87e   : > { %v3198_v7 = vrot.slane %v3165_v63, 1 }
 0x87f   : > { %v3134_v30 = vpop.f32.mrf.mxu2 }
 0x880   : > { %v3199_v21 = vsel %vm6689_vm5, %v3197_v15, %v3198_v7  ;;  %vm6708_vm5 = vmmov %vm6705_vm0 }
 0x881   : > { %v3018_v54 = vpop.f32.mrf.mxu0  ;;  %v6469_v6 = vadd.f32 %v3199_v21, %v6398_v1  ;;  %v4807_v1 = vld [vmem:[%s5355_s22 + $0x28] sm:$0xff] }
 0x882   : > { %v3019_v48 = vadd.f32 %v3018_v54, %v6430_v11  ;;  %v3662_v39 = vpack.c.bf16 %v4807_v1, %v4806_v40 }
 0x884   : > { %v3166_v44 = vadd.f32 %v3132_v55, %v3019_v48  ;;  %3545 = vmatmul.bf16.gmra.mxu0 %v6354_v14  ;;  %4483 = vmatmul.msk.bf16.gmra.mxu2 %vm6691_vm6, %v3662_v39  ;;  %v4809_v55 = vld [vmem:[%s5355_s22 + $0x38] sm:$0xff] }
 0x885   : > { %v3663_v47 = vpack.c.bf16 %v4809_v55, %v4808_v18 }
 0x886   : > { %v3200_v25 = vrot.slane %v3166_v44, 1  ;;  %v3325_v44 = vpop.f32.mrf.mxu3 }
 0x887   : > { %v3137_v10 = vpop.f32.mrf.mxu2 }
 0x889   : > { %v3020_v41 = vpop.f32.mrf.mxu0 }
 0x88a   : > { %v3021_v2 = vadd.f32 %v3020_v41, %v6434_v42 }
 0x88c   : > { %v3167_v5 = vadd.f32 %v3134_v30, %v3021_v2 }
 0x88e   : > { %v3201_v34 = vrot.slane %v3167_v5, 1 }
 0x88f   : > { %v3139_v56 = vpop.f32.mrf.mxu2 }
 0x890   : > { %v3202_v49 = vsel %vm6690_vm11, %v3200_v25, %v3201_v34  ;;  %v3327_v25 = vpop.f32.mrf.mxu3 }
 0x891   : > { %v3023_v61 = vpop.f32.mrf.mxu0  ;;  %v6478_v11 = vadd.f32 %v3202_v49, %v6404_v31 }
 0x892   : > { %v3024_v14 = vadd.f32 %v3023_v61, %v6442_v17 }
 0x894   : > { %v3168_v51 = vadd.f32 %v3137_v10, %v3024_v14  ;;  %3550 = vmatmul.bf16.gmra.mxu0 %v6360_v12  ;;  %4484 = vmatmul.msk.bf16.gmra.mxu2 %vm6694_vm7, %v3663_v47 }
 0x896   : > { %v3203_v58 = vrot.slane %v3168_v51, 1 }
 0x897   : > { %v3142_v42 = vpop.f32.mrf.mxu2 }
 0x899   : > { %v3025_v50 = vpop.f32.mrf.mxu0 }
 0x89a   : > { %v3026_v9 = vadd.f32 %v3025_v50, %v6447_v24 }
 0x89c   : > { %v3169_v36 = vadd.f32 %v3139_v56, %v3026_v9 }
 0x89e   : > { %v3204_v33 = vrot.slane %v3169_v36, 1 }
 0x89f   : > { %v3144_v22 = vpop.f32.mrf.mxu2 }
 0x8a0   : > { %v3205_v31 = vsel %vm6692_vm8, %v3203_v58, %v3204_v33 }
 0x8a1   : > { %v3028_v19 = vpop.f32.mrf.mxu0  ;;  %v6486_v17 = vadd.f32 %v3205_v31, %v6414_v16 }
 0x8a2   : > { %v3029_v0 = vadd.f32 %v3028_v19, %v2931_v23 }
 0x8a4   : > { %v3170_v12 = vadd.f32 %v3142_v42, %v3029_v0  ;;  %3555 = vmatmul.bf16.gmra.mxu0 %v6366_v59  ;;  %v3330_v42 = vpop.f32.mrf.mxu3 }
 0x8a6   : > { %v3206_v46 = vrot.slane %v3170_v12, 1 }
 0x8a7   : > { %v3147_v8 = vpop.f32.mrf.mxu2 }
 0x8a9   : > { %v3030_v52 = vpop.f32.mrf.mxu0 }
 0x8aa   : > { %v3031_v24 = vadd.f32 %v3030_v52, %v2933_v4  ;;  %v2948_v4 = vpop.f32.mrf.mxu1 }
 0x8ac   : > { %v3171_v35 = vadd.f32 %v3144_v22, %v3031_v24  ;;  %v3332_v33 = vpop.f32.mrf.mxu3 }
 0x8ae   : > { %v3207_v13 = vrot.slane %v3171_v35, 1 }
 0x8af   : > { %v3149_v59 = vpop.f32.mrf.mxu2 }
 0x8b0   : > { %v3208_v45 = vsel %vm6693_vm1, %v3206_v46, %v3207_v13  ;;  %v6514_v46 = vld [vmem:[%s6698_s15] ss:$0 sm:$0xff] }
 0x8b1   : > { %v3033_v62 = vpop.f32.mrf.mxu0  ;;  %v6493_v16 = vadd.f32 %v3208_v45, %v6422_v20 }
 0x8b2   : > { %v3034_v23 = vadd.f32 %v3033_v62, %v2936_v60  ;;  %v3422_v41 = vpop.f32.mrf.mxu1 }
 0x8b3   : > { %v3423_v12 = vadd.f32 %v3422_v41, %v3325_v44 }
 0x8b4   : > { %v3172_v63 = vadd.f32 %v3147_v8, %v3034_v23  ;;  %3560 = vmatmul.bf16.gmra.mxu0 %v6372_v53  ;;  %v3335_v8 = vpop.f32.mrf.mxu3 }
 0x8b6   : > { %v3209_v54 = vrot.slane %v3172_v63, 1 }
 0x8b7   : > { %v3152_v21 = vpop.f32.mrf.mxu2 }
 0x8b9   : > { %v3035_v15 = vpop.f32.mrf.mxu0 }
 0x8ba   : > { %v3036_v7 = vadd.f32 %v3035_v15, %v2938_v29  ;;  %v3424_v56 = vpop.f32.mrf.mxu1 }
 0x8bb   : > { %v3425_v52 = vadd.f32 %v3424_v56, %v3327_v25 }
 0x8bc   : > { %v3173_v30 = vadd.f32 %v3149_v59, %v3036_v7  ;;  %v3337_v23 = vpop.f32.mrf.mxu3 }
 0x8be   : > { %v3210_v48 = vrot.slane %v3173_v30, 1 }
 0x8bf   : > { %v3154_v53 = vpop.f32.mrf.mxu2 }
 0x8c0   : > { %v3211_v10 = vsel %vm6695_vm9, %v3209_v54, %v3210_v48 }
 0x8c1   : > { %v3038_v20 = vpop.f32.mrf.mxu0  ;;  %v6499_v60 = vadd.f32 %v3211_v10, %v6432_v37 }
 0x8c2   : > { %v3039_v2 = vadd.f32 %v3038_v20, %v2941_v57 }
 0x8c4   : > { %v3174_v5 = vadd.f32 %v3152_v21, %v3039_v2  ;;  %3565 = vmatmul.bf16.gmra.mxu0 %v6378_v26  ;;  %v3427_v26 = vpop.f32.mrf.mxu1 }
 0x8c5   : > { %v3428_v7 = vadd.f32 %v3427_v26, %v3330_v42 }
 0x8c6   : > { %v3212_v40 = vrot.slane %v3174_v5, 1 }
 0x8c7   : > { %v3157_v39 = vpop.f32.mrf.mxu2 }
 0x8c9   : > { %v3040_v34 = vpop.f32.mrf.mxu0 }
 0x8ca   : > { %v3041_v29 = vadd.f32 %v3040_v34, %v2943_v3 }
 0x8cc   : > { %v3175_v49 = vadd.f32 %v3154_v53, %v3041_v29  ;;  %v3429_v19 = vpop.f32.mrf.mxu1 }
 0x8cd   : > { %v3430_v30 = vadd.f32 %v3429_v19, %v3332_v33 }
 0x8ce   : > { %v3213_v1 = vrot.slane %v3175_v49, 1 }
 0x8cf   : > { %v3159_v9 = vpop.f32.mrf.mxu2 }
 0x8d0   : > { %v3214_v61 = vsel %vm6696_vm12, %v3212_v40, %v3213_v1 }
 0x8d1   : > { %v3043_v14 = vpop.f32.mrf.mxu0  ;;  %v6504_v51 = vadd.f32 %v3214_v61, %v6440_v38 }
 0x8d2   : > { %v3044_v37 = vadd.f32 %v3043_v14, %v2946_v32 }
 0x8d4   : > { %v3176_v57 = vadd.f32 %v3157_v39, %v3044_v37  ;;  %3570 = vmatmul.bf16.gmra.mxu0 %v6234_v27  ;;  %v3432_v27 = vpop.f32.mrf.mxu1 }
 0x8d5   : > { %v3433_v49 = vadd.f32 %v3432_v27, %v3335_v8 }
 0x8d6   : > { %v3215_v22 = vrot.slane %v3176_v57, 1 }
 0x8d7   : > { %v3721_v18 = vpop.f32.mrf.mxu2 }
 0x8d8   : > { %v3722_v62 = vadd.f32 %v6514_v46, %v3721_v18 }
 0x8d9   : > { %v3045_v50 = vpop.f32.mrf.mxu0 }
 0x8da   : > { %v3046_v36 = vadd.f32 %v3045_v50, %v2948_v4 }
 0x8dc   : > { %v3177_v58 = vadd.f32 %v3159_v9, %v3046_v36  ;;  %v3434_v4 = vpop.f32.mrf.mxu1 }
 0x8dd   : > { %v3435_v1 = vadd.f32 %v3434_v4, %v3337_v23 }
 0x8de   : > { %v3216_v31 = vrot.slane %v3177_v58, 1 }
 0x8df   : > { %v3723_v41 = vpop.f32.mrf.mxu2 }
 0x8e0   : > { %v3217_v0 = vsel %vm6697_vm10, %v3215_v22, %v3216_v31  ;;  %v3724_v53 = vadd.f32 %v6514_v46, %v3723_v41 }
 0x8e1   : > { %v6509_v3 = vadd.f32 %v3217_v0, %v6452_v28  ;;  %v3536_v38 = vpop.f32.mrf.mxu0  ;;  %v6519_v28 = vld [vmem:[%s6699_s21] ss:$0 sm:$0xff] }
 0x8e2   : > { %v3576_v24 = vadd.f32 %v3536_v38, %v3423_v12 }
 0x8e4   : > { %v3608_v13 = vrot.slane %v3576_v24, 2  ;;  %v3437_v20 = vpop.f32.mrf.mxu1 }
 0x8e7   : > { %v3726_v57 = vpop.f32.mrf.mxu2 }
 0x8e8   : > { %v3727_v9 = vadd.f32 %v6514_v46, %v3726_v57 }
 0x8e9   : > { %v3538_v35 = vpop.f32.mrf.mxu0 }
 0x8ea   : > { %v3577_v32 = vadd.f32 %v3538_v35, %v3425_v52 }
 0x8ec   : > { %v3609_v45 = vrot.slane %v3577_v32, 2  ;;  %v3439_v40 = vpop.f32.mrf.mxu1 }
 0x8ee   : > { %v3610_v55 = vsel %vm6700_vm3, %v3608_v13, %v3609_v45 }
 0x8ef   : > { %v3640_v47 = vadd.f32 %v3610_v55, %v6461_v43  ;;  %v3340_v43 = vpop.f32.mrf.mxu3  ;;  %v3728_v35 = vpop.f32.mrf.mxu2 }
 0x8f0   : > { %v3438_v31 = vadd.f32 %v3437_v20, %v3340_v43  ;;  %v3729_v13 = vadd.f32 %v6514_v46, %v3728_v35 }
 0x8f1   : > { %v3652_v59 = vadd.f32 %v6519_v28, %v3640_v47  ;;  %v3541_v63 = vpop.f32.mrf.mxu0 }
 0x8f2   : > { %v3578_v21 = vadd.f32 %v3541_v63, %v3428_v7 }
 0x8f3   : > { %v3741_v15 = vadd.f32 %v3722_v62, %v3652_v59 }
 0x8f4   : > { %v3611_v44 = vrot.slane %v3578_v21, 2  ;;  %v3442_v36 = vpop.f32.mrf.mxu1 }
 0x8f5   : > { %3749 = vst [vmem:[%s6527_s14] sm:$0xff] %v3741_v15 }
 0x8f7   : > { %v3342_v56 = vpop.f32.mrf.mxu3 }
 0x8f8   : > { %v3440_v19 = vadd.f32 %v3439_v40, %v3342_v56 }
 0x8f9   : > { %v3543_v54 = vpop.f32.mrf.mxu0 }
 0x8fa   : > { %v3579_v48 = vadd.f32 %v3543_v54, %v3430_v30 }
 0x8fc   : > { %v3612_v10 = vrot.slane %v3579_v48, 2  ;;  %v3444_v52 = vpop.f32.mrf.mxu1 }
 0x8fe   : > { %v3613_v2 = vsel %vm6701_vm2, %v3611_v44, %v3612_v10 }
 0x8ff   : > { %v3641_v5 = vadd.f32 %v3613_v2, %v6469_v6  ;;  %v3345_v26 = vpop.f32.mrf.mxu3 }
 0x900   : > { %v3443_v23 = vadd.f32 %v3442_v36, %v3345_v26 }
 0x901   : > { %v3653_v25 = vadd.f32 %v6519_v28, %v3641_v5  ;;  %v3546_v34 = vpop.f32.mrf.mxu0 }
 0x902   : > { %v3580_v39 = vadd.f32 %v3546_v34, %v3433_v49 }
 0x903   : > { %v3742_v29 = vadd.f32 %v3724_v53, %v3653_v25 }
 0x904   : > { %v3614_v37 = vrot.slane %v3580_v39, 2  ;;  %v3447_v62 = vpop.f32.mrf.mxu1 }
 0x905   : > { %3750 = vst [vmem:[%s6527_s14 + $0x8] sm:$0xff] %v3742_v29 }
 0x907   : > { %v3347_v38 = vpop.f32.mrf.mxu3  ;;  %v3731_v21 = vpop.f32.mrf.mxu2 }
 0x908   : > { %v3445_v59 = vadd.f32 %v3444_v52, %v3347_v38  ;;  %v3732_v44 = vadd.f32 %v6514_v46, %v3731_v21 }
 0x909   : > { %v3548_v61 = vpop.f32.mrf.mxu0 }
 0x90a   : > { %v3581_v14 = vadd.f32 %v3548_v61, %v3435_v1 }
 0x90c   : > { %v3615_v42 = vrot.slane %v3581_v14, 2  ;;  %v3449_v48 = vpop.f32.mrf.mxu1 }
 0x90e   : > { %v3616_v6 = vsel %vm6702_vm4, %v3614_v37, %v3615_v42 }
 0x90f   : > { %v3642_v50 = vadd.f32 %v3616_v6, %v6478_v11  ;;  %v3350_v55 = vpop.f32.mrf.mxu3  ;;  %v3733_v1 = vpop.f32.mrf.mxu2 }
 0x910   : > { %v3448_v2 = vadd.f32 %v3447_v62, %v3350_v55  ;;  %v3734_v61 = vadd.f32 %v6514_v46, %v3733_v1 }
 0x911   : > { %v3654_v58 = vadd.f32 %v6519_v28, %v3642_v50  ;;  %v3551_v33 = vpop.f32.mrf.mxu0 }
 0x912   : > { %v3582_v0 = vadd.f32 %v3551_v33, %v3438_v31 }
 0x913   : > { %v3743_v22 = vadd.f32 %v3727_v9, %v3654_v58 }
 0x914   : > { %v3617_v24 = vrot.slane %v3582_v0, 2  ;;  %v3452_v34 = vpop.f32.mrf.mxu1 }
 0x915   : > { %3751 = vst [vmem:[%s6527_s14 + $0x10] sm:$0xff] %v3743_v22 }
 0x917   : > { %v3352_v54 = vpop.f32.mrf.mxu3 }
 0x918   : > { %v3450_v53 = vadd.f32 %v3449_v48, %v3352_v54 }
 0x919   : > { %v3553_v12 = vpop.f32.mrf.mxu0 }
 0x91a   : > { %v3583_v8 = vadd.f32 %v3553_v12, %v3440_v19  ;;  %v3736_v19 = vpop.f32.mrf.mxu2 }
 0x91b   : > { %v3737_v12 = vadd.f32 %v6514_v46, %v3736_v19 }
 0x91c   : > { %v3618_v27 = vrot.slane %v3583_v8, 2  ;;  %v3454_v57 = vpop.f32.mrf.mxu1 }
 0x91e   : > { %v3619_v11 = vsel %vm6703_vm13, %v3617_v24, %v3618_v27 }
 0x91f   : > { %v3643_v32 = vadd.f32 %v3619_v11, %v6486_v17  ;;  %v3355_v5 = vpop.f32.mrf.mxu3 }
 0x920   : > { %v3453_v26 = vadd.f32 %v3452_v34, %v3355_v5 }
 0x921   : > { %v3655_v45 = vadd.f32 %v6519_v28, %v3643_v32  ;;  %v3556_v18 = vpop.f32.mrf.mxu0 }
 0x922   : > { %v3584_v63 = vadd.f32 %v3556_v18, %v3443_v23 }
 0x923   : > { %v3744_v47 = vadd.f32 %v3729_v13, %v3655_v45 }
 0x924   : > { %v3620_v7 = vrot.slane %v3584_v63, 2 }
 0x925   : > { %3752 = vst [vmem:[%s6527_s14 + $0x18] sm:$0xff] %v3744_v47  ;;  %v3738_v47 = vpop.f32.mrf.mxu2 }
 0x927   : > { %v3357_v14 = vpop.f32.mrf.mxu3 }
 0x928   : > { %v3455_v50 = vadd.f32 %v3454_v57, %v3357_v14 }
 0x929   : > { %v3558_v4 = vpop.f32.mrf.mxu0 }
 0x92a   : > { %v3585_v15 = vadd.f32 %v3558_v4, %v3445_v59  ;;  %v3739_v59 = vadd.f32 %v6514_v46, %v3738_v47 }
 0x92c   : > { %v3621_v30 = vrot.slane %v3585_v15, 2 }
 0x92e   : > { %v3622_v17 = vsel %vm6704_vm14, %v3620_v7, %v3621_v30 }
 0x92f   : > { %v3644_v43 = vadd.f32 %v3622_v17, %v6493_v16  ;;  %v3360_v33 = vpop.f32.mrf.mxu3 }
 0x931   : > { %v3656_v10 = vadd.f32 %v6519_v28, %v3644_v43  ;;  %v3561_v41 = vpop.f32.mrf.mxu0 }
 0x932   : > { %v3586_v25 = vadd.f32 %v3561_v41, %v3448_v2 }
 0x933   : > { %v3745_v20 = vadd.f32 %v3732_v44, %v3656_v10 }
 0x934   : > { %v3623_v49 = vrot.slane %v3586_v25, 2 }
 0x935   : > { %3753 = vst [vmem:[%s6527_s14 + $0x20] sm:$0xff] %v3745_v20 }
 0x937   : > { %v3362_v27 = vpop.f32.mrf.mxu3 }
 0x939   : > { %v3563_v29 = vpop.f32.mrf.mxu0 }
 0x93a   : > { %v3587_v56 = vadd.f32 %v3563_v29, %v3450_v53 }
 0x93c   : > { %v3624_v40 = vrot.slane %v3587_v56, 2 }
 0x93e   : > { %v3625_v16 = vsel %vm6705_vm0, %v3623_v49, %v3624_v40 }
 0x93f   : > { %v3645_v39 = vadd.f32 %v3625_v16, %v6499_v60  ;;  %v3457_v60 = vpop.f32.mrf.mxu1 }
 0x940   : > { %v3458_v35 = vadd.f32 %v3457_v60, %v3360_v33 }
 0x941   : > { %v3657_v37 = vadd.f32 %v6519_v28, %v3645_v39  ;;  %v3566_v42 = vpop.f32.mrf.mxu0 }
 0x942   : > { %v3588_v9 = vadd.f32 %v3566_v42, %v3453_v26 }
 0x943   : > { %v3746_v6 = vadd.f32 %v3734_v61, %v3657_v37 }
 0x944   : > { %v3626_v22 = vrot.slane %v3588_v9, 2 }
 0x945   : > { %3754 = vst [vmem:[%s6527_s14 + $0x28] sm:$0xff] %v3746_v6 }
 0x947   : > { %v3459_v11 = vpop.f32.mrf.mxu1 }
 0x948   : > { %v3460_v32 = vadd.f32 %v3459_v11, %v3362_v27 }
 0x949   : > { %v3568_v36 = vpop.f32.mrf.mxu0 }
 0x94a   : > { %v3589_v58 = vadd.f32 %v3568_v36, %v3455_v50 }
 0x94c   : > { %v3627_v31 = vrot.slane %v3589_v58, 2 }
 0x94e   : > { %v3628_v0 = vsel %vm6706_vm15, %v3626_v22, %v3627_v31 }
 0x94f   : > { %v3646_v38 = vadd.f32 %v3628_v0, %v6504_v51 }
 0x951   : > { %v3658_v8 = vadd.f32 %v6519_v28, %v3646_v38  ;;  %v3571_v52 = vpop.f32.mrf.mxu0 }
 0x952   : > { %v3590_v13 = vadd.f32 %v3571_v52, %v3458_v35 }
 0x953   : > { %v3747_v24 = vadd.f32 %v3737_v12, %v3658_v8 }
 0x954   : > { %v3629_v55 = vrot.slane %v3590_v13, 2 }
 0x955   : > { %3755 = vst [vmem:[%s6527_s14 + $0x30] sm:$0xff] %v3747_v24 }
 0x959   : > { %v3573_v45 = vpop.f32.mrf.mxu0 }
 0x95a   : > { %v3591_v18 = vadd.f32 %v3573_v45, %v3460_v32 }
 0x95c   : > { %v3630_v51 = vrot.slane %v3591_v18, 2 }
 0x95e   : > { %v3631_v62 = vsel %vm6708_vm5, %v3629_v55, %v3630_v51 }
 0x95f   : > { %v3647_v23 = vadd.f32 %v3631_v62, %v6509_v3 }
 0x961   : > { %v3659_v63 = vadd.f32 %v6519_v28, %v3647_v23 }
 0x963   : > { %v3748_v4 = vadd.f32 %v3739_v59, %v3659_v63 }
 0x965   : > { %3756 = vst [vmem:[%s6527_s14 + $0x38] sm:$0xff] %v3748_v4 }
 0x966   : > { %5047 = shalt.err (!%p5044_p5)
}
 0x967   : > { %s5116_s9 = smov 128   ;;  %s5117_s28 = smov 8  }
 0x968   : > { %4636 = dma.vmem_to_hbm [thread:$0]  (%p5289_p0), %s3771_s13, 1024, %s3773_s10, %s3758_s20, %s5116_s9, %s5116_s9, %s5117_s28  }
 0x969 PF: > { %s6709_s15 = sld [smem:[#allocation24_spill]]  ;;  %s3787_s0 = sand.u32 1, %s5090_s29  }
 0x96a   : > { %s3788_s22 = scalar_lea.sflag [#allocation6], %s3787_s0 }
 0x96f   : > { %p6710_p10 = scmp.ge.s32.totalorder %s6709_s15, 2 }
 0x971   : > { %p4662_p11 = pnand %p6710_p10, %p5297_p6 }
 0x973   : > { %p4663_p12 = pneg %p4662_p11 }
 0x975   : > { %5085 = dma.done.wait (%p4663_p12), %s3788_s22, 1024  }
 0x976   : > { %5087 = vsyncadd (%p4663_p12), %s3788_s22, 4294966272  ;;  %s6711_s16 = sld [smem:[#allocation25_spill]]  ;;  %s6714_s29 = smov %s5094_s30 }
 0x977   : > { %s6712_s21 = sld [smem:[#allocation23_spill]] }
 0x978   : > { %s6713_s15 = sld [smem:[#allocation26_spill]] }
 0x97c   : > { %p32_p2 = scmp.ge.s32.totalorder %s6711_s16, 4  }
 0x97d   : > { %s6715_s30 = smov %s6712_s21 }
 0x97e   :  { %34 = sbr.rel (!%p32_p2) target bundleno = 20 (0x14), region = 176 }
 0x983   :  { %3794 = vsyncpa [#allocation5], 1 }
 0x984   :  { %3796 = vsyncpa [#allocation5 + $0x1], 1 }
 0x985   :  { %3797 = vsyncpa [#allocation8], 1 }
 0x986   :  { %3799 = vsyncpa [#allocation8 + $0x1], 1 }
 0x987   :  { %3800 = vsyncpa [#allocation11], 1 }
 0x988   :  { %3801 = vsyncpa [#allocation14], 1 }
 0x989   :  { %3802 = vsyncpa [#allocation6], 1 }
 0x98a   :  { %3804 = vsyncpa [#allocation6 + $0x1], 1 }

// kernel: tpu_custom_call.1
= control target key start
LH: loop header
LB: loop body
LE: loop exit
PB: predicated region body
PF: predicated region fallthrough
CT: control target
= control target key end

     0   :  { %s6599_s0 = inlined_call_operand.hbm [shape: f32[2,8,8,64], index: 0, kind: input, shape index: {}]   ;;  %s6600_s1 = inlined_call_operand.hbm [shape: f32[2,1,128], index: 1, kind: input, shape index: {}]   ;;  %s6601_s2 = inlined_call_operand.vmem [shape: f32[1,64], index: 2, kind: input, shape index: {}]   ;;  %s6602_s3 = inlined_call_operand.vmem [shape: f32[1,64], index: 3, kind: input, shape index: {}]   ;;  %s6603_s4 = inlined_call_operand.hbm [shape: f32[32,64], index: 4, kind: input, shape index: {}]   ;;  %s6604_s5 = inlined_call_operand.hbm [shape: bf16[9,64,128], index: 5, kind: input, shape index: {}]   ;;  %s6605_s6 = inlined_call_operand.vmem [shape: f32[1,128], index: 6, kind: input, shape index: {}]   ;;  %s6606_s7 = inlined_call_operand.vmem [shape: f32[1,128], index: 7, kind: input, shape index: {}]   ;;  %s6607_s8 = inlined_call_operand.vmem [shape: f32[1,128], index: 8, kind: input, shape index: {}]   ;;  %s6608_s9 = inlined_call_operand.hbm [shape: f32[32,128], index: 9, kind: input, shape index: {}]   ;;  %s6609_s10 = inlined_call_operand.hbm [shape: bf16[9,128,128], index: 10, kind: input, shape index: {}]   ;;  %s6610_s11 = inlined_call_operand.vmem [shape: f32[1,128], index: 11, kind: input, shape index: {}]   ;;  %s6611_s12 = inlined_call_operand.hbm [shape: bf16[64,128], index: 12, kind: input, shape index: {}]   ;;  %s6612_s13 = inlined_call_operand.vmem [shape: f32[1,128], index: 13, kind: input, shape index: {}]   ;;  %s6613_s14 = inlined_call_operand.hbm [shape: f32[2,8,8,128], index: 14, kind: output, shape index: {}]  }
   0x1   :  { %6624 = sst [smem:[#allocation28_spill]] %s6599_s0 }
   0x2   :  { %6625 = sst [smem:[#allocation29_spill]] %s6603_s4 }
   0x3   :  { %6626 = sst [smem:[#allocation30_spill]] %s6604_s5 }
   0x4   :  { %6627 = sst [smem:[#allocation31_spill]] %s6607_s8 }
   0x5   :  { %6628 = sst [smem:[#allocation32_spill]] %s6608_s9 }
   0x6   :  { %6629 = sst [smem:[#allocation33_spill]] %s6609_s10 }
   0x7   :  { %6630 = sst [smem:[#allocation34_spill]] %s6610_s11 }
   0x8   :  { %6631 = sst [smem:[#allocation35_spill]] %s6611_s12 }
   0x9   :  { %6632 = sst [smem:[#allocation36_spill]] %s6612_s13 }
   0xa   :  { %6633 = sst [smem:[#allocation37_spill]] %s6613_s14 }
   0xb   :  { %19 = vsyncpa [#allocation5], 0 }
   0xc   :  { %21 = vsyncpa [#allocation5 + $0x1], 0 }
   0xd   :  { %22 = vsyncpa [#allocation8], 0 }
   0xe   :  { %24 = vsyncpa [#allocation8 + $0x1], 0 }
   0xf   :  { %25 = vsyncpa [#allocation11], 0 }
  0x10   :  { %26 = vsyncpa [#allocation14], 0 }
  0x11   :  { %27 = vsyncpa [#allocation6], 0 }
  0x12   :  { %29 = vsyncpa [#allocation6 + $0x1], 0  ;;  %s5193_s29 = smov 0   ;;  %s5195_s30 = smov 0  }
  0x13   :  { %s5197_s15 = smov 0   ;;  %s5199_s16 = smov 0  }
  0x14 LB: > { %6634 = sst [smem:[#allocation23_spill]] %s5098_s15  ;;  %s5217_s20 = sadd.s32 4294967295, %s5102_s16   ;;  %s5102_s16 = sphi %s5199_s16, %s6711_s16   ;;  %s5098_s15 = sphi %s5197_s15, %s6713_s15   ;;  %s5094_s30 = sphi %s5195_s30, %s6715_s30   ;;  %s5090_s29 = sphi %s5193_s29, %s6714_s29  }
  0x15   : > { %6635 = sst [smem:[#allocation24_spill]] %s5102_s16  ;;  %p3913_p0 = scmp.ge.s32.totalorder %s5102_s16, 1 }
  0x16   : > { %s6636_s4 = sld [smem:[#allocation29_spill]]  ;;  %p56_p1 = scmp.eq.s32.totalorder %s5217_s20, 0 }
  0x17   : > { %p370_p2 = scmp.lt.s32.totalorder %s5102_s16, 3  ;;  %s5104_s22 = smov [#allocation9]  }
  0x18   : > { %s389_s23 = sshll.u32 %s5104_s22, 4  ;;  %s6638_s5 = sld [smem:[#allocation30_spill]]  ;;  %s390_s23 = int_to_ptr.vmem [resolvable:$true] %s389_s23 }
  0x19   : > { %p5222_p3 = pnand %p3913_p0, %p370_p2  ;;  %s5105_s28 = smov [#allocation10]  }
  0x1a   : > { %s403_s17 = sshll.u32 %s5105_s28, 4  ;;  %s6615_s18 = smov 128   ;;  %s404_s17 = int_to_ptr.vmem [resolvable:$true] %s403_s17 }
  0x1b   : > { %p4638_p4 = pneg %p5222_p3  ;;  %s6616_s22 = smov 8  }
  0x1c   : > { %s387_s19 = sshll.u32 %s6636_s4, 4  ;;  %s5108_s24 = smov 64   ;;  %s388_s19 = int_to_ptr.hbm [resolvable:$true] %s387_s19 }
  0x1d   : > { %p5234_p6 = pnand %p4638_p4, %p56_p1  ;;  %s5109_s25 = smov 4  }
  0x1e   : > { %s401_s26 = sshll.u32 %s6638_s5, 4  ;;  %s6640_s10 = sld [smem:[#allocation33_spill]]  ;;  %s402_s26 = int_to_ptr.hbm [resolvable:$true] %s401_s26 }
  0x1f   : > { %4641 = dma.hbm_to_vmem [thread:$0]  (!%p5234_p6), %s388_s19, 512, %s390_s23, [#allocation8], %s6615_s18, %s6615_s18, %s6616_s22  }
  0x20   : > { %4644 = dma.hbm_to_vmem [thread:$0]  (!%p5234_p6), %s402_s26, 4608, %s404_s17, [#allocation11], %s5108_s24, %s5108_s24, %s5109_s25  }
  0x21   : > { %s5110_s28 = smov [#allocation13]   ;;  %s6641_s9 = sld [smem:[#allocation32_spill]] }
  0x22   : > { %s440_s11 = sshll.u32 %s5110_s28, 4  ;;  %s5111_s4 = smov [#allocation12]   ;;  %s441_s11 = int_to_ptr.vmem [resolvable:$true] %s440_s11 }
  0x23   : > { %s426_s5 = sshll.u32 %s5111_s4, 4  ;;  %s6642_s12 = sld [smem:[#allocation35_spill]]  ;;  %s427_s5 = int_to_ptr.vmem [resolvable:$true] %s426_s5 }
  0x24   : > { %s438_s14 = sshll.u32 %s6640_s10, 4  ;;  %s5112_s8 = smov [#allocation15]   ;;  %s439_s14 = int_to_ptr.hbm [resolvable:$true] %s438_s14 }
  0x25   : > { %4650 = dma.hbm_to_vmem [thread:$0]  (!%p5234_p6), %s439_s14, 9216, %s441_s11, [#allocation14], %s5108_s24, %s5108_s24, %s5109_s25  }
  0x26   : > { %s457_s11 = sshll.u32 %s5112_s8, 4  ;;  %s3912_s13 = sadd.s32 4294967294, %s5102_s16   ;;  %s458_s11 = int_to_ptr.vmem [resolvable:$true] %s457_s11 }
  0x27   : > { %s424_s19 = sshll.u32 %s6641_s9, 4  ;;  %s5265_s14 = sadd.s32 1, %s5102_s16   ;;  %s425_s19 = int_to_ptr.hbm [resolvable:$true] %s424_s19 }
  0x28   : > { %4647 = dma.hbm_to_vmem [thread:$0]  (!%p5234_p6), %s425_s19, 512, %s427_s5, [#allocation11], %s6615_s18, %s6615_s18, %s6616_s22  }
  0x29   : > { %s455_s17 = sshll.u32 %s6642_s12, 4  ;;  %6643 = sst [smem:[#allocation25_spill]] %s5265_s14  ;;  %s456_s17 = int_to_ptr.hbm [resolvable:$true] %s455_s17 }
  0x2a   : > { %4653 = dma.hbm_to_vmem [thread:$0]  (!%p5234_p6), %s456_s17, 512, %s458_s11, [#allocation14], %s5108_s24, %s5108_s24, %s5109_s25  }
  0x2b   : > { %s42_s28 = sadd.s32 1, %s5098_s15  ;;  %s39_s4 = ssub.s32 %s5102_s16, %s5265_s14 }
  0x2c   : > { %p49_p7 = scmp.ne.s32.totalorder %s5098_s15, %s5094_s30  ;;  %p40_p8 = scmp.eq.s32.totalorder %s39_s4, 0 }
  0x2d   : > { %p50_p9 = scmp.eq.s32.totalorder %s5102_s16, 0  ;;  %p55_p10 = scmp.ne.s32.totalorder %s5094_s30, %s5090_s29 }
  0x2e   : > { %p357_p11 = scmp.eq.s32.totalorder %s5217_s20, 1  ;;  %p363_p2 = scmp.eq.s32.totalorder %s3912_s13, 1 }
  0x2f   : > { %s5277_s19 = scalar_select %p40_p8, %s5098_s15, %s42_s28  }
  0x30   : > { %p5279_p12 = por %p50_p9, %p49_p7  ;;  %p5285_p13 = por %p56_p1, %p55_p10 }
  0x31   : > { %6644 = sst [smem:[#allocation26_spill]] %s5277_s19  ;;  %p5289_p0 = por %p357_p11, %p49_p7 }
  0x32   : > { %p4670_p4 = scmp.lt.s32.totalorder %s5102_s16, 2  ;;  %s5295_s25 = sand.u32 1, %s5098_s15  }
  0x33   : > { %p5297_p6 = por %p363_p2, %p55_p10  ;;  %s3920_s26 = sshll.u32 %s5295_s25, 6 }
  0x34   : > { %s4490_s17 = sshll.u32 %s5102_s16, 6  ;;  %s6649_s0 = sld [smem:[#allocation28_spill]] }
  0x35   : > { %s478_s18 = scalar_lea.vmem [#allocation4], %s3920_s26  ;;  %p5308_p7 = pnand %p4670_p4, %p5279_p12 }
  0x36   : > { %s486_s22 = sshll.u32 %s478_s18, 4  ;;  %s496_s9 = sand.u32 1, %s5102_s16   ;;  %s487_s22 = int_to_ptr.vmem [resolvable:$true] %s486_s22 }
  0x37   : > { %s502_s19 = scalar_lea.hbm %s6600_s1, %s5102_s16  ;;  %s475_s15 = scalar_lea.sflag [#allocation5], %s5295_s25 }
  0x38   : > { %p4964_p9 = pneg %p5308_p7 }
  0x3a   : > { %s483_s28 = scalar_lea.hbm %s6649_s0, %s4490_s17  ;;  %s4967_s26 = scalar_lea.hbm %s6649_s0, 128 }
  0x3b   : > { %s484_s4 = sshll.u32 %s483_s28, 4  ;;  %s485_s4 = int_to_ptr.hbm [resolvable:$true] %s484_s4 }
  0x3c   : > { %s4960_s8 = sshra.s32 %s485_s4, 4  ;;  %s4961_s8 = int_to_ptr.hbm [resolvable:$true] %s4960_s8 }
  0x3d   : > { %s4962_s17 = scalar_lea.hbm %s4961_s8, 64  ;;  %p4968_p12 = scmp.lt.s32.totalorder %s4961_s8, %s6649_s0 }
  0x3e   : > { %p4963_p8 = scmp.ne.s32.totalorder %s4961_s8, %s4962_s17  ;;  %p4969_p2 = scmp.lt.s32.totalorder %s4967_s26, %s4962_s17 }
  0x40   : > { %p4965_p10 = pnand %p4964_p9, %p4963_p8  ;;  %p4970_p4 = por %p4969_p2, %p4968_p12 }
  0x42   : > { %p4966_p11 = pneg %p4965_p10 }
  0x44   : > { %p4971_p5 = pnand %p4970_p4, %p4966_p11 }
  0x46   : > { %4974 = shalt.err (!%p4971_p5)
}
  0x47   : > { %s6651_s10 = smov 8   ;;  %s6652_s12 = smov 128  }
  0x48   : > { %4657 = dma.hbm_to_vmem [thread:$0]  (!%p5308_p7), %s485_s4, 1024, %s487_s22, %s475_s15, %s6652_s12, %s6652_s12, %s6651_s10  }
  0x49   : > { %s504_s14 = sshll.u32 %s502_s19, 4  ;;  %s499_s16 = scalar_lea.vmem [#allocation7], %s5295_s25  ;;  %s505_s14 = int_to_ptr.hbm [resolvable:$true] %s504_s14 }
  0x4a   : > { %s506_s18 = sshll.u32 %s499_s16, 4  ;;  %s497_s5 = scalar_lea.sflag [#allocation8], %s496_s9  ;;  %s507_s18 = int_to_ptr.vmem [resolvable:$true] %s506_s18 }
  0x4b   : > { %s4990_s11 = sshra.s32 %s505_s14, 4  ;;  %s4997_s28 = scalar_lea.hbm %s6600_s1, 2  ;;  %s4991_s11 = int_to_ptr.hbm [resolvable:$true] %s4990_s11 }
  0x4c   : > { %s4992_s8 = scalar_lea.hbm %s4991_s11, 1  ;;  %p4998_p11 = scmp.lt.s32.totalorder %s4991_s11, %s6600_s1 }
  0x4d   : > { %p4993_p8 = scmp.ne.s32.totalorder %s4991_s11, %s4992_s8  ;;  %p4999_p12 = scmp.lt.s32.totalorder %s4997_s28, %s4992_s8 }
  0x4f   : > { %p4995_p5 = pnand %p4993_p8, %p4964_p9  ;;  %p5000_p2 = por %p4999_p12, %p4998_p11 }
  0x51   : > { %p4996_p10 = pneg %p4995_p5 }
  0x53   : > { %p5001_p4 = pnand %p5000_p2, %p4996_p10 }
  0x55   : > { %5004 = shalt.err (!%p5001_p4)
}
  0x56   : > { %4660 = dma.hbm_to_vmem [thread:$0]  (!%p5308_p7), %s505_s14, 16, %s507_s18, %s497_s5  }
  0x57   : > { %515 = sbr.rel (%p5222_p3) target bundleno = 2409 (0x969), region = 76 }
  0x5c   : > { %s5349_s9 = sand.u32 1, %s5094_s30  }
  0x5d   : > { %s3924_s16 = sshll.u32 %s5349_s9, 6  ;;  %s518_s0 = scalar_lea.sflag [#allocation5], %s5349_s9 }
  0x5e   : > { %s5355_s22 = scalar_lea.vmem [#allocation4], %s3924_s16 }
  0x5f   : > { %5065 = dma.done.wait (%p5285_p13), %s518_s0, 1024  }
  0x60   : > { %5067 = vsyncadd (%p5285_p13), %s518_s0, 4294966272  ;;  %s527_s21 = sand.u32 1, %s5217_s20   ;;  %s530_s19 = scalar_lea.vmem [#allocation7], %s5349_s9 }
  0x61   : > { %s528_s14 = scalar_lea.sflag [#allocation8], %s527_s21 }
  0x62   : > { %5069 = dma.done.wait (%p5285_p13), %s528_s14, 16  }
  0x63   : > { %5071 = vsyncadd (%p5285_p13), %s528_s14, 4294967280 }
  0x64   : > { %5073 = dma.done.wait (%p56_p1), [#allocation8], 512  }
  0x65   : > { %5075 = vsyncadd (%p56_p1), [#allocation8], 4294966784 }
  0x66   : > { %5077 = dma.done.wait (%p56_p1), [#allocation11], 5120  }
  0x67   : > { %5079 = vsyncadd (%p56_p1), [#allocation11], 4294962176 }
  0x68   : > { %5081 = dma.done.wait (%p56_p1), [#allocation14], 9728  }
  0x69   : > { %5083 = vsyncadd (%p56_p1), [#allocation14], 4294957568  ;;  %vm6623_vm0 = vcmask 523264   ;;  %v617_v0 = vld [vmem:[#allocation9 + $0x18] sm:$0xff]  ;;  %v5384_v2 = vld [vmem:[%s5355_s22 + $0x8] sm:$0xff]  ;;  %v5113_v33 = vmov 128.0  }
  0x6a   : > { %3931 = vmatpush.xpose.msk.msra.mxu0 %vm6623_vm0, %v617_v0  ;;  %v5381_v1 = vld [vmem:[%s5355_s22] sm:$0xff]  ;;  %699 = vmatpush.msra.mxu1 %v617_v0  ;;  %v616_v3 = vld [vmem:[#allocation9 + $0x10] sm:$0xff]  ;;  %v620_v7 = vsel %vm6623_vm0, %v5384_v2, 0.0  ;;  %v615_v11 = vld [vmem:[#allocation9 + $0x8] sm:$0xff]  ;;  %4729 = vrcp.f32 %v5113_v33  ;;  %vm683_vm2 = vcmask 261120   ;;  %vm993_vm6 = vcmask 516096  }
  0x6b   : > { %v608_v4 = vld [vmem:[%s5355_s22 + $0x10] sm:$0xff]  ;;  %v609_v5 = vld [vmem:[%s5355_s22 + $0x18] sm:$0xff]  ;;  %v619_v6 = vsel %vm6623_vm0, %v5381_v1, 0.0  ;;  %3937 = vmatpush.xpose.msk.msra.mxu2 %vm6623_vm0, %v617_v0  ;;  %785 = vmatpush.msra.mxu3 %v617_v0  ;;  %v610_v8 = vld [vmem:[%s5355_s22 + $0x20] sm:$0xff]  ;;  %vm1002_vm7 = vcmask 522240   ;;  %s6677_s17 = sld [smem:[#allocation31_spill]] }
  0x6c   : > { %v621_v9 = vadd.f32 %v620_v7, %v619_v6  ;;  %v622_v10 = vsel %vm6623_vm0, %v608_v4, 0.0  ;;  %700 = vmatpush.msra.mxu1 %v616_v3  ;;  %v611_v12 = vld [vmem:[%s5355_s22 + $0x28] sm:$0xff]  ;;  %v624_v13 = vsel %vm6623_vm0, %v609_v5, 0.0  ;;  %v626_v16 = vsel %vm6623_vm0, %v610_v8, 0.0  ;;  %v612_v17 = vld [vmem:[%s5355_s22 + $0x30] sm:$0xff]  ;;  %v613_v20 = vld [vmem:[%s5355_s22 + $0x38] sm:$0xff] }
  0x6d   : > { %786 = vmatpush.msra.mxu3 %v616_v3  ;;  %v614_v15 = vld [vmem:[#allocation9] sm:$0xff]  ;;  %v628_v19 = vsel %vm6623_vm0, %v611_v12, 0.0  ;;  %v630_v22 = vsel %vm6623_vm0, %v612_v17, 0.0  ;;  %v632_v24 = vsel %vm6623_vm0, %v613_v20, 0.0  ;;  %v5461_v33 = vld [vmem:[#allocation10 + $0xc8] sm:$0xff]  ;;  %s6698_s15 = sld [smem:[#allocation36_spill]] }
  0x6e   : > { %3932 = vmatpush.xpose.msk.msra.mxu0 %vm6623_vm0, %v616_v3  ;;  %v623_v14 = vadd.f32 %v622_v10, %v621_v9  ;;  %701 = vmatpush.msra.mxu1 %v615_v11  ;;  %s6699_s21 = sld [smem:[#allocation34_spill]]  ;;  %s6527_s14 = scalar_lea.vmem [#allocation16], %s3924_s16 }
  0x6f   : > { %3938 = vmatpush.xpose.msk.msra.mxu2 %vm6623_vm0, %v616_v3  ;;  %787 = vmatpush.msra.mxu3 %v615_v11  ;;  %s4603_s16 = sshll.u32 %s5217_s20, 6  ;;  %s6707_s25 = sld [smem:[#allocation37_spill]] }
  0x70   : > { %v625_v18 = vadd.f32 %v624_v13, %v623_v14  ;;  %702 = vmatpush.msra.mxu1 %v614_v15  ;;  %v4730_v34 = vpop.eup %4729  ;;  %s3770_s13 = sshll.u32 %s6527_s14, 4  ;;  %s3758_s20 = scalar_lea.sflag [#allocation6], %s5349_s9  ;;  %s3771_s13 = int_to_ptr.vmem [resolvable:$true] %s3770_s13 }
  0x71   : > { %788 = vmatpush.msra.mxu3 %v614_v15  ;;  %v676_v35 = vmul.f32 128.0, %v4730_v34  ;;  %vm680_vm1 = vweird.f32 %v4730_v34 }
  0x72   : > { %3933 = vmatpush.xpose.msk.msra.mxu0 %vm6623_vm0, %v615_v11  ;;  %v627_v21 = vadd.f32 %v626_v16, %v625_v18 }
  0x73   : > { %3939 = vmatpush.xpose.msk.msra.mxu2 %vm6623_vm0, %v615_v11  ;;  %v677_v36 = vsub.f32 1.0, %v676_v35  ;;  %v769_v35 = vld [vmem:[%s6601_s2] sm:$0x1] }
  0x74   : > { %v629_v23 = vadd.f32 %v628_v19, %v627_v21 }
  0x75   : > { %v678_v37 = vmul.f32 %v4730_v34, %v677_v36  ;;  %s3769_s4 = scalar_lea.hbm %s6707_s25, %s4603_s16  ;;  %s5040_s8 = scalar_lea.hbm %s6707_s25, 128 }
  0x76   : > { %3934 = vmatpush.xpose.msk.msra.mxu0 %vm6623_vm0, %v614_v15  ;;  %v631_v25 = vadd.f32 %v630_v22, %v629_v23  ;;  %v4498_v23 = vld [vmem:[#allocation10 + $0x78] sm:$0xff]  ;;  %s3772_s10 = sshll.u32 %s3769_s4, 4  ;;  %s3773_s10 = int_to_ptr.hbm [resolvable:$true] %s3772_s10 }
  0x77   : > { %3940 = vmatpush.xpose.msk.msra.mxu2 %vm6623_vm0, %v614_v15  ;;  %v679_v38 = vadd.f32 %v4730_v34, %v678_v37  ;;  %1161 = vmatpush.bf16.msrb.mxu1 %v4498_v23  ;;  %s5034_s12 = sshra.s32 %s3773_s10, 4  ;;  %s5035_s12 = int_to_ptr.hbm [resolvable:$true] %s5034_s12 }
  0x78   : > { %v633_v26 = vadd.f32 %v632_v24, %v631_v25  ;;  %v5455_v24 = vld [vmem:[#allocation10 + $0xd8] sm:$0xff]  ;;  %4604 = vmatpush.bf16.msrb.mxu3 %v4498_v23  ;;  %s5036_s18 = scalar_lea.hbm %s5035_s12, 64  ;;  %p5041_p7 = scmp.lt.s32.totalorder %s5035_s12, %s6707_s25 }
  0x79   : > { %v681_v39 = vsel %vm680_vm1, %v4730_v34, %v679_v38  ;;  %v4510_v25 = vld [vmem:[#allocation10 + $0x98] sm:$0xff]  ;;  %v4508_v34 = vld [vmem:[#allocation10 + $0x88] sm:$0xff]  ;;  %v4495_v38 = vld [vmem:[#allocation10 + $0x60] sm:$0xff]  ;;  %p5037_p1 = scmp.ne.s32.totalorder %s5035_s12, %s5036_s18  ;;  %p5042_p9 = scmp.lt.s32.totalorder %s5040_s8, %s5036_s18 }
  0x7a   : > { %v634_v27 = vrot.slane %v633_v26, 4  ;;  %1348 = vmatpush.bf16.msrb.mxu0 %v5455_v24 }
  0x7b   : > { %1439 = vmatpush.bf16.msrb.mxu2 %v4510_v25  ;;  %p5038_p3 = pnand %p5037_p1, %p5289_p0  ;;  %p5043_p8 = por %p5042_p9, %p5041_p7 }
  0x7c   : > { %v635_v28 = vadd.f32 %v634_v27, %v633_v26  ;;  %v4497_v27 = vld [vmem:[#allocation10 + $0x70] sm:$0xff] }
  0x7d   : > { %1162 = vmatpush.bf16.msrb.mxu1 %v4497_v27  ;;  %4605 = vmatpush.bf16.msrb.mxu3 %v4497_v27  ;;  %p5039_p13 = pneg %p5038_p3 }
  0x7e   : > { %v636_v29 = vrot.slane %v635_v28, 2 }
  0x7f   : > { %p5044_p5 = pnand %p5043_p8, %p5039_p13 }
  0x80   : > { %v637_v30 = vadd.f32 %v636_v29, %v635_v28  ;;  %v5458_v28 = vld [vmem:[#allocation10 + $0xd0] sm:$0xff] }
  0x81   : > { %v4509_v29 = vld [vmem:[#allocation10 + $0x90] sm:$0xff]  ;;  %1349 = vmatpush.bf16.msrb.mxu0 %v5458_v28 }
  0x82   : > { %v638_v31 = vrot.slane %v637_v30, 1  ;;  %1440 = vmatpush.bf16.msrb.mxu2 %v4509_v29 }
  0x84   : > { %v639_v32 = vadd.f32 %v638_v31, %v637_v30 }
  0x85   : > { %1350 = vmatpush.bf16.msrb.mxu0 %v5461_v33 }
  0x86   : > { %3935 = vmatmul.msk.f32.vlgmr.msra.gmra.mxu0 %vm6623_vm0, %v639_v32  ;;  %v4496_v32 = vld [vmem:[#allocation10 + $0x68] sm:$0xff]  ;;  %1441 = vmatpush.bf16.msrb.mxu2 %v4508_v34 }
  0x87   : > { %1163 = vmatpush.bf16.msrb.mxu1 %v4496_v32  ;;  %4606 = vmatpush.bf16.msrb.mxu3 %v4496_v32 }
  0x8b   : > { %1164 = vmatpush.bf16.msrb.mxu1 %v4495_v38  ;;  %4607 = vmatpush.bf16.msrb.mxu3 %v4495_v38 }
 0x103   : > { %v672_v40 = vpop.f32.mrf.mxu0 }
 0x104   : > { %v682_v41 = vmul.f32 %v681_v39, %v672_v40  ;;  %v5467_v40 = vld [vmem:[#allocation10 + $0xc0] sm:$0xff] }
 0x105   : > { %1351 = vmatpush.bf16.msrb.mxu0 %v5467_v40 }
 0x106   : > { %3936 = vmatmul.msk.f32.vlgmr.msra.gmra.mxu1 %vm683_vm2, %v682_v41  ;;  %v4507_v41 = vld [vmem:[#allocation10 + $0x80] sm:$0xff] }
 0x107   : > { %1442 = vmatpush.bf16.msrb.mxu2 %v4507_v41 }
 0x183   : > { %v704_v42 = vpop.f32.mrf.mxu1 }
 0x184   : > { %v707_v43 = vperm.slane %v704_v42, 0 }
 0x186   : > { %v5412_v44 = vsub.f32 %v5381_v1, %v707_v43  ;;  %v5415_v45 = vsub.f32 %v5384_v2, %v707_v43  ;;  %v5417_v46 = vsub.f32 %v608_v4, %v707_v43  ;;  %v5419_v47 = vsub.f32 %v609_v5, %v707_v43 }
 0x187   : > { %v5421_v48 = vsub.f32 %v610_v8, %v707_v43  ;;  %v5429_v52 = vsub.f32 %v611_v12, %v707_v43  ;;  %v5435_v57 = vsub.f32 %v612_v17, %v707_v43  ;;  %v5440_v61 = vsub.f32 %v613_v20, %v707_v43  ;;  %v4723_v43 = vld [vmem:[%s6602_s3] ss:$0 sm:$0xff] }
 0x188   : > { %v716_v49 = vmul.f32 %v5412_v44, %v5412_v44  ;;  %v717_v50 = vmul.f32 %v5415_v45, %v5415_v45  ;;  %v718_v51 = vmul.f32 %v5417_v46, %v5417_v46  ;;  %v719_v53 = vmul.f32 %v5419_v47, %v5419_v47 }
 0x189   : > { %v720_v58 = vmul.f32 %v5421_v48, %v5421_v48  ;;  %v721_v62 = vmul.f32 %v5429_v52, %v5429_v52  ;;  %v722_v1 = vmul.f32 %v5435_v57, %v5435_v57  ;;  %v723_v4 = vmul.f32 %v5440_v61, %v5440_v61 }
 0x18a   : > { %v724_v54 = vsel %vm6623_vm0, %v716_v49, 0.0  ;;  %v725_v55 = vsel %vm6623_vm0, %v717_v50, 0.0  ;;  %v727_v59 = vsel %vm6623_vm0, %v718_v51, 0.0  ;;  %v729_v63 = vsel %vm6623_vm0, %v719_v53, 0.0 }
 0x18b   : > { %v726_v56 = vadd.f32 %v725_v55, %v724_v54  ;;  %v731_v2 = vsel %vm6623_vm0, %v720_v58, 0.0  ;;  %v733_v5 = vsel %vm6623_vm0, %v721_v62, 0.0  ;;  %v735_v7 = vsel %vm6623_vm0, %v722_v1, 0.0 }
 0x18c   : > { %v737_v9 = vsel %vm6623_vm0, %v723_v4, 0.0 }
 0x18d   : > { %v728_v60 = vadd.f32 %v727_v59, %v726_v56 }
 0x18f   : > { %v730_v0 = vadd.f32 %v729_v63, %v728_v60 }
 0x191   : > { %v732_v3 = vadd.f32 %v731_v2, %v730_v0 }
 0x193   : > { %v734_v6 = vadd.f32 %v733_v5, %v732_v3 }
 0x195   : > { %v736_v8 = vadd.f32 %v735_v7, %v734_v6 }
 0x197   : > { %v738_v10 = vadd.f32 %v737_v9, %v736_v8 }
 0x199   : > { %v739_v11 = vrot.slane %v738_v10, 4 }
 0x19b   : > { %v740_v12 = vadd.f32 %v739_v11, %v738_v10 }
 0x19d   : > { %v741_v13 = vrot.slane %v740_v12, 2 }
 0x19f   : > { %v742_v14 = vadd.f32 %v741_v13, %v740_v12 }
 0x1a1   : > { %v743_v15 = vrot.slane %v742_v14, 1 }
 0x1a3   : > { %v744_v16 = vadd.f32 %v743_v15, %v742_v14 }
 0x1a5   : > { %3941 = vmatmul.msk.f32.vlgmr.msra.gmra.mxu2 %vm6623_vm0, %v744_v16 }
 0x228   : > { %v765_v17 = vpop.f32.mrf.mxu2 }
 0x229   : > { %v768_v18 = vmul.f32 %v765_v17, %v681_v39 }
 0x22b   : > { %3942 = vmatmul.msk.f32.vlgmr.msra.gmra.mxu3 %vm683_vm2, %v768_v18 }
 0x2ae   : > { %v790_v19 = vpop.f32.mrf.mxu3 }
 0x2af   : > { %v791_v20 = vadd.f32 1e-06, %v790_v19 }
 0x2b1   : > { %4731 = vrsqrt.f32 %v791_v20  ;;  %vm799_vm4 = vweird.f32 %v791_v20 }
 0x2b7   : > { %v4732_v21 = vpop.eup %4731 }
 0x2b8   : > { %v794_v22 = vmul.f32 %v4732_v21, %v791_v20  ;;  %vm800_vm3 = vweird.f32 %v4732_v21 }
 0x2b9   : > { %vm801_vm5 = vmor %vm799_vm4, %vm800_vm3 }
 0x2ba   : > { %v795_v26 = vmul.f32 %v4732_v21, %v794_v22 }
 0x2bc   : > { %v796_v30 = vmul.f32 0.5, %v795_v26 }
 0x2be   : > { %v797_v31 = vsub.f32 1.5, %v796_v30  ;;  %v4494_v30 = vld [vmem:[#allocation10 + $0x18] sm:$0xff] }
 0x2bf   : > { %1250 = vmatpush.bf16.msra.mxu3 %v4494_v30 }
 0x2c0   : > { %v798_v36 = vmul.f32 %v4732_v21, %v797_v31 }
 0x2c2   : > { %v802_v37 = vsel %vm801_vm5, %v4732_v21, %v798_v36  ;;  %v4506_v36 = vld [vmem:[#allocation10 + $0x38] sm:$0xff] }
 0x2c3   : > { %v803_v39 = vmul.f32 %v802_v37, %v769_v35  ;;  %1512 = vmatpush.bf16.msra.mxu1 %v4506_v36 }
 0x2c5   : > { %v805_v42 = vperm.slane %v803_v39, 0 }
 0x2c7   : > { %v807_v49 = vmul.f32 %v805_v42, %v5412_v44  ;;  %v808_v50 = vmul.f32 %v805_v42, %v5415_v45  ;;  %v809_v51 = vmul.f32 %v805_v42, %v5417_v46  ;;  %v810_v53 = vmul.f32 %v805_v42, %v5419_v47 }
 0x2c8   : > { %v811_v54 = vmul.f32 %v805_v42, %v5421_v48  ;;  %v812_v55 = vmul.f32 %v805_v42, %v5429_v52  ;;  %v813_v56 = vmul.f32 %v805_v42, %v5435_v57  ;;  %v814_v58 = vmul.f32 %v805_v42, %v5440_v61 }
 0x2c9   : > { %v5481_v59 = vadd.f32 %v4723_v43, %v807_v49  ;;  %v5483_v44 = vadd.f32 %v4723_v43, %v808_v50  ;;  %v5114_v46 = vmov 0.0   ;;  %v5489_v47 = vadd.f32 %v4723_v43, %v809_v51 }
 0x2ca   : > { %v5485_v45 = vadd.f32 %v4723_v43, %v814_v58  ;;  %994 = vst.msk [vmem:[#allocation2 + $0x10] sm:$0x1] %vm993_vm6, %v5114_v46  ;;  %v5491_v48 = vadd.f32 %v4723_v43, %v810_v53  ;;  %v5497_v60 = vadd.f32 %v4723_v43, %v811_v54  ;;  %v5503_v63 = vadd.f32 %v4723_v43, %v812_v55 }
 0x2cb   : > { %v3943_v52 = vmul.f32 -1.442695, %v5481_v59  ;;  %v3944_v57 = vmul.f32 -1.442695, %v5483_v44  ;;  %1003 = vst.msk [vmem:[#allocation2 + $0x19] sm:$0x7f] %vm1002_vm7, %v5114_v46  ;;  %v5508_v1 = vadd.f32 %v4723_v43, %v813_v56 }
 0x2cc   : > { %v3950_v61 = vmul.f32 -1.442695, %v5485_v45  ;;  %987 = vst.msk [vmem:[#allocation2] sm:$0xff] %vm6623_vm0, %v5114_v46  ;;  %v3945_v62 = vmul.f32 -1.442695, %v5489_v47  ;;  %v4493_v43 = vld [vmem:[#allocation10 + $0x10] sm:$0xff] }
 0x2cd   : > { %4733 = vpow2.f32 %v3943_v52  ;;  %988 = vst.msk [vmem:[#allocation2 + $0x8] sm:$0xff] %vm6623_vm0, %v5114_v46  ;;  %v3946_v0 = vmul.f32 -1.442695, %v5491_v48  ;;  %v3947_v2 = vmul.f32 -1.442695, %v5497_v60  ;;  %1251 = vmatpush.bf16.msra.mxu3 %v4493_v43 }
 0x2ce   : > { %4735 = vpow2.f32 %v3944_v57  ;;  %990 = vst.msk [vmem:[#allocation2 + $0x90] sm:$0xff] %vm6623_vm0, %v5114_v46  ;;  %v3948_v3 = vmul.f32 -1.442695, %v5503_v63  ;;  %v3949_v4 = vmul.f32 -1.442695, %v5508_v1 }
 0x2cf   : > { %4737 = vpow2.f32 %v3950_v61  ;;  %991 = vst.msk [vmem:[#allocation2 + $0x98] sm:$0xff] %vm6623_vm0, %v5114_v46 }
 0x2d0   : > { %995 = vst.msk [vmem:[#allocation2 + $0x20] sm:$0x1] %vm993_vm6, %v5114_v46  ;;  %4739 = vpow2.f32 %v3945_v62 }
 0x2d1   : > { %996 = vst.msk [vmem:[#allocation2 + $0x30] sm:$0x1] %vm993_vm6, %v5114_v46  ;;  %4741 = vpow2.f32 %v3946_v0  ;;  %v4492_v0 = vld [vmem:[#allocation10 + $0x8] sm:$0xff] }
 0x2d2   : > { %997 = vst.msk [vmem:[#allocation2 + $0x40] sm:$0x1] %vm993_vm6, %v5114_v46  ;;  %4743 = vpow2.f32 %v3947_v2  ;;  %1252 = vmatpush.bf16.msra.mxu3 %v4492_v0 }
 0x2d3   : > { %v4734_v5 = vpop.eup %4733  ;;  %998 = vst.msk [vmem:[#allocation2 + $0x50] sm:$0x1] %vm993_vm6, %v5114_v46  ;;  %4745 = vpow2.f32 %v3948_v3 }
 0x2d4   : > { %v4736_v6 = vpop.eup %4735  ;;  %v5525_v7 = vadd.f32 1.0, %v4734_v5  ;;  %999 = vst.msk [vmem:[#allocation2 + $0x60] sm:$0x1] %vm993_vm6, %v5114_v46  ;;  %4747 = vpow2.f32 %v3949_v4 }
 0x2d5   : > { %v4738_v8 = vpop.eup %4737  ;;  %v5529_v9 = vadd.f32 1.0, %v4736_v6  ;;  %1000 = vst.msk [vmem:[#allocation2 + $0x70] sm:$0x1] %vm993_vm6, %v5114_v46 }
 0x2d6   : > { %v4740_v10 = vpop.eup %4739  ;;  %v5533_v11 = vadd.f32 1.0, %v4738_v8  ;;  %4749 = vrcp.f32 %v5525_v7  ;;  %1001 = vst.msk [vmem:[#allocation2 + $0x80] sm:$0x1] %vm993_vm6, %v5114_v46  ;;  %v868_v14 = vand.u32 2147483647, %v5525_v7  ;;  %v870_v16 = vand.u32 2147483648, %v5525_v7 }
 0x2d7   : > { %v4742_v12 = vpop.eup %4741  ;;  %4751 = vrcp.f32 %v5529_v9  ;;  %1004 = vst.msk [vmem:[#allocation2 + $0x29] sm:$0x7f] %vm1002_vm7, %v5114_v46  ;;  %v5550_v17 = vadd.f32 1.0, %v4740_v10  ;;  %v885_v21 = vand.u32 2147483648, %v5529_v9  ;;  %vm864_vm8 = vweird.f32 %v5525_v7 }
 0x2d8   : > { %4753 = vrcp.f32 %v5533_v11  ;;  %1005 = vst.msk [vmem:[#allocation2 + $0x39] sm:$0x7f] %vm1002_vm7, %v5114_v46  ;;  %v4744_v13 = vpop.eup %4743  ;;  %v5552_v18 = vadd.f32 1.0, %v4742_v12  ;;  %v975_v20 = vand.u32 2147483648, %v5533_v11  ;;  %vm5570_vm9 = vcmp.eq.f32.partialorder %v868_v14, 8.507059e+37 }
 0x2d9   : > { %1006 = vst.msk [vmem:[#allocation2 + $0x49] sm:$0x7f] %vm1002_vm7, %v5114_v46  ;;  %v4746_v15 = vpop.eup %4745  ;;  %4755 = vrcp.f32 %v5550_v17  ;;  %v5564_v23 = vadd.f32 1.0, %v4744_v13  ;;  %v883_v29 = vand.u32 2147483647, %v5529_v9  ;;  %v871_v32 = vor.u32 1.1754944e-38, %v870_v16 }
 0x2da   : > { %1007 = vst.msk [vmem:[#allocation2 + $0x59] sm:$0x7f] %vm1002_vm7, %v5114_v46  ;;  %v4748_v19 = vpop.eup %4747  ;;  %4757 = vrcp.f32 %v5552_v18  ;;  %vm969_vm10 = vweird.f32 %v5533_v11  ;;  %v973_v34 = vand.u32 2147483647, %v5533_v11  ;;  %v5585_v37 = vadd.f32 1.0, %v4746_v15 }
 0x2db   : > { %1008 = vst.msk [vmem:[#allocation2 + $0x69] sm:$0x7f] %vm1002_vm7, %v5114_v46  ;;  %v5589_v41 = vor.u32 1.1754944e-38, %v975_v20  ;;  %v5591_v42 = vor.u32 1.1754944e-38, %v885_v21  ;;  %vm879_vm11 = vweird.f32 %v5529_v9  ;;  %v900_v50 = vand.u32 2147483648, %v5550_v17 }
 0x2dc   : > { %v5558_v22 = vpop.eup %4749  ;;  %1009 = vst.msk [vmem:[#allocation2 + $0x79] sm:$0x7f] %vm1002_vm7, %v5114_v46  ;;  %4759 = vrcp.f32 %v5564_v23  ;;  %v5596_v51 = vadd.f32 1.0, %v4748_v19  ;;  %v898_v55 = vand.u32 2147483647, %v5550_v17  ;;  %vm5604_vm13 = vcmp.eq.f32.partialorder %v973_v34, 8.507059e+37 }
 0x2dd   : > { %v5566_v25 = vpop.eup %4751  ;;  %v860_v26 = vmul.f32 %v5558_v22, %v5525_v7  ;;  %1010 = vst.msk [vmem:[#allocation2 + $0x89] sm:$0x7f] %vm1002_vm7, %v5114_v46  ;;  %vm865_vm12 = vweird.f32 %v5558_v22  ;;  %vm894_vm14 = vweird.f32 %v5550_v17  ;;  %vm909_vm15 = vweird.f32 %v5552_v18 }
 0x2de   : > { %v5578_v31 = vpop.eup %4753  ;;  %2392 = vst [vmem:[#allocation3] sm:$0xff] %v5114_v46  ;;  %v875_v35 = vmul.f32 %v5566_v25, %v5529_v9  ;;  %4761 = vrcp.f32 %v5585_v37  ;;  %v913_v3 = vand.u32 2147483647, %v5552_v18  ;;  %vm866_vm1 = vmor %vm864_vm8, %vm865_vm12  ;;  %vm880_vm4 = vweird.f32 %v5566_v25 }
 0x2df   : > { %v861_v38 = vsub.f32 1.0, %v860_v26  ;;  %v965_v39 = vmul.f32 %v5578_v31, %v5533_v11  ;;  %v5601_v56 = vpop.eup %4755  ;;  %2398 = vst [vmem:[#allocation3 + $0x10] sm:$0x1] %v5114_v46  ;;  %vm970_vm3 = vweird.f32 %v5578_v31  ;;  %vm5627_vm5 = vcmp.eq.f32.partialorder %v883_v29, 8.507059e+37 }
 0x2e0   : > { %v876_v49 = vsub.f32 1.0, %v875_v35  ;;  %v5612_v57 = vpop.eup %4757  ;;  %2399 = vst [vmem:[#allocation3 + $0x20] sm:$0x1] %v5114_v46  ;;  %v890_v2 = vmul.f32 %v5601_v56, %v5550_v17  ;;  %v901_v5 = vor.u32 1.1754944e-38, %v900_v50  ;;  %vm5636_vm6 = vcmp.eq.f32.partialorder %v898_v55, 8.507059e+37  ;;  %vm5654_vm8 = vmor %vm969_vm10, %vm970_vm3 }
 0x2e1   : > { %v862_v53 = vmul.f32 %v5558_v22, %v861_v38  ;;  %v966_v54 = vsub.f32 1.0, %v965_v39  ;;  %2400 = vst [vmem:[#allocation3 + $0x30] sm:$0x1] %v5114_v46  ;;  %v905_v6 = vmul.f32 %v5612_v57, %v5552_v18  ;;  %v915_v13 = vand.u32 2147483648, %v5552_v18  ;;  %v4520_v39 = vld [vmem:[#allocation10 + $0xa8] sm:$0xff] }
 0x2e2   : > { %v877_v52 = vmul.f32 %v5566_v25, %v876_v49  ;;  %2401 = vst [vmem:[#allocation3 + $0x40] sm:$0x1] %v5114_v46  ;;  %v891_v10 = vsub.f32 1.0, %v890_v2  ;;  %v5641_v14 = vpop.eup %4759  ;;  %vm924_vm7 = vweird.f32 %v5564_v23  ;;  %vm5659_vm12 = vcmp.eq.f32.partialorder %v913_v3, 8.507059e+37 }
 0x2e3   : > { %v863_v61 = vadd.f32 %v5558_v22, %v862_v53  ;;  %v967_v62 = vmul.f32 %v5578_v31, %v966_v54  ;;  %2402 = vst [vmem:[#allocation3 + $0x50] sm:$0x1] %v5114_v46  ;;  %v906_v19 = vsub.f32 1.0, %v905_v6  ;;  %vm910_vm10 = vweird.f32 %v5612_v57 }
 0x2e4   : > { %v878_v16 = vadd.f32 %v5566_v25, %v877_v52  ;;  %2403 = vst [vmem:[#allocation3 + $0x60] sm:$0x1] %v5114_v46  ;;  %v5664_v27 = vpop.eup %4761  ;;  %v892_v29 = vmul.f32 %v5601_v56, %v891_v10  ;;  %v916_v34 = vor.u32 1.1754944e-38, %v915_v13  ;;  %v930_v35 = vand.u32 2147483648, %v5564_v23 }
 0x2e5   : > { %v867_v8 = vsel %vm866_vm1, %v5558_v22, %v863_v61  ;;  %v968_v7 = vadd.f32 %v5578_v31, %v967_v62  ;;  %v4491_v22 = vld [vmem:[#allocation10] sm:$0xff]  ;;  %2404 = vst [vmem:[#allocation3 + $0x70] sm:$0x1] %v5114_v46  ;;  %v907_v30 = vmul.f32 %v5612_v57, %v906_v19  ;;  %vm5678_vm1 = vmor %vm879_vm11, %vm880_vm4  ;;  %v935_v36 = vmul.f32 %v5664_v27, %v5585_v37  ;;  %v4505_v61 = vld [vmem:[#allocation10 + $0x30] sm:$0xff] }
 0x2e6   : > { %v872_v15 = vsel %vm5570_vm9, %v871_v32, %v867_v8  ;;  %vm895_vm9 = vweird.f32 %v5601_v56  ;;  %2405 = vst [vmem:[#allocation3 + $0x80] sm:$0x1] %v5114_v46  ;;  %v882_v38 = vsel %vm5678_vm1, %v5566_v25, %v878_v16  ;;  %v893_v9 = vadd.f32 %v5601_v56, %v892_v29  ;;  %1253 = vmatpush.bf16.msra.mxu3 %v4491_v22  ;;  %vm5710_vm4 = vmor %vm909_vm15, %vm910_vm10  ;;  %v4515_v62 = vld [vmem:[#allocation10 + $0x40] sm:$0xff] }
 0x2e7   : > { %v979_v20 = vmul.f32 %v872_v15, %v5481_v59  ;;  %v928_v59 = vand.u32 2147483647, %v5564_v23  ;;  %v972_v11 = vsel %vm5654_vm8, %v5578_v31, %v968_v7  ;;  %v920_v31 = vmul.f32 %v5641_v14, %v5564_v23  ;;  %vm5696_vm11 = vmor %vm894_vm14, %vm895_vm9  ;;  %2406 = vst [vmem:[#allocation3 + $0x19] sm:$0x7f] %v5114_v46  ;;  %1513 = vmatpush.bf16.msra.mxu1 %v4505_v61 }
 0x2e8   : > { %v908_v43 = vadd.f32 %v5612_v57, %v907_v30  ;;  %vm925_vm3 = vweird.f32 %v5641_v14  ;;  %v977_v25 = vsel %vm5604_vm13, %v5589_v41, %v972_v11  ;;  %v936_v50 = vsub.f32 1.0, %v935_v36  ;;  %2407 = vst [vmem:[#allocation3 + $0x29] sm:$0x7f] %v5114_v46 }
 0x2e9   : > { %1011 = vst.msk [vmem:[#allocation2 + $0x11] sm:$0xff] %vm6623_vm0, %v979_v20  ;;  %v921_v49 = vsub.f32 1.0, %v920_v31  ;;  %4763 = vrcp.f32 %v5596_v51  ;;  %v897_v53 = vsel %vm5696_vm11, %v5601_v56, %v893_v9  ;;  %v943_v18 = vand.u32 2147483647, %v5585_v37  ;;  %vm5747_vm15 = vmor %vm924_vm7, %vm925_vm3  ;;  %v4521_v9 = vld [vmem:[#allocation10 + $0xb0] sm:$0xff] }
 0x2ea   : > { %v912_v41 = vsel %vm5710_vm4, %v5612_v57, %v908_v43  ;;  %v945_v54 = vand.u32 2147483648, %v5585_v37  ;;  %2408 = vst [vmem:[#allocation3 + $0x39] sm:$0x7f] %v5114_v46  ;;  %v887_v55 = vsel %vm5627_vm5, %v5591_v42, %v882_v38  ;;  %v937_v52 = vmul.f32 %v5664_v27, %v936_v50  ;;  %v4519_v43 = vld [vmem:[#allocation10 + $0xa0] sm:$0xff] }
 0x2eb   : > { %v922_v58 = vmul.f32 %v5641_v14, %v921_v49  ;;  %vm940_vm13 = vweird.f32 %v5664_v27  ;;  %2409 = vst [vmem:[#allocation3 + $0x49] sm:$0x7f] %v5114_v46  ;;  %v986_v56 = vmul.f32 %v977_v25, %v5485_v45  ;;  %v902_v57 = vsel %vm5636_vm6, %v901_v5, %v897_v53  ;;  %v4503_v50 = vld [vmem:[#allocation10 + $0x20] sm:$0xff] }
 0x2ec   : > { %vm5735_vm14 = vcmp.eq.f32.partialorder %v928_v59, 8.507059e+37  ;;  %v931_v0 = vor.u32 1.1754944e-38, %v930_v35  ;;  %2410 = vst [vmem:[#allocation3 + $0x59] sm:$0x7f] %v5114_v46  ;;  %v917_v42 = vsel %vm5659_vm12, %v916_v34, %v912_v41  ;;  %v938_v3 = vadd.f32 %v5664_v27, %v937_v52  ;;  %v4526_v52 = vld [vmem:[#allocation10 + $0x118] sm:$0xff] }
 0x2ed   : > { %v923_v2 = vadd.f32 %v5641_v14, %v922_v58  ;;  %vm939_vm5 = vweird.f32 %v5585_v37  ;;  %2411 = vst [vmem:[#allocation3 + $0x69] sm:$0x7f] %v5114_v46  ;;  %v980_v6 = vmul.f32 %v887_v55, %v5483_v44  ;;  %vm944_vm8 = vcmp.eq.f32.partialorder %v943_v18, 8.507059e+37 }
 0x2ee   : > { %vm941_vm6 = vmor %vm939_vm5, %vm940_vm13  ;;  %v946_v23 = vor.u32 1.1754944e-38, %v945_v54  ;;  %2412 = vst [vmem:[#allocation3 + $0x79] sm:$0x7f] %v5114_v46  ;;  %v981_v10 = vmul.f32 %v902_v57, %v5489_v47  ;;  %v982_v44 = vmul.f32 %v917_v42, %v5491_v48  ;;  %v958_v20 = vand.u32 2147483647, %v5596_v51  ;;  %v4518_v54 = vld [vmem:[#allocation10 + $0x58] sm:$0xff] }
 0x2ef   : > { %v4764_v8 = vpop.eup %4763  ;;  %v927_v37 = vsel %vm5747_vm15, %v5641_v14, %v923_v2  ;;  %v942_v12 = vsel %vm941_vm6, %v5664_v27, %v938_v3  ;;  %2413 = vst [vmem:[#allocation3 + $0x89] sm:$0x7f] %v5114_v46  ;;  %v960_v14 = vand.u32 2147483648, %v5596_v51  ;;  %vm954_vm9 = vweird.f32 %v5596_v51  ;;  %1831 = vmatpush.bf16.msra.mxu2 %v4518_v54  ;;  %v4516_v57 = vld [vmem:[#allocation10 + $0x48] sm:$0xff] }
 0x2f0   : > { %v1043_v4 = vld [vmem:[#allocation2 + $0x10] sm:$0xff]  ;;  %v1044_v5 = vld [vmem:[#allocation2 + $0x18] sm:$0xff]  ;;  %v932_v13 = vsel %vm5735_vm14, %v931_v0, %v927_v37  ;;  %v947_v15 = vsel %vm944_vm8, %v946_v23, %v942_v12  ;;  %v950_v16 = vmul.f32 %v4764_v8, %v5596_v51  ;;  %1018 = vst.msk [vmem:[#allocation2 + $0x81] sm:$0xff] %vm6623_vm0, %v986_v56  ;;  %vm955_vm7 = vweird.f32 %v4764_v8  ;;  %v1019_v51 = vld [vmem:[#allocation2] sm:$0xff] }
 0x2f1   : > { %v5757_v7 = vpack.c.bf16 %v1044_v5, %v1043_v4  ;;  %v983_v47 = vmul.f32 %v932_v13, %v5497_v60  ;;  %1012 = vst.msk [vmem:[#allocation2 + $0x21] sm:$0xff] %vm6623_vm0, %v980_v6  ;;  %v984_v46 = vmul.f32 %v947_v15, %v5503_v63  ;;  %vm956_vm12 = vmor %vm954_vm9, %vm955_vm7  ;;  %v961_v63 = vor.u32 1.1754944e-38, %v960_v14  ;;  %v4517_v56 = vld [vmem:[#allocation10 + $0x50] sm:$0xff]  ;;  %v4524_v13 = vld [vmem:[#allocation10 + $0x108] sm:$0xff] }
 0x2f2   : > { %v951_v48 = vsub.f32 1.0, %v950_v16  ;;  %1013 = vst.msk [vmem:[#allocation2 + $0x31] sm:$0xff] %vm6623_vm0, %v981_v10  ;;  %vm959_vm10 = vcmp.eq.f32.partialorder %v958_v20, 8.507059e+37  ;;  %v4525_v0 = vld [vmem:[#allocation10 + $0x110] sm:$0xff]  ;;  %v4514_v15 = vld [vmem:[#allocation10 + $0xf8] sm:$0xff]  ;;  %vm6622_vm1 = vcmask 1046528  }
 0x2f3   : > { %3967 = vmatmul.msk.bf16.vlgmr.msrb.gmra.mxu1 %vm6623_vm0, %v5757_v7  ;;  %4039 = vmatmul.msk.bf16.vlgmr.msrb.gmra.mxu2 %vm6623_vm0, %v5757_v7  ;;  %1014 = vst.msk [vmem:[#allocation2 + $0x41] sm:$0xff] %vm6623_vm0, %v982_v44  ;;  %v4513_v14 = vld [vmem:[#allocation10 + $0xf0] sm:$0xff]  ;;  %vm6621_vm11 = vcmask 1045504  }
 0x2f4   : > { %v952_v19 = vmul.f32 %v4764_v8, %v951_v48  ;;  %1015 = vst.msk [vmem:[#allocation2 + $0x51] sm:$0xff] %vm6623_vm0, %v983_v47  ;;  %1832 = vmatpush.bf16.msra.mxu2 %v4517_v56 }
 0x2f5   : > { %1016 = vst.msk [vmem:[#allocation2 + $0x61] sm:$0xff] %vm6623_vm0, %v984_v46 }
 0x2f6   : > { %v953_v60 = vadd.f32 %v4764_v8, %v952_v19  ;;  %v4512_v19 = vld [vmem:[#allocation10 + $0xe8] sm:$0xff] }
 0x2f7   : > { %v1057_v21 = vld [vmem:[#allocation2 + $0x80] sm:$0xff]  ;;  %v1058_v22 = vld [vmem:[#allocation2 + $0x88] sm:$0xff] }
 0x2f8   : > { %v957_v26 = vsel %vm956_vm12, %v4764_v8, %v953_v60  ;;  %v5785_v59 = vpack.c.bf16 %v1058_v22, %v1057_v21  ;;  %v1068_v27 = vld [vmem:[#allocation2 + $0x20] sm:$0xff]  ;;  %v1069_v11 = vld [vmem:[#allocation2 + $0x28] sm:$0xff]  ;;  %1833 = vmatpush.bf16.msra.mxu2 %v4516_v57 }
 0x2f9   : > { %v962_v29 = vsel %vm959_vm10, %v961_v63, %v957_v26  ;;  %v5787_v30 = vpack.c.bf16 %v1069_v11, %v1068_v27  ;;  %v1070_v31 = vld [vmem:[#allocation2 + $0x30] sm:$0xff]  ;;  %v1071_v35 = vld [vmem:[#allocation2 + $0x38] sm:$0xff]  ;;  %v4511_v22 = vld [vmem:[#allocation10 + $0xe0] sm:$0xff] }
 0x2fa   : > { %v985_v32 = vmul.f32 %v962_v29, %v5508_v1  ;;  %3974 = vmatmul.msk.bf16.vlgmr.msrb.gmra.mxu3 %vm6623_vm0, %v5785_v59  ;;  %v1020_v1 = vld [vmem:[#allocation2 + $0x8] sm:$0xff] }
 0x2fb   : > { %4015 = vmatmul.msk.bf16.vlgmr.msrb.gmra.mxu0 %vm6623_vm0, %v5787_v30  ;;  %4608 = vmatpush.bf16.msrb.mxu3 %v5455_v24  ;;  %v5802_v34 = vpack.c.bf16 %v1020_v1, %v1019_v51  ;;  %v5805_v24 = vpack.c.bf16 %v1071_v35, %v1070_v31  ;;  %v1073_v36 = vld [vmem:[#allocation2 + $0x48] sm:$0xff]  ;;  %v1074_v25 = vld [vmem:[#allocation2 + $0x50] sm:$0xff]  ;;  %v1075_v17 = vld [vmem:[#allocation2 + $0x58] sm:$0xff] }
 0x2fc   : > { %1017 = vst.msk [vmem:[#allocation2 + $0x71] sm:$0xff] %vm6623_vm0, %v985_v32  ;;  %v5825_v49 = vpack.c.bf16 %v1075_v17, %v1074_v25  ;;  %v1076_v53 = vld [vmem:[#allocation2 + $0x60] sm:$0xff]  ;;  %v1077_v41 = vld [vmem:[#allocation2 + $0x68] sm:$0xff]  ;;  %1834 = vmatpush.bf16.msra.mxu2 %v4515_v62  ;;  %v1082_v51 = vld [vmem:[#allocation2 + $0x90] sm:$0xff] }
 0x2fd   : > { %v5835_v18 = vpack.c.bf16 %v1077_v41, %v1076_v53  ;;  %v1083_v1 = vld [vmem:[#allocation2 + $0x98] sm:$0xff] }
 0x2ff   : > { %4609 = vmatpush.bf16.msrb.mxu3 %v5458_v28  ;;  %v4504_v28 = vld [vmem:[#allocation10 + $0x28] sm:$0xff] }
 0x300   : > { %1514 = vmatpush.bf16.msra.mxu1 %v4504_v28  ;;  %v5919_v28 = vpack.c.bf16 %v1083_v1, %v1082_v51 }
 0x303   : > { %3968 = vmatmul.msk.bf16.gmra.mxu1 %vm6623_vm0, %v5787_v30  ;;  %4040 = vmatmul.msk.bf16.gmra.mxu2 %vm6623_vm0, %v5787_v30  ;;  %v1055_v55 = vld [vmem:[#allocation2 + $0x70] sm:$0xff]  ;;  %v1056_v58 = vld [vmem:[#allocation2 + $0x78] sm:$0xff] }
 0x304   : > { %4610 = vmatpush.bf16.msrb.mxu3 %v5461_v33  ;;  %v1072_v33 = vld [vmem:[#allocation2 + $0x40] sm:$0xff]  ;;  %1515 = vmatpush.bf16.msra.mxu1 %v4503_v50  ;;  %v5849_v61 = vpack.c.bf16 %v1056_v58, %v1055_v55 }
 0x305   : > { %v5815_v38 = vpack.c.bf16 %v1073_v36, %v1072_v33  ;;  %v4523_v36 = vld [vmem:[#allocation10 + $0x100] sm:$0xff] }
 0x308   : > { %4611 = vmatpush.bf16.msrb.mxu3 %v5467_v40  ;;  %v4522_v40 = vld [vmem:[#allocation10 + $0xb8] sm:$0xff]  ;;  %1913 = vmatpush.bf16.msrb.mxu1 %v4526_v52 }
 0x309   : > { %1758 = vmatpush.bf16.msra.mxu0 %v4522_v40 }
 0x30a   : > { %3991 = vmatmul.msk.bf16.vlgmr.msra.gmra.mxu3 %vm6623_vm0, %v5802_v34 }
 0x30b   : > { %4016 = vmatmul.msk.bf16.gmra.mxu0 %vm6623_vm0, %v5805_v24 }
 0x30c   : > { %1914 = vmatpush.bf16.msrb.mxu1 %v4525_v0  ;;  %1594 = vmatpush.bf16.msra.mxu3 %v4514_v15 }
 0x30d   : > { %1759 = vmatpush.bf16.msra.mxu0 %v4521_v9 }
 0x310   : > { %1915 = vmatpush.bf16.msrb.mxu1 %v4524_v13  ;;  %1595 = vmatpush.bf16.msra.mxu3 %v4513_v14 }
 0x311   : > { %1760 = vmatpush.bf16.msra.mxu0 %v4520_v39 }
 0x313   : > { %3969 = vmatmul.msk.bf16.gmra.mxu1 %vm6623_vm0, %v5805_v24  ;;  %4041 = vmatmul.msk.bf16.gmra.mxu2 %vm6623_vm0, %v5805_v24 }
 0x314   : > { %1596 = vmatpush.bf16.msra.mxu3 %v4512_v19  ;;  %1916 = vmatpush.bf16.msrb.mxu1 %v4523_v36 }
 0x315   : > { %1761 = vmatpush.bf16.msra.mxu0 %v4519_v43 }
 0x318   : > { %1597 = vmatpush.bf16.msra.mxu3 %v4511_v22 }
 0x31a   : > { %3992 = vmatmul.msk.bf16.gmra.mxu3 %vm6623_vm0, %v5757_v7 }
 0x31b   : > { %4017 = vmatmul.msk.bf16.gmra.mxu0 %vm6623_vm0, %v5815_v38 }
 0x323   : > { %3970 = vmatmul.msk.bf16.gmra.mxu1 %vm6623_vm0, %v5815_v38  ;;  %4042 = vmatmul.msk.bf16.gmra.mxu2 %vm6623_vm0, %v5815_v38 }
 0x32a   : > { %3993 = vmatmul.msk.bf16.gmra.mxu3 %vm6623_vm0, %v5787_v30 }
 0x32b   : > { %4018 = vmatmul.msk.bf16.gmra.mxu0 %vm6623_vm0, %v5825_v49 }
 0x333   : > { %3971 = vmatmul.msk.bf16.gmra.mxu1 %vm6623_vm0, %v5825_v49  ;;  %4043 = vmatmul.msk.bf16.gmra.mxu2 %vm6623_vm0, %v5825_v49 }
 0x33a   : > { %3994 = vmatmul.msk.bf16.gmra.mxu3 %vm6623_vm0, %v5805_v24 }
 0x33b   : > { %4019 = vmatmul.msk.bf16.gmra.mxu0 %vm6623_vm0, %v5835_v18 }
 0x343   : > { %3972 = vmatmul.msk.bf16.gmra.mxu1 %vm6623_vm0, %v5835_v18  ;;  %4044 = vmatmul.msk.bf16.gmra.mxu2 %vm6623_vm0, %v5835_v18 }
 0x34a   : > { %3995 = vmatmul.msk.bf16.gmra.mxu3 %vm6623_vm0, %v5815_v38 }
 0x34b   : > { %4111 = vmatmul.msk.bf16.vlgmr.msra.gmra.mxu0 %vm6623_vm0, %v5757_v7 }
 0x353   : > { %3973 = vmatmul.msk.bf16.gmra.mxu1 %vm6623_vm0, %v5849_v61  ;;  %4045 = vmatmul.msk.bf16.gmra.mxu2 %vm6623_vm0, %v5849_v61 }
 0x35a   : > { %3996 = vmatmul.msk.bf16.gmra.mxu3 %vm6623_vm0, %v5825_v49 }
 0x35b   : > { %4112 = vmatmul.msk.bf16.gmra.mxu0 %vm6623_vm0, %v5787_v30 }
 0x363   : > { %4046 = vmatmul.msk.bf16.gmra.mxu2 %vm6623_vm0, %v5785_v59  ;;  %4063 = vmatmul.msk.bf16.vlgmr.msra.gmra.mxu1 %vm6623_vm0, %v5802_v34 }
 0x36a   : > { %3997 = vmatmul.msk.bf16.gmra.mxu3 %vm6623_vm0, %v5835_v18 }
 0x36b   : > { %4113 = vmatmul.msk.bf16.gmra.mxu0 %vm6623_vm0, %v5805_v24 }
 0x370   : > { %v1166_v42 = vpop.f32.mrf.mxu1 }
 0x373   : > { %4064 = vmatmul.msk.bf16.gmra.mxu1 %vm6623_vm0, %v5757_v7  ;;  %4135 = vmatmul.msk.bf16.vlgmr.msra.gmra.mxu2 %vm6623_vm0, %v5802_v34 }
 0x376   : > { %v5871_v2 = vpop.f32.mrf.mxu2 }
 0x378   : > { %v1168_v45 = vpop.f32.mrf.mxu1  ;;  %v1353_v3 = vpop.f32.mrf.mxu0 }
 0x37a   : > { %3998 = vmatmul.msk.bf16.gmra.mxu3 %vm6623_vm0, %v5849_v61 }
 0x37b   : > { %4114 = vmatmul.msk.bf16.gmra.mxu0 %vm6623_vm0, %v5815_v38 }
 0x37d   : > { %v5879_v5 = vpop.f32.mrf.mxu3 }
 0x37e   : > { %v5877_v4 = vpop.f32.mrf.mxu2 }
 0x380   : > { %v1170_v6 = vpop.f32.mrf.mxu1  ;;  %v1355_v23 = vpop.f32.mrf.mxu0 }
 0x383   : > { %4065 = vmatmul.msk.bf16.gmra.mxu1 %vm6623_vm0, %v5787_v30  ;;  %4136 = vmatmul.msk.bf16.gmra.mxu2 %vm6623_vm0, %v5757_v7 }
 0x385   : > { %v1196_v10 = vpop.f32.mrf.mxu3 }
 0x386   : > { %v5885_v8 = vpop.f32.mrf.mxu2 }
 0x388   : > { %v1172_v37 = vpop.f32.mrf.mxu1  ;;  %v5887_v12 = vpop.f32.mrf.mxu0 }
 0x38a   : > { %4020 = vmatmul.msk.bf16.vlgmr.msrb.gmra.mxu3 %vm6623_vm0, %v5849_v61 }
 0x38b   : > { %4115 = vmatmul.msk.bf16.gmra.mxu0 %vm6623_vm0, %v5825_v49 }
 0x38d   : > { %v1255_v16 = vpop.f32.mrf.mxu3 }
 0x38e   : > { %v5893_v44 = vpop.f32.mrf.mxu2  ;;  %v1256_v7 = vadd.f32 %v1255_v16, %v1166_v42 }
 0x390   : > { %v1174_v47 = vpop.f32.mrf.mxu1  ;;  %v5895_v46 = vadd.f32 %v1353_v3, %v1256_v7  ;;  %v1359_v48 = vpop.f32.mrf.mxu0 }
 0x393   : > { %4066 = vmatmul.msk.bf16.gmra.mxu1 %vm6623_vm0, %v5805_v24  ;;  %4137 = vmatmul.msk.bf16.gmra.mxu2 %vm6623_vm0, %v5787_v30 }
 0x395   : > { %v1257_v60 = vpop.f32.mrf.mxu3 }
 0x396   : > { %v5901_v20 = vpop.f32.mrf.mxu2 }
 0x398   : > { %v1176_v63 = vpop.f32.mrf.mxu1  ;;  %v5903_v21 = vpop.f32.mrf.mxu0 }
 0x39a   : > { %4021 = vmatmul.msk.bf16.gmra.mxu3 %vm6623_vm0, %v5785_v59 }
 0x39b   : > { %4116 = vmatmul.msk.bf16.gmra.mxu0 %vm6623_vm0, %v5835_v18 }
 0x39d   : > { %v1259_v27 = vpop.f32.mrf.mxu3 }
 0x39e   : > { %v5909_v26 = vpop.f32.mrf.mxu2  ;;  %v5911_v29 = vadd.f32 %v1259_v27, %v1170_v6 }
 0x3a0   : > { %v1178_v11 = vpop.f32.mrf.mxu1  ;;  %v1363_v32 = vpop.f32.mrf.mxu0 }
 0x3a3   : > { %4067 = vmatmul.msk.bf16.gmra.mxu1 %vm6623_vm0, %v5815_v38  ;;  %4138 = vmatmul.msk.bf16.gmra.mxu2 %vm6623_vm0, %v5805_v24 }
 0x3a5   : > { %v1261_v31 = vpop.f32.mrf.mxu3 }
 0x3a6   : > { %v5917_v34 = vpop.f32.mrf.mxu2 }
 0x3a8   : > { %v1180_v35 = vpop.f32.mrf.mxu1  ;;  %v5921_v33 = vpop.f32.mrf.mxu0 }
 0x3aa   : > { %4022 = vmatmul.msk.bf16.gmra.mxu3 %vm6623_vm0, %v5919_v28 }
 0x3ab   : > { %4117 = vmatmul.msk.bf16.gmra.mxu0 %vm6623_vm0, %v5849_v61 }
 0x3ad   : > { %v1263_v9 = vpop.f32.mrf.mxu3 }
 0x3ae   : > { %v5927_v40 = vpop.f32.mrf.mxu2  ;;  %v5929_v43 = vadd.f32 %v1263_v9, %v1174_v47 }
 0x3b0   : > { %v1182_v39 = vpop.f32.mrf.mxu1  ;;  %v1367_v25 = vpop.f32.mrf.mxu0 }
 0x3b3   : > { %4068 = vmatmul.msk.bf16.gmra.mxu1 %vm6623_vm0, %v5825_v49  ;;  %4139 = vmatmul.msk.bf16.gmra.mxu2 %vm6623_vm0, %v5815_v38 }
 0x3b5   : > { %v1265_v50 = vpop.f32.mrf.mxu3 }
 0x3b6   : > { %v5935_v17 = vpop.f32.mrf.mxu2 }
 0x3b8   : > { %v1184_v53 = vpop.f32.mrf.mxu1  ;;  %v5937_v41 = vpop.f32.mrf.mxu0 }
 0x3ba   : > { %4087 = vmatmul.msk.bf16.vlgmr.msra.gmra.mxu3 %vm6623_vm0, %v5787_v30 }
 0x3bb   : > { %4118 = vmatmul.msk.bf16.gmra.mxu0 %vm6623_vm0, %v5785_v59 }
 0x3bd   : > { %v1267_v55 = vpop.f32.mrf.mxu3 }
 0x3be   : > { %v5943_v54 = vpop.f32.mrf.mxu2  ;;  %v5945_v52 = vadd.f32 %v1267_v55, %v1178_v11 }
 0x3c0   : > { %v1186_v58 = vpop.f32.mrf.mxu1  ;;  %v1371_v56 = vpop.f32.mrf.mxu0 }
 0x3c3   : > { %4069 = vmatmul.msk.bf16.gmra.mxu1 %vm6623_vm0, %v5835_v18  ;;  %4140 = vmatmul.msk.bf16.gmra.mxu2 %vm6623_vm0, %v5825_v49 }
 0x3c5   : > { %v1269_v62 = vpop.f32.mrf.mxu3 }
 0x3c6   : > { %v5951_v57 = vpop.f32.mrf.mxu2 }
 0x3c8   : > { %v1188_v0 = vpop.f32.mrf.mxu1  ;;  %v5975_v19 = vpop.f32.mrf.mxu0 }
 0x3ca   : > { %4088 = vmatmul.msk.bf16.gmra.mxu3 %vm6623_vm0, %v5805_v24 }
 0x3cd   : > { %v1271_v45 = vpop.f32.mrf.mxu3 }
 0x3ce   : > { %v5955_v42 = vpop.f32.mrf.mxu2  ;;  %v5957_v6 = vadd.f32 %v1271_v45, %v1182_v39 }
 0x3d0   : > { %v1190_v3 = vpop.f32.mrf.mxu1  ;;  %v1765_v11 = vpop.f32.mrf.mxu0 }
 0x3d3   : > { %4070 = vmatmul.msk.bf16.gmra.mxu1 %vm6623_vm0, %v5849_v61  ;;  %4141 = vmatmul.msk.bf16.gmra.mxu2 %vm6623_vm0, %v5835_v18 }
 0x3d5   : > { %v1273_v10 = vpop.f32.mrf.mxu3 }
 0x3d6   : > { %v5963_v23 = vpop.f32.mrf.mxu2 }
 0x3d8   : > { %v1192_v37 = vpop.f32.mrf.mxu1  ;;  %v5987_v31 = vpop.f32.mrf.mxu0 }
 0x3da   : > { %4089 = vmatmul.msk.bf16.gmra.mxu3 %vm6623_vm0, %v5815_v38 }
 0x3dd   : > { %v1275_v15 = vpop.f32.mrf.mxu3 }
 0x3de   : > { %v5967_v13 = vpop.f32.mrf.mxu2  ;;  %v1276_v47 = vadd.f32 %v1275_v15, %v1186_v58 }
 0x3e0   : > { %v1517_v16 = vpop.f32.mrf.mxu1  ;;  %v1770_v50 = vpop.f32.mrf.mxu0 }
 0x3e3   : > { %4142 = vmatmul.msk.bf16.gmra.mxu2 %vm6623_vm0, %v5849_v61  ;;  %4159 = vmatmul.msk.bf16.vlgmr.msrb.gmra.mxu1 %vm6623_vm0, %v5787_v30 }
 0x3e5   : > { %v1277_v48 = vpop.f32.mrf.mxu3 }
 0x3e6   : > { %v5973_v7 = vpop.f32.mrf.mxu2 }
 0x3e8   : > { %v1519_v14 = vpop.f32.mrf.mxu1 }
 0x3ea   : > { %4090 = vmatmul.msk.bf16.gmra.mxu3 %vm6623_vm0, %v5825_v49 }
 0x3ed   : > { %v1279_v63 = vpop.f32.mrf.mxu3 }
 0x3ee   : > { %v5979_v60 = vpop.f32.mrf.mxu2  ;;  %v1280_v27 = vadd.f32 %v1279_v63, %v1190_v3 }
 0x3f0   : > { %v1522_v22 = vpop.f32.mrf.mxu1 }
 0x3f3   : > { %4160 = vmatmul.msk.bf16.gmra.mxu1 %vm6623_vm0, %v5805_v24 }
 0x3f5   : > { %v1281_v30 = vpop.f32.mrf.mxu3 }
 0x3f6   : > { %v5983_v32 = vpop.f32.mrf.mxu2 }
 0x3f8   : > { %v1524_v51 = vpop.f32.mrf.mxu1 }
 0x3fa   : > { %4091 = vmatmul.msk.bf16.gmra.mxu3 %vm6623_vm0, %v5835_v18 }
 0x3fd   : > { %v5991_v36 = vpop.f32.mrf.mxu3 }
 0x3fe   : > { %v1838_v1 = vpop.f32.mrf.mxu2 }
 0x3ff   : > { %v5989_v35 = vadd.f32 %v1838_v1, %v1765_v11 }
 0x400   : > { %v1527_v9 = vpop.f32.mrf.mxu1 }
 0x403   : > { %4161 = vmatmul.msk.bf16.gmra.mxu1 %vm6623_vm0, %v5815_v38  ;;  %v6009_v38 = vpop.f32.mrf.mxu0 }
 0x405   : > { %v1285_v39 = vpop.f32.mrf.mxu3 }
 0x406   : > { %v5995_v24 = vpop.f32.mrf.mxu2 }
 0x408   : > { %v5997_v25 = vpop.f32.mrf.mxu1 }
 0x40a   : > { %4092 = vmatmul.msk.bf16.gmra.mxu3 %vm6623_vm0, %v5849_v61 }
 0x40b   : > { %v1775_v10 = vpop.f32.mrf.mxu0 }
 0x40d   : > { %v1373_v58 = vpop.f32.mrf.mxu3 }
 0x40e   : > { %v1843_v53 = vpop.f32.mrf.mxu2  ;;  %v6005_v62 = vadd.f32 %v1373_v58, %v1276_v47 }
 0x40f   : > { %v6001_v55 = vadd.f32 %v1843_v53, %v1770_v50 }
 0x410   : > { %v6003_v56 = vpop.f32.mrf.mxu1 }
 0x413   : > { %4162 = vmatmul.msk.bf16.gmra.mxu1 %vm6623_vm0, %v5825_v49 }
 0x415   : > { %v1375_v45 = vpop.f32.mrf.mxu3 }
 0x416   : > { %v6011_v0 = vpop.f32.mrf.mxu2  ;;  %v1520_v45 = vadd.f32 %v1519_v14, %v5877_v4 }
 0x418   : > { %v6013_v3 = vpop.f32.mrf.mxu1 }
 0x41a   : > { %4093 = vmatmul.msk.bf16.gmra.mxu3 %vm6623_vm0, %v5785_v59 }
 0x41d   : > { %v1377_v48 = vpop.f32.mrf.mxu3 }
 0x41e   : > { %v1848_v37 = vpop.f32.mrf.mxu2  ;;  %v6021_v63 = vadd.f32 %v1377_v48, %v1280_v27  ;;  %v1518_v27 = vadd.f32 %v1517_v16, %v5871_v2  ;;  %v1523_v16 = vadd.f32 %v1522_v22, %v5885_v8 }
 0x41f   : > { %v6017_v15 = vadd.f32 %v1848_v37, %v1775_v10 }
 0x420   : > { %v6019_v47 = vpop.f32.mrf.mxu1 }
 0x423   : > { %4163 = vmatmul.msk.bf16.gmra.mxu1 %vm6623_vm0, %v5835_v18 }
 0x425   : > { %v1379_v49 = vpop.f32.mrf.mxu3 }
 0x428   : > { %v6025_v11 = vpop.f32.mrf.mxu1 }
 0x42a   : > { %4094 = vmatmul.msk.bf16.gmra.mxu3 %vm6623_vm0, %v5919_v28 }
 0x42d   : > { %v6029_v30 = vpop.f32.mrf.mxu3 }
 0x42e   : > { %6675 = vst [vmem:[#allocation27_spill] sm:$0xff] %v6029_v30 }
 0x430   : > { %v6031_v1 = vpop.f32.mrf.mxu1 }
 0x433   : > { %4164 = vmatmul.msk.bf16.gmra.mxu1 %vm6623_vm0, %v5849_v61 }
 0x435   : > { %v1383_v39 = vpop.f32.mrf.mxu3 }
 0x438   : > { %v6035_v50 = vpop.f32.mrf.mxu1 }
 0x43d   : > { %v1599_v53 = vpop.f32.mrf.mxu3 }
 0x43e   : > { %v1639_v58 = vadd.f32 %v1599_v53, %v1518_v27 }
 0x440   : > { %v6038_v18 = vpop.f32.mrf.mxu1  ;;  %v1672_v61 = vrot.slane %v1639_v58, 1 }
 0x443   : > { %4165 = vmatmul.msk.bf16.gmra.mxu1 %vm6623_vm0, %v5785_v59  ;;  %v1525_v59 = vadd.f32 %v1524_v51, %v5893_v44 }
 0x445   : > { %v1601_v10 = vpop.f32.mrf.mxu3 }
 0x446   : > { %v1640_v48 = vadd.f32 %v1601_v10, %v1520_v45 }
 0x448   : > { %v6043_v37 = vpop.f32.mrf.mxu1  ;;  %v1673_v49 = vrot.slane %v1640_v48, 1  ;;  %v6058_v48 = vld [vmem:[#allocation12 + $0x18] sm:$0xff] }
 0x449   : > { %2084 = vmatpush.xpose.msrb.mxu3 %v6058_v48  ;;  %2115 = vmatpush.msrb.mxu0 %v6058_v48 }
 0x44a   : > { %v1674_v39 = vsel %vm6622_vm1, %v1672_v61, %v1673_v49  ;;  %2165 = vmatpush.xpose.msrb.mxu2 %v6058_v48  ;;  %v1837_v61 = vadd.f32 %v5983_v32, %v5975_v19 }
 0x44b   : > { %v1704_v2 = vadd.f32 %v1674_v39, %v5895_v46  ;;  %v1386_v46 = vadd.f32 %v5887_v12, %v5911_v29  ;;  %v1530_v12 = vadd.f32 %v5997_v25, %v5909_v26  ;;  %v1533_v25 = vadd.f32 %v6003_v56, %v5917_v34 }
 0x44d   : > { %v1604_v30 = vpop.f32.mrf.mxu3 }
 0x44e   : > { %v1641_v53 = vadd.f32 %v1604_v30, %v1523_v16  ;;  %v1528_v30 = vadd.f32 %v1527_v9, %v5901_v20 }
 0x450   : > { %v6048_v27 = vpop.f32.mrf.mxu1  ;;  %v1675_v45 = vrot.slane %v1641_v53, 1 }
 0x453   : > { %4166 = vmatmul.msk.bf16.gmra.mxu1 %vm6623_vm0, %v5919_v28 }
 0x455   : > { %v1606_v4 = vpop.f32.mrf.mxu3 }
 0x456   : > { %v1642_v58 = vadd.f32 %v1606_v4, %v1525_v59 }
 0x458   : > { %v6053_v14 = vpop.f32.mrf.mxu1  ;;  %v1676_v10 = vrot.slane %v1642_v58, 1  ;;  %v1387_v58 = vadd.f32 %v5903_v21, %v5929_v43 }
 0x45a   : > { %v1677_v8 = vsel %vm6622_vm1, %v1675_v45, %v1676_v10 }
 0x45b   : > { %v1705_v22 = vadd.f32 %v1677_v8, %v1386_v46  ;;  %v1842_v8 = vadd.f32 %v5995_v24, %v5987_v31 }
 0x45d   : > { %v1609_v44 = vpop.f32.mrf.mxu3 }
 0x45e   : > { %v1643_v51 = vadd.f32 %v1609_v44, %v1528_v30  ;;  %v1535_v30 = vadd.f32 %v6013_v3, %v5927_v40 }
 0x460   : > { %v1918_v28 = vpop.f32.mrf.mxu1  ;;  %v1678_v9 = vrot.slane %v1643_v51, 1 }
 0x461   : > { %v1958_v29 = vadd.f32 %v1918_v28, %v1837_v61  ;;  %v1851_v28 = vpop.f32.mrf.mxu2  ;;  %v1778_v61 = vpop.f32.mrf.mxu0 }
 0x463   : > { %v1991_v59 = vrot.slane %v1958_v29, 2 }
 0x465   : > { %v1611_v49 = vpop.f32.mrf.mxu3 }
 0x466   : > { %v1644_v16 = vadd.f32 %v1611_v49, %v1530_v12  ;;  %v1388_v49 = vadd.f32 %v5921_v33, %v5945_v52  ;;  %v1847_v33 = vadd.f32 %v6011_v0, %v6009_v38  ;;  %v1538_v52 = vadd.f32 %v6019_v47, %v5935_v17 }
 0x467   : > { %v1389_v38 = vadd.f32 %v5937_v41, %v5957_v6  ;;  %v1545_v41 = vadd.f32 %v6035_v50, %v5955_v42  ;;  %v2056_v50 = vld [vmem:[#allocation12 + $0x8] sm:$0xff] }
 0x468   : > { %v1920_v39 = vpop.f32.mrf.mxu1  ;;  %v1679_v53 = vrot.slane %v1644_v16, 1 }
 0x469   : > { %v1959_v20 = vadd.f32 %v1920_v39, %v5989_v35  ;;  %v6088_v39 = vld [vmem:[#allocation12 + $0x10] sm:$0xff] }
 0x46a   : > { %v1680_v45 = vsel %vm6622_vm1, %v1678_v9, %v1679_v53  ;;  %2085 = vmatpush.xpose.msrb.mxu3 %v6088_v39  ;;  %2116 = vmatpush.msrb.mxu0 %v6088_v39  ;;  %v1780_v9 = vpop.f32.mrf.mxu0 }
 0x46b   : > { %v1992_v4 = vrot.slane %v1959_v20, 2  ;;  %v1706_v32 = vadd.f32 %v1680_v45, %v1387_v58  ;;  %2166 = vmatpush.xpose.msrb.mxu2 %v6088_v39  ;;  %v1853_v20 = vpop.f32.mrf.mxu2 }
 0x46c   : > { %2117 = vmatpush.msrb.mxu0 %v2056_v50 }
 0x46d   : > { %v1993_v19 = vsel %vm6621_vm11, %v1991_v59, %v1992_v4  ;;  %v1614_v10 = vpop.f32.mrf.mxu3 }
 0x46e   : > { %v6073_v26 = vadd.f32 %v1993_v19, %v1704_v2  ;;  %v1645_v46 = vadd.f32 %v1614_v10, %v1533_v25  ;;  %2086 = vmatpush.xpose.msrb.mxu3 %v2056_v50 }
 0x46f   : > { %2167 = vmatpush.xpose.msrb.mxu2 %v2056_v50 }
 0x470   : > { %v1923_v35 = vpop.f32.mrf.mxu1  ;;  %v1681_v12 = vrot.slane %v1645_v46, 1 }
 0x471   : > { %v1960_v21 = vadd.f32 %v1923_v35, %v1842_v8 }
 0x472   : > { %v6110_v8 = vpop.f32.mrf.mxu0 }
 0x473   : > { %v1994_v34 = vrot.slane %v1960_v21, 2  ;;  %v6102_v0 = vpop.f32.mrf.mxu2  ;;  %v1852_v21 = vadd.f32 %v1851_v28, %v1778_v61 }
 0x475   : > { %v1616_v43 = vpop.f32.mrf.mxu3 }
 0x476   : > { %v1646_v51 = vadd.f32 %v1616_v43, %v1535_v30  ;;  %v1543_v43 = vadd.f32 %v6031_v1, %v5951_v57 }
 0x478   : > { %v1925_v44 = vpop.f32.mrf.mxu1  ;;  %v1682_v29 = vrot.slane %v1646_v51, 1 }
 0x479   : > { %v1961_v2 = vadd.f32 %v1925_v44, %v6001_v55  ;;  %v1854_v44 = vadd.f32 %v1853_v20, %v1780_v9 }
 0x47a   : > { %v1683_v31 = vsel %vm6622_vm1, %v1681_v12, %v1682_v29 }
 0x47b   : > { %v1995_v56 = vrot.slane %v1961_v2, 2  ;;  %v1707_v40 = vadd.f32 %v1683_v31, %v1388_v49  ;;  %v6116_v6 = vpop.f32.mrf.mxu2 }
 0x47d   : > { %v1996_v24 = vsel %vm6621_vm11, %v1994_v34, %v1995_v56  ;;  %v1619_v55 = vpop.f32.mrf.mxu3 }
 0x47e   : > { %v6086_v3 = vadd.f32 %v1996_v24, %v1705_v22  ;;  %v1540_v22 = vadd.f32 %v6025_v11, %v5943_v54  ;;  %v1647_v53 = vadd.f32 %v1619_v55, %v1538_v52  ;;  %v1550_v52 = vadd.f32 %v6043_v37, %v5967_v13 }
 0x47f   : > { %v1555_v37 = vadd.f32 %v6053_v14, %v5979_v60 }
 0x480   : > { %v1928_v16 = vpop.f32.mrf.mxu1  ;;  %v1684_v25 = vrot.slane %v1647_v53, 1 }
 0x481   : > { %v1962_v59 = vadd.f32 %v1928_v16, %v1847_v33  ;;  %v1548_v33 = vadd.f32 %v6038_v18, %v5963_v23  ;;  %v1553_v23 = vadd.f32 %v6048_v27, %v5973_v7 }
 0x483   : > { %v1997_v35 = vrot.slane %v1962_v59, 2  ;;  %v1861_v20 = vpop.f32.mrf.mxu2 }
 0x485   : > { %v1621_v4 = vpop.f32.mrf.mxu3 }
 0x486   : > { %v1648_v45 = vadd.f32 %v1621_v4, %v1540_v22 }
 0x488   : > { %v1930_v58 = vpop.f32.mrf.mxu1  ;;  %v1685_v10 = vrot.slane %v1648_v45, 1 }
 0x489   : > { %v1963_v19 = vadd.f32 %v1930_v58, %v6017_v15 }
 0x48a   : > { %v1686_v17 = vsel %vm6622_vm1, %v1684_v25, %v1685_v10 }
 0x48b   : > { %v1998_v46 = vrot.slane %v1963_v19, 2  ;;  %v6106_v47 = vadd.f32 %v1686_v17, %v1389_v38  ;;  %v1863_v58 = vpop.f32.mrf.mxu2 }
 0x48d   : > { %v1999_v54 = vsel %vm6621_vm11, %v1997_v35, %v1998_v46  ;;  %v1624_v15 = vpop.f32.mrf.mxu3  ;;  %v2055_v46 = vld [vmem:[#allocation12] sm:$0xff] }
 0x48e   : > { %v6108_v11 = vadd.f32 %v1999_v54, %v1706_v32  ;;  %v1649_v51 = vadd.f32 %v1624_v15, %v1543_v43  ;;  %v1785_v32 = vpop.f32.mrf.mxu0  ;;  %2087 = vmatpush.xpose.msrb.mxu3 %v2055_v46  ;;  %2118 = vmatpush.msrb.mxu0 %v2055_v46  ;;  %v1284_v15 = vadd.f32 %v5991_v36, %v5879_v5 }
 0x48f   : > { %2168 = vmatpush.xpose.msrb.mxu2 %v2055_v46 }
 0x490   : > { %v1933_v30 = vpop.f32.mrf.mxu1  ;;  %v1687_v49 = vrot.slane %v1649_v51, 1 }
 0x491   : > { %v1964_v2 = vadd.f32 %v1933_v30, %v1852_v21  ;;  %v6676_v30 = vld [vmem:[#allocation27_spill] sm:$0xff] }
 0x492   : > { %2190 = vmatpush.msra.mxu3 %v6058_v48  ;;  %v1392_v21 = vadd.f32 %v6676_v30, %v1284_v15 }
 0x493   : > { %v2000_v24 = vrot.slane %v1964_v2, 2  ;;  %v1866_v13 = vpop.f32.mrf.mxu2 }
 0x494   : > { %2191 = vmatpush.msra.mxu3 %v6088_v39  ;;  %v1857_v39 = vadd.f32 %v6102_v0, %v6110_v8  ;;  %v4724_v0 = vld [vmem:[%s6605_s6] ss:$0 sm:$0xff] }
 0x495   : > { %v1626_v12 = vpop.f32.mrf.mxu3 }
 0x496   : > { %v1650_v34 = vadd.f32 %v1626_v12, %v1545_v41  ;;  %v1788_v9 = vpop.f32.mrf.mxu0  ;;  %2192 = vmatpush.msra.mxu3 %v2056_v50  ;;  %v1859_v41 = vadd.f32 %v6116_v6, %v1785_v32 }
 0x497   : > { %v1862_v36 = vadd.f32 %v1861_v20, %v1788_v9 }
 0x498   : > { %v1935_v29 = vpop.f32.mrf.mxu1  ;;  %v1688_v31 = vrot.slane %v1650_v34, 1  ;;  %2193 = vmatpush.msra.mxu3 %v2055_v46 }
 0x499   : > { %v1965_v56 = vadd.f32 %v1935_v29, %v1854_v44 }
 0x49a   : > { %v1689_v61 = vsel %vm6622_vm1, %v1687_v49, %v1688_v31 }
 0x49b   : > { %v2001_v28 = vrot.slane %v1965_v56, 2  ;;  %v6121_v1 = vadd.f32 %v1689_v61, %v6005_v62  ;;  %v1868_v44 = vpop.f32.mrf.mxu2 }
 0x49d   : > { %v2002_v57 = vsel %vm6621_vm11, %v2000_v24, %v2001_v28  ;;  %v1629_v55 = vpop.f32.mrf.mxu3 }
 0x49e   : > { %v6123_v42 = vadd.f32 %v2002_v57, %v1707_v40  ;;  %v1651_v22 = vadd.f32 %v1629_v55, %v1548_v33  ;;  %v1790_v45 = vpop.f32.mrf.mxu0 }
 0x49f   : > { %v1864_v51 = vadd.f32 %v1863_v58, %v1790_v45 }
 0x4a0   : > { %v1938_v16 = vpop.f32.mrf.mxu1  ;;  %v1690_v40 = vrot.slane %v1651_v22, 1  ;;  %v4725_v22 = vld [vmem:[%s530_s19] ss:$0 sm:$0xff]  ;;  %v2038_v58 = vadd.f32 %v4724_v0, %v6123_v42 }
 0x4a1   : > { %v1966_v29 = vadd.f32 %v1938_v16, %v1857_v39  ;;  %v2036_v16 = vadd.f32 %v4724_v0, %v6086_v3 }
 0x4a3   : > { %v1871_v56 = vpop.f32.mrf.mxu2  ;;  %v2003_v57 = vrot.slane %v1966_v29, 2  ;;  %v5115_v29 = vmov 256.0  }
 0x4a4   : > { %4765 = vrcp.f32 %v5115_v29 }
 0x4a5   : > { %v1631_v53 = vpop.f32.mrf.mxu3 }
 0x4a6   : > { %v1652_v59 = vadd.f32 %v1631_v53, %v1550_v52  ;;  %v1793_v18 = vpop.f32.mrf.mxu0  ;;  %v2035_v52 = vadd.f32 %v4724_v0, %v6073_v26  ;;  %v2037_v53 = vadd.f32 %v4724_v0, %v6108_v11 }
 0x4a7   : > { %v1867_v49 = vadd.f32 %v1866_v13, %v1793_v18  ;;  %v2050_v18 = vadd.f32 %v4725_v22, %v2038_v58 }
 0x4a8   : > { %v1940_v62 = vpop.f32.mrf.mxu1  ;;  %v1691_v4 = vrot.slane %v1652_v59, 1 }
 0x4a9   : > { %v1967_v2 = vadd.f32 %v1940_v62, %v1859_v41 }
 0x4aa   : > { %v1692_v19 = vsel %vm6622_vm1, %v1690_v40, %v1691_v4  ;;  %v2048_v4 = vadd.f32 %v4725_v22, %v2036_v16 }
 0x4ab   : > { %v6131_v25 = vadd.f32 %v1692_v19, %v6021_v63  ;;  %v2004_v31 = vrot.slane %v1967_v2, 2  ;;  %v1873_v40 = vpop.f32.mrf.mxu2 }
 0x4ad   : > { %v1634_v10 = vpop.f32.mrf.mxu3  ;;  %v2005_v8 = vsel %vm6621_vm11, %v2003_v57, %v2004_v31 }
 0x4ae   : > { %v1653_v38 = vadd.f32 %v1634_v10, %v1553_v23  ;;  %v1795_v14 = vpop.f32.mrf.mxu0  ;;  %v2027_v62 = vadd.f32 %v2005_v8, %v6106_v47  ;;  %v2047_v10 = vadd.f32 %v4725_v22, %v2035_v52 }
 0x4af   : > { %v1869_v12 = vadd.f32 %v1868_v44, %v1795_v14 }
 0x4b0   : > { %v1943_v35 = vpop.f32.mrf.mxu1  ;;  %v1693_v7 = vrot.slane %v1653_v38, 1  ;;  %v2039_v46 = vadd.f32 %v4724_v0, %v2027_v62  ;;  %v2059_v11 = vadd.f32 %v2048_v4, %v2047_v10 }
 0x4b1   : > { %v1968_v24 = vadd.f32 %v1943_v35, %v1862_v36  ;;  %v2049_v35 = vadd.f32 %v4725_v22, %v2037_v53 }
 0x4b3   : > { %v2006_v32 = vrot.slane %v1968_v24, 2 }
 0x4b5   : > { %v1636_v17 = vpop.f32.mrf.mxu3 }
 0x4b6   : > { %v1654_v54 = vadd.f32 %v1636_v17, %v1555_v37  ;;  %v1798_v61 = vpop.f32.mrf.mxu0  ;;  %v2060_v17 = vadd.f32 %v2059_v11, %v2049_v35 }
 0x4b7   : > { %v1872_v45 = vadd.f32 %v1871_v56, %v1798_v61 }
 0x4b8   : > { %v1945_v63 = vpop.f32.mrf.mxu1  ;;  %v1694_v27 = vrot.slane %v1654_v54, 1 }
 0x4b9   : > { %v1969_v34 = vadd.f32 %v1945_v63, %v1864_v51  ;;  %v2051_v63 = vadd.f32 %v4725_v22, %v2039_v46 }
 0x4ba   : > { %v1695_v48 = vsel %vm6622_vm1, %v1693_v7, %v1694_v27 }
 0x4bb   : > { %v1711_v43 = vadd.f32 %v1695_v48, %v1392_v21  ;;  %v2007_v50 = vrot.slane %v1969_v34, 2  ;;  %v4766_v34 = vpop.eup %4765 }
 0x4bc   : > { %v2093_v56 = vmul.f32 256.0, %v4766_v34  ;;  %vm2097_vm3 = vweird.f32 %v4766_v34 }
 0x4bd   : > { %v2008_v9 = vsel %vm6621_vm11, %v2006_v32, %v2007_v50 }
 0x4be   : > { %v2028_v3 = vadd.f32 %v2008_v9, %v6121_v1  ;;  %v1800_v19 = vpop.f32.mrf.mxu0  ;;  %v2061_v1 = vadd.f32 %v2060_v17, %v2050_v18 }
 0x4bf   : > { %v1874_v23 = vadd.f32 %v1873_v40, %v1800_v19 }
 0x4c0   : > { %v1948_v60 = vpop.f32.mrf.mxu1  ;;  %v2040_v47 = vadd.f32 %v4724_v0, %v2028_v3  ;;  %v2062_v30 = vadd.f32 %v2061_v1, %v2051_v63  ;;  %v4542_v1 = vld [vmem:[#allocation13 + $0xf8] sm:$0xff] }
 0x4c1   : > { %v1970_v6 = vadd.f32 %v1948_v60, %v1867_v49  ;;  %v2094_v49 = vsub.f32 1.0, %v2093_v56  ;;  %2576 = vmatpush.bf16.msra.mxu0 %v4542_v1 }
 0x4c2   : > { %v2052_v7 = vadd.f32 %v4725_v22, %v2040_v47 }
 0x4c3   : > { %v2009_v33 = vrot.slane %v1970_v6, 2  ;;  %v2095_v31 = vmul.f32 %v4766_v34, %v2094_v49  ;;  %v4547_v49 = vld [vmem:[#allocation13 + $0x1a0] sm:$0xff] }
 0x4c5   : > { %v2096_v24 = vadd.f32 %v4766_v34, %v2095_v31  ;;  %v4563_v31 = vld [vmem:[#allocation13 + $0x120] sm:$0xff] }
 0x4c8   : > { %v1950_v5 = vpop.f32.mrf.mxu1 }
 0x4c9   : > { %v1971_v28 = vadd.f32 %v1950_v5, %v1869_v12 }
 0x4cb   : > { %v2010_v55 = vrot.slane %v1971_v28, 2 }
 0x4cd   : > { %v2011_v59 = vsel %vm6621_vm11, %v2009_v33, %v2010_v55 }
 0x4ce   : > { %v2029_v26 = vadd.f32 %v2011_v59, %v6131_v25  ;;  %v2063_v25 = vadd.f32 %v2062_v30, %v2052_v7  ;;  %v4566_v30 = vld [vmem:[#allocation13 + $0x138] sm:$0xff] }
 0x4cf   : > { %2902 = vmatpush.bf16.msra.mxu1 %v4566_v30  ;;  %v4558_v30 = vld [vmem:[#allocation13 + $0x78] sm:$0xff] }
 0x4d0   : > { %v1953_v20 = vpop.f32.mrf.mxu1  ;;  %v2041_v54 = vadd.f32 %v4724_v0, %v2029_v26 }
 0x4d1   : > { %v1972_v13 = vadd.f32 %v1953_v20, %v1872_v45 }
 0x4d2   : > { %v2053_v21 = vadd.f32 %v4725_v22, %v2041_v54 }
 0x4d3   : > { %v2012_v42 = vrot.slane %v1972_v13, 2 }
 0x4d4   : > { %v2064_v60 = vadd.f32 %v2063_v25, %v2053_v21  ;;  %v4549_v25 = vld [vmem:[#allocation13 + $0x1b0] sm:$0xff] }
 0x4d8   : > { %v1955_v37 = vpop.f32.mrf.mxu1 }
 0x4d9   : > { %v1973_v38 = vadd.f32 %v1955_v37, %v1874_v23 }
 0x4db   : > { %v2013_v15 = vrot.slane %v1973_v38, 2 }
 0x4dd   : > { %v2014_v27 = vsel %vm6621_vm11, %v2012_v42, %v2013_v15  ;;  %v4534_v42 = vld [vmem:[#allocation13 + $0x38] sm:$0xff] }
 0x4de   : > { %v2030_v48 = vadd.f32 %v2014_v27, %v1711_v43  ;;  %v2098_v43 = vsel %vm2097_vm3, %v4766_v34, %v2096_v24  ;;  %2665 = vmatpush.bf16.msra.mxu2 %v4534_v42  ;;  %v4550_v27 = vld [vmem:[#allocation13 + $0x1b8] sm:$0xff]  ;;  %v4539_v34 = vld [vmem:[#allocation13 + $0xe0] sm:$0xff] }
 0x4df   : > { %v4559_v42 = vld [vmem:[#allocation13 + $0x100] sm:$0xff] }
 0x4e0   : > { %v2042_v44 = vadd.f32 %v4724_v0, %v2030_v48  ;;  %v4541_v48 = vld [vmem:[#allocation13 + $0xf0] sm:$0xff] }
 0x4e1   : > { %2577 = vmatpush.bf16.msra.mxu0 %v4541_v48 }
 0x4e2   : > { %v2054_v14 = vadd.f32 %v4725_v22, %v2042_v44  ;;  %v4565_v44 = vld [vmem:[#allocation13 + $0x130] sm:$0xff] }
 0x4e3   : > { %2903 = vmatpush.bf16.msra.mxu1 %v4565_v44 }
 0x4e4   : > { %v2065_v41 = vadd.f32 %v2064_v60, %v2054_v14 }
 0x4e6   : > { %v2066_v39 = vrot.slane %v2065_v41, 4 }
 0x4e8   : > { %v2067_v51 = vadd.f32 %v2066_v39, %v2065_v41  ;;  %v4540_v39 = vld [vmem:[#allocation13 + $0xe8] sm:$0xff] }
 0x4e9   : > { %2578 = vmatpush.bf16.msra.mxu0 %v4540_v39 }
 0x4ea   : > { %v2068_v2 = vrot.slane %v2067_v51, 2 }
 0x4ec   : > { %v2069_v5 = vadd.f32 %v2068_v2, %v2067_v51  ;;  %v4548_v51 = vld [vmem:[#allocation13 + $0x1a8] sm:$0xff] }
 0x4ed   : > { %v4564_v2 = vld [vmem:[#allocation13 + $0x128] sm:$0xff]  ;;  %2579 = vmatpush.bf16.msra.mxu0 %v4539_v34 }
 0x4ee   : > { %v2070_v36 = vrot.slane %v2069_v5, 1  ;;  %2904 = vmatpush.bf16.msra.mxu1 %v4564_v2 }
 0x4f0   : > { %v2071_v12 = vadd.f32 %v2070_v36, %v2069_v5  ;;  %v2174_v5 = vld [vmem:[%s6606_s7] sm:$0x1] }
 0x4f2   : > { %2088 = vmatmul.f32.vlgmr.msrb.gmra.mxu3 %v2071_v12  ;;  %v4531_v12 = vld [vmem:[#allocation13 + $0x20] sm:$0xff]  ;;  %2905 = vmatpush.bf16.msra.mxu1 %v4563_v31 }
 0x4f3   : > { %2771 = vmatpush.bf16.msrb.mxu3 %v4550_v27 }
 0x4f7   : > { %2772 = vmatpush.bf16.msrb.mxu3 %v4549_v25 }
 0x4fb   : > { %2773 = vmatpush.bf16.msrb.mxu3 %v4548_v51 }
 0x4ff   : > { %2774 = vmatpush.bf16.msrb.mxu3 %v4547_v49 }
 0x575   : > { %v2089_v28 = vpop.f32.mrf.mxu3 }
 0x576   : > { %v2099_v61 = vmul.f32 %v2098_v43, %v2089_v28  ;;  %v4530_v28 = vld [vmem:[#allocation13 + $0x18] sm:$0xff] }
 0x578   : > { %4167 = vmatmul.msk.f32.vlgmr.msrb.gmra.mxu0 %vm683_vm2, %v2099_v61  ;;  %v4538_v61 = vld [vmem:[#allocation13 + $0xd8] sm:$0xff] }
 0x579   : > { %2580 = vmatpush.bf16.msra.mxu0 %v4538_v61 }
 0x5f5   : > { %v2120_v57 = vpop.f32.mrf.mxu0 }
 0x5f6   : > { %v2123_v50 = vperm.slane %v2120_v57, 0 }
 0x5f8   : > { %v6163_v6 = vsub.f32 %v2047_v10, %v2123_v50  ;;  %v6165_v0 = vsub.f32 %v2048_v4, %v2123_v50  ;;  %v6167_v8 = vsub.f32 %v2049_v35, %v2123_v50  ;;  %v6169_v32 = vsub.f32 %v2050_v18, %v2123_v50 }
 0x5f9   : > { %v6175_v20 = vsub.f32 %v2051_v63, %v2123_v50  ;;  %v6179_v52 = vsub.f32 %v2052_v7, %v2123_v50  ;;  %v6183_v62 = vsub.f32 %v2053_v21, %v2123_v50  ;;  %v6187_v4 = vsub.f32 %v2054_v14, %v2123_v50  ;;  %v4533_v7 = vld [vmem:[#allocation13 + $0x30] sm:$0xff]  ;;  %v4532_v14 = vld [vmem:[#allocation13 + $0x28] sm:$0xff] }
 0x5fa   : > { %v2132_v55 = vmul.f32 %v6163_v6, %v6163_v6  ;;  %v2133_v16 = vmul.f32 %v6165_v0, %v6165_v0  ;;  %v2134_v9 = vmul.f32 %v6167_v8, %v6167_v8  ;;  %v2135_v22 = vmul.f32 %v6169_v32, %v6169_v32  ;;  %2666 = vmatpush.bf16.msra.mxu2 %v4533_v7  ;;  %v4801_v7 = vld [vmem:[#allocation3] sm:$0xff] }
 0x5fb   : > { %v2136_v59 = vmul.f32 %v6175_v20, %v6175_v20  ;;  %v2137_v58 = vmul.f32 %v6179_v52, %v6179_v52  ;;  %v2138_v45 = vmul.f32 %v6183_v62, %v6183_v62  ;;  %v2139_v10 = vmul.f32 %v6187_v4, %v6187_v4 }
 0x5fc   : > { %v2140_v33 = vadd.f32 %v2133_v16, %v2132_v55  ;;  %v4546_v55 = vld [vmem:[#allocation13 + $0x198] sm:$0xff]  ;;  %v6234_v27 = vpack.c.bf16 %v4801_v7, %v4801_v7 }
 0x5fd   : > { %v4562_v16 = vld [vmem:[#allocation13 + $0x118] sm:$0xff]  ;;  %2775 = vmatpush.bf16.msrb.mxu3 %v4546_v55 }
 0x5fe   : > { %v2141_v53 = vadd.f32 %v2140_v33, %v2134_v9  ;;  %2667 = vmatpush.bf16.msra.mxu2 %v4532_v14  ;;  %2906 = vmatpush.bf16.msra.mxu1 %v4562_v16 }
 0x600   : > { %v2142_v40 = vadd.f32 %v2141_v53, %v2135_v22 }
 0x602   : > { %v2143_v3 = vadd.f32 %v2142_v40, %v2136_v59  ;;  %2668 = vmatpush.bf16.msra.mxu2 %v4531_v12 }
 0x604   : > { %v2144_v19 = vadd.f32 %v2143_v3, %v2137_v58  ;;  %v4545_v3 = vld [vmem:[#allocation13 + $0x190] sm:$0xff] }
 0x605   : > { %2776 = vmatpush.bf16.msrb.mxu3 %v4545_v3 }
 0x606   : > { %v2145_v35 = vadd.f32 %v2144_v19, %v2138_v45  ;;  %2669 = vmatpush.bf16.msra.mxu2 %v4530_v28  ;;  %v4561_v45 = vld [vmem:[#allocation13 + $0x110] sm:$0xff] }
 0x607   : > { %2907 = vmatpush.bf16.msra.mxu1 %v4561_v45 }
 0x608   : > { %v2146_v46 = vadd.f32 %v2145_v35, %v2139_v10 }
 0x60a   : > { %v2147_v26 = vrot.slane %v2146_v46, 4 }
 0x60c   : > { %v2148_v23 = vadd.f32 %v2147_v26, %v2146_v46  ;;  %v4528_v26 = vld [vmem:[#allocation13 + $0x8] sm:$0xff] }
 0x60e   : > { %v2149_v13 = vrot.slane %v2148_v23, 2 }
 0x610   : > { %v2150_v11 = vadd.f32 %v2149_v13, %v2148_v23 }
 0x612   : > { %v2151_v18 = vrot.slane %v2150_v11, 1 }
 0x614   : > { %v2152_v47 = vadd.f32 %v2151_v18, %v2150_v11  ;;  %v4536_v11 = vld [vmem:[#allocation13 + $0xc8] sm:$0xff] }
 0x616   : > { %2169 = vmatmul.f32.vlgmr.msrb.gmra.mxu2 %v2152_v47  ;;  %v4544_v47 = vld [vmem:[#allocation13 + $0x188] sm:$0xff] }
 0x617   : > { %2777 = vmatpush.bf16.msrb.mxu3 %v4544_v47 }
 0x699   : > { %v2170_v37 = vpop.f32.mrf.mxu2 }
 0x69a   : > { %v2173_v38 = vmul.f32 %v2170_v37, %v2098_v43  ;;  %v4726_v43 = vld [vmem:[%s6677_s17] ss:$0 sm:$0xff]  ;;  %v4560_v37 = vld [vmem:[#allocation13 + $0x108] sm:$0xff] }
 0x69b   : > { %2908 = vmatpush.bf16.msra.mxu1 %v4560_v37 }
 0x69c   : > { %4168 = vmatmul.msk.f32.vlgmr.msra.gmra.mxu3 %vm683_vm2, %v2173_v38 }
 0x69f   : > { %2909 = vmatpush.bf16.msra.mxu1 %v4559_v42  ;;  %v4557_v42 = vld [vmem:[#allocation13 + $0x70] sm:$0xff] }
 0x71f   : > { %v2195_v17 = vpop.f32.mrf.mxu3 }
 0x720   : > { %v2196_v63 = vadd.f32 1e-06, %v2195_v17 }
 0x722   : > { %4767 = vrsqrt.f32 %v2196_v63  ;;  %vm2204_vm4 = vweird.f32 %v2196_v63 }
 0x728   : > { %v4768_v54 = vpop.eup %4767 }
 0x729   : > { %v2199_v15 = vmul.f32 %v4768_v54, %v2196_v63  ;;  %vm2205_vm2 = vweird.f32 %v4768_v54 }
 0x72a   : > { %vm2206_vm13 = vmor %vm2204_vm4, %vm2205_vm2 }
 0x72b   : > { %v2200_v21 = vmul.f32 %v4768_v54, %v2199_v15 }
 0x72d   : > { %v2201_v60 = vmul.f32 0.5, %v2200_v21 }
 0x72f   : > { %v2202_v41 = vsub.f32 1.5, %v2201_v60 }
 0x731   : > { %v2203_v36 = vmul.f32 %v4768_v54, %v2202_v41 }
 0x733   : > { %v2207_v29 = vsel %vm2206_vm13, %v4768_v54, %v2203_v36  ;;  %v4543_v54 = vld [vmem:[#allocation13 + $0x180] sm:$0xff] }
 0x734   : > { %v2208_v56 = vmul.f32 %v2207_v29, %v2174_v5  ;;  %2778 = vmatpush.bf16.msrb.mxu3 %v4543_v54 }
 0x736   : > { %v2210_v24 = vperm.slane %v2208_v56, 0 }
 0x738   : > { %v2212_v57 = vmul.f32 %v2210_v24, %v6163_v6  ;;  %v2213_v50 = vmul.f32 %v2210_v24, %v6165_v0  ;;  %v2214_v9 = vmul.f32 %v2210_v24, %v6167_v8  ;;  %v2215_v33 = vmul.f32 %v2210_v24, %v6169_v32  ;;  %v4529_v6 = vld [vmem:[#allocation13 + $0x10] sm:$0xff] }
 0x739   : > { %v2216_v22 = vmul.f32 %v2210_v24, %v6175_v20  ;;  %v2217_v53 = vmul.f32 %v2210_v24, %v6179_v52  ;;  %v4537_v0 = vld [vmem:[#allocation13 + $0xd0] sm:$0xff]  ;;  %v2218_v46 = vmul.f32 %v2210_v24, %v6183_v62  ;;  %2670 = vmatpush.bf16.msra.mxu2 %v4529_v6  ;;  %v2219_v13 = vmul.f32 %v2210_v24, %v6187_v4  ;;  %v4527_v62 = vld [vmem:[#allocation13] sm:$0xff] }
 0x73a   : > { %v6208_v59 = vadd.f32 %v4726_v43, %v2212_v57  ;;  %v6210_v40 = vadd.f32 %v4726_v43, %v2213_v50  ;;  %v6212_v58 = vadd.f32 %v4726_v43, %v2214_v9  ;;  %v6214_v19 = vadd.f32 %v4726_v43, %v2215_v33  ;;  %2581 = vmatpush.bf16.msra.mxu0 %v4537_v0  ;;  %v4535_v4 = vld [vmem:[#allocation13 + $0xc0] sm:$0xff] }
 0x73b   : > { %v6216_v8 = vadd.f32 %v4726_v43, %v2216_v22  ;;  %v6218_v32 = vadd.f32 %v4726_v43, %v2217_v53  ;;  %v6228_v38 = vadd.f32 %v4726_v43, %v2218_v46  ;;  %v6230_v17 = vadd.f32 %v4726_v43, %v2219_v13 }
 0x73c   : > { %v4169_v20 = vmul.f32 -1.442695, %v6208_v59  ;;  %v4170_v52 = vmul.f32 -1.442695, %v6210_v40  ;;  %v4171_v10 = vmul.f32 -1.442695, %v6212_v58 }
 0x73d   : > { %v4172_v35 = vmul.f32 -1.442695, %v6214_v19  ;;  %v4173_v23 = vmul.f32 -1.442695, %v6216_v8  ;;  %v4174_v18 = vmul.f32 -1.442695, %v6218_v32  ;;  %2671 = vmatpush.bf16.msra.mxu2 %v4528_v26 }
 0x73e   : > { %4769 = vpow2.f32 %v4169_v20  ;;  %2582 = vmatpush.bf16.msra.mxu0 %v4536_v11  ;;  %v4175_v21 = vmul.f32 -1.442695, %v6228_v38  ;;  %v4176_v44 = vmul.f32 -1.442695, %v6230_v17 }
 0x73f   : > { %4771 = vpow2.f32 %v4170_v52 }
 0x740   : > { %4773 = vpow2.f32 %v4171_v10 }
 0x741   : > { %4775 = vpow2.f32 %v4172_v35  ;;  %2672 = vmatpush.bf16.msra.mxu2 %v4527_v62 }
 0x742   : > { %4777 = vpow2.f32 %v4173_v23  ;;  %2583 = vmatpush.bf16.msra.mxu0 %v4535_v4 }
 0x743   : > { %4779 = vpow2.f32 %v4174_v18 }
 0x744   : > { %v4770_v63 = vpop.eup %4769  ;;  %2673 = vmatmul.bf16.vlgmr.msra.gmra.mxu2 %v6234_v27 }
 0x745   : > { %v4772_v15 = vpop.eup %4771  ;;  %v6232_v1 = vadd.f32 1.0, %v4770_v63 }
 0x746   : > { %v4774_v48 = vpop.eup %4773  ;;  %v6237_v25 = vadd.f32 1.0, %v4772_v15  ;;  %2999 = vmatpush.bf16.msrb.mxu0 %v4558_v30 }
 0x747   : > { %v4776_v60 = vpop.eup %4775  ;;  %4781 = vrcp.f32 %v6232_v1  ;;  %v6243_v39 = vadd.f32 1.0, %v4774_v48  ;;  %v2273_v2 = vand.u32 2147483647, %v6232_v1  ;;  %v2275_v5 = vand.u32 2147483648, %v6232_v1 }
 0x748   : > { %v4778_v14 = vpop.eup %4777  ;;  %4783 = vrcp.f32 %v6237_v25  ;;  %v6245_v51 = vadd.f32 1.0, %v4776_v60  ;;  %v2288_v12 = vand.u32 2147483647, %v6237_v25  ;;  %vm2269_vm14 = vweird.f32 %v6232_v1 }
 0x749   : > { %v4780_v41 = vpop.eup %4779  ;;  %4785 = vpow2.f32 %v4175_v21  ;;  %v6249_v36 = vadd.f32 1.0, %v4778_v14  ;;  %v2290_v29 = vand.u32 2147483648, %v6237_v25  ;;  %vm2284_vm15 = vweird.f32 %v6237_v25 }
 0x74a   : > { %4787 = vpow2.f32 %v4176_v44  ;;  %v6256_v34 = vadd.f32 1.0, %v4780_v41  ;;  %v2305_v49 = vand.u32 2147483648, %v6243_v39  ;;  %v2320_v31 = vand.u32 2147483648, %v6245_v51  ;;  %3000 = vmatpush.bf16.msrb.mxu0 %v4557_v42 }
 0x74b   : > { %4789 = vrcp.f32 %v6243_v39  ;;  %vm6263_vm5 = vcmp.eq.f32.partialorder %v2273_v2, 8.507059e+37  ;;  %v2276_v61 = vor.u32 1.1754944e-38, %v2275_v5  ;;  %v2303_v57 = vand.u32 2147483647, %v6243_v39 }
 0x74c   : > { %4791 = vrcp.f32 %v6245_v51  ;;  %vm6269_vm6 = vcmp.eq.f32.partialorder %v2288_v12, 8.507059e+37  ;;  %v2318_v9 = vand.u32 2147483647, %v6245_v51  ;;  %v2335_v33 = vand.u32 2147483648, %v6249_v36 }
 0x74d   : > { %v4782_v56 = vpop.eup %4781  ;;  %4793 = vrcp.f32 %v6249_v36  ;;  %v2291_v6 = vor.u32 1.1754944e-38, %v2290_v29  ;;  %vm2299_vm8 = vweird.f32 %v6243_v39  ;;  %v2306_v45 = vor.u32 1.1754944e-38, %v2305_v49 }
 0x74e   : > { %v4784_v24 = vpop.eup %4783  ;;  %v2265_v43 = vmul.f32 %v4782_v56, %v6232_v1  ;;  %4795 = vrcp.f32 %v6256_v34  ;;  %vm2270_vm7 = vweird.f32 %v4782_v56  ;;  %vm2314_vm9 = vweird.f32 %v6245_v51 }
 0x74f   : > { %v4786_v50 = vpop.eup %4785  ;;  %v2280_v55 = vmul.f32 %v4784_v24, %v6237_v25  ;;  %v2321_v20 = vor.u32 1.1754944e-38, %v2320_v31  ;;  %vm2285_vm12 = vweird.f32 %v4784_v24  ;;  %vm6279_vm10 = vcmp.eq.f32.partialorder %v2303_v57, 8.507059e+37  ;;  %vm2271_vm13 = vmor %vm2269_vm14, %vm2270_vm7 }
 0x750   : > { %v4788_v22 = vpop.eup %4787  ;;  %v2266_v53 = vsub.f32 1.0, %v2265_v43  ;;  %vm2329_vm3 = vweird.f32 %v6249_v36  ;;  %v2333_v26 = vand.u32 2147483647, %v6249_v36  ;;  %vm6286_vm2 = vcmp.eq.f32.partialorder %v2318_v9, 8.507059e+37  ;;  %vm2286_vm0 = vmor %vm2284_vm15, %vm2285_vm12 }
 0x751   : > { %v4790_v0 = vpop.eup %4789  ;;  %v2281_v3 = vsub.f32 1.0, %v2280_v55  ;;  %v2336_v47 = vor.u32 1.1754944e-38, %v2335_v33  ;;  %v2348_v37 = vand.u32 2147483647, %v6256_v34  ;;  %v6298_v44 = vadd.f32 1.0, %v4786_v50 }
 0x752   : > { %v4792_v52 = vpop.eup %4791  ;;  %v2267_v10 = vmul.f32 %v4782_v56, %v2266_v53  ;;  %v2295_v35 = vmul.f32 %v4790_v0, %v6243_v39  ;;  %vm2300_vm4 = vweird.f32 %v4790_v0  ;;  %v2350_v31 = vand.u32 2147483648, %v6256_v34 }
 0x753   : > { %v4794_v23 = vpop.eup %4793  ;;  %v2282_v13 = vmul.f32 %v4784_v24, %v2281_v3  ;;  %v2310_v11 = vmul.f32 %v4792_v52, %v6245_v51  ;;  %vm2315_vm11 = vweird.f32 %v4792_v52  ;;  %vm2301_vm14 = vmor %vm2299_vm8, %vm2300_vm4  ;;  %4797 = vrcp.f32 %v6298_v44 }
 0x754   : > { %v2268_v62 = vadd.f32 %v4782_v56, %v2267_v10  ;;  %v2296_v4 = vsub.f32 1.0, %v2295_v35  ;;  %v2325_v63 = vmul.f32 %v4794_v23, %v6249_v36  ;;  %vm2330_vm1 = vweird.f32 %v4794_v23  ;;  %v4796_v7 = vpop.eup %4795 }
 0x755   : > { %v2283_v54 = vadd.f32 %v4784_v24, %v2282_v13  ;;  %v2311_v15 = vsub.f32 1.0, %v2310_v11  ;;  %v2340_v41 = vmul.f32 %v4796_v7, %v6256_v34  ;;  %v6315_v43 = vadd.f32 1.0, %v4788_v22  ;;  %vm2331_vm15 = vmor %vm2329_vm3, %vm2330_vm1 }
 0x756   : > { %v2272_v30 = vsel %vm2271_vm13, %v4782_v56, %v2268_v62  ;;  %v2297_v21 = vmul.f32 %v4790_v0, %v2296_v4  ;;  %v2326_v48 = vsub.f32 1.0, %v2325_v63  ;;  %v2351_v36 = vor.u32 1.1754944e-38, %v2350_v31 }
 0x757   : > { %v2277_v60 = vsel %vm6263_vm5, %v2276_v61, %v2272_v30  ;;  %v2287_v1 = vsel %vm2286_vm0, %v4784_v24, %v2283_v54  ;;  %v2312_v14 = vmul.f32 %v4792_v52, %v2311_v15  ;;  %v2341_v49 = vsub.f32 1.0, %v2340_v41  ;;  %vm2316_vm0 = vmor %vm2314_vm9, %vm2315_vm11  ;;  %v4574_v41 = vld [vmem:[#allocation13 + $0x1f8] sm:$0xff] }
 0x758   : > { %v2384_v2 = vmul.f32 %v2277_v60, %v6208_v59  ;;  %v2292_v5 = vsel %vm6269_vm6, %v2291_v6, %v2287_v1  ;;  %v2298_v12 = vadd.f32 %v4790_v0, %v2297_v21  ;;  %v2327_v25 = vmul.f32 %v4794_v23, %v2326_v48  ;;  %3113 = vmatpush.bf16.msrb.mxu2 %v4574_v41 }
 0x759   : > { %v2385_v29 = vmul.f32 %v2292_v5, %v6210_v40  ;;  %v2313_v56 = vadd.f32 %v4792_v52, %v2312_v14  ;;  %v2342_v28 = vmul.f32 %v4796_v7, %v2341_v49  ;;  %vm2345_vm5 = vweird.f32 %v4796_v7  ;;  %v4798_v33 = vpop.eup %4797  ;;  %v4571_v49 = vld [vmem:[#allocation13 + $0x1e0] sm:$0xff] }
 0x75a   : > { %2414 = vst [vmem:[#allocation3 + $0x11] sm:$0xff] %v2384_v2  ;;  %v2302_v24 = vsel %vm2301_vm14, %v4790_v0, %v2298_v12  ;;  %v2328_v59 = vadd.f32 %v4794_v23, %v2327_v25  ;;  %vm2334_vm11 = vcmp.eq.f32.partialorder %v2333_v26, 8.507059e+37  ;;  %vm2344_vm6 = vweird.f32 %v6256_v34  ;;  %v4553_v25 = vld [vmem:[#allocation13 + $0x50] sm:$0xff] }
 0x75b   : > { %2415 = vst [vmem:[#allocation3 + $0x21] sm:$0xff] %v2385_v29  ;;  %v2307_v40 = vsel %vm6279_vm10, %v2306_v45, %v2302_v24  ;;  %v2317_v39 = vsel %vm2316_vm0, %v4792_v52, %v2313_v56  ;;  %v2343_v16 = vadd.f32 %v4796_v7, %v2342_v28  ;;  %vm2346_vm8 = vmor %vm2344_vm6, %vm2345_vm5  ;;  %4799 = vrcp.f32 %v6315_v43  ;;  %v4573_v29 = vld [vmem:[#allocation13 + $0x1f0] sm:$0xff]  ;;  %v4572_v56 = vld [vmem:[#allocation13 + $0x1e8] sm:$0xff] }
 0x75c   : > { %v2386_v61 = vmul.f32 %v2307_v40, %v6212_v58  ;;  %v2322_v51 = vsel %vm6286_vm2, %v2321_v20, %v2317_v39  ;;  %v2332_v57 = vsel %vm2331_vm15, %v4794_v23, %v2328_v59  ;;  %vm2349_vm1 = vcmp.eq.f32.partialorder %v2348_v37, 8.507059e+37  ;;  %3114 = vmatpush.bf16.msrb.mxu2 %v4573_v29  ;;  %v4570_v40 = vld [vmem:[#allocation13 + $0x1d8] sm:$0xff] }
 0x75d   : > { %v2387_v50 = vmul.f32 %v2322_v51, %v6214_v19  ;;  %v2337_v55 = vsel %vm2334_vm11, %v2336_v47, %v2332_v57  ;;  %v2347_v58 = vsel %vm2346_vm8, %v4796_v7, %v2343_v16  ;;  %v2355_v0 = vmul.f32 %v4798_v33, %v6298_v44  ;;  %v4590_v39 = vld [vmem:[#allocation13 + $0x178] sm:$0xff]  ;;  %v4589_v51 = vld [vmem:[#allocation13 + $0x170] sm:$0xff]  ;;  %v4580_v16 = vld [vmem:[#allocation13 + $0xa8] sm:$0xff] }
 0x75e   : > { %2416 = vst [vmem:[#allocation3 + $0x31] sm:$0xff] %v2386_v61  ;;  %v2388_v9 = vmul.f32 %v2337_v55, %v6216_v8  ;;  %v2352_v22 = vsel %vm2349_vm1, %v2351_v36, %v2347_v58  ;;  %v2363_v10 = vand.u32 2147483647, %v6298_v44  ;;  %v2365_v35 = vand.u32 2147483648, %v6298_v44  ;;  %v4582_v28 = vld [vmem:[#allocation13 + $0xb8] sm:$0xff]  ;;  %v4569_v61 = vld [vmem:[#allocation13 + $0x1d0] sm:$0xff]  ;;  %3316 = vmatpush.bf16.msra.mxu3 %v4590_v39 }
 0x75f   : > { %2417 = vst [vmem:[#allocation3 + $0x41] sm:$0xff] %v2387_v50  ;;  %v2389_v19 = vmul.f32 %v2352_v22, %v6218_v32  ;;  %v2356_v20 = vsub.f32 1.0, %v2355_v0  ;;  %v4556_v32 = vld [vmem:[#allocation13 + $0x68] sm:$0xff]  ;;  %vm2360_vm7 = vweird.f32 %v4798_v33  ;;  %vm2359_vm9 = vweird.f32 %v6298_v44  ;;  %3413 = vmatpush.bf16.msrb.mxu1 %v4582_v28  ;;  %v4581_v57 = vld [vmem:[#allocation13 + $0xb0] sm:$0xff]  ;;  %v4579_v22 = vld [vmem:[#allocation13 + $0xa0] sm:$0xff] }
 0x760   : > { %2418 = vst [vmem:[#allocation3 + $0x51] sm:$0xff] %v2388_v9  ;;  %3001 = vmatpush.bf16.msrb.mxu0 %v4556_v32  ;;  %vm2361_vm12 = vmor %vm2359_vm9, %vm2360_vm7  ;;  %vm2364_vm10 = vcmp.eq.f32.partialorder %v2363_v10, 8.507059e+37  ;;  %v2366_v11 = vor.u32 1.1754944e-38, %v2365_v35  ;;  %v2380_v18 = vand.u32 2147483648, %v6315_v43  ;;  %v2378_v62 = vand.u32 2147483647, %v6315_v43  ;;  %3115 = vmatpush.bf16.msrb.mxu2 %v4572_v56 }
 0x761   : > { %v2446_v53 = vld [vmem:[#allocation3 + $0x10] sm:$0xff]  ;;  %v2447_v6 = vld [vmem:[#allocation3 + $0x18] sm:$0xff]  ;;  %2419 = vst [vmem:[#allocation3 + $0x61] sm:$0xff] %v2389_v19  ;;  %v4800_v52 = vpop.eup %4799  ;;  %v2357_v46 = vmul.f32 %v4798_v33, %v2356_v20  ;;  %vm2374_vm2 = vweird.f32 %v6315_v43  ;;  %v4567_v9 = vld [vmem:[#allocation13 + $0x1c0] sm:$0xff]  ;;  %vm6686_vm14 = vcmask 523264   ;;  %vm6687_vm0 = vcmask 1046528  }
 0x762   : > { %v6331_v34 = vpack.c.bf16 %v2447_v6, %v2446_v53  ;;  %v2471_v3 = vld [vmem:[#allocation3 + $0x20] sm:$0xff]  ;;  %v2472_v8 = vld [vmem:[#allocation3 + $0x28] sm:$0xff]  ;;  %v2370_v26 = vmul.f32 %v4800_v52, %v6315_v43  ;;  %vm2375_vm3 = vweird.f32 %v4800_v52  ;;  %v2381_v42 = vor.u32 1.1754944e-38, %v2380_v18  ;;  %3317 = vmatpush.bf16.msra.mxu3 %v4589_v51  ;;  %v4597_v18 = vld [vmem:[#allocation13 + $0x230] sm:$0xff] }
 0x763   : > { %v6333_v45 = vpack.c.bf16 %v2472_v8, %v2471_v3  ;;  %v2358_v23 = vadd.f32 %v4798_v33, %v2357_v46  ;;  %vm2376_vm4 = vmor %vm2374_vm2, %vm2375_vm3  ;;  %vm2379_vm13 = vcmp.eq.f32.partialorder %v2378_v62, 8.507059e+37  ;;  %v4552_v43 = vld [vmem:[#allocation13 + $0x48] sm:$0xff]  ;;  %3414 = vmatpush.bf16.msrb.mxu1 %v4581_v57  ;;  %v4551_v6 = vld [vmem:[#allocation13 + $0x40] sm:$0xff]  ;;  %vm6700_vm3 = vcmask 1045504  }
 0x764   : > { %2584 = vmatmul.bf16.vlgmr.msra.gmra.mxu0 %v6331_v34  ;;  %2677 = vmatmul.bf16.gmra.mxu2 %v6331_v34  ;;  %v2371_v13 = vsub.f32 1.0, %v2370_v26  ;;  %v4568_v50 = vld [vmem:[#allocation13 + $0x1c8] sm:$0xff]  ;;  %v4586_v19 = vld [vmem:[#allocation13 + $0x158] sm:$0xff]  ;;  %v4585_v3 = vld [vmem:[#allocation13 + $0x150] sm:$0xff] }
 0x765   : > { %2779 = vmatmul.bf16.vlgmr.msrb.gmra.mxu3 %v6333_v45  ;;  %2910 = vmatmul.bf16.vlgmr.msra.gmra.mxu1 %v6331_v34  ;;  %v2362_v47 = vsel %vm2361_vm12, %v4798_v33, %v2358_v23  ;;  %v2473_v21 = vld [vmem:[#allocation3 + $0x30] sm:$0xff]  ;;  %v2474_v48 = vld [vmem:[#allocation3 + $0x38] sm:$0xff]  ;;  %v4587_v33 = vld [vmem:[#allocation13 + $0x160] sm:$0xff] }
 0x766   : > { %v2372_v37 = vmul.f32 %v4800_v52, %v2371_v13  ;;  %v2367_v4 = vsel %vm2364_vm10, %v2366_v11, %v2362_v47  ;;  %v6348_v44 = vpack.c.bf16 %v2474_v48, %v2473_v21  ;;  %v2475_v60 = vld [vmem:[#allocation3 + $0x40] sm:$0xff]  ;;  %v2476_v1 = vld [vmem:[#allocation3 + $0x48] sm:$0xff]  ;;  %3116 = vmatpush.bf16.msrb.mxu2 %v4571_v49  ;;  %v4577_v8 = vld [vmem:[#allocation13 + $0x90] sm:$0xff] }
 0x767   : > { %v2390_v63 = vmul.f32 %v2367_v4, %v6228_v38  ;;  %v4555_v38 = vld [vmem:[#allocation13 + $0x60] sm:$0xff]  ;;  %v6354_v14 = vpack.c.bf16 %v2476_v1, %v2475_v60  ;;  %v2477_v2 = vld [vmem:[#allocation3 + $0x50] sm:$0xff]  ;;  %v2478_v5 = vld [vmem:[#allocation3 + $0x58] sm:$0xff]  ;;  %3415 = vmatpush.bf16.msrb.mxu1 %v4580_v16 }
 0x768   : > { %v2373_v54 = vadd.f32 %v4800_v52, %v2372_v37  ;;  %3002 = vmatpush.bf16.msrb.mxu0 %v4555_v38  ;;  %v6360_v12 = vpack.c.bf16 %v2478_v5, %v2477_v2  ;;  %v2479_v31 = vld [vmem:[#allocation3 + $0x60] sm:$0xff]  ;;  %v2480_v24 = vld [vmem:[#allocation3 + $0x68] sm:$0xff]  ;;  %v4593_v51 = vld [vmem:[#allocation13 + $0x210] sm:$0xff] }
 0x769   : > { %2420 = vst [vmem:[#allocation3 + $0x71] sm:$0xff] %v2390_v63  ;;  %v6366_v59 = vpack.c.bf16 %v2480_v24, %v2479_v31  ;;  %v4588_v55 = vld [vmem:[#allocation13 + $0x168] sm:$0xff]  ;;  %v4578_v0 = vld [vmem:[#allocation13 + $0x98] sm:$0xff]  ;;  %v4583_v32 = vld [vmem:[#allocation13 + $0x140] sm:$0xff] }
 0x76a   : > { %v2377_v15 = vsel %vm2376_vm4, %v4800_v52, %v2373_v54  ;;  %3117 = vmatpush.bf16.msrb.mxu2 %v4570_v40  ;;  %3318 = vmatpush.bf16.msra.mxu3 %v4588_v55  ;;  %v4584_v20 = vld [vmem:[#allocation13 + $0x148] sm:$0xff]  ;;  %v4575_v46 = vld [vmem:[#allocation13 + $0x80] sm:$0xff]  ;;  %v4598_v23 = vld [vmem:[#allocation13 + $0x238] sm:$0xff] }
 0x76b   : > { %v2382_v7 = vsel %vm2379_vm13, %v2381_v42, %v2377_v15  ;;  %3416 = vmatpush.bf16.msrb.mxu1 %v4579_v22  ;;  %v4576_v52 = vld [vmem:[#allocation13 + $0x88] sm:$0xff]  ;;  %v4595_v48 = vld [vmem:[#allocation13 + $0x220] sm:$0xff]  ;;  %v4602_v29 = vld [vmem:[#allocation15 + $0x18] sm:$0xff] }
 0x76c   : > { %v2391_v30 = vmul.f32 %v2382_v7, %v6230_v17  ;;  %v4554_v17 = vld [vmem:[#allocation13 + $0x58] sm:$0xff]  ;;  %v4596_v62 = vld [vmem:[#allocation13 + $0x228] sm:$0xff]  ;;  %vm6688_vm15 = vmmov %vm6686_vm14 }
 0x76d   : > { %3003 = vmatpush.bf16.msrb.mxu0 %v4554_v17  ;;  %vm6689_vm5 = vmmov %vm6687_vm0 }
 0x76e   : > { %2421 = vst [vmem:[#allocation3 + $0x81] sm:$0xff] %v2391_v30  ;;  %3118 = vmatpush.bf16.msrb.mxu2 %v4569_v61  ;;  %3319 = vmatpush.bf16.msra.mxu3 %v4587_v33  ;;  %vm6690_vm11 = vmmov %vm6687_vm0 }
 0x76f   : > { %3417 = vmatpush.bf16.msrb.mxu1 %v4578_v0  ;;  %v4601_v0 = vld [vmem:[#allocation15 + $0x10] sm:$0xff]  ;;  %vm6691_vm6 = vmmov %vm6686_vm14 }
 0x770   : > { %v2481_v36 = vld [vmem:[#allocation3 + $0x70] sm:$0xff]  ;;  %v2482_v58 = vld [vmem:[#allocation3 + $0x78] sm:$0xff]  ;;  %vm6692_vm8 = vmmov %vm6687_vm0 }
 0x771   : > { %3004 = vmatpush.bf16.msrb.mxu0 %v4553_v25  ;;  %v6372_v53 = vpack.c.bf16 %v2482_v58, %v2481_v36  ;;  %vm6693_vm1 = vmmov %vm6687_vm0 }
 0x772   : > { %3119 = vmatpush.bf16.msrb.mxu2 %v4568_v50  ;;  %3320 = vmatpush.bf16.msra.mxu3 %v4586_v19  ;;  %v4592_v19 = vld [vmem:[#allocation13 + $0x208] sm:$0xff]  ;;  %vm6694_vm7 = vmmov %vm6691_vm6 }
 0x773   : > { %3418 = vmatpush.bf16.msrb.mxu1 %v4577_v8  ;;  %vm6695_vm9 = vmmov %vm6687_vm0 }
 0x774   : > { %2588 = vmatmul.bf16.gmra.mxu0 %v6333_v45  ;;  %2681 = vmatmul.bf16.gmra.mxu2 %v6333_v45  ;;  %vm6696_vm12 = vmmov %vm6687_vm0 }
 0x775   : > { %2783 = vmatmul.bf16.gmra.mxu3 %v6348_v44  ;;  %2915 = vmatmul.bf16.gmra.mxu1 %v6333_v45  ;;  %v2483_v10 = vld [vmem:[#allocation3 + $0x80] sm:$0xff]  ;;  %v2484_v35 = vld [vmem:[#allocation3 + $0x88] sm:$0xff]  ;;  %vm6697_vm10 = vmmov %vm6687_vm0 }
 0x776   : > { %3005 = vmatpush.bf16.msrb.mxu0 %v4552_v43  ;;  %3120 = vmatpush.bf16.msrb.mxu2 %v4567_v9  ;;  %v6378_v26 = vpack.c.bf16 %v2484_v35, %v2483_v10  ;;  %vm6701_vm2 = vmmov %vm6700_vm3 }
 0x777   : > { %3321 = vmatpush.bf16.msra.mxu3 %v4585_v3  ;;  %3419 = vmatpush.bf16.msrb.mxu1 %v4576_v52  ;;  %vm6702_vm4 = vmmov %vm6701_vm2 }
 0x778   : > { %vm6703_vm13 = vmmov %vm6701_vm2 }
 0x77a   : > { %3006 = vmatpush.bf16.msrb.mxu0 %v4551_v6  ;;  %3716 = vmatpush.bf16.msra.mxu2 %v4602_v29  ;;  %v4802_v29 = vld [vmem:[%s5355_s22] sm:$0xff] }
 0x77b   : > { %3322 = vmatpush.bf16.msra.mxu3 %v4584_v20  ;;  %3420 = vmatpush.bf16.msrb.mxu1 %v4575_v46 }
 0x77e   : > { %3527 = vmatpush.bf16.msra.mxu0 %v4598_v23  ;;  %3717 = vmatpush.bf16.msra.mxu2 %v4601_v0 }
 0x77f   : > { %3323 = vmatpush.bf16.msra.mxu3 %v4583_v32 }
 0x782   : > { %3528 = vmatpush.bf16.msra.mxu0 %v4597_v18 }
 0x784   : > { %2592 = vmatmul.bf16.gmra.mxu0 %v6348_v44  ;;  %2685 = vmatmul.bf16.gmra.mxu2 %v6348_v44 }
 0x785   : > { %2787 = vmatmul.bf16.gmra.mxu3 %v6354_v14  ;;  %2920 = vmatmul.bf16.gmra.mxu1 %v6348_v44 }
 0x786   : > { %3529 = vmatpush.bf16.msra.mxu0 %v4596_v62 }
 0x78a   : > { %3530 = vmatpush.bf16.msra.mxu0 %v4595_v48 }
 0x794   : > { %2596 = vmatmul.bf16.gmra.mxu0 %v6354_v14  ;;  %2689 = vmatmul.bf16.gmra.mxu2 %v6354_v14 }
 0x795   : > { %2791 = vmatmul.bf16.gmra.mxu3 %v6360_v12  ;;  %2925 = vmatmul.bf16.gmra.mxu1 %v6354_v14 }
 0x7a4   : > { %2600 = vmatmul.bf16.gmra.mxu0 %v6360_v12  ;;  %2693 = vmatmul.bf16.gmra.mxu2 %v6360_v12 }
 0x7a5   : > { %2795 = vmatmul.bf16.gmra.mxu3 %v6366_v59  ;;  %2930 = vmatmul.bf16.gmra.mxu1 %v6360_v12 }
 0x7b4   : > { %2604 = vmatmul.bf16.gmra.mxu0 %v6366_v59  ;;  %2697 = vmatmul.bf16.gmra.mxu2 %v6366_v59 }
 0x7b5   : > { %2799 = vmatmul.bf16.gmra.mxu3 %v6372_v53  ;;  %2935 = vmatmul.bf16.gmra.mxu1 %v6366_v59 }
 0x7c4   : > { %2608 = vmatmul.bf16.gmra.mxu0 %v6372_v53  ;;  %2701 = vmatmul.bf16.gmra.mxu2 %v6372_v53 }
 0x7c5   : > { %2803 = vmatmul.bf16.gmra.mxu3 %v6378_v26  ;;  %2940 = vmatmul.bf16.gmra.mxu1 %v6372_v53 }
 0x7c7   : > { %v2674_v13 = vpop.f32.mrf.mxu2 }
 0x7cf   : > { %v2676_v11 = vpop.f32.mrf.mxu2 }
 0x7d4   : > { %2612 = vmatmul.bf16.gmra.mxu0 %v6378_v26  ;;  %3121 = vmatmul.bf16.vlgmr.msrb.gmra.mxu2 %v6333_v45 }
 0x7d5   : > { %2807 = vmatmul.bf16.gmra.mxu3 %v6234_v27  ;;  %2945 = vmatmul.bf16.gmra.mxu1 %v6378_v26 }
 0x7e1   : > { %v2585_v47 = vpop.f32.mrf.mxu0 }
 0x7e2   : > { %v2675_v37 = vadd.f32 %v2674_v13, %v2585_v47  ;;  %v6406_v43 = vpop.f32.mrf.mxu1  ;;  %v4591_v13 = vld [vmem:[#allocation13 + $0x200] sm:$0xff] }
 0x7e4   : > { %3007 = vmatmul.bf16.vlgmr.msrb.gmra.mxu0 %v6234_v27  ;;  %3126 = vmatmul.bf16.gmra.mxu2 %v6348_v44 }
 0x7e5   : > { %3324 = vmatmul.bf16.vlgmr.msra.gmra.mxu3 %v6331_v34  ;;  %3421 = vmatmul.bf16.vlgmr.msrb.gmra.mxu1 %v6234_v27 }
 0x7e7   : > { %v2678_v4 = vpop.f32.mrf.mxu2 }
 0x7e8   : > { %v2780_v63 = vpop.f32.mrf.mxu3 }
 0x7e9   : > { %v6392_v54 = vadd.f32 %v2780_v63, %v2675_v37  ;;  %v2587_v42 = vpop.f32.mrf.mxu0 }
 0x7ea   : > { %v6412_v55 = vpop.f32.mrf.mxu1 }
 0x7ef   : > { %v2680_v15 = vpop.f32.mrf.mxu2 }
 0x7f0   : > { %v2782_v7 = vpop.f32.mrf.mxu3 }
 0x7f1   : > { %v2589_v30 = vpop.f32.mrf.mxu0 }
 0x7f2   : > { %v2679_v21 = vadd.f32 %v2678_v4, %v2589_v30  ;;  %v6416_v6 = vpop.f32.mrf.mxu1  ;;  %v4600_v30 = vld [vmem:[#allocation15 + $0x8] sm:$0xff] }
 0x7f3   : > { %3718 = vmatpush.bf16.msra.mxu2 %v4600_v30 }
 0x7f4   : > { %3012 = vmatmul.bf16.gmra.mxu0 %v6331_v34  ;;  %3131 = vmatmul.bf16.gmra.mxu2 %v6354_v14 }
 0x7f5   : > { %3329 = vmatmul.bf16.gmra.mxu3 %v6333_v45  ;;  %3426 = vmatmul.bf16.gmra.mxu1 %v6331_v34  ;;  %v4594_v34 = vld [vmem:[#allocation13 + $0x218] sm:$0xff] }
 0x7f6   : > { %3531 = vmatpush.bf16.msra.mxu0 %v4594_v34 }
 0x7f7   : > { %v2682_v38 = vpop.f32.mrf.mxu2 }
 0x7f8   : > { %v2784_v60 = vpop.f32.mrf.mxu3 }
 0x7f9   : > { %v6398_v1 = vadd.f32 %v2784_v60, %v2679_v21  ;;  %v2591_v17 = vpop.f32.mrf.mxu0 }
 0x7fa   : > { %3532 = vmatpush.bf16.msra.mxu0 %v4593_v51  ;;  %v6424_v10 = vpop.f32.mrf.mxu1 }
 0x7fe   : > { %3533 = vmatpush.bf16.msra.mxu0 %v4592_v19 }
 0x7ff   : > { %v2684_v41 = vpop.f32.mrf.mxu2 }
 0x800   : > { %v2786_v2 = vpop.f32.mrf.mxu3 }
 0x801   : > { %v2593_v5 = vpop.f32.mrf.mxu0 }
 0x802   : > { %v2683_v25 = vadd.f32 %v2682_v38, %v2593_v5  ;;  %v6430_v11 = vpop.f32.mrf.mxu1  ;;  %3534 = vmatpush.bf16.msra.mxu0 %v4591_v13  ;;  %v4599_v5 = vld [vmem:[#allocation15] sm:$0xff] }
 0x803   : > { %3719 = vmatpush.bf16.msra.mxu2 %v4599_v5 }
 0x804   : > { %3017 = vmatmul.bf16.gmra.mxu0 %v6333_v45  ;;  %3136 = vmatmul.bf16.gmra.mxu2 %v6360_v12 }
 0x805   : > { %3334 = vmatmul.bf16.gmra.mxu3 %v6348_v44  ;;  %3431 = vmatmul.bf16.gmra.mxu1 %v6333_v45 }
 0x807   : > { %v2686_v56 = vpop.f32.mrf.mxu2 }
 0x808   : > { %v2788_v49 = vpop.f32.mrf.mxu3 }
 0x809   : > { %v6404_v31 = vadd.f32 %v2788_v49, %v2683_v25  ;;  %v2595_v24 = vpop.f32.mrf.mxu0 }
 0x80a   : > { %v6434_v42 = vpop.f32.mrf.mxu1 }
 0x80f   : > { %v2688_v40 = vpop.f32.mrf.mxu2 }
 0x810   : > { %v2790_v39 = vpop.f32.mrf.mxu3 }
 0x811   : > { %v2597_v28 = vpop.f32.mrf.mxu0 }
 0x812   : > { %v2687_v61 = vadd.f32 %v2686_v56, %v2597_v28  ;;  %v6442_v17 = vpop.f32.mrf.mxu1  ;;  %v4803_v56 = vld [vmem:[%s5355_s22 + $0x8] sm:$0xff] }
 0x813   : > { %v3660_v49 = vpack.c.bf16 %v4803_v56, %v4802_v29 }
 0x814   : > { %3022 = vmatmul.bf16.gmra.mxu0 %v6348_v44  ;;  %3141 = vmatmul.bf16.gmra.mxu2 %v6366_v59 }
 0x815   : > { %3339 = vmatmul.bf16.gmra.mxu3 %v6354_v14  ;;  %3436 = vmatmul.bf16.gmra.mxu1 %v6348_v44 }
 0x817   : > { %v2690_v57 = vpop.f32.mrf.mxu2 }
 0x818   : > { %v2792_v50 = vpop.f32.mrf.mxu3 }
 0x819   : > { %v6414_v16 = vadd.f32 %v2792_v50, %v2687_v61  ;;  %v2599_v9 = vpop.f32.mrf.mxu0 }
 0x81a   : > { %v6447_v24 = vpop.f32.mrf.mxu1 }
 0x81f   : > { %v2692_v36 = vpop.f32.mrf.mxu2 }
 0x820   : > { %v2794_v58 = vpop.f32.mrf.mxu3 }
 0x821   : > { %v2601_v33 = vpop.f32.mrf.mxu0 }
 0x822   : > { %v2691_v22 = vadd.f32 %v2690_v57, %v2601_v33 }
 0x824   : > { %3027 = vmatmul.bf16.gmra.mxu0 %v6354_v14  ;;  %3146 = vmatmul.bf16.gmra.mxu2 %v6372_v53 }
 0x825   : > { %3344 = vmatmul.bf16.gmra.mxu3 %v6360_v12  ;;  %3441 = vmatmul.bf16.gmra.mxu1 %v6354_v14 }
 0x827   : > { %v2694_v3 = vpop.f32.mrf.mxu2 }
 0x828   : > { %v2796_v8 = vpop.f32.mrf.mxu3 }
 0x829   : > { %v6422_v20 = vadd.f32 %v2796_v8, %v2691_v22  ;;  %v2603_v52 = vpop.f32.mrf.mxu0 }
 0x82f   : > { %v2696_v35 = vpop.f32.mrf.mxu2 }
 0x830   : > { %v2798_v32 = vpop.f32.mrf.mxu3  ;;  %v4804_v35 = vld [vmem:[%s5355_s22 + $0x10] sm:$0xff] }
 0x831   : > { %v2605_v46 = vpop.f32.mrf.mxu0  ;;  %v4805_v32 = vld [vmem:[%s5355_s22 + $0x18] sm:$0xff] }
 0x832   : > { %v2695_v23 = vadd.f32 %v2694_v3, %v2605_v46  ;;  %v3661_v46 = vpack.c.bf16 %v4805_v32, %v4804_v35 }
 0x834   : > { %3032 = vmatmul.bf16.gmra.mxu0 %v6360_v12  ;;  %3151 = vmatmul.bf16.gmra.mxu2 %v6378_v26 }
 0x835   : > { %3349 = vmatmul.bf16.gmra.mxu3 %v6366_v59  ;;  %3446 = vmatmul.bf16.gmra.mxu1 %v6360_v12 }
 0x837   : > { %v2698_v18 = vpop.f32.mrf.mxu2 }
 0x838   : > { %v2800_v47 = vpop.f32.mrf.mxu3 }
 0x839   : > { %v6432_v37 = vadd.f32 %v2800_v47, %v2695_v23  ;;  %v2607_v62 = vpop.f32.mrf.mxu0  ;;  %v2931_v23 = vpop.f32.mrf.mxu1 }
 0x83f   : > { %v2700_v4 = vpop.f32.mrf.mxu2 }
 0x840   : > { %v2802_v63 = vpop.f32.mrf.mxu3 }
 0x841   : > { %v2609_v15 = vpop.f32.mrf.mxu0  ;;  %v2933_v4 = vpop.f32.mrf.mxu1 }
 0x842   : > { %v2699_v7 = vadd.f32 %v2698_v18, %v2609_v15 }
 0x844   : > { %3037 = vmatmul.bf16.gmra.mxu0 %v6366_v59  ;;  %3156 = vmatmul.bf16.gmra.mxu2 %v6234_v27 }
 0x845   : > { %3354 = vmatmul.bf16.gmra.mxu3 %v6372_v53  ;;  %3451 = vmatmul.bf16.gmra.mxu1 %v6366_v59 }
 0x847   : > { %v2702_v21 = vpop.f32.mrf.mxu2 }
 0x848   : > { %v2804_v48 = vpop.f32.mrf.mxu3 }
 0x849   : > { %v6440_v38 = vadd.f32 %v2804_v48, %v2699_v7  ;;  %v2611_v60 = vpop.f32.mrf.mxu0 }
 0x84a   : > { %v2936_v60 = vpop.f32.mrf.mxu1 }
 0x84f   : > { %v2704_v41 = vpop.f32.mrf.mxu2 }
 0x850   : > { %v2806_v2 = vpop.f32.mrf.mxu3 }
 0x851   : > { %v2613_v25 = vpop.f32.mrf.mxu0 }
 0x852   : > { %v2703_v34 = vadd.f32 %v2702_v21, %v2613_v25  ;;  %v2938_v29 = vpop.f32.mrf.mxu1 }
 0x854   : > { %3042 = vmatmul.bf16.gmra.mxu0 %v6372_v53  ;;  %4481 = vmatmul.msk.bf16.vlgmr.msra.gmra.mxu2 %vm6686_vm14, %v3660_v49  ;;  %vm6704_vm14 = vmmov %vm6701_vm2 }
 0x855   : > { %3359 = vmatmul.bf16.gmra.mxu3 %v6378_v26  ;;  %3456 = vmatmul.bf16.gmra.mxu1 %v6372_v53 }
 0x857   : > { %v3122_v40 = vpop.f32.mrf.mxu2 }
 0x858   : > { %v2808_v39 = vpop.f32.mrf.mxu3 }
 0x859   : > { %v6452_v28 = vadd.f32 %v2808_v39, %v2703_v34  ;;  %v2615_v61 = vpop.f32.mrf.mxu0 }
 0x85f   : > { %v3124_v51 = vpop.f32.mrf.mxu2 }
 0x860   : > { %v2810_v57 = vpop.f32.mrf.mxu3 }
 0x861   : > { %v3008_v50 = vpop.f32.mrf.mxu0  ;;  %v2941_v57 = vpop.f32.mrf.mxu1 }
 0x862   : > { %v3009_v9 = vadd.f32 %v3008_v50, %v6406_v43 }
 0x864   : > { %v3162_v36 = vadd.f32 %v3122_v40, %v3009_v9  ;;  %3535 = vmatmul.bf16.vlgmr.msra.gmra.mxu0 %v6333_v45  ;;  %4482 = vmatmul.msk.bf16.gmra.mxu2 %vm6688_vm15, %v3661_v46  ;;  %v4806_v40 = vld [vmem:[%s5355_s22 + $0x20] sm:$0xff] }
 0x866   : > { %v3194_v0 = vrot.slane %v3162_v36, 1 }
 0x867   : > { %v3127_v58 = vpop.f32.mrf.mxu2 }
 0x869   : > { %v3010_v33 = vpop.f32.mrf.mxu0 }
 0x86a   : > { %v3011_v22 = vadd.f32 %v3010_v33, %v6412_v55 }
 0x86c   : > { %v3163_v19 = vadd.f32 %v3124_v51, %v3011_v22 }
 0x86e   : > { %v3195_v3 = vrot.slane %v3163_v19, 1 }
 0x86f   : > { %v3129_v8 = vpop.f32.mrf.mxu2 }
 0x870   : > { %v3196_v52 = vsel %vm6687_vm0, %v3194_v0, %v3195_v3  ;;  %v2943_v3 = vpop.f32.mrf.mxu1  ;;  %vm6705_vm0 = vmmov %vm6701_vm2 }
 0x871   : > { %v3013_v13 = vpop.f32.mrf.mxu0  ;;  %v6461_v43 = vadd.f32 %v3196_v52, %v6392_v54  ;;  %vm6706_vm15 = vmmov %vm6705_vm0 }
 0x872   : > { %v3014_v45 = vadd.f32 %v3013_v13, %v6416_v6 }
 0x874   : > { %v3164_v18 = vadd.f32 %v3127_v58, %v3014_v45  ;;  %3540 = vmatmul.bf16.gmra.mxu0 %v6348_v44 }
 0x876   : > { %v3197_v15 = vrot.slane %v3164_v18, 1  ;;  %v4808_v18 = vld [vmem:[%s5355_s22 + $0x30] sm:$0xff] }
 0x877   : > { %v3132_v55 = vpop.f32.mrf.mxu2 }
 0x878   : > { %v2946_v32 = vpop.f32.mrf.mxu1 }
 0x879   : > { %v3015_v47 = vpop.f32.mrf.mxu0 }
 0x87a   : > { %v3016_v62 = vadd.f32 %v3015_v47, %v6424_v10 }
 0x87c   : > { %v3165_v63 = vadd.f32 %v3129_v8, %v3016_v62 }
 0x87e   : > { %v3198_v7 = vrot.slane %v3165_v63, 1 }
 0x87f   : > { %v3134_v30 = vpop.f32.mrf.mxu2 }
 0x880   : > { %v3199_v21 = vsel %vm6689_vm5, %v3197_v15, %v3198_v7  ;;  %vm6708_vm5 = vmmov %vm6705_vm0 }
 0x881   : > { %v3018_v54 = vpop.f32.mrf.mxu0  ;;  %v6469_v6 = vadd.f32 %v3199_v21, %v6398_v1  ;;  %v4807_v1 = vld [vmem:[%s5355_s22 + $0x28] sm:$0xff] }
 0x882   : > { %v3019_v48 = vadd.f32 %v3018_v54, %v6430_v11  ;;  %v3662_v39 = vpack.c.bf16 %v4807_v1, %v4806_v40 }
 0x884   : > { %v3166_v44 = vadd.f32 %v3132_v55, %v3019_v48  ;;  %3545 = vmatmul.bf16.gmra.mxu0 %v6354_v14  ;;  %4483 = vmatmul.msk.bf16.gmra.mxu2 %vm6691_vm6, %v3662_v39  ;;  %v4809_v55 = vld [vmem:[%s5355_s22 + $0x38] sm:$0xff] }
 0x885   : > { %v3663_v47 = vpack.c.bf16 %v4809_v55, %v4808_v18 }
 0x886   : > { %v3200_v25 = vrot.slane %v3166_v44, 1  ;;  %v3325_v44 = vpop.f32.mrf.mxu3 }
 0x887   : > { %v3137_v10 = vpop.f32.mrf.mxu2 }
 0x889   : > { %v3020_v41 = vpop.f32.mrf.mxu0 }
 0x88a   : > { %v3021_v2 = vadd.f32 %v3020_v41, %v6434_v42 }
 0x88c   : > { %v3167_v5 = vadd.f32 %v3134_v30, %v3021_v2 }
 0x88e   : > { %v3201_v34 = vrot.slane %v3167_v5, 1 }
 0x88f   : > { %v3139_v56 = vpop.f32.mrf.mxu2 }
 0x890   : > { %v3202_v49 = vsel %vm6690_vm11, %v3200_v25, %v3201_v34  ;;  %v3327_v25 = vpop.f32.mrf.mxu3 }
 0x891   : > { %v3023_v61 = vpop.f32.mrf.mxu0  ;;  %v6478_v11 = vadd.f32 %v3202_v49, %v6404_v31 }
 0x892   : > { %v3024_v14 = vadd.f32 %v3023_v61, %v6442_v17 }
 0x894   : > { %v3168_v51 = vadd.f32 %v3137_v10, %v3024_v14  ;;  %3550 = vmatmul.bf16.gmra.mxu0 %v6360_v12  ;;  %4484 = vmatmul.msk.bf16.gmra.mxu2 %vm6694_vm7, %v3663_v47 }
 0x896   : > { %v3203_v58 = vrot.slane %v3168_v51, 1 }
 0x897   : > { %v3142_v42 = vpop.f32.mrf.mxu2 }
 0x899   : > { %v3025_v50 = vpop.f32.mrf.mxu0 }
 0x89a   : > { %v3026_v9 = vadd.f32 %v3025_v50, %v6447_v24 }
 0x89c   : > { %v3169_v36 = vadd.f32 %v3139_v56, %v3026_v9 }
 0x89e   : > { %v3204_v33 = vrot.slane %v3169_v36, 1 }
 0x89f   : > { %v3144_v22 = vpop.f32.mrf.mxu2 }
 0x8a0   : > { %v3205_v31 = vsel %vm6692_vm8, %v3203_v58, %v3204_v33 }
 0x8a1   : > { %v3028_v19 = vpop.f32.mrf.mxu0  ;;  %v6486_v17 = vadd.f32 %v3205_v31, %v6414_v16 }
 0x8a2   : > { %v3029_v0 = vadd.f32 %v3028_v19, %v2931_v23 }
 0x8a4   : > { %v3170_v12 = vadd.f32 %v3142_v42, %v3029_v0  ;;  %3555 = vmatmul.bf16.gmra.mxu0 %v6366_v59  ;;  %v3330_v42 = vpop.f32.mrf.mxu3 }
 0x8a6   : > { %v3206_v46 = vrot.slane %v3170_v12, 1 }
 0x8a7   : > { %v3147_v8 = vpop.f32.mrf.mxu2 }
 0x8a9   : > { %v3030_v52 = vpop.f32.mrf.mxu0 }
 0x8aa   : > { %v3031_v24 = vadd.f32 %v3030_v52, %v2933_v4  ;;  %v2948_v4 = vpop.f32.mrf.mxu1 }
 0x8ac   : > { %v3171_v35 = vadd.f32 %v3144_v22, %v3031_v24  ;;  %v3332_v33 = vpop.f32.mrf.mxu3 }
 0x8ae   : > { %v3207_v13 = vrot.slane %v3171_v35, 1 }
 0x8af   : > { %v3149_v59 = vpop.f32.mrf.mxu2 }
 0x8b0   : > { %v3208_v45 = vsel %vm6693_vm1, %v3206_v46, %v3207_v13  ;;  %v6514_v46 = vld [vmem:[%s6698_s15] ss:$0 sm:$0xff] }
 0x8b1   : > { %v3033_v62 = vpop.f32.mrf.mxu0  ;;  %v6493_v16 = vadd.f32 %v3208_v45, %v6422_v20 }
 0x8b2   : > { %v3034_v23 = vadd.f32 %v3033_v62, %v2936_v60  ;;  %v3422_v41 = vpop.f32.mrf.mxu1 }
 0x8b3   : > { %v3423_v12 = vadd.f32 %v3422_v41, %v3325_v44 }
 0x8b4   : > { %v3172_v63 = vadd.f32 %v3147_v8, %v3034_v23  ;;  %3560 = vmatmul.bf16.gmra.mxu0 %v6372_v53  ;;  %v3335_v8 = vpop.f32.mrf.mxu3 }
 0x8b6   : > { %v3209_v54 = vrot.slane %v3172_v63, 1 }
 0x8b7   : > { %v3152_v21 = vpop.f32.mrf.mxu2 }
 0x8b9   : > { %v3035_v15 = vpop.f32.mrf.mxu0 }
 0x8ba   : > { %v3036_v7 = vadd.f32 %v3035_v15, %v2938_v29  ;;  %v3424_v56 = vpop.f32.mrf.mxu1 }
 0x8bb   : > { %v3425_v52 = vadd.f32 %v3424_v56, %v3327_v25 }
 0x8bc   : > { %v3173_v30 = vadd.f32 %v3149_v59, %v3036_v7  ;;  %v3337_v23 = vpop.f32.mrf.mxu3 }
 0x8be   : > { %v3210_v48 = vrot.slane %v3173_v30, 1 }
 0x8bf   : > { %v3154_v53 = vpop.f32.mrf.mxu2 }
 0x8c0   : > { %v3211_v10 = vsel %vm6695_vm9, %v3209_v54, %v3210_v48 }
 0x8c1   : > { %v3038_v20 = vpop.f32.mrf.mxu0  ;;  %v6499_v60 = vadd.f32 %v3211_v10, %v6432_v37 }
 0x8c2   : > { %v3039_v2 = vadd.f32 %v3038_v20, %v2941_v57 }
 0x8c4   : > { %v3174_v5 = vadd.f32 %v3152_v21, %v3039_v2  ;;  %3565 = vmatmul.bf16.gmra.mxu0 %v6378_v26  ;;  %v3427_v26 = vpop.f32.mrf.mxu1 }
 0x8c5   : > { %v3428_v7 = vadd.f32 %v3427_v26, %v3330_v42 }
 0x8c6   : > { %v3212_v40 = vrot.slane %v3174_v5, 1 }
 0x8c7   : > { %v3157_v39 = vpop.f32.mrf.mxu2 }
 0x8c9   : > { %v3040_v34 = vpop.f32.mrf.mxu0 }
 0x8ca   : > { %v3041_v29 = vadd.f32 %v3040_v34, %v2943_v3 }
 0x8cc   : > { %v3175_v49 = vadd.f32 %v3154_v53, %v3041_v29  ;;  %v3429_v19 = vpop.f32.mrf.mxu1 }
 0x8cd   : > { %v3430_v30 = vadd.f32 %v3429_v19, %v3332_v33 }
 0x8ce   : > { %v3213_v1 = vrot.slane %v3175_v49, 1 }
 0x8cf   : > { %v3159_v9 = vpop.f32.mrf.mxu2 }
 0x8d0   : > { %v3214_v61 = vsel %vm6696_vm12, %v3212_v40, %v3213_v1 }
 0x8d1   : > { %v3043_v14 = vpop.f32.mrf.mxu0  ;;  %v6504_v51 = vadd.f32 %v3214_v61, %v6440_v38 }
 0x8d2   : > { %v3044_v37 = vadd.f32 %v3043_v14, %v2946_v32 }
 0x8d4   : > { %v3176_v57 = vadd.f32 %v3157_v39, %v3044_v37  ;;  %3570 = vmatmul.bf16.gmra.mxu0 %v6234_v27  ;;  %v3432_v27 = vpop.f32.mrf.mxu1 }
 0x8d5   : > { %v3433_v49 = vadd.f32 %v3432_v27, %v3335_v8 }
 0x8d6   : > { %v3215_v22 = vrot.slane %v3176_v57, 1 }
 0x8d7   : > { %v3721_v18 = vpop.f32.mrf.mxu2 }
 0x8d8   : > { %v3722_v62 = vadd.f32 %v6514_v46, %v3721_v18 }
 0x8d9   : > { %v3045_v50 = vpop.f32.mrf.mxu0 }
 0x8da   : > { %v3046_v36 = vadd.f32 %v3045_v50, %v2948_v4 }
 0x8dc   : > { %v3177_v58 = vadd.f32 %v3159_v9, %v3046_v36  ;;  %v3434_v4 = vpop.f32.mrf.mxu1 }
 0x8dd   : > { %v3435_v1 = vadd.f32 %v3434_v4, %v3337_v23 }
 0x8de   : > { %v3216_v31 = vrot.slane %v3177_v58, 1 }
 0x8df   : > { %v3723_v41 = vpop.f32.mrf.mxu2 }
 0x8e0   : > { %v3217_v0 = vsel %vm6697_vm10, %v3215_v22, %v3216_v31  ;;  %v3724_v53 = vadd.f32 %v6514_v46, %v3723_v41 }
 0x8e1   : > { %v6509_v3 = vadd.f32 %v3217_v0, %v6452_v28  ;;  %v3536_v38 = vpop.f32.mrf.mxu0  ;;  %v6519_v28 = vld [vmem:[%s6699_s21] ss:$0 sm:$0xff] }
 0x8e2   : > { %v3576_v24 = vadd.f32 %v3536_v38, %v3423_v12 }
 0x8e4   : > { %v3608_v13 = vrot.slane %v3576_v24, 2  ;;  %v3437_v20 = vpop.f32.mrf.mxu1 }
 0x8e7   : > { %v3726_v57 = vpop.f32.mrf.mxu2 }
 0x8e8   : > { %v3727_v9 = vadd.f32 %v6514_v46, %v3726_v57 }
 0x8e9   : > { %v3538_v35 = vpop.f32.mrf.mxu0 }
 0x8ea   : > { %v3577_v32 = vadd.f32 %v3538_v35, %v3425_v52 }
 0x8ec   : > { %v3609_v45 = vrot.slane %v3577_v32, 2  ;;  %v3439_v40 = vpop.f32.mrf.mxu1 }
 0x8ee   : > { %v3610_v55 = vsel %vm6700_vm3, %v3608_v13, %v3609_v45 }
 0x8ef   : > { %v3640_v47 = vadd.f32 %v3610_v55, %v6461_v43  ;;  %v3340_v43 = vpop.f32.mrf.mxu3  ;;  %v3728_v35 = vpop.f32.mrf.mxu2 }
 0x8f0   : > { %v3438_v31 = vadd.f32 %v3437_v20, %v3340_v43  ;;  %v3729_v13 = vadd.f32 %v6514_v46, %v3728_v35 }
 0x8f1   : > { %v3652_v59 = vadd.f32 %v6519_v28, %v3640_v47  ;;  %v3541_v63 = vpop.f32.mrf.mxu0 }
 0x8f2   : > { %v3578_v21 = vadd.f32 %v3541_v63, %v3428_v7 }
 0x8f3   : > { %v3741_v15 = vadd.f32 %v3722_v62, %v3652_v59 }
 0x8f4   : > { %v3611_v44 = vrot.slane %v3578_v21, 2  ;;  %v3442_v36 = vpop.f32.mrf.mxu1 }
 0x8f5   : > { %3749 = vst [vmem:[%s6527_s14] sm:$0xff] %v3741_v15 }
 0x8f7   : > { %v3342_v56 = vpop.f32.mrf.mxu3 }
 0x8f8   : > { %v3440_v19 = vadd.f32 %v3439_v40, %v3342_v56 }
 0x8f9   : > { %v3543_v54 = vpop.f32.mrf.mxu0 }
 0x8fa   : > { %v3579_v48 = vadd.f32 %v3543_v54, %v3430_v30 }
 0x8fc   : > { %v3612_v10 = vrot.slane %v3579_v48, 2  ;;  %v3444_v52 = vpop.f32.mrf.mxu1 }
 0x8fe   : > { %v3613_v2 = vsel %vm6701_vm2, %v3611_v44, %v3612_v10 }
 0x8ff   : > { %v3641_v5 = vadd.f32 %v3613_v2, %v6469_v6  ;;  %v3345_v26 = vpop.f32.mrf.mxu3 }
 0x900   : > { %v3443_v23 = vadd.f32 %v3442_v36, %v3345_v26 }
 0x901   : > { %v3653_v25 = vadd.f32 %v6519_v28, %v3641_v5  ;;  %v3546_v34 = vpop.f32.mrf.mxu0 }
 0x902   : > { %v3580_v39 = vadd.f32 %v3546_v34, %v3433_v49 }
 0x903   : > { %v3742_v29 = vadd.f32 %v3724_v53, %v3653_v25 }
 0x904   : > { %v3614_v37 = vrot.slane %v3580_v39, 2  ;;  %v3447_v62 = vpop.f32.mrf.mxu1 }
 0x905   : > { %3750 = vst [vmem:[%s6527_s14 + $0x8] sm:$0xff] %v3742_v29 }
 0x907   : > { %v3347_v38 = vpop.f32.mrf.mxu3  ;;  %v3731_v21 = vpop.f32.mrf.mxu2 }
 0x908   : > { %v3445_v59 = vadd.f32 %v3444_v52, %v3347_v38  ;;  %v3732_v44 = vadd.f32 %v6514_v46, %v3731_v21 }
 0x909   : > { %v3548_v61 = vpop.f32.mrf.mxu0 }
 0x90a   : > { %v3581_v14 = vadd.f32 %v3548_v61, %v3435_v1 }
 0x90c   : > { %v3615_v42 = vrot.slane %v3581_v14, 2  ;;  %v3449_v48 = vpop.f32.mrf.mxu1 }
 0x90e   : > { %v3616_v6 = vsel %vm6702_vm4, %v3614_v37, %v3615_v42 }
 0x90f   : > { %v3642_v50 = vadd.f32 %v3616_v6, %v6478_v11  ;;  %v3350_v55 = vpop.f32.mrf.mxu3  ;;  %v3733_v1 = vpop.f32.mrf.mxu2 }
 0x910   : > { %v3448_v2 = vadd.f32 %v3447_v62, %v3350_v55  ;;  %v3734_v61 = vadd.f32 %v6514_v46, %v3733_v1 }
 0x911   : > { %v3654_v58 = vadd.f32 %v6519_v28, %v3642_v50  ;;  %v3551_v33 = vpop.f32.mrf.mxu0 }
 0x912   : > { %v3582_v0 = vadd.f32 %v3551_v33, %v3438_v31 }
 0x913   : > { %v3743_v22 = vadd.f32 %v3727_v9, %v3654_v58 }
 0x914   : > { %v3617_v24 = vrot.slane %v3582_v0, 2  ;;  %v3452_v34 = vpop.f32.mrf.mxu1 }
 0x915   : > { %3751 = vst [vmem:[%s6527_s14 + $0x10] sm:$0xff] %v3743_v22 }
 0x917   : > { %v3352_v54 = vpop.f32.mrf.mxu3 }
 0x918   : > { %v3450_v53 = vadd.f32 %v3449_v48, %v3352_v54 }
 0x919   : > { %v3553_v12 = vpop.f32.mrf.mxu0 }
 0x91a   : > { %v3583_v8 = vadd.f32 %v3553_v12, %v3440_v19  ;;  %v3736_v19 = vpop.f32.mrf.mxu2 }
 0x91b   : > { %v3737_v12 = vadd.f32 %v6514_v46, %v3736_v19 }
 0x91c   : > { %v3618_v27 = vrot.slane %v3583_v8, 2  ;;  %v3454_v57 = vpop.f32.mrf.mxu1 }
 0x91e   : > { %v3619_v11 = vsel %vm6703_vm13, %v3617_v24, %v3618_v27 }
 0x91f   : > { %v3643_v32 = vadd.f32 %v3619_v11, %v6486_v17  ;;  %v3355_v5 = vpop.f32.mrf.mxu3 }
 0x920   : > { %v3453_v26 = vadd.f32 %v3452_v34, %v3355_v5 }
 0x921   : > { %v3655_v45 = vadd.f32 %v6519_v28, %v3643_v32  ;;  %v3556_v18 = vpop.f32.mrf.mxu0 }
 0x922   : > { %v3584_v63 = vadd.f32 %v3556_v18, %v3443_v23 }
 0x923   : > { %v3744_v47 = vadd.f32 %v3729_v13, %v3655_v45 }
 0x924   : > { %v3620_v7 = vrot.slane %v3584_v63, 2 }
 0x925   : > { %3752 = vst [vmem:[%s6527_s14 + $0x18] sm:$0xff] %v3744_v47  ;;  %v3738_v47 = vpop.f32.mrf.mxu2 }
 0x927   : > { %v3357_v14 = vpop.f32.mrf.mxu3 }
 0x928   : > { %v3455_v50 = vadd.f32 %v3454_v57, %v3357_v14 }
 0x929   : > { %v3558_v4 = vpop.f32.mrf.mxu0 }
 0x92a   : > { %v3585_v15 = vadd.f32 %v3558_v4, %v3445_v59  ;;  %v3739_v59 = vadd.f32 %v6514_v46, %v3738_v47 }
 0x92c   : > { %v3621_v30 = vrot.slane %v3585_v15, 2 }
 0x92e   : > { %v3622_v17 = vsel %vm6704_vm14, %v3620_v7, %v3621_v30 }
 0x92f   : > { %v3644_v43 = vadd.f32 %v3622_v17, %v6493_v16  ;;  %v3360_v33 = vpop.f32.mrf.mxu3 }
 0x931   : > { %v3656_v10 = vadd.f32 %v6519_v28, %v3644_v43  ;;  %v3561_v41 = vpop.f32.mrf.mxu0 }
 0x932   : > { %v3586_v25 = vadd.f32 %v3561_v41, %v3448_v2 }
 0x933   : > { %v3745_v20 = vadd.f32 %v3732_v44, %v3656_v10 }
 0x934   : > { %v3623_v49 = vrot.slane %v3586_v25, 2 }
 0x935   : > { %3753 = vst [vmem:[%s6527_s14 + $0x20] sm:$0xff] %v3745_v20 }
 0x937   : > { %v3362_v27 = vpop.f32.mrf.mxu3 }
 0x939   : > { %v3563_v29 = vpop.f32.mrf.mxu0 }
 0x93a   : > { %v3587_v56 = vadd.f32 %v3563_v29, %v3450_v53 }
 0x93c   : > { %v3624_v40 = vrot.slane %v3587_v56, 2 }
 0x93e   : > { %v3625_v16 = vsel %vm6705_vm0, %v3623_v49, %v3624_v40 }
 0x93f   : > { %v3645_v39 = vadd.f32 %v3625_v16, %v6499_v60  ;;  %v3457_v60 = vpop.f32.mrf.mxu1 }
 0x940   : > { %v3458_v35 = vadd.f32 %v3457_v60, %v3360_v33 }
 0x941   : > { %v3657_v37 = vadd.f32 %v6519_v28, %v3645_v39  ;;  %v3566_v42 = vpop.f32.mrf.mxu0 }
 0x942   : > { %v3588_v9 = vadd.f32 %v3566_v42, %v3453_v26 }
 0x943   : > { %v3746_v6 = vadd.f32 %v3734_v61, %v3657_v37 }
 0x944   : > { %v3626_v22 = vrot.slane %v3588_v9, 2 }
 0x945   : > { %3754 = vst [vmem:[%s6527_s14 + $0x28] sm:$0xff] %v3746_v6 }
 0x947   : > { %v3459_v11 = vpop.f32.mrf.mxu1 }
 0x948   : > { %v3460_v32 = vadd.f32 %v3459_v11, %v3362_v27 }
 0x949   : > { %v3568_v36 = vpop.f32.mrf.mxu0 }
 0x94a   : > { %v3589_v58 = vadd.f32 %v3568_v36, %v3455_v50 }
 0x94c   : > { %v3627_v31 = vrot.slane %v3589_v58, 2 }
 0x94e   : > { %v3628_v0 = vsel %vm6706_vm15, %v3626_v22, %v3627_v31 }
 0x94f   : > { %v3646_v38 = vadd.f32 %v3628_v0, %v6504_v51 }
 0x951   : > { %v3658_v8 = vadd.f32 %v6519_v28, %v3646_v38  ;;  %v3571_v52 = vpop.f32.mrf.mxu0 }
 0x952   : > { %v3590_v13 = vadd.f32 %v3571_v52, %v3458_v35 }
 0x953   : > { %v3747_v24 = vadd.f32 %v3737_v12, %v3658_v8 }
 0x954   : > { %v3629_v55 = vrot.slane %v3590_v13, 2 }
 0x955   : > { %3755 = vst [vmem:[%s6527_s14 + $0x30] sm:$0xff] %v3747_v24 }
 0x959   : > { %v3573_v45 = vpop.f32.mrf.mxu0 }
 0x95a   : > { %v3591_v18 = vadd.f32 %v3573_v45, %v3460_v32 }
 0x95c   : > { %v3630_v51 = vrot.slane %v3591_v18, 2 }
 0x95e   : > { %v3631_v62 = vsel %vm6708_vm5, %v3629_v55, %v3630_v51 }
 0x95f   : > { %v3647_v23 = vadd.f32 %v3631_v62, %v6509_v3 }
 0x961   : > { %v3659_v63 = vadd.f32 %v6519_v28, %v3647_v23 }
 0x963   : > { %v3748_v4 = vadd.f32 %v3739_v59, %v3659_v63 }
 0x965   : > { %3756 = vst [vmem:[%s6527_s14 + $0x38] sm:$0xff] %v3748_v4 }
 0x966   : > { %5047 = shalt.err (!%p5044_p5)
}
 0x967   : > { %s5116_s9 = smov 128   ;;  %s5117_s28 = smov 8  }
 0x968   : > { %4636 = dma.vmem_to_hbm [thread:$0]  (%p5289_p0), %s3771_s13, 1024, %s3773_s10, %s3758_s20, %s5116_s9, %s5116_s9, %s5117_s28  }
 0x969 PF: > { %s6709_s15 = sld [smem:[#allocation24_spill]]  ;;  %s3787_s0 = sand.u32 1, %s5090_s29  }
 0x96a   : > { %s3788_s22 = scalar_lea.sflag [#allocation6], %s3787_s0 }
 0x96f   : > { %p6710_p10 = scmp.ge.s32.totalorder %s6709_s15, 2 }
 0x971   : > { %p4662_p11 = pnand %p6710_p10, %p5297_p6 }
 0x973   : > { %p4663_p12 = pneg %p4662_p11 }
 0x975   : > { %5085 = dma.done.wait (%p4663_p12), %s3788_s22, 1024  }
 0x976   : > { %5087 = vsyncadd (%p4663_p12), %s3788_s22, 4294966272  ;;  %s6711_s16 = sld [smem:[#allocation25_spill]]  ;;  %s6714_s29 = smov %s5094_s30 }
 0x977   : > { %s6712_s21 = sld [smem:[#allocation23_spill]] }
 0x978   : > { %s6713_s15 = sld [smem:[#allocation26_spill]] }
 0x97c   : > { %p32_p2 = scmp.ge.s32.totalorder %s6711_s16, 4  }
 0x97d   : > { %s6715_s30 = smov %s6712_s21 }
 0x97e   :  { %34 = sbr.rel (!%p32_p2) target bundleno = 20 (0x14), region = 176 }
 0x983   :  { %3794 = vsyncpa [#allocation5], 1 }
 0x984   :  { %3796 = vsyncpa [#allocation5 + $0x1], 1 }
 0x985   :  { %3797 = vsyncpa [#allocation8], 1 }
 0x986   :  { %3799 = vsyncpa [#allocation8 + $0x1], 1 }
 0x987   :  { %3800 = vsyncpa [#allocation11], 1 }
 0x988   :  { %3801 = vsyncpa [#allocation14], 1 }
 0x989   :  { %3802 = vsyncpa [#allocation6], 1 }
 0x98a   :  { %3804 = vsyncpa [#allocation6 + $0x1], 1 }

</bundles_post_ra>
